<compile_context>
chip_gen: v7x
topology: tpu7x:2x2x1
jax: 0.10.0
libtpu: 0.0.40
codegen_flags: <defaults>
</compile_context>

<pallas_src>
import functools
import math

import jax
import jax.numpy as jnp
from jax.experimental import pallas as pl
from jax.experimental.pallas import tpu as pltpu

LN_EPS = 1e-5
_GELU_C = 0.7978845608028654  # sqrt(2/pi)


def _layer_norm_2d(v, gamma, beta):
    """PyTorch LayerNorm([N, C]) semantics: normalize over ALL elements of the
    2-D (per-batch) slice, then elementwise affine."""
    denom = float(v.shape[0] * v.shape[1])
    mu = jnp.sum(v, axis=1, keepdims=True)
    mu = jnp.sum(mu, axis=0, keepdims=True) / denom            # (1, 1)
    centered = v - mu
    var = jnp.sum(centered * centered, axis=1, keepdims=True)
    var = jnp.sum(var, axis=0, keepdims=True) / denom          # (1, 1)
    return centered * jax.lax.rsqrt(var + LN_EPS) * gamma + beta


def _self_attention_kernel(x_ref, ln1_g_ref, ln1_b_ref,
                           wq_ref, wk_ref, wv_ref,
                           bq_ref, bk_ref, bv_ref,
                           wo_ref, bo_ref,
                           ln2_g_ref, ln2_b_ref,
                           w1_ref, b1_ref, w2_ref, b2_ref,
                           o_ref, *, n_heads):
    f32, bf16 = jnp.float32, jnp.bfloat16

    # Channels-major activations: (C, N) — tokens on the 128-lane axis.
    x = x_ref[0].astype(f32)                        # (C, N)
    c, n_tok = x.shape
    d = c // n_heads
    scale = 1.0 / math.sqrt(d)

    # ---- LayerNorm 1 + QKV projection  (q_t = Wq @ x_ln_t  <=> x_ln @ Wq^T) --
    x_ln = _layer_norm_2d(x, ln1_g_ref[...], ln1_b_ref[...])
    x_ln_b = x_ln.astype(bf16)
    q = jnp.dot(wq_ref[...], x_ln_b, preferred_element_type=f32) + bq_ref[...]
    k = jnp.dot(wk_ref[...], x_ln_b, preferred_element_type=f32) + bk_ref[...]
    v = jnp.dot(wv_ref[...], x_ln_b, preferred_element_type=f32) + bv_ref[...]
    wo = wo_ref[...]                                # (C, C) bf16

    # ---- multi-head attention; out-projection accumulated per head ----------
    attn = None
    for h in range(n_heads):
        lo, hi = h * d, (h + 1) * d
        qh = (q[lo:hi, :] * scale).astype(bf16)     # (d, N)
        kh = k[lo:hi, :].astype(bf16)               # (d, N)
        vh = v[lo:hi, :].astype(bf16)               # (d, N)
        # s[i, j] = sum_d qh[d, i] * kh[d, j]
        s = jax.lax.dot_general(qh, kh, (((0,), (0,)), ((), ())),
                                preferred_element_type=f32)       # (N, N)
        s = s - jnp.max(s, axis=-1, keepdims=True)
        p = jnp.exp(s)
        p = p * pl.reciprocal(jnp.sum(p, axis=-1, keepdims=True), approx=True)
        # oh[d, i] = sum_j vh[d, j] * p[i, j]
        oh = jax.lax.dot_general(vh, p.astype(bf16), (((1,), (1,)), ((), ())),
                                 preferred_element_type=f32)      # (d, N)
        contrib = jnp.dot(wo[:, lo:hi], oh.astype(bf16),
                          preferred_element_type=f32)             # (C, N)
        attn = contrib if attn is None else attn + contrib
    attn = attn + bo_ref[...]

    h1 = attn + x                                   # residual 1

    # ---- feed-forward: LayerNorm -> Linear -> GELU -> Linear -----------------
    h_ln = _layer_norm_2d(h1, ln2_g_ref[...], ln2_b_ref[...])
    ff = jnp.dot(w1_ref[...], h_ln.astype(bf16), preferred_element_type=f32)
    ff = ff + b1_ref[...]
    # TODO(synk): PyTorch nn.GELU() default is the exact erf form; the tanh
    # approximation used here (EUP-friendly) differs by < 1e-3.
    ff = 0.5 * ff * (1.0 + jnp.tanh(_GELU_C * (ff + 0.044715 * ff * ff * ff)))
    ff = jnp.dot(w2_ref[...], ff.astype(bf16), preferred_element_type=f32)
    ff = ff + b2_ref[...]

    # Lane-dense store: (C, N), last dim N is a multiple of 128.
    o_ref[0] = (ff + h1).astype(o_ref.dtype)        # residual 2


def self_attention_forward(params, x, n_heads):
    """x: (B, C, H, W) float32 -> (B, C, H, W) float32."""
    B, C, H, W = x.shape
    N = H * W
    x_cn = x.reshape(B, C, N).astype(jnp.float32)   # free reshape, no transpose

    full2d = lambda r, c: pl.BlockSpec((r, c), lambda b: (0, 0))
    kernel = functools.partial(_self_attention_kernel, n_heads=n_heads)

    out_cn = pl.pallas_call(
        kernel,
        out_shape=jax.ShapeDtypeStruct((B, C, N), jnp.float32),
        grid=(B,),
        in_specs=[
            pl.BlockSpec((1, C, N), lambda b: (b, 0, 0)),   # x (channels-major)
            full2d(C, N), full2d(C, N),                     # ln1 gamma / beta
            full2d(C, C), full2d(C, C), full2d(C, C),       # Wq, Wk, Wv
            full2d(C, 1), full2d(C, 1), full2d(C, 1),       # bq, bk, bv
            full2d(C, C), full2d(C, 1),                     # Wo, bo
            full2d(C, N), full2d(C, N),                     # ln2 gamma / beta
            full2d(C, C), full2d(C, 1),                     # W1, b1
            full2d(C, C), full2d(C, 1),                     # W2, b2
        ],
        out_specs=pl.BlockSpec((1, C, N), lambda b: (b, 0, 0)),
        compiler_params=pltpu.CompilerParams(
            dimension_semantics=("parallel",),
            vmem_limit_bytes=32 * 1024 * 1024),
    )(x_cn,
      params["ln1_g"], params["ln1_b"],
      params["wq"], params["wk"], params["wv"],
      params["bq"], params["bk"], params["bv"],
      params["wo"], params["bo"],
      params["ln2_g"], params["ln2_b"],
      params["w1"], params["b1"],
      params["w2"], params["b2"])
    return out_cn.reshape(B, C, H, W)


# ----------------------------------------------------------------------------
# Synthetic parameters (kernel-ready layouts) + pure-JAX reference.
# ----------------------------------------------------------------------------
def make_self_attention_params(key, in_channels, size, n_heads):
    assert in_channels % n_heads == 0
    C, N = in_channels, size * size
    f32, bf16 = jnp.float32, jnp.bfloat16
    ks = jax.random.split(key, 12)
    in_proj_w = 0.15 * jax.random.normal(ks[0], (3 * C, C), f32)  # PyTorch (3C, C)
    in_proj_b = 0.05 * jax.random.normal(ks[1], (3 * C,), f32)
    return {
        # LayerNorm affine params stored channels-major (C, N) for the kernel.
        "ln1_g": 1.0 + 0.05 * jax.random.normal(ks[2], (C, N), f32),
        "ln1_b": 0.05 * jax.random.normal(ks[3], (C, N), f32),
        "ln2_g": 1.0 + 0.05 * jax.random.normal(ks[4], (C, N), f32),
        "ln2_b": 0.05 * jax.random.normal(ks[5], (C, N), f32),
        # Projection weights kept in native PyTorch (out, in) layout, bf16.
        "wq": in_proj_w[:C].astype(bf16),
        "wk": in_proj_w[C:2 * C].astype(bf16),
        "wv": in_proj_w[2 * C:].astype(bf16),
        "bq": in_proj_b[:C].reshape(C, 1),
        "bk": in_proj_b[C:2 * C].reshape(C, 1),
        "bv": in_proj_b[2 * C:].reshape(C, 1),
        "wo": (0.15 * jax.random.normal(ks[6], (C, C), f32)).astype(bf16),
        "bo": 0.05 * jax.random.normal(ks[7], (C, 1), f32),
        "w1": (0.15 * jax.random.normal(ks[8], (C, C), f32)).astype(bf16),
        "b1": 0.05 * jax.random.normal(ks[9], (C, 1), f32),
        "w2": (0.15 * jax.random.normal(ks[10], (C, C), f32)).astype(bf16),
        "b2": 0.05 * jax.random.normal(ks[11], (C, 1), f32),
    }


def reference_forward(params, x, n_heads):
    """Pure-JAX f32 reference with PyTorch MHA / LayerNorm semantics."""
    f32 = jnp.float32
    B, C, H, W = x.shape
    N = H * W
    xs = x.reshape(B, C, N).transpose(0, 2, 1).astype(f32)     # (B, N, C)

    def ln(v, g, b):
        mu = jnp.mean(v, axis=(1, 2), keepdims=True)
        var = jnp.mean(jnp.square(v - mu), axis=(1, 2), keepdims=True)
        return (v - mu) / jnp.sqrt(var + LN_EPS) * g + b

    f = lambda name: params[name].astype(f32)
    wq, wk, wv, wo, w1, w2 = f("wq"), f("wk"), f("wv"), f("wo"), f("w1"), f("w2")
    bq, bk, bv = f("bq")[:, 0], f("bk")[:, 0], f("bv")[:, 0]
    bo, b1, b2 = f("bo")[:, 0], f("b1")[:, 0], f("b2")[:, 0]

    x_ln = ln(xs, f("ln1_g").T, f("ln1_b").T)
    q = x_ln @ wq.T + bq
    k = x_ln @ wk.T + bk
    v = x_ln @ wv.T + bv
    d = C // n_heads
    qh = q.reshape(B, N, n_heads, d).transpose(0, 2, 1, 3)
    kh = k.reshape(B, N, n_heads, d).transpose(0, 2, 1, 3)
    vh = v.reshape(B, N, n_heads, d).transpose(0, 2, 1, 3)
    s = jnp.einsum("bhnd,bhmd->bhnm", qh, kh) / math.sqrt(d)
    pattn = jax.nn.softmax(s, axis=-1)
    o = jnp.einsum("bhnm,bhmd->bhnd", pattn, vh)
    o = o.transpose(0, 2, 1, 3).reshape(B, N, C)
    attn = o @ wo.T + bo
    h1 = attn + xs
    h_ln = ln(h1, f("ln2_g").T, f("ln2_b").T)
    ff = h_ln @ w1.T + b1
    ff = 0.5 * ff * (1.0 + jnp.tanh(_GELU_C * (ff + 0.044715 * ff ** 3)))
    ff = ff @ w2.T + b2
    out = ff + h1
    return out.transpose(0, 2, 1).reshape(B, C, H, W)


# ----------------------------------------------------------------------------
if __name__ == "__main__":
    key = jax.random.PRNGKey(0)
    k_param, k_in = jax.random.split(key)

    # SelfAttention(in_channels=32, size=16, n_heads=4) on a (2, 32, 16, 16) input.
    batch, in_channels, size, n_heads = 2, 32, 16, 4

    params = make_self_attention_params(k_param, in_channels, size, n_heads)
    x = jax.random.normal(k_in, (batch, in_channels, size, size), jnp.float32)

    fwd = jax.jit(self_attention_forward, static_argnames="n_heads")
    out = fwd(params, x, n_heads=n_heads)
    out = jax.block_until_ready(out)

    assert out.shape == (batch, in_channels, size, size), out.shape
    assert bool(jnp.all(jnp.isfinite(out)))

    ref = reference_forward(params, x, n_heads)
    max_err = float(jnp.max(jnp.abs(out - ref)))
    assert max_err < 1e-1, f"max abs error vs reference: {max_err}"

    print("KERNEL_OK")
</pallas_src>

<mosaic_0001>
module attributes {stable_mosaic.version = 11 : i64} {
  func.func @_self_attention_kernel(%arg0: i32, %arg1: memref<1x32x256xf32, #tpu.memory_space<vmem>>, %arg2: memref<32x256xf32, #tpu.memory_space<vmem>>, %arg3: memref<32x256xf32, #tpu.memory_space<vmem>>, %arg4: memref<32x32xbf16, #tpu.memory_space<vmem>>, %arg5: memref<32x32xbf16, #tpu.memory_space<vmem>>, %arg6: memref<32x32xbf16, #tpu.memory_space<vmem>>, %arg7: memref<32x1xf32, #tpu.memory_space<vmem>>, %arg8: memref<32x1xf32, #tpu.memory_space<vmem>>, %arg9: memref<32x1xf32, #tpu.memory_space<vmem>>, %arg10: memref<32x32xbf16, #tpu.memory_space<vmem>>, %arg11: memref<32x1xf32, #tpu.memory_space<vmem>>, %arg12: memref<32x256xf32, #tpu.memory_space<vmem>>, %arg13: memref<32x256xf32, #tpu.memory_space<vmem>>, %arg14: memref<32x32xbf16, #tpu.memory_space<vmem>>, %arg15: memref<32x1xf32, #tpu.memory_space<vmem>>, %arg16: memref<32x32xbf16, #tpu.memory_space<vmem>>, %arg17: memref<32x1xf32, #tpu.memory_space<vmem>>, %arg18: memref<1x32x256xf32, #tpu.memory_space<vmem>>) attributes {dimension_semantics = [#tpu.dimension_semantics<parallel>], iteration_bounds = array<i64: 2>, scalar_prefetch = 0 : i64, scratch_operands = 0 : i64, tpu.core_type = #tpu.core_type<tc>, window_params = [{transform_indices = @transform_0, window_bounds = array<i64: 1, 32, 256>}, {pipeline_mode = #tpu.pipeline_mode<synchronous>, transform_indices = @transform_1, window_bounds = array<i64: 32, 256>}, {pipeline_mode = #tpu.pipeline_mode<synchronous>, transform_indices = @transform_2, window_bounds = array<i64: 32, 256>}, {pipeline_mode = #tpu.pipeline_mode<synchronous>, transform_indices = @transform_3, window_bounds = array<i64: 32, 32>}, {pipeline_mode = #tpu.pipeline_mode<synchronous>, transform_indices = @transform_4, window_bounds = array<i64: 32, 32>}, {pipeline_mode = #tpu.pipeline_mode<synchronous>, transform_indices = @transform_5, window_bounds = array<i64: 32, 32>}, {pipeline_mode = #tpu.pipeline_mode<synchronous>, transform_indices = @transform_6, window_bounds = array<i64: 32, 1>}, {pipeline_mode = #tpu.pipeline_mode<synchronous>, transform_indices = @transform_7, window_bounds = array<i64: 32, 1>}, {pipeline_mode = #tpu.pipeline_mode<synchronous>, transform_indices = @transform_8, window_bounds = array<i64: 32, 1>}, {pipeline_mode = #tpu.pipeline_mode<synchronous>, transform_indices = @transform_9, window_bounds = array<i64: 32, 32>}, {pipeline_mode = #tpu.pipeline_mode<synchronous>, transform_indices = @transform_10, window_bounds = array<i64: 32, 1>}, {pipeline_mode = #tpu.pipeline_mode<synchronous>, transform_indices = @transform_11, window_bounds = array<i64: 32, 256>}, {pipeline_mode = #tpu.pipeline_mode<synchronous>, transform_indices = @transform_12, window_bounds = array<i64: 32, 256>}, {pipeline_mode = #tpu.pipeline_mode<synchronous>, transform_indices = @transform_13, window_bounds = array<i64: 32, 32>}, {pipeline_mode = #tpu.pipeline_mode<synchronous>, transform_indices = @transform_14, window_bounds = array<i64: 32, 1>}, {pipeline_mode = #tpu.pipeline_mode<synchronous>, transform_indices = @transform_15, window_bounds = array<i64: 32, 32>}, {pipeline_mode = #tpu.pipeline_mode<synchronous>, transform_indices = @transform_16, window_bounds = array<i64: 32, 1>}, {transform_indices = @transform_17, window_bounds = array<i64: 1, 32, 256>}]} {
    %c0 = arith.constant 0 : index
    %c0_0 = arith.constant 0 : index
    %c0_1 = arith.constant 0 : index
    %0 = vector.load %arg1[%c0, %c0_0, %c0_1] : memref<1x32x256xf32, #tpu.memory_space<vmem>>, vector<1x32x256xf32>
    %1 = vector.shape_cast %0 : vector<1x32x256xf32> to vector<32x256xf32>
    %c0_2 = arith.constant 0 : index
    %c0_3 = arith.constant 0 : index
    %2 = vector.load %arg2[%c0_2, %c0_3] : memref<32x256xf32, #tpu.memory_space<vmem>>, vector<32x256xf32>
    %c0_4 = arith.constant 0 : index
    %c0_5 = arith.constant 0 : index
    %3 = vector.load %arg3[%c0_4, %c0_5] : memref<32x256xf32, #tpu.memory_space<vmem>>, vector<32x256xf32>
    %cst = arith.constant dense<0.000000e+00> : vector<32xf32>
    %4 = vector.multi_reduction <add>, %1, %cst [1] : vector<32x256xf32> to vector<32xf32>
    %5 = vector.shape_cast %4 : vector<32xf32> to vector<32x1xf32>
    %cst_6 = arith.constant dense<0.000000e+00> : vector<1xf32>
    %6 = vector.multi_reduction <add>, %5, %cst_6 [0] : vector<32x1xf32> to vector<1xf32>
    %7 = vector.shape_cast %6 : vector<1xf32> to vector<1x1xf32>
    %cst_7 = arith.constant 8.192000e+03 : f32
    %8 = vector.broadcast %cst_7 : f32 to vector<1x1xf32>
    %9 = arith.divf %7, %8 : vector<1x1xf32>
    %10 = vector.broadcast %9 : vector<1x1xf32> to vector<32x256xf32>
    %11 = arith.subf %1, %10 : vector<32x256xf32>
    %12 = arith.mulf %11, %11 : vector<32x256xf32>
    %cst_8 = arith.constant dense<0.000000e+00> : vector<32xf32>
    %13 = vector.multi_reduction <add>, %12, %cst_8 [1] : vector<32x256xf32> to vector<32xf32>
    %14 = vector.shape_cast %13 : vector<32xf32> to vector<32x1xf32>
    %cst_9 = arith.constant dense<0.000000e+00> : vector<1xf32>
    %15 = vector.multi_reduction <add>, %14, %cst_9 [0] : vector<32x1xf32> to vector<1xf32>
    %16 = vector.shape_cast %15 : vector<1xf32> to vector<1x1xf32>
    %cst_10 = arith.constant 8.192000e+03 : f32
    %17 = vector.broadcast %cst_10 : f32 to vector<1x1xf32>
    %18 = arith.divf %16, %17 : vector<1x1xf32>
    %cst_11 = arith.constant 9.99999974E-6 : f32
    %19 = vector.broadcast %cst_11 : f32 to vector<1x1xf32>
    %20 = arith.addf %18, %19 : vector<1x1xf32>
    %21 = math.rsqrt %20 : vector<1x1xf32>
    %22 = vector.broadcast %21 : vector<1x1xf32> to vector<32x256xf32>
    %23 = arith.mulf %11, %22 : vector<32x256xf32>
    %24 = arith.mulf %23, %2 : vector<32x256xf32>
    %25 = arith.addf %24, %3 : vector<32x256xf32>
    %26 = arith.truncf %25 : vector<32x256xf32> to vector<32x256xbf16>
    %c0_12 = arith.constant 0 : index
    %c0_13 = arith.constant 0 : index
    %27 = vector.load %arg4[%c0_12, %c0_13] : memref<32x32xbf16, #tpu.memory_space<vmem>>, vector<32x32xbf16>
    %cst_14 = arith.constant dense<0.000000e+00> : vector<32x256xf32>
    %28 = tpu.matmul %27, %26, %cst_14 {dimension_numbers = #tpu.dot_dimension_numbers<[1], [0], [0], [1], [0, 0, 1, 1], [], []>} : vector<32x32xbf16>, vector<32x256xbf16>, vector<32x256xf32> -> vector<32x256xf32>
    %c0_15 = arith.constant 0 : index
    %c0_16 = arith.constant 0 : index
    %29 = vector.load %arg7[%c0_15, %c0_16] : memref<32x1xf32, #tpu.memory_space<vmem>>, vector<32x1xf32>
    %30 = vector.broadcast %29 : vector<32x1xf32> to vector<32x256xf32>
    %31 = arith.addf %28, %30 : vector<32x256xf32>
    %c0_17 = arith.constant 0 : index
    %c0_18 = arith.constant 0 : index
    %32 = vector.load %arg5[%c0_17, %c0_18] : memref<32x32xbf16, #tpu.memory_space<vmem>>, vector<32x32xbf16>
    %cst_19 = arith.constant dense<0.000000e+00> : vector<32x256xf32>
    %33 = tpu.matmul %32, %26, %cst_19 {dimension_numbers = #tpu.dot_dimension_numbers<[1], [0], [0], [1], [0, 0, 1, 1], [], []>} : vector<32x32xbf16>, vector<32x256xbf16>, vector<32x256xf32> -> vector<32x256xf32>
    %c0_20 = arith.constant 0 : index
    %c0_21 = arith.constant 0 : index
    %34 = vector.load %arg8[%c0_20, %c0_21] : memref<32x1xf32, #tpu.memory_space<vmem>>, vector<32x1xf32>
    %35 = vector.broadcast %34 : vector<32x1xf32> to vector<32x256xf32>
    %36 = arith.addf %33, %35 : vector<32x256xf32>
    %c0_22 = arith.constant 0 : index
    %c0_23 = arith.constant 0 : index
    %37 = vector.load %arg6[%c0_22, %c0_23] : memref<32x32xbf16, #tpu.memory_space<vmem>>, vector<32x32xbf16>
    %cst_24 = arith.constant dense<0.000000e+00> : vector<32x256xf32>
    %38 = tpu.matmul %37, %26, %cst_24 {dimension_numbers = #tpu.dot_dimension_numbers<[1], [0], [0], [1], [0, 0, 1, 1], [], []>} : vector<32x32xbf16>, vector<32x256xbf16>, vector<32x256xf32> -> vector<32x256xf32>
    %c0_25 = arith.constant 0 : index
    %c0_26 = arith.constant 0 : index
    %39 = vector.load %arg9[%c0_25, %c0_26] : memref<32x1xf32, #tpu.memory_space<vmem>>, vector<32x1xf32>
    %40 = vector.broadcast %39 : vector<32x1xf32> to vector<32x256xf32>
    %41 = arith.addf %38, %40 : vector<32x256xf32>
    %c0_27 = arith.constant 0 : index
    %c0_28 = arith.constant 0 : index
    %42 = vector.load %arg10[%c0_27, %c0_28] : memref<32x32xbf16, #tpu.memory_space<vmem>>, vector<32x32xbf16>
    %43 = vector.extract_strided_slice %31 {offsets = [0, 0], sizes = [8, 256], strides = [1, 1]} : vector<32x256xf32> to vector<8x256xf32>
    %cst_29 = arith.constant 0.353553385 : f32
    %44 = vector.broadcast %cst_29 : f32 to vector<8x256xf32>
    %45 = arith.mulf %43, %44 : vector<8x256xf32>
    %46 = arith.truncf %45 : vector<8x256xf32> to vector<8x256xbf16>
    %47 = vector.extract_strided_slice %36 {offsets = [0, 0], sizes = [8, 256], strides = [1, 1]} : vector<32x256xf32> to vector<8x256xf32>
    %48 = arith.truncf %47 : vector<8x256xf32> to vector<8x256xbf16>
    %49 = vector.extract_strided_slice %41 {offsets = [0, 0], sizes = [8, 256], strides = [1, 1]} : vector<32x256xf32> to vector<8x256xf32>
    %50 = arith.truncf %49 : vector<8x256xf32> to vector<8x256xbf16>
    %cst_30 = arith.constant dense<0.000000e+00> : vector<256x256xf32>
    %51 = tpu.matmul %46, %48, %cst_30 {dimension_numbers = #tpu.dot_dimension_numbers<[0], [0], [1], [1], [0, 1, 1, 1], [], []>} : vector<8x256xbf16>, vector<8x256xbf16>, vector<256x256xf32> -> vector<256x256xf32>
    %cst_31 = arith.constant dense<0xFF800000> : vector<256xf32>
    %52 = vector.multi_reduction <maximumf>, %51, %cst_31 [1] : vector<256x256xf32> to vector<256xf32>
    %53 = vector.shape_cast %52 : vector<256xf32> to vector<256x1xf32>
    %54 = vector.broadcast %53 : vector<256x1xf32> to vector<256x256xf32>
    %55 = arith.subf %51, %54 : vector<256x256xf32>
    %56 = math.exp %55 : vector<256x256xf32>
    %cst_32 = arith.constant dense<0.000000e+00> : vector<256xf32>
    %57 = vector.multi_reduction <add>, %56, %cst_32 [1] : vector<256x256xf32> to vector<256xf32>
    %58 = vector.shape_cast %57 : vector<256xf32> to vector<256x1xf32>
    %59 = tpu.reciprocal %58 {approx = true} : vector<256x1xf32> -> vector<256x1xf32>
    %60 = vector.broadcast %59 : vector<256x1xf32> to vector<256x256xf32>
    %61 = arith.mulf %56, %60 : vector<256x256xf32>
    %62 = arith.truncf %61 : vector<256x256xf32> to vector<256x256xbf16>
    %cst_33 = arith.constant dense<0.000000e+00> : vector<8x256xf32>
    %63 = tpu.matmul %50, %62, %cst_33 {dimension_numbers = #tpu.dot_dimension_numbers<[1], [1], [0], [0], [0, 0, 1, 0], [], []>} : vector<8x256xbf16>, vector<256x256xbf16>, vector<8x256xf32> -> vector<8x256xf32>
    %64 = vector.extract_strided_slice %42 {offsets = [0, 0], sizes = [32, 8], strides = [1, 1]} : vector<32x32xbf16> to vector<32x8xbf16>
    %65 = arith.truncf %63 : vector<8x256xf32> to vector<8x256xbf16>
    %cst_34 = arith.constant dense<0.000000e+00> : vector<32x256xf32>
    %66 = tpu.matmul %64, %65, %cst_34 {dimension_numbers = #tpu.dot_dimension_numbers<[1], [0], [0], [1], [0, 0, 1, 1], [], []>} : vector<32x8xbf16>, vector<8x256xbf16>, vector<32x256xf32> -> vector<32x256xf32>
    %67 = vector.extract_strided_slice %31 {offsets = [8, 0], sizes = [8, 256], strides = [1, 1]} : vector<32x256xf32> to vector<8x256xf32>
    %cst_35 = arith.constant 0.353553385 : f32
    %68 = vector.broadcast %cst_35 : f32 to vector<8x256xf32>
    %69 = arith.mulf %67, %68 : vector<8x256xf32>
    %70 = arith.truncf %69 : vector<8x256xf32> to vector<8x256xbf16>
    %71 = vector.extract_strided_slice %36 {offsets = [8, 0], sizes = [8, 256], strides = [1, 1]} : vector<32x256xf32> to vector<8x256xf32>
    %72 = arith.truncf %71 : vector<8x256xf32> to vector<8x256xbf16>
    %73 = vector.extract_strided_slice %41 {offsets = [8, 0], sizes = [8, 256], strides = [1, 1]} : vector<32x256xf32> to vector<8x256xf32>
    %74 = arith.truncf %73 : vector<8x256xf32> to vector<8x256xbf16>
    %cst_36 = arith.constant dense<0.000000e+00> : vector<256x256xf32>
    %75 = tpu.matmul %70, %72, %cst_36 {dimension_numbers = #tpu.dot_dimension_numbers<[0], [0], [1], [1], [0, 1, 1, 1], [], []>} : vector<8x256xbf16>, vector<8x256xbf16>, vector<256x256xf32> -> vector<256x256xf32>
    %cst_37 = arith.constant dense<0xFF800000> : vector<256xf32>
    %76 = vector.multi_reduction <maximumf>, %75, %cst_37 [1] : vector<256x256xf32> to vector<256xf32>
    %77 = vector.shape_cast %76 : vector<256xf32> to vector<256x1xf32>
    %78 = vector.broadcast %77 : vector<256x1xf32> to vector<256x256xf32>
    %79 = arith.subf %75, %78 : vector<256x256xf32>
    %80 = math.exp %79 : vector<256x256xf32>
    %cst_38 = arith.constant dense<0.000000e+00> : vector<256xf32>
    %81 = vector.multi_reduction <add>, %80, %cst_38 [1] : vector<256x256xf32> to vector<256xf32>
    %82 = vector.shape_cast %81 : vector<256xf32> to vector<256x1xf32>
    %83 = tpu.reciprocal %82 {approx = true} : vector<256x1xf32> -> vector<256x1xf32>
    %84 = vector.broadcast %83 : vector<256x1xf32> to vector<256x256xf32>
    %85 = arith.mulf %80, %84 : vector<256x256xf32>
    %86 = arith.truncf %85 : vector<256x256xf32> to vector<256x256xbf16>
    %cst_39 = arith.constant dense<0.000000e+00> : vector<8x256xf32>
    %87 = tpu.matmul %74, %86, %cst_39 {dimension_numbers = #tpu.dot_dimension_numbers<[1], [1], [0], [0], [0, 0, 1, 0], [], []>} : vector<8x256xbf16>, vector<256x256xbf16>, vector<8x256xf32> -> vector<8x256xf32>
    %88 = vector.extract_strided_slice %42 {offsets = [0, 8], sizes = [32, 8], strides = [1, 1]} : vector<32x32xbf16> to vector<32x8xbf16>
    %89 = arith.truncf %87 : vector<8x256xf32> to vector<8x256xbf16>
    %cst_40 = arith.constant dense<0.000000e+00> : vector<32x256xf32>
    %90 = tpu.matmul %88, %89, %cst_40 {dimension_numbers = #tpu.dot_dimension_numbers<[1], [0], [0], [1], [0, 0, 1, 1], [], []>} : vector<32x8xbf16>, vector<8x256xbf16>, vector<32x256xf32> -> vector<32x256xf32>
    %91 = arith.addf %66, %90 : vector<32x256xf32>
    %92 = vector.extract_strided_slice %31 {offsets = [16, 0], sizes = [8, 256], strides = [1, 1]} : vector<32x256xf32> to vector<8x256xf32>
    %cst_41 = arith.constant 0.353553385 : f32
    %93 = vector.broadcast %cst_41 : f32 to vector<8x256xf32>
    %94 = arith.mulf %92, %93 : vector<8x256xf32>
    %95 = arith.truncf %94 : vector<8x256xf32> to vector<8x256xbf16>
    %96 = vector.extract_strided_slice %36 {offsets = [16, 0], sizes = [8, 256], strides = [1, 1]} : vector<32x256xf32> to vector<8x256xf32>
    %97 = arith.truncf %96 : vector<8x256xf32> to vector<8x256xbf16>
    %98 = vector.extract_strided_slice %41 {offsets = [16, 0], sizes = [8, 256], strides = [1, 1]} : vector<32x256xf32> to vector<8x256xf32>
    %99 = arith.truncf %98 : vector<8x256xf32> to vector<8x256xbf16>
    %cst_42 = arith.constant dense<0.000000e+00> : vector<256x256xf32>
    %100 = tpu.matmul %95, %97, %cst_42 {dimension_numbers = #tpu.dot_dimension_numbers<[0], [0], [1], [1], [0, 1, 1, 1], [], []>} : vector<8x256xbf16>, vector<8x256xbf16>, vector<256x256xf32> -> vector<256x256xf32>
    %cst_43 = arith.constant dense<0xFF800000> : vector<256xf32>
    %101 = vector.multi_reduction <maximumf>, %100, %cst_43 [1] : vector<256x256xf32> to vector<256xf32>
    %102 = vector.shape_cast %101 : vector<256xf32> to vector<256x1xf32>
    %103 = vector.broadcast %102 : vector<256x1xf32> to vector<256x256xf32>
    %104 = arith.subf %100, %103 : vector<256x256xf32>
    %105 = math.exp %104 : vector<256x256xf32>
    %cst_44 = arith.constant dense<0.000000e+00> : vector<256xf32>
    %106 = vector.multi_reduction <add>, %105, %cst_44 [1] : vector<256x256xf32> to vector<256xf32>
    %107 = vector.shape_cast %106 : vector<256xf32> to vector<256x1xf32>
    %108 = tpu.reciprocal %107 {approx = true} : vector<256x1xf32> -> vector<256x1xf32>
    %109 = vector.broadcast %108 : vector<256x1xf32> to vector<256x256xf32>
    %110 = arith.mulf %105, %109 : vector<256x256xf32>
    %111 = arith.truncf %110 : vector<256x256xf32> to vector<256x256xbf16>
    %cst_45 = arith.constant dense<0.000000e+00> : vector<8x256xf32>
    %112 = tpu.matmul %99, %111, %cst_45 {dimension_numbers = #tpu.dot_dimension_numbers<[1], [1], [0], [0], [0, 0, 1, 0], [], []>} : vector<8x256xbf16>, vector<256x256xbf16>, vector<8x256xf32> -> vector<8x256xf32>
    %113 = vector.extract_strided_slice %42 {offsets = [0, 16], sizes = [32, 8], strides = [1, 1]} : vector<32x32xbf16> to vector<32x8xbf16>
    %114 = arith.truncf %112 : vector<8x256xf32> to vector<8x256xbf16>
    %cst_46 = arith.constant dense<0.000000e+00> : vector<32x256xf32>
    %115 = tpu.matmul %113, %114, %cst_46 {dimension_numbers = #tpu.dot_dimension_numbers<[1], [0], [0], [1], [0, 0, 1, 1], [], []>} : vector<32x8xbf16>, vector<8x256xbf16>, vector<32x256xf32> -> vector<32x256xf32>
    %116 = arith.addf %91, %115 : vector<32x256xf32>
    %117 = vector.extract_strided_slice %31 {offsets = [24, 0], sizes = [8, 256], strides = [1, 1]} : vector<32x256xf32> to vector<8x256xf32>
    %cst_47 = arith.constant 0.353553385 : f32
    %118 = vector.broadcast %cst_47 : f32 to vector<8x256xf32>
    %119 = arith.mulf %117, %118 : vector<8x256xf32>
    %120 = arith.truncf %119 : vector<8x256xf32> to vector<8x256xbf16>
    %121 = vector.extract_strided_slice %36 {offsets = [24, 0], sizes = [8, 256], strides = [1, 1]} : vector<32x256xf32> to vector<8x256xf32>
    %122 = arith.truncf %121 : vector<8x256xf32> to vector<8x256xbf16>
    %123 = vector.extract_strided_slice %41 {offsets = [24, 0], sizes = [8, 256], strides = [1, 1]} : vector<32x256xf32> to vector<8x256xf32>
    %124 = arith.truncf %123 : vector<8x256xf32> to vector<8x256xbf16>
    %cst_48 = arith.constant dense<0.000000e+00> : vector<256x256xf32>
    %125 = tpu.matmul %120, %122, %cst_48 {dimension_numbers = #tpu.dot_dimension_numbers<[0], [0], [1], [1], [0, 1, 1, 1], [], []>} : vector<8x256xbf16>, vector<8x256xbf16>, vector<256x256xf32> -> vector<256x256xf32>
    %cst_49 = arith.constant dense<0xFF800000> : vector<256xf32>
    %126 = vector.multi_reduction <maximumf>, %125, %cst_49 [1] : vector<256x256xf32> to vector<256xf32>
    %127 = vector.shape_cast %126 : vector<256xf32> to vector<256x1xf32>
    %128 = vector.broadcast %127 : vector<256x1xf32> to vector<256x256xf32>
    %129 = arith.subf %125, %128 : vector<256x256xf32>
    %130 = math.exp %129 : vector<256x256xf32>
    %cst_50 = arith.constant dense<0.000000e+00> : vector<256xf32>
    %131 = vector.multi_reduction <add>, %130, %cst_50 [1] : vector<256x256xf32> to vector<256xf32>
    %132 = vector.shape_cast %131 : vector<256xf32> to vector<256x1xf32>
    %133 = tpu.reciprocal %132 {approx = true} : vector<256x1xf32> -> vector<256x1xf32>
    %134 = vector.broadcast %133 : vector<256x1xf32> to vector<256x256xf32>
    %135 = arith.mulf %130, %134 : vector<256x256xf32>
    %136 = arith.truncf %135 : vector<256x256xf32> to vector<256x256xbf16>
    %cst_51 = arith.constant dense<0.000000e+00> : vector<8x256xf32>
    %137 = tpu.matmul %124, %136, %cst_51 {dimension_numbers = #tpu.dot_dimension_numbers<[1], [1], [0], [0], [0, 0, 1, 0], [], []>} : vector<8x256xbf16>, vector<256x256xbf16>, vector<8x256xf32> -> vector<8x256xf32>
    %138 = vector.extract_strided_slice %42 {offsets = [0, 24], sizes = [32, 8], strides = [1, 1]} : vector<32x32xbf16> to vector<32x8xbf16>
    %139 = arith.truncf %137 : vector<8x256xf32> to vector<8x256xbf16>
    %cst_52 = arith.constant dense<0.000000e+00> : vector<32x256xf32>
    %140 = tpu.matmul %138, %139, %cst_52 {dimension_numbers = #tpu.dot_dimension_numbers<[1], [0], [0], [1], [0, 0, 1, 1], [], []>} : vector<32x8xbf16>, vector<8x256xbf16>, vector<32x256xf32> -> vector<32x256xf32>
    %141 = arith.addf %116, %140 : vector<32x256xf32>
    %c0_53 = arith.constant 0 : index
    %c0_54 = arith.constant 0 : index
    %142 = vector.load %arg11[%c0_53, %c0_54] : memref<32x1xf32, #tpu.memory_space<vmem>>, vector<32x1xf32>
    %143 = vector.broadcast %142 : vector<32x1xf32> to vector<32x256xf32>
    %144 = arith.addf %141, %143 : vector<32x256xf32>
    %145 = arith.addf %144, %1 : vector<32x256xf32>
    %c0_55 = arith.constant 0 : index
    %c0_56 = arith.constant 0 : index
    %146 = vector.load %arg12[%c0_55, %c0_56] : memref<32x256xf32, #tpu.memory_space<vmem>>, vector<32x256xf32>
    %c0_57 = arith.constant 0 : index
    %c0_58 = arith.constant 0 : index
    %147 = vector.load %arg13[%c0_57, %c0_58] : memref<32x256xf32, #tpu.memory_space<vmem>>, vector<32x256xf32>
    %cst_59 = arith.constant dense<0.000000e+00> : vector<32xf32>
    %148 = vector.multi_reduction <add>, %145, %cst_59 [1] : vector<32x256xf32> to vector<32xf32>
    %149 = vector.shape_cast %148 : vector<32xf32> to vector<32x1xf32>
    %cst_60 = arith.constant dense<0.000000e+00> : vector<1xf32>
    %150 = vector.multi_reduction <add>, %149, %cst_60 [0] : vector<32x1xf32> to vector<1xf32>
    %151 = vector.shape_cast %150 : vector<1xf32> to vector<1x1xf32>
    %cst_61 = arith.constant 8.192000e+03 : f32
    %152 = vector.broadcast %cst_61 : f32 to vector<1x1xf32>
    %153 = arith.divf %151, %152 : vector<1x1xf32>
    %154 = vector.broadcast %153 : vector<1x1xf32> to vector<32x256xf32>
    %155 = arith.subf %145, %154 : vector<32x256xf32>
    %156 = arith.mulf %155, %155 : vector<32x256xf32>
    %cst_62 = arith.constant dense<0.000000e+00> : vector<32xf32>
    %157 = vector.multi_reduction <add>, %156, %cst_62 [1] : vector<32x256xf32> to vector<32xf32>
    %158 = vector.shape_cast %157 : vector<32xf32> to vector<32x1xf32>
    %cst_63 = arith.constant dense<0.000000e+00> : vector<1xf32>
    %159 = vector.multi_reduction <add>, %158, %cst_63 [0] : vector<32x1xf32> to vector<1xf32>
    %160 = vector.shape_cast %159 : vector<1xf32> to vector<1x1xf32>
    %cst_64 = arith.constant 8.192000e+03 : f32
    %161 = vector.broadcast %cst_64 : f32 to vector<1x1xf32>
    %162 = arith.divf %160, %161 : vector<1x1xf32>
    %cst_65 = arith.constant 9.99999974E-6 : f32
    %163 = vector.broadcast %cst_65 : f32 to vector<1x1xf32>
    %164 = arith.addf %162, %163 : vector<1x1xf32>
    %165 = math.rsqrt %164 : vector<1x1xf32>
    %166 = vector.broadcast %165 : vector<1x1xf32> to vector<32x256xf32>
    %167 = arith.mulf %155, %166 : vector<32x256xf32>
    %168 = arith.mulf %167, %146 : vector<32x256xf32>
    %169 = arith.addf %168, %147 : vector<32x256xf32>
    %c0_66 = arith.constant 0 : index
    %c0_67 = arith.constant 0 : index
    %170 = vector.load %arg14[%c0_66, %c0_67] : memref<32x32xbf16, #tpu.memory_space<vmem>>, vector<32x32xbf16>
    %171 = arith.truncf %169 : vector<32x256xf32> to vector<32x256xbf16>
    %cst_68 = arith.constant dense<0.000000e+00> : vector<32x256xf32>
    %172 = tpu.matmul %170, %171, %cst_68 {dimension_numbers = #tpu.dot_dimension_numbers<[1], [0], [0], [1], [0, 0, 1, 1], [], []>} : vector<32x32xbf16>, vector<32x256xbf16>, vector<32x256xf32> -> vector<32x256xf32>
    %c0_69 = arith.constant 0 : index
    %c0_70 = arith.constant 0 : index
    %173 = vector.load %arg15[%c0_69, %c0_70] : memref<32x1xf32, #tpu.memory_space<vmem>>, vector<32x1xf32>
    %174 = vector.broadcast %173 : vector<32x1xf32> to vector<32x256xf32>
    %175 = arith.addf %172, %174 : vector<32x256xf32>
    %cst_71 = arith.constant 5.000000e-01 : f32
    %176 = vector.broadcast %cst_71 : f32 to vector<32x256xf32>
    %177 = arith.mulf %176, %175 : vector<32x256xf32>
    %cst_72 = arith.constant 4.471500e-02 : f32
    %178 = vector.broadcast %cst_72 : f32 to vector<32x256xf32>
    %179 = arith.mulf %178, %175 : vector<32x256xf32>
    %180 = arith.mulf %179, %175 : vector<32x256xf32>
    %181 = arith.mulf %180, %175 : vector<32x256xf32>
    %182 = arith.addf %175, %181 : vector<32x256xf32>
    %cst_73 = arith.constant 0.797884583 : f32
    %183 = vector.broadcast %cst_73 : f32 to vector<32x256xf32>
    %184 = arith.mulf %183, %182 : vector<32x256xf32>
    %185 = math.tanh %184 : vector<32x256xf32>
    %cst_74 = arith.constant 1.000000e+00 : f32
    %186 = vector.broadcast %cst_74 : f32 to vector<32x256xf32>
    %187 = arith.addf %186, %185 : vector<32x256xf32>
    %188 = arith.mulf %177, %187 : vector<32x256xf32>
    %c0_75 = arith.constant 0 : index
    %c0_76 = arith.constant 0 : index
    %189 = vector.load %arg16[%c0_75, %c0_76] : memref<32x32xbf16, #tpu.memory_space<vmem>>, vector<32x32xbf16>
    %190 = arith.truncf %188 : vector<32x256xf32> to vector<32x256xbf16>
    %cst_77 = arith.constant dense<0.000000e+00> : vector<32x256xf32>
    %191 = tpu.matmul %189, %190, %cst_77 {dimension_numbers = #tpu.dot_dimension_numbers<[1], [0], [0], [1], [0, 0, 1, 1], [], []>} : vector<32x32xbf16>, vector<32x256xbf16>, vector<32x256xf32> -> vector<32x256xf32>
    %c0_78 = arith.constant 0 : index
    %c0_79 = arith.constant 0 : index
    %192 = vector.load %arg17[%c0_78, %c0_79] : memref<32x1xf32, #tpu.memory_space<vmem>>, vector<32x1xf32>
    %193 = vector.broadcast %192 : vector<32x1xf32> to vector<32x256xf32>
    %194 = arith.addf %191, %193 : vector<32x256xf32>
    %195 = arith.addf %194, %145 : vector<32x256xf32>
    %c0_80 = arith.constant 0 : index
    %c0_81 = arith.constant 0 : index
    %c0_82 = arith.constant 0 : index
    %196 = vector.load %arg18[%c0_80, %c0_81, %c0_82] : memref<1x32x256xf32, #tpu.memory_space<vmem>>, vector<1x32x256xf32>
    %197 = vector.shape_cast %196 : vector<1x32x256xf32> to vector<32x256xf32>
    %198 = vector.shape_cast %195 : vector<32x256xf32> to vector<1x32x256xf32>
    tpu.vector_store %arg18[%c0_80, %c0_81, %c0_82], %198 {strides = array<i32>} : memref<1x32x256xf32, #tpu.memory_space<vmem>>, vector<1x32x256xf32>,
    return
  }
  func.func @transform_0(%arg0: i32) -> (i32, i32, i32) {
    %c0_i32 = arith.constant 0 : i32
    %c0_i32_0 = arith.constant 0 : i32
    %c0_i32_1 = arith.constant 0 : i32
    return %arg0, %c0_i32, %c0_i32_0 : i32, i32, i32
  }
  func.func @transform_1(%arg0: i32) -> (i32, i32) {
    %c0_i32 = arith.constant 0 : i32
    %c0_i32_0 = arith.constant 0 : i32
    %c0_i32_1 = arith.constant 0 : i32
    return %c0_i32, %c0_i32_0 : i32, i32
  }
  func.func @transform_2(%arg0: i32) -> (i32, i32) {
    %c0_i32 = arith.constant 0 : i32
    %c0_i32_0 = arith.constant 0 : i32
    %c0_i32_1 = arith.constant 0 : i32
    return %c0_i32, %c0_i32_0 : i32, i32
  }
  func.func @transform_3(%arg0: i32) -> (i32, i32) {
    %c0_i32 = arith.constant 0 : i32
    %c0_i32_0 = arith.constant 0 : i32
    %c0_i32_1 = arith.constant 0 : i32
    return %c0_i32, %c0_i32_0 : i32, i32
  }
  func.func @transform_4(%arg0: i32) -> (i32, i32) {
    %c0_i32 = arith.constant 0 : i32
    %c0_i32_0 = arith.constant 0 : i32
    %c0_i32_1 = arith.constant 0 : i32
    return %c0_i32, %c0_i32_0 : i32, i32
  }
  func.func @transform_5(%arg0: i32) -> (i32, i32) {
    %c0_i32 = arith.constant 0 : i32
    %c0_i32_0 = arith.constant 0 : i32
    %c0_i32_1 = arith.constant 0 : i32
    return %c0_i32, %c0_i32_0 : i32, i32
  }
  func.func @transform_6(%arg0: i32) -> (i32, i32) {
    %c0_i32 = arith.constant 0 : i32
    %c0_i32_0 = arith.constant 0 : i32
    %c0_i32_1 = arith.constant 0 : i32
    return %c0_i32, %c0_i32_0 : i32, i32
  }
  func.func @transform_7(%arg0: i32) -> (i32, i32) {
    %c0_i32 = arith.constant 0 : i32
    %c0_i32_0 = arith.constant 0 : i32
    %c0_i32_1 = arith.constant 0 : i32
    return %c0_i32, %c0_i32_0 : i32, i32
  }
  func.func @transform_8(%arg0: i32) -> (i32, i32) {
    %c0_i32 = arith.constant 0 : i32
    %c0_i32_0 = arith.constant 0 : i32
    %c0_i32_1 = arith.constant 0 : i32
    return %c0_i32, %c0_i32_0 : i32, i32
  }
  func.func @transform_9(%arg0: i32) -> (i32, i32) {
    %c0_i32 = arith.constant 0 : i32
    %c0_i32_0 = arith.constant 0 : i32
    %c0_i32_1 = arith.constant 0 : i32
    return %c0_i32, %c0_i32_0 : i32, i32
  }
  func.func @transform_10(%arg0: i32) -> (i32, i32) {
    %c0_i32 = arith.constant 0 : i32
    %c0_i32_0 = arith.constant 0 : i32
    %c0_i32_1 = arith.constant 0 : i32
    return %c0_i32, %c0_i32_0 : i32, i32
  }
  func.func @transform_11(%arg0: i32) -> (i32, i32) {
    %c0_i32 = arith.constant 0 : i32
    %c0_i32_0 = arith.constant 0 : i32
    %c0_i32_1 = arith.constant 0 : i32
    return %c0_i32, %c0_i32_0 : i32, i32
  }
  func.func @transform_12(%arg0: i32) -> (i32, i32) {
    %c0_i32 = arith.constant 0 : i32
    %c0_i32_0 = arith.constant 0 : i32
    %c0_i32_1 = arith.constant 0 : i32
    return %c0_i32, %c0_i32_0 : i32, i32
  }
  func.func @transform_13(%arg0: i32) -> (i32, i32) {
    %c0_i32 = arith.constant 0 : i32
    %c0_i32_0 = arith.constant 0 : i32
    %c0_i32_1 = arith.constant 0 : i32
    return %c0_i32, %c0_i32_0 : i32, i32
  }
  func.func @transform_14(%arg0: i32) -> (i32, i32) {
    %c0_i32 = arith.constant 0 : i32
    %c0_i32_0 = arith.constant 0 : i32
    %c0_i32_1 = arith.constant 0 : i32
    return %c0_i32, %c0_i32_0 : i32, i32
  }
  func.func @transform_15(%arg0: i32) -> (i32, i32) {
    %c0_i32 = arith.constant 0 : i32
    %c0_i32_0 = arith.constant 0 : i32
    %c0_i32_1 = arith.constant 0 : i32
    return %c0_i32, %c0_i32_0 : i32, i32
  }
  func.func @transform_16(%arg0: i32) -> (i32, i32) {
    %c0_i32 = arith.constant 0 : i32
    %c0_i32_0 = arith.constant 0 : i32
    %c0_i32_1 = arith.constant 0 : i32
    return %c0_i32, %c0_i32_0 : i32, i32
  }
  func.func @transform_17(%arg0: i32) -> (i32, i32, i32) {
    %c0_i32 = arith.constant 0 : i32
    %c0_i32_0 = arith.constant 0 : i32
    %c0_i32_1 = arith.constant 0 : i32
    return %arg0, %c0_i32, %c0_i32_0 : i32, i32, i32
  }
}

</mosaic_0001>

<bundles_post_ra>
// kernel: self_attention_forward.1
= control target key start
LH: loop header
LB: loop body
LE: loop exit
PB: predicated region body
PF: predicated region fallthrough
CT: control target
= control target key end

     0   :  { %s6185_s24 = smov 0   ;;  %s9117_s0 = inlined_call_operand.vmem [shape: f32[2,32,256], index: 0, kind: input, shape index: {}]   ;;  %s9118_s1 = inlined_call_operand.vmem [shape: f32[32,256], index: 1, kind: input, shape index: {}]   ;;  %s9119_s2 = inlined_call_operand.vmem [shape: f32[32,256], index: 2, kind: input, shape index: {}]   ;;  %s9120_s3 = inlined_call_operand.vmem [shape: bf16[32,32], index: 3, kind: input, shape index: {}]   ;;  %s9121_s4 = inlined_call_operand.vmem [shape: bf16[32,32], index: 4, kind: input, shape index: {}]   ;;  %s9122_s5 = inlined_call_operand.vmem [shape: bf16[32,32], index: 5, kind: input, shape index: {}]   ;;  %s9123_s6 = inlined_call_operand.vmem [shape: f32[32,1], index: 6, kind: input, shape index: {}]   ;;  %s9124_s7 = inlined_call_operand.vmem [shape: f32[32,1], index: 7, kind: input, shape index: {}]   ;;  %s9125_s8 = inlined_call_operand.vmem [shape: f32[32,1], index: 8, kind: input, shape index: {}]   ;;  %s9126_s9 = inlined_call_operand.vmem [shape: bf16[32,32], index: 9, kind: input, shape index: {}]   ;;  %s9127_s10 = inlined_call_operand.vmem [shape: f32[32,1], index: 10, kind: input, shape index: {}]   ;;  %s9128_s11 = inlined_call_operand.vmem [shape: f32[32,256], index: 11, kind: input, shape index: {}]   ;;  %s9129_s12 = inlined_call_operand.vmem [shape: f32[32,256], index: 12, kind: input, shape index: {}]   ;;  %s9130_s13 = inlined_call_operand.vmem [shape: bf16[32,32], index: 13, kind: input, shape index: {}]   ;;  %s9131_s14 = inlined_call_operand.vmem [shape: f32[32,1], index: 14, kind: input, shape index: {}]   ;;  %s9132_s15 = inlined_call_operand.vmem [shape: bf16[32,32], index: 15, kind: input, shape index: {}]   ;;  %s9133_s16 = inlined_call_operand.vmem [shape: f32[32,1], index: 16, kind: input, shape index: {}]   ;;  %s9134_s17 = inlined_call_operand.vmem [shape: f32[2,32,256], index: 17, kind: output, shape index: {}]  }
   0x1   :  { %9398 = sst [smem:[#allocation109_spill]] %s9117_s0 }
   0x2   :  { %9399 = sst [smem:[#allocation110_spill]] %s9118_s1 }
   0x3 LB: > { %9400 = sst [smem:[#allocation2_spill]] %s6089_s24  ;;  %s5116_s25 = sadd.s32 4294967295, %s6089_s24   ;;  %s6089_s24 = sphi %s6185_s24, %s27_s24  }
   0x4   : > { %p5120_p0 = scmp.ge.s32.totalorder %s6089_s24, 1  ;;  %p487_p1 = scmp.lt.s32.totalorder %s6089_s24, 3 }
   0x6   : > { %p488_p2 = pnand %p5120_p0, %p487_p1 }
   0x8   : > { %491 = sbr.rel (%p488_p2) target bundleno = 4533 (0x11b5), region = 88 }
   0xf   : > { %p539_p3 = scmp.lt.s32.totalorder %s5116_s25, 1  ;;  %s9401_s29 = sld [smem:[#allocation109_spill]]  ;;  %v9138_v46 = vmov 0   ;;  %v670_v47 = vld [vmem:[%s9123_s6 + $0x8] sm:$0xff]  ;;  %vm703_vm0 = vcmask 261120   ;;  %vm1050_vm1 = vcmask 1043456  }
  0x10   : > { %742 = vmatprep.mubr.bf16.mxu0 %v9138_v46  ;;  %5271 = vset.pattern.permute.xlu0 %v9138_v46  ;;  %v768_v48 = vld [vmem:[%s9124_s7 + $0x8] sm:$0xff]  ;;  %s9402_s22 = sld [smem:[#allocation110_spill]]  ;;  %vm1001_vm2 = vcmask 64512   ;;  %s6092_s24 = smov 120  }
  0x11   : > { %s9968_s25 = smov (!%p539_p3, %s5116_s25), 1  ;;  %5272 = vset.pattern.permute.xlu1 %v9138_v46  ;;  %849 = vmatprep.mubr.bf16.mxu1 %v9138_v46  ;;  %s6093_s18 = smov 112  }
  0x12   : > { %s9136_s26 = sshll.u32 %s9968_s25, 6  ;;  %s6094_s21 = smov 104  }
  0x13   : > { %s9965_s27 = sshll.u32 %s9968_s25, 6 }
  0x15   : > { %s6201_s0 = scalar_lea.vmem %s9401_s29, %s9136_s26  ;;  %s9096_s29 = scalar_lea.vmem %s9134_s17, %s9965_s27 }
  0x16   : > { %v550_v0 = vld [vmem:[%s6201_s0] sm:$0xff]  ;;  %v551_v1 = vld [vmem:[%s6201_s0 + $0x8] sm:$0xff]  ;;  %v552_v5 = vld [vmem:[%s6201_s0 + $0x10] sm:$0xff] }
  0x17   : > { %v554_v2 = vld [vmem:[%s6201_s0 + $0x20] sm:$0xff]  ;;  %v574_v3 = vadd.f32 %v551_v1, %v550_v0  ;;  %v555_v4 = vld [vmem:[%s6201_s0 + $0x28] sm:$0xff]  ;;  %v553_v6 = vld [vmem:[%s6201_s0 + $0x18] sm:$0xff] }
  0x18   : > { %v580_v7 = vadd.f32 %v555_v4, %v554_v2  ;;  %v556_v8 = vld [vmem:[%s6201_s0 + $0x30] sm:$0xff]  ;;  %v557_v9 = vld [vmem:[%s6201_s0 + $0x38] sm:$0xff]  ;;  %v577_v10 = vadd.f32 %v553_v6, %v552_v5 }
  0x19   : > { %575 = vadd.xlane.f32.xlu0 %v574_v3  ;;  %v583_v11 = vadd.f32 %v557_v9, %v556_v8  ;;  %v567_v3 = vld [vmem:[%s9119_s2 + $0x8] sm:$0xff] }
  0x1a   : > { %581 = vadd.xlane.f32.xlu1 %v580_v7 }
  0x1d   : > { %578 = vadd.xlane.f32.xlu0 %v577_v10 }
  0x1e   : > { %584 = vadd.xlane.f32.xlu1 %v583_v11  ;;  %v565_v11 = vld [vmem:[%s9402_s22 + $0x38] sm:$0xff] }
  0xa6   : > { %v576_v12 = vpop.xlane.xlu0 %575 }
  0xa7   : > { %v582_v13 = vpop.xlane.xlu1 %581 }
  0xaa   : > { %v579_v14 = vpop.xlane.xlu0 %578 }
  0xab   : > { %v586_v15 = vadd.f32 %v579_v14, %v576_v12  ;;  %v585_v16 = vpop.xlane.xlu1 %584  ;;  %v562_v12 = vld [vmem:[%s9402_s22 + $0x20] sm:$0xff]  ;;  %v569_v14 = vld [vmem:[%s9119_s2 + $0x18] sm:$0xff] }
  0xad   : > { %v587_v17 = vadd.f32 %v586_v15, %v582_v13  ;;  %v564_v13 = vld [vmem:[%s9402_s22 + $0x30] sm:$0xff]  ;;  %v566_v15 = vld [vmem:[%s9119_s2] sm:$0xff] }
  0xaf   : > { %v588_v18 = vadd.f32 %v587_v17, %v585_v16  ;;  %v568_v16 = vld [vmem:[%s9119_s2 + $0x10] sm:$0xff] }
  0xb1   : > { %v589_v19 = vrot.slane %v588_v18, 4 }
  0xb3   : > { %v590_v20 = vadd.f32 %v589_v19, %v588_v18 }
  0xb5   : > { %v591_v21 = vrot.slane %v590_v20, 2 }
  0xb7   : > { %v592_v22 = vadd.f32 %v591_v21, %v590_v20 }
  0xb9   : > { %v593_v23 = vrot.slane %v592_v22, 1 }
  0xbb   : > { %v594_v24 = vadd.f32 %v593_v23, %v592_v22 }
  0xbd   : > { %v596_v25 = vmul.f32 0.00012207031, %v594_v24 }
  0xbf   : > { %v599_v26 = vsub.f32 %v552_v5, %v596_v25  ;;  %v600_v27 = vsub.f32 %v553_v6, %v596_v25  ;;  %v597_v28 = vsub.f32 %v550_v0, %v596_v25  ;;  %v598_v29 = vsub.f32 %v551_v1, %v596_v25  ;;  %v559_v0 = vld [vmem:[%s9402_s22 + $0x8] sm:$0xff]  ;;  %v561_v1 = vld [vmem:[%s9402_s22 + $0x18] sm:$0xff]  ;;  %v560_v5 = vld [vmem:[%s9402_s22 + $0x10] sm:$0xff] }
  0xc0   : > { %v6211_v30 = vsub.f32 %v556_v8, %v596_v25  ;;  %v604_v31 = vsub.f32 %v557_v9, %v596_v25  ;;  %v601_v32 = vsub.f32 %v554_v2, %v596_v25  ;;  %v602_v33 = vsub.f32 %v555_v4, %v596_v25  ;;  %v558_v4 = vld [vmem:[%s9402_s22] sm:$0xff]  ;;  %v563_v6 = vld [vmem:[%s9402_s22 + $0x28] sm:$0xff] }
  0xc1   : > { %v607_v34 = vmul.f32 %v599_v26, %v599_v26  ;;  %v608_v35 = vmul.f32 %v600_v27, %v600_v27  ;;  %v605_v36 = vmul.f32 %v597_v28, %v597_v28  ;;  %v606_v37 = vmul.f32 %v598_v29, %v598_v29  ;;  %v571_v25 = vld [vmem:[%s9119_s2 + $0x28] sm:$0xff] }
  0xc2   : > { %v611_v38 = vmul.f32 %v6211_v30, %v6211_v30  ;;  %v612_v39 = vmul.f32 %v604_v31, %v604_v31  ;;  %v609_v42 = vmul.f32 %v601_v32, %v601_v32  ;;  %v610_v43 = vmul.f32 %v602_v33, %v602_v33 }
  0xc3   : > { %v616_v40 = vadd.f32 %v608_v35, %v607_v34  ;;  %v613_v41 = vadd.f32 %v606_v37, %v605_v36  ;;  %v570_v35 = vld [vmem:[%s9119_s2 + $0x20] sm:$0xff]  ;;  %v572_v36 = vld [vmem:[%s9119_s2 + $0x30] sm:$0xff] }
  0xc4   : > { %v622_v44 = vadd.f32 %v612_v39, %v611_v38  ;;  %v619_v45 = vadd.f32 %v610_v43, %v609_v42 }
  0xc5   : > { %617 = vadd.xlane.f32.xlu1 %v616_v40  ;;  %614 = vadd.xlane.f32.xlu0 %v613_v41 }
  0xc9   : > { %623 = vadd.xlane.f32.xlu1 %v622_v44  ;;  %620 = vadd.xlane.f32.xlu0 %v619_v45  ;;  %v5273_v45 = vld [vmem:[%s9120_s3] sm:$0xff]  }
  0xda   : > { %778 = vperm.xlu1 %5272, %v768_v48   ;;  %v5275_v48 = vld [vmem:[%s9121_s4] sm:$0xff]  }
  0xdf   : > { %680 = vperm.xlu0 %5271, %v670_v47   ;;  %v5274_v47 = vld [vmem:[%s9120_s3 + $0x8] sm:$0xff]  }
 0x152   : > { %v618_v49 = vpop.xlane.xlu1 %617  ;;  %v615_v50 = vpop.xlane.xlu0 %614 }
 0x153   : > { %v625_v51 = vadd.f32 %v618_v49, %v615_v50  ;;  %v5276_v49 = vld [vmem:[%s9122_s5] sm:$0xff]   ;;  %v5277_v50 = vld [vmem:[%s9122_s5 + $0x8] sm:$0xff]  }
 0x156   : > { %v621_v52 = vpop.xlane.xlu0 %620  ;;  %v624_v54 = vpop.xlane.xlu1 %623 }
 0x157   : > { %v626_v53 = vadd.f32 %v625_v51, %v621_v52 }
 0x159   : > { %v627_v55 = vadd.f32 %v626_v53, %v624_v54 }
 0x15b   : > { %v628_v56 = vrot.slane %v627_v55, 4 }
 0x15d   : > { %v629_v57 = vadd.f32 %v628_v56, %v627_v55 }
 0x15e   : > { %v681_v52 = vpop.permute.xlu0 %680 }
 0x15f   : > { %v630_v58 = vrot.slane %v629_v57, 2 }
 0x161   : > { %v631_v59 = vadd.f32 %v630_v58, %v629_v57 }
 0x163   : > { %v632_v60 = vrot.slane %v631_v59, 1 }
 0x165   : > { %v633_v61 = vadd.f32 %v632_v60, %v631_v59 }
 0x167   : > { %v634_v62 = vmul.f32 0.00012207031, %v633_v61 }
 0x169   : > { %v635_v63 = vadd.f32 1e-05, %v634_v62 }
 0x16b   : > { %5285 = vrsqrt.f32 %v635_v63 }
 0x175   : > { %v5286_v2 = vpop.eup %5285 }
 0x176   : > { %v638_v7 = vmul.f32 %v5286_v2, %v598_v29  ;;  %v640_v8 = vmul.f32 %v5286_v2, %v600_v27  ;;  %v637_v9 = vmul.f32 %v5286_v2, %v597_v28  ;;  %v639_v10 = vmul.f32 %v5286_v2, %v599_v26  ;;  %v573_v26 = vld [vmem:[%s9119_s2 + $0x38] sm:$0xff] }
 0x177   : > { %v642_v17 = vmul.f32 %v5286_v2, %v602_v33  ;;  %v644_v18 = vmul.f32 %v5286_v2, %v604_v31  ;;  %v641_v19 = vmul.f32 %v5286_v2, %v601_v32  ;;  %v643_v20 = vmul.f32 %v5286_v2, %v6211_v30 }
 0x178   : > { %v646_v21 = vmul.f32 %v638_v7, %v559_v0  ;;  %v648_v22 = vmul.f32 %v640_v8, %v561_v1  ;;  %v645_v23 = vmul.f32 %v637_v9, %v558_v4  ;;  %v647_v24 = vmul.f32 %v639_v10, %v560_v5 }
 0x179   : > { %v650_v27 = vmul.f32 %v642_v17, %v563_v6  ;;  %v652_v28 = vmul.f32 %v644_v18, %v565_v11  ;;  %v649_v29 = vmul.f32 %v641_v19, %v562_v12  ;;  %v651_v33 = vmul.f32 %v643_v20, %v564_v13 }
 0x17a   : > { %v654_v31 = vadd.f32 %v646_v21, %v567_v3  ;;  %v656_v32 = vadd.f32 %v648_v22, %v569_v14  ;;  %v653_v34 = vadd.f32 %v645_v23, %v566_v15  ;;  %v655_v30 = vadd.f32 %v647_v24, %v568_v16  ;;  %v779_v3 = vpop.permute.xlu1 %778 }
 0x17b   : > { %v658_v37 = vadd.f32 %v650_v27, %v571_v25  ;;  %v660_v38 = vadd.f32 %v652_v28, %v573_v26  ;;  %v657_v41 = vadd.f32 %v649_v29, %v570_v35  ;;  %v659_v42 = vadd.f32 %v651_v33, %v572_v36 }
 0x17c   : > { %v662_v39 = vpack.c.bf16 %v656_v32, %v654_v31  ;;  %v661_v40 = vpack.c.bf16 %v655_v30, %v653_v34 }
 0x17d   : > { %v664_v43 = vpack.c.bf16 %v660_v38, %v658_v37  ;;  %v663_v44 = vpack.c.bf16 %v659_v42, %v657_v41 }
 0x17e   : > { %710 = vmatprep.subr.bf16.mxu0 %v662_v39  ;;  %5231 = vmatprep.subr.bf16.mxu1 %v662_v39 }
 0x17f   : > { %711 = vmatpush1.bf16.msra.mxu0 %v661_v40  ;;  %5233 = vmatpush1.bf16.msra.mxu1 %v661_v40 }
 0x180   : > { %712 = vmatprep.subr.bf16.mxu0 %v664_v43  ;;  %5232 = vmatprep.subr.bf16.mxu1 %v664_v43 }
 0x183   : > { %713 = vmatpush1.bf16.msra.mxu0 %v663_v44  ;;  %5234 = vmatpush1.bf16.msra.mxu1 %v663_v44 }
 0x184   : > { %807 = vmatprep.subr.bf16.mxu0 %v662_v39 }
 0x186   : > { %5127 = vmatmul.mubr.msk.bf16.vlgmr.msra.gmra.mrb[0].mxu0 %vm703_vm0, %v5273_v45 }
 0x187   : > { %808 = vmatpush1.bf16.msra.mxu0 %v661_v40  ;;  %752 = vmatprep.mubr.bf16.mxu0 %v9138_v46 }
 0x188   : > { %809 = vmatprep.subr.bf16.mxu0 %v664_v43 }
 0x18b   : > { %810 = vmatpush1.bf16.msra.mxu0 %v663_v44 }
 0x18c   : > { %904 = vmatprep.subr.bf16.mxu0 %v662_v39 }
 0x18e   : > { %5128 = vmatmul.mubr.msk.bf16.gmra.mrb[4].mxu0 %vm703_vm0, %v5274_v47 }
 0x18f   : > { %839 = vmatprep.mubr.bf16.mxu0 %v9138_v46 }
 0x196   : > { %5131 = vmatmul.mubr.msk.bf16.vlgmr.msra.gmra.mrb[8].mxu0 %vm703_vm0, %v5275_v48 }
 0x197   : > { %905 = vmatpush1.bf16.msra.mxu0 %v661_v40  ;;  %936 = vmatprep.mubr.bf16.mxu0 %v9138_v46 }
 0x198   : > { %906 = vmatprep.subr.bf16.mxu0 %v664_v43 }
 0x19b   : > { %907 = vmatpush1.bf16.msra.mxu0 %v663_v44 }
 0x19e   : > { %5135 = vmatmul.mubr.msk.bf16.vlgmr.msra.gmra.mrb[12].mxu0 %vm703_vm0, %v5276_v49 }
 0x19f   : > { %946 = vmatprep.mubr.bf16.mxu0 %v9138_v46 }
 0x1a6   : > { %5136 = vmatmul.mubr.msk.bf16.gmra.mrb[16].mxu0 %vm703_vm0, %v5277_v50 }
 0x1a7   : > { %1931 = vmatprep.mubr.bf16.mxu0 %v9138_v46 }
 0x259   : > { %v6299_v51 = vpop.f32.mrb[0].mxu0 }
 0x25a   : > { %9403 = vst [vmem:[#allocation3_spill] sm:$0xff] %v6299_v51  ;;  %v6301_v53 = vpop.f32.mrb[1].mxu0 }
 0x25b   : > { %9404 = vst [vmem:[#allocation4_spill] sm:$0xff] %v6301_v53  ;;  %v748_v54 = vpop.f32.mrb[2].mxu0 }
 0x25c   : > { %v749_v55 = vadd.f32 %v748_v54, %v681_v52  ;;  %v750_v56 = vpop.f32.mrb[3].mxu0 }
 0x25d   : > { %v751_v57 = vadd.f32 %v750_v56, %v681_v52 }
 0x25e   : > { %v1805_v58 = vmul.f32 0.35355338, %v749_v55 }
 0x25f   : > { %v1806_v59 = vmul.f32 0.35355338, %v751_v57 }
 0x260   : > { %v1807_v60 = vpack.c.bf16 %v1805_v58, %v1805_v58 }
 0x261   : > { %v1808_v61 = vpack.c.bf16 %v1806_v59, %v1806_v59  ;;  %v6303_v62 = vpop.f32.mrb[4].mxu0 }
 0x262   : > { %9405 = vst [vmem:[#allocation5_spill] sm:$0xff] %v6303_v62  ;;  %1813 = vxpose.xlu1.c.b16.start.end [1/1] (short) %v1807_v60, 128  ;;  %v6305_v63 = vpop.f32.mrb[5].mxu0 }
 0x263   : > { %9406 = vst [vmem:[#allocation6_spill] sm:$0xff] %v6305_v63  ;;  %1829 = vxpose.xlu0.c.b16.start.end [1/1] (short) %v1808_v61, 128  ;;  %v6307_v0 = vpop.f32.mrb[6].mxu0 }
 0x264   : > { %9407 = vst [vmem:[#allocation7_spill] sm:$0xff] %v6307_v0  ;;  %v6309_v1 = vpop.f32.mrb[7].mxu0 }
 0x265   : > { %9408 = vst [vmem:[#allocation8_spill] sm:$0xff] %v6309_v1 }
 0x269   : > { %v6311_v2 = vpop.f32.mrb[8].mxu0 }
 0x26a   : > { %9409 = vst [vmem:[#allocation9_spill] sm:$0xff] %v6311_v2  ;;  %v6313_v4 = vpop.f32.mrb[9].mxu0 }
 0x26b   : > { %9410 = vst [vmem:[#allocation10_spill] sm:$0xff] %v6313_v4  ;;  %v845_v5 = vpop.f32.mrb[10].mxu0 }
 0x26c   : > { %v846_v6 = vadd.f32 %v845_v5, %v779_v3  ;;  %v847_v7 = vpop.f32.mrb[11].mxu0 }
 0x26d   : > { %v848_v8 = vadd.f32 %v847_v7, %v779_v3 }
 0x26e   : > { %v1809_v9 = vpack.c.bf16 %v846_v6, %v846_v6 }
 0x26f   : > { %v1810_v10 = vpack.c.bf16 %v848_v8, %v848_v8 }
 0x270   : > { %v1894_v11 = vsel %vm1050_vm1, %v1809_v9, 0 }
 0x271   : > { %5154 = vmatprep.subr.msk.bf16.mxu0 %vm1050_vm1, %v1810_v10  ;;  %v6317_v12 = vpop.f32.mrb[12].mxu0 }
 0x272   : > { %1900 = vmatpush1.bf16.msra.mxu0 %v1894_v11  ;;  %9411 = vst [vmem:[#allocation11_spill] sm:$0xff] %v6317_v12  ;;  %v6319_v13 = vpop.f32.mrb[13].mxu0 }
 0x273   : > { %9412 = vst [vmem:[#allocation12_spill] sm:$0xff] %v6319_v13  ;;  %v6321_v14 = vpop.f32.mrb[14].mxu0 }
 0x274   : > { %9413 = vst [vmem:[#allocation13_spill] sm:$0xff] %v6321_v14  ;;  %v6323_v15 = vpop.f32.mrb[15].mxu0 }
 0x275   : > { %9414 = vst [vmem:[#allocation14_spill] sm:$0xff] %v6323_v15 }
 0x279   : > { %v6325_v16 = vpop.f32.mrb[16].mxu0 }
 0x27a   : > { %9415 = vst [vmem:[#allocation15_spill] sm:$0xff] %v6325_v16  ;;  %v6327_v17 = vpop.f32.mrb[17].mxu0 }
 0x27b   : > { %9416 = vst [vmem:[#allocation16_spill] sm:$0xff] %v6327_v17  ;;  %v6329_v18 = vpop.f32.mrb[18].mxu0 }
 0x27c   : > { %9417 = vst [vmem:[#allocation17_spill] sm:$0xff] %v6329_v18  ;;  %v6331_v20 = vpop.f32.mrb[19].mxu0 }
 0x27d   : > { %9418 = vst [vmem:[#allocation18_spill] sm:$0xff] %v6331_v20 }
 0x2c8   : > { %v1821_v19 = vpop.trf.xlu1 }
 0x2c9   : > { %5155 = vmatmul.mubr.msk.bf16.vlgmr.msra.gmra.mrb[20].mxu0 %vm1001_vm2, %v1821_v19  ;;  %v1837_v28 = vpop.trf.xlu0 }
 0x2ca   : > { %1941 = vmatprep.mubr.bf16.mxu0 %v9138_v46 }
 0x2cc   : > { %v1822_v21 = vpop.trf.xlu1 }
 0x2cd   : > { %v1838_v29 = vpop.trf.xlu0 }
 0x2d0   : > { %v1823_v22 = vpop.trf.xlu1 }
 0x2d1   : > { %5156 = vmatmul.mubr.msk.bf16.gmra.mrb[24].mxu0 %vm1001_vm2, %v1822_v21  ;;  %v1839_v33 = vpop.trf.xlu0 }
 0x2d2   : > { %1951 = vmatprep.mubr.bf16.mxu0 %v9138_v46 }
 0x2d4   : > { %v1824_v23 = vpop.trf.xlu1 }
 0x2d5   : > { %v1840_v31 = vpop.trf.xlu0 }
 0x2d8   : > { %v1825_v24 = vpop.trf.xlu1 }
 0x2d9   : > { %5157 = vmatmul.mubr.msk.bf16.gmra.mrb[28].mxu0 %vm1001_vm2, %v1823_v22  ;;  %v1841_v32 = vpop.trf.xlu0 }
 0x2da   : > { %1961 = vmatprep.mubr.bf16.mxu0 %v9138_v46 }
 0x2dc   : > { %v1826_v25 = vpop.trf.xlu1 }
 0x2dd   : > { %v1842_v34 = vpop.trf.xlu0 }
 0x2e0   : > { %v1827_v26 = vpop.trf.xlu1 }
 0x2e1   : > { %5158 = vmatmul.mubr.msk.bf16.gmra.mrb[32].mxu0 %vm1001_vm2, %v1824_v23  ;;  %v1843_v30 = vpop.trf.xlu0 }
 0x2e2   : > { %1971 = vmatprep.mubr.bf16.mxu0 %v9138_v46 }
 0x2e4   : > { %v1828_v27 = vpop.trf.xlu1 }
 0x2e5   : > { %v1844_v35 = vpop.trf.xlu0 }
 0x2e9   : > { %5159 = vmatmul.mubr.msk.bf16.gmra.mrb[36].mxu0 %vm1001_vm2, %v1825_v24 }
 0x2ea   : > { %1981 = vmatprep.mubr.bf16.mxu0 %v9138_v46 }
 0x2f1   : > { %5160 = vmatmul.mubr.msk.bf16.gmra.mrb[40].mxu0 %vm1001_vm2, %v1826_v25 }
 0x2f2   : > { %1991 = vmatprep.mubr.bf16.mxu0 %v9138_v46 }
 0x2f9   : > { %5161 = vmatmul.mubr.msk.bf16.gmra.mrb[44].mxu0 %vm1001_vm2, %v1827_v26 }
 0x2fa   : > { %2001 = vmatprep.mubr.bf16.mxu0 %v9138_v46 }
 0x301   : > { %5162 = vmatmul.mubr.msk.bf16.gmra.mrb[48].mxu0 %vm1001_vm2, %v1828_v27 }
 0x302   : > { %2011 = vmatprep.mubr.bf16.mxu0 %v9138_v46 }
 0x309   : > { %5163 = vmatmul.mubr.msk.bf16.gmra.mrb[52].mxu0 %vm1001_vm2, %v1837_v28 }
 0x30a   : > { %2021 = vmatprep.mubr.bf16.mxu0 %v9138_v46 }
 0x311   : > { %5164 = vmatmul.mubr.msk.bf16.gmra.mrb[56].mxu0 %vm1001_vm2, %v1838_v29 }
 0x312   : > { %2031 = vmatprep.mubr.bf16.mxu0 %v9138_v46 }
 0x319   : > { %5165 = vmatmul.mubr.msk.bf16.gmra.mrb[60].mxu0 %vm1001_vm2, %v1839_v33 }
 0x31a   : > { %2041 = vmatprep.mubr.bf16.mxu0 %v9138_v46 }
 0x321   : > { %5166 = vmatmul.mubr.msk.bf16.gmra.mrb[64].mxu0 %vm1001_vm2, %v1840_v31 }
 0x322   : > { %2051 = vmatprep.mubr.bf16.mxu0 %v9138_v46 }
 0x329   : > { %5167 = vmatmul.mubr.msk.bf16.gmra.mrb[68].mxu0 %vm1001_vm2, %v1841_v32 }
 0x32a   : > { %2061 = vmatprep.mubr.bf16.mxu0 %v9138_v46 }
 0x331   : > { %5168 = vmatmul.mubr.msk.bf16.gmra.mrb[72].mxu0 %vm1001_vm2, %v1842_v34 }
 0x332   : > { %2071 = vmatprep.mubr.bf16.mxu0 %v9138_v46 }
 0x339   : > { %5169 = vmatmul.mubr.msk.bf16.gmra.mrb[76].mxu0 %vm1001_vm2, %v1843_v30 }
 0x33a   : > { %2081 = vmatprep.mubr.bf16.mxu0 %v9138_v46 }
 0x341   : > { %5170 = vmatmul.mubr.msk.bf16.gmra.mrb[80].mxu0 %vm1001_vm2, %v1844_v35 }
 0x39c   : > { %v6364_v36 = vpop.f32.mrb[20].mxu0 }
 0x39d   : > { %v6366_v37 = vpop.f32.mrb[21].mxu0 }
 0x39e   : > { %v6368_v38 = vpop.f32.mrb[22].mxu0  ;;  %v2092_v39 = vmax.f32 %v6364_v36, %v6366_v37 }
 0x39f   : > { %v6372_v40 = vpop.f32.mrb[23].mxu0 }
 0x3a0   : > { %2093 = vmax.xlane.f32.xlu1 %v2092_v39  ;;  %v2095_v41 = vmax.f32 %v6368_v38, %v6372_v40 }
 0x3a2   : > { %2096 = vmax.xlane.f32.xlu0 %v2095_v41 }
 0x3a4   : > { %v6376_v42 = vpop.f32.mrb[24].mxu0 }
 0x3a5   : > { %v6378_v43 = vpop.f32.mrb[25].mxu0 }
 0x3a6   : > { %v6380_v44 = vpop.f32.mrb[26].mxu0  ;;  %v2098_v45 = vmax.f32 %v6376_v42, %v6378_v43 }
 0x3a7   : > { %v6384_v47 = vpop.f32.mrb[27].mxu0 }
 0x3a8   : > { %2099 = vmax.xlane.f32.xlu1 %v2098_v45  ;;  %v2101_v48 = vmax.f32 %v6380_v44, %v6384_v47 }
 0x3ac   : > { %2102 = vmax.xlane.f32.xlu1 %v2101_v48  ;;  %v6388_v49 = vpop.f32.mrb[28].mxu0 }
 0x3ad   : > { %v6390_v50 = vpop.f32.mrb[29].mxu0 }
 0x3ae   : > { %v2104_v52 = vmax.f32 %v6388_v49, %v6390_v50  ;;  %v6394_v54 = vpop.f32.mrb[30].mxu0 }
 0x3af   : > { %v6396_v55 = vpop.f32.mrb[31].mxu0 }
 0x3b0   : > { %2105 = vmax.xlane.f32.xlu1 %v2104_v52  ;;  %v2107_v56 = vmax.f32 %v6394_v54, %v6396_v55 }
 0x3b4   : > { %2108 = vmax.xlane.f32.xlu1 %v2107_v56  ;;  %v6400_v57 = vpop.f32.mrb[32].mxu0 }
 0x3b5   : > { %v6402_v58 = vpop.f32.mrb[33].mxu0 }
 0x3b6   : > { %v2110_v59 = vmax.f32 %v6400_v57, %v6402_v58  ;;  %v6406_v60 = vpop.f32.mrb[34].mxu0 }
 0x3b7   : > { %v6408_v61 = vpop.f32.mrb[35].mxu0 }
 0x3b8   : > { %2111 = vmax.xlane.f32.xlu1 %v2110_v59  ;;  %v2113_v3 = vmax.f32 %v6406_v60, %v6408_v61 }
 0x3bc   : > { %2114 = vmax.xlane.f32.xlu1 %v2113_v3  ;;  %v6412_v5 = vpop.f32.mrb[36].mxu0 }
 0x3bd   : > { %v6414_v6 = vpop.f32.mrb[37].mxu0 }
 0x3be   : > { %v6416_v7 = vpop.f32.mrb[38].mxu0  ;;  %v2116_v8 = vmax.f32 %v6412_v5, %v6414_v6 }
 0x3bf   : > { %v6420_v9 = vpop.f32.mrb[39].mxu0 }
 0x3c0   : > { %2117 = vmax.xlane.f32.xlu0 %v2116_v8  ;;  %v2119_v10 = vmax.f32 %v6416_v7, %v6420_v9 }
 0x3c2   : > { %2120 = vmax.xlane.f32.xlu1 %v2119_v10 }
 0x3c4   : > { %v6424_v11 = vpop.f32.mrb[40].mxu0 }
 0x3c5   : > { %v6426_v19 = vpop.f32.mrb[41].mxu0 }
 0x3c6   : > { %v6428_v21 = vpop.f32.mrb[42].mxu0  ;;  %v2122_v22 = vmax.f32 %v6424_v11, %v6426_v19 }
 0x3c7   : > { %v6432_v23 = vpop.f32.mrb[43].mxu0 }
 0x3c8   : > { %2123 = vmax.xlane.f32.xlu0 %v2122_v22  ;;  %v2125_v24 = vmax.f32 %v6428_v21, %v6432_v23 }
 0x3ca   : > { %2126 = vmax.xlane.f32.xlu1 %v2125_v24 }
 0x3cc   : > { %v6436_v25 = vpop.f32.mrb[44].mxu0 }
 0x3cd   : > { %v6438_v26 = vpop.f32.mrb[45].mxu0 }
 0x3ce   : > { %v6440_v27 = vpop.f32.mrb[46].mxu0  ;;  %v2128_v28 = vmax.f32 %v6436_v25, %v6438_v26 }
 0x3cf   : > { %v6444_v29 = vpop.f32.mrb[47].mxu0 }
 0x3d0   : > { %2129 = vmax.xlane.f32.xlu0 %v2128_v28  ;;  %v2131_v33 = vmax.f32 %v6440_v27, %v6444_v29 }
 0x3d2   : > { %2132 = vmax.xlane.f32.xlu1 %v2131_v33 }
 0x3d4   : > { %v6448_v31 = vpop.f32.mrb[48].mxu0 }
 0x3d5   : > { %v6450_v32 = vpop.f32.mrb[49].mxu0 }
 0x3d6   : > { %v6452_v34 = vpop.f32.mrb[50].mxu0  ;;  %v2134_v30 = vmax.f32 %v6448_v31, %v6450_v32 }
 0x3d7   : > { %v6456_v35 = vpop.f32.mrb[51].mxu0 }
 0x3d8   : > { %2135 = vmax.xlane.f32.xlu0 %v2134_v30  ;;  %v2137_v39 = vmax.f32 %v6452_v34, %v6456_v35 }
 0x3da   : > { %2138 = vmax.xlane.f32.xlu1 %v2137_v39 }
 0x3dc   : > { %v6460_v41 = vpop.f32.mrb[52].mxu0 }
 0x3dd   : > { %v6462_v45 = vpop.f32.mrb[53].mxu0 }
 0x3de   : > { %v6464_v48 = vpop.f32.mrb[54].mxu0  ;;  %v2140_v52 = vmax.f32 %v6460_v41, %v6462_v45 }
 0x3df   : > { %v6468_v56 = vpop.f32.mrb[55].mxu0 }
 0x3e0   : > { %2141 = vmax.xlane.f32.xlu0 %v2140_v52  ;;  %v2143_v59 = vmax.f32 %v6464_v48, %v6468_v56 }
 0x3e2   : > { %2144 = vmax.xlane.f32.xlu1 %v2143_v59 }
 0x3e4   : > { %v6472_v3 = vpop.f32.mrb[56].mxu0 }
 0x3e5   : > { %v6474_v8 = vpop.f32.mrb[57].mxu0 }
 0x3e6   : > { %v6476_v10 = vpop.f32.mrb[58].mxu0  ;;  %v2146_v22 = vmax.f32 %v6472_v3, %v6474_v8 }
 0x3e7   : > { %v6480_v24 = vpop.f32.mrb[59].mxu0 }
 0x3e8   : > { %2147 = vmax.xlane.f32.xlu0 %v2146_v22  ;;  %v2149_v28 = vmax.f32 %v6476_v10, %v6480_v24 }
 0x3ea   : > { %2150 = vmax.xlane.f32.xlu1 %v2149_v28 }
 0x3ec   : > { %v6484_v33 = vpop.f32.mrb[60].mxu0 }
 0x3ed   : > { %v6486_v30 = vpop.f32.mrb[61].mxu0 }
 0x3ee   : > { %v6488_v39 = vpop.f32.mrb[62].mxu0  ;;  %v2152_v52 = vmax.f32 %v6484_v33, %v6486_v30 }
 0x3ef   : > { %v6492_v59 = vpop.f32.mrb[63].mxu0 }
 0x3f0   : > { %2153 = vmax.xlane.f32.xlu0 %v2152_v52  ;;  %v2155_v46 = vmax.f32 %v6488_v39, %v6492_v59 }
 0x3f2   : > { %2156 = vmax.xlane.f32.xlu1 %v2155_v46 }
 0x3f4   : > { %v6496_v22 = vpop.f32.mrb[64].mxu0 }
 0x3f5   : > { %v6498_v18 = vpop.f32.mrb[65].mxu0 }
 0x3f6   : > { %v6500_v28 = vpop.f32.mrb[66].mxu0  ;;  %v2158_v20 = vmax.f32 %v6496_v22, %v6498_v18 }
 0x3f7   : > { %v6504_v16 = vpop.f32.mrb[67].mxu0 }
 0x3f8   : > { %2159 = vmax.xlane.f32.xlu0 %v2158_v20  ;;  %v2161_v17 = vmax.f32 %v6500_v28, %v6504_v16 }
 0x3fa   : > { %2162 = vmax.xlane.f32.xlu1 %v2161_v17 }
 0x3fc   : > { %v6508_v52 = vpop.f32.mrb[68].mxu0 }
 0x3fd   : > { %v6510_v1 = vpop.f32.mrb[69].mxu0 }
 0x3fe   : > { %v6512_v46 = vpop.f32.mrb[70].mxu0  ;;  %v2164_v0 = vmax.f32 %v6508_v52, %v6510_v1 }
 0x3ff   : > { %v6516_v13 = vpop.f32.mrb[71].mxu0 }
 0x400   : > { %9419 = vst [vmem:[#allocation19_spill] sm:$0xff] %v6516_v13  ;;  %2165 = vmax.xlane.f32.xlu0 %v2164_v0  ;;  %v2167_v12 = vmax.f32 %v6512_v46, %v6516_v13 }
 0x402   : > { %2168 = vmax.xlane.f32.xlu1 %v2167_v12 }
 0x404   : > { %v6520_v20 = vpop.f32.mrb[72].mxu0 }
 0x405   : > { %9420 = vst [vmem:[#allocation20_spill] sm:$0xff] %v6520_v20  ;;  %v6522_v14 = vpop.f32.mrb[73].mxu0 }
 0x406   : > { %9421 = vst [vmem:[#allocation21_spill] sm:$0xff] %v6522_v14  ;;  %v6524_v17 = vpop.f32.mrb[74].mxu0  ;;  %v2170_v15 = vmax.f32 %v6520_v20, %v6522_v14 }
 0x407   : > { %9422 = vst [vmem:[#allocation22_spill] sm:$0xff] %v6524_v17  ;;  %v6528_v63 = vpop.f32.mrb[75].mxu0 }
 0x408   : > { %9423 = vst [vmem:[#allocation23_spill] sm:$0xff] %v6528_v63  ;;  %2171 = vmax.xlane.f32.xlu0 %v2170_v15  ;;  %v2173_v4 = vmax.f32 %v6524_v17, %v6528_v63 }
 0x40a   : > { %2174 = vmax.xlane.f32.xlu1 %v2173_v4 }
 0x40c   : > { %v6532_v0 = vpop.f32.mrb[76].mxu0 }
 0x40d   : > { %9424 = vst [vmem:[#allocation24_spill] sm:$0xff] %v6532_v0  ;;  %v6534_v2 = vpop.f32.mrb[77].mxu0 }
 0x40e   : > { %9425 = vst [vmem:[#allocation25_spill] sm:$0xff] %v6534_v2  ;;  %v6536_v12 = vpop.f32.mrb[78].mxu0  ;;  %v2176_v62 = vmax.f32 %v6532_v0, %v6534_v2 }
 0x40f   : > { %9426 = vst [vmem:[#allocation26_spill] sm:$0xff] %v6536_v12  ;;  %v6540_v53 = vpop.f32.mrb[79].mxu0 }
 0x410   : > { %9427 = vst [vmem:[#allocation27_spill] sm:$0xff] %v6540_v53  ;;  %2177 = vmax.xlane.f32.xlu0 %v2176_v62  ;;  %v2179_v51 = vmax.f32 %v6536_v12, %v6540_v53  ;;  %v9432_v62 = vmov 0  }
 0x412   : > { %2180 = vmax.xlane.f32.xlu1 %v2179_v51  ;;  %v5278_v51 = vld [vmem:[%s9121_s4 + $0x8] sm:$0xff]  }
 0x413   : > { %5132 = vmatmul.mubr.msk.bf16.vlgmr.msra.gmra.mrb[0].mxu1 %vm703_vm0, %v5278_v51 }
 0x414   : > { %v6544_v15 = vpop.f32.mrb[80].mxu0  ;;  %1089 = vmatprep.mubr.bf16.mxu1 %v9432_v62 }
 0x415   : > { %9428 = vst [vmem:[#allocation28_spill] sm:$0xff] %v6544_v15  ;;  %v6546_v63 = vpop.f32.mrb[81].mxu0 }
 0x416   : > { %9429 = vst [vmem:[#allocation29_spill] sm:$0xff] %v6546_v63  ;;  %v6548_v4 = vpop.f32.mrb[82].mxu0  ;;  %v2182_v17 = vmax.f32 %v6544_v15, %v6546_v63 }
 0x417   : > { %9430 = vst [vmem:[#allocation30_spill] sm:$0xff] %v6548_v4  ;;  %v6552_v14 = vpop.f32.mrb[83].mxu0 }
 0x418   : > { %9431 = vst [vmem:[#allocation31_spill] sm:$0xff] %v6552_v14  ;;  %2183 = vmax.xlane.f32.xlu0 %v2182_v17  ;;  %v2185_v2 = vmax.f32 %v6548_v4, %v6552_v14 }
 0x41a   : > { %2186 = vmax.xlane.f32.xlu1 %v2185_v2 }
 0x42d   : > { %v2094_v53 = vpop.xlane.xlu1 %2093 }
 0x42e   : > { %v2188_v12 = vsub.f32 %v6364_v36, %v2094_v53  ;;  %v2189_v63 = vsub.f32 %v6366_v37, %v2094_v53 }
 0x42f   : > { %v2097_v15 = vpop.xlane.xlu0 %2096 }
 0x430   : > { %v2252_v0 = vmul.f32 1.442695, %v2188_v12  ;;  %v2254_v17 = vmul.f32 1.442695, %v2189_v63  ;;  %v2190_v20 = vsub.f32 %v6368_v38, %v2097_v15  ;;  %v2191_v2 = vsub.f32 %v6372_v40, %v2097_v15 }
 0x432   : > { %5287 = vpow2.f32 %v2252_v0  ;;  %v2256_v14 = vmul.f32 1.442695, %v2190_v20  ;;  %v2258_v4 = vmul.f32 1.442695, %v2191_v2 }
 0x433   : > { %5289 = vpow2.f32 %v2254_v17 }
 0x434   : > { %5291 = vpow2.f32 %v2256_v14 }
 0x435   : > { %5293 = vpow2.f32 %v2258_v4  ;;  %v2100_v51 = vpop.xlane.xlu1 %2099 }
 0x436   : > { %v2192_v62 = vsub.f32 %v6376_v42, %v2100_v51  ;;  %v2193_v36 = vsub.f32 %v6378_v43, %v2100_v51 }
 0x438   : > { %v2260_v13 = vmul.f32 1.442695, %v2192_v62  ;;  %v2262_v53 = vmul.f32 1.442695, %v2193_v36 }
 0x439   : > { %v2103_v37 = vpop.xlane.xlu1 %2102 }
 0x43a   : > { %5295 = vpow2.f32 %v2260_v13  ;;  %v2194_v63 = vsub.f32 %v6380_v44, %v2103_v37  ;;  %v2195_v38 = vsub.f32 %v6384_v47, %v2103_v37 }
 0x43b   : > { %5297 = vpow2.f32 %v2262_v53 }
 0x43c   : > { %v6569_v40 = vpop.eup %5287  ;;  %v2264_v20 = vmul.f32 1.442695, %v2194_v63  ;;  %v2266_v0 = vmul.f32 1.442695, %v2195_v38 }
 0x43d   : > { %v6571_v14 = vpop.eup %5289  ;;  %v6573_v12 = vpop.xlane.xlu1 %2105 }
 0x43e   : > { %v6575_v42 = vpop.eup %5291  ;;  %5299 = vpow2.f32 %v2264_v20  ;;  %v2380_v43 = vadd.f32 %v6571_v14, %v6569_v40 }
 0x43f   : > { %v6579_v13 = vpop.eup %5293  ;;  %5301 = vpow2.f32 %v2266_v0 }
 0x440   : > { %2381 = vadd.xlane.f32.xlu0 %v2380_v43  ;;  %v2383_v44 = vadd.f32 %v6579_v13, %v6575_v42 }
 0x441   : > { %v2109_v47 = vpop.xlane.xlu1 %2108 }
 0x442   : > { %2384 = vadd.xlane.f32.xlu1 %v2383_v44  ;;  %v2198_v15 = vsub.f32 %v6394_v54, %v2109_v47  ;;  %v2199_v4 = vsub.f32 %v6396_v55, %v2109_v47 }
 0x444   : > { %v6585_v62 = vpop.eup %5295  ;;  %v2272_v17 = vmul.f32 1.442695, %v2198_v15  ;;  %v2274_v2 = vmul.f32 1.442695, %v2199_v4 }
 0x445   : > { %v6587_v51 = vpop.eup %5297  ;;  %v6589_v36 = vpop.xlane.xlu1 %2111 }
 0x446   : > { %5303 = vpow2.f32 %v2272_v17  ;;  %v2386_v53 = vadd.f32 %v6587_v51, %v6585_v62 }
 0x447   : > { %5305 = vpow2.f32 %v2274_v2 }
 0x448   : > { %v6593_v37 = vpop.eup %5299  ;;  %2387 = vadd.xlane.f32.xlu0 %v2386_v53 }
 0x449   : > { %v6595_v63 = vpop.eup %5301  ;;  %v2115_v54 = vpop.xlane.xlu1 %2114 }
 0x44a   : > { %v2202_v55 = vsub.f32 %v6406_v60, %v2115_v54  ;;  %v2203_v38 = vsub.f32 %v6408_v61, %v2115_v54  ;;  %v2389_v20 = vadd.f32 %v6595_v63, %v6593_v37 }
 0x44c   : > { %v2280_v0 = vmul.f32 1.442695, %v2202_v55  ;;  %v2282_v43 = vmul.f32 1.442695, %v2203_v38  ;;  %2390 = vadd.xlane.f32.xlu1 %v2389_v20 }
 0x44e   : > { %5307 = vpow2.f32 %v2280_v0 }
 0x44f   : > { %5309 = vpow2.f32 %v2282_v43  ;;  %v2121_v44 = vpop.xlane.xlu1 %2120  ;;  %v669_v43 = vld [vmem:[%s9123_s6] sm:$0xff] }
 0x450   : > { %v6601_v47 = vpop.eup %5303  ;;  %v2206_v15 = vsub.f32 %v6416_v7, %v2121_v44  ;;  %v2207_v4 = vsub.f32 %v6420_v9, %v2121_v44 }
 0x451   : > { %v6605_v17 = vpop.eup %5305 }
 0x452   : > { %v2288_v60 = vmul.f32 1.442695, %v2206_v15  ;;  %v2290_v2 = vmul.f32 1.442695, %v2207_v4  ;;  %v2395_v61 = vadd.f32 %v6605_v17, %v6601_v47 }
 0x454   : > { %5311 = vpow2.f32 %v2288_v60  ;;  %2396 = vadd.xlane.f32.xlu1 %v2395_v61 }
 0x455   : > { %5313 = vpow2.f32 %v2290_v2 }
 0x457   : > { %v2127_v53 = vpop.xlane.xlu1 %2126 }
 0x458   : > { %v6609_v54 = vpop.eup %5307  ;;  %v2210_v55 = vsub.f32 %v6428_v21, %v2127_v53  ;;  %v2211_v38 = vsub.f32 %v6432_v23, %v2127_v53  ;;  %v2196_v53 = vsub.f32 %v6388_v49, %v6573_v12 }
 0x459   : > { %v6613_v7 = vpop.eup %5309 }
 0x45a   : > { %v2296_v9 = vmul.f32 1.442695, %v2210_v55  ;;  %v2298_v20 = vmul.f32 1.442695, %v2211_v38  ;;  %v2401_v0 = vadd.f32 %v6613_v7, %v6609_v54  ;;  %v2197_v38 = vsub.f32 %v6390_v50, %v6573_v12 }
 0x45c   : > { %5315 = vpow2.f32 %v2296_v9  ;;  %2402 = vadd.xlane.f32.xlu1 %v2401_v0  ;;  %v2118_v0 = vpop.xlane.xlu0 %2117 }
 0x45d   : > { %5317 = vpow2.f32 %v2298_v20  ;;  %v2200_v20 = vsub.f32 %v6400_v57, %v6589_v36 }
 0x45e   : > { %v6620_v44 = vpop.eup %5311  ;;  %675 = vperm.xlu0 %5271, %v669_v43  }
 0x45f   : > { %v6622_v21 = vpop.eup %5313  ;;  %v2133_v23 = vpop.xlane.xlu1 %2132 }
 0x460   : > { %v2214_v15 = vsub.f32 %v6440_v27, %v2133_v23  ;;  %v2215_v4 = vsub.f32 %v6444_v29, %v2133_v23  ;;  %v2407_v60 = vadd.f32 %v6622_v21, %v6620_v44  ;;  %v2268_v27 = vmul.f32 1.442695, %v2196_v53  ;;  %v2124_v57 = vpop.xlane.xlu0 %2123 }
 0x461   : > { %v2201_v23 = vsub.f32 %v6402_v58, %v6589_v36  ;;  %v2205_v58 = vsub.f32 %v6414_v6, %v2118_v0 }
 0x462   : > { %v2304_v2 = vmul.f32 1.442695, %v2214_v15  ;;  %v2306_v61 = vmul.f32 1.442695, %v2215_v4  ;;  %2408 = vadd.xlane.f32.xlu1 %v2407_v60  ;;  %v2270_v4 = vmul.f32 1.442695, %v2197_v38  ;;  %v2204_v60 = vsub.f32 %v6412_v5, %v2118_v0 }
 0x464   : > { %5319 = vpow2.f32 %v2304_v2  ;;  %v2276_v2 = vmul.f32 1.442695, %v2200_v20  ;;  %v2284_v36 = vmul.f32 1.442695, %v2204_v60  ;;  %v2130_v38 = vpop.xlane.xlu0 %2129 }
 0x465   : > { %5321 = vpow2.f32 %v2306_v61  ;;  %v2278_v61 = vmul.f32 1.442695, %v2201_v23  ;;  %v2212_v23 = vsub.f32 %v6436_v25, %v2130_v38 }
 0x466   : > { %v6630_v55 = vpop.eup %5315  ;;  %5323 = vpow2.f32 %v2268_v27 }
 0x467   : > { %v6634_v9 = vpop.eup %5317  ;;  %v2139_v29 = vpop.xlane.xlu1 %2138 }
 0x468   : > { %v2218_v43 = vsub.f32 %v6452_v34, %v2139_v29  ;;  %v2219_v49 = vsub.f32 %v6456_v35, %v2139_v29  ;;  %v2413_v15 = vadd.f32 %v6634_v9, %v6630_v55  ;;  %v2208_v29 = vsub.f32 %v6424_v11, %v2124_v57 }
 0x46a   : > { %v2312_v50 = vmul.f32 1.442695, %v2218_v43  ;;  %v2314_v12 = vmul.f32 1.442695, %v2219_v49  ;;  %2414 = vadd.xlane.f32.xlu1 %v2413_v15  ;;  %v2286_v43 = vmul.f32 1.442695, %v2205_v58  ;;  %v2209_v49 = vsub.f32 %v6426_v19, %v2124_v57  ;;  %v2136_v15 = vpop.xlane.xlu0 %2135 }
 0x46b   : > { %v2300_v19 = vmul.f32 1.442695, %v2212_v23  ;;  %v2216_v25 = vsub.f32 %v6448_v31, %v2136_v15 }
 0x46c   : > { %5325 = vpow2.f32 %v2312_v50  ;;  %v2294_v11 = vmul.f32 1.442695, %v2209_v49  ;;  %v2213_v50 = vsub.f32 %v6438_v26, %v2130_v38 }
 0x46d   : > { %5327 = vpow2.f32 %v2314_v12 }
 0x46e   : > { %v6645_v34 = vpop.eup %5319  ;;  %5329 = vpow2.f32 %v2270_v4  ;;  %v2142_v57 = vpop.xlane.xlu0 %2141  ;;  %v2302_v38 = vmul.f32 1.442695, %v2213_v50 }
 0x46f   : > { %v6648_v35 = vpop.eup %5321  ;;  %v2145_v53 = vpop.xlane.xlu1 %2144  ;;  %5331 = vpow2.f32 %v2276_v2  ;;  %v2220_v31 = vsub.f32 %v6460_v41, %v2142_v57  ;;  %v2221_v49 = vsub.f32 %v6462_v45, %v2142_v57 }
 0x470   : > { %v2222_v27 = vsub.f32 %v6464_v48, %v2145_v53  ;;  %v2223_v5 = vsub.f32 %v6468_v56, %v2145_v53  ;;  %5333 = vpow2.f32 %v2278_v61  ;;  %v2419_v20 = vadd.f32 %v6648_v35, %v6645_v34  ;;  %v6657_v48 = vpop.eup %5323 }
 0x471   : > { %5335 = vpow2.f32 %v2284_v36  ;;  %v2292_v56 = vmul.f32 1.442695, %v2208_v29  ;;  %v2217_v36 = vsub.f32 %v6450_v32, %v2136_v15  ;;  %v2316_v41 = vmul.f32 1.442695, %v2220_v31 }
 0x472   : > { %v2320_v6 = vmul.f32 1.442695, %v2222_v27  ;;  %v2322_v0 = vmul.f32 1.442695, %v2223_v5  ;;  %2420 = vadd.xlane.f32.xlu1 %v2419_v20 }
 0x473   : > { %v2310_v20 = vmul.f32 1.442695, %v2217_v36 }
 0x474   : > { %5337 = vpow2.f32 %v2320_v6 }
 0x475   : > { %5339 = vpow2.f32 %v2322_v0  ;;  %v2148_v6 = vpop.xlane.xlu0 %2147 }
 0x476   : > { %v6659_v4 = vpop.eup %5325  ;;  %5341 = vpow2.f32 %v2286_v43 }
 0x477   : > { %v6662_v12 = vpop.eup %5327  ;;  %v2151_v60 = vpop.xlane.xlu1 %2150  ;;  %5343 = vpow2.f32 %v2292_v56 }
 0x478   : > { %v6664_v2 = vpop.eup %5329  ;;  %v2226_v61 = vsub.f32 %v6476_v10, %v2151_v60  ;;  %v2227_v58 = vsub.f32 %v6480_v24, %v2151_v60  ;;  %v2425_v53 = vadd.f32 %v6662_v12, %v6659_v4  ;;  %5345 = vpow2.f32 %v2294_v11 }
 0x479   : > { %v6672_v26 = vpop.eup %5331  ;;  %5347 = vpow2.f32 %v2300_v19  ;;  %v2392_v10 = vadd.f32 %v6664_v2, %v6657_v48  ;;  %v2308_v24 = vmul.f32 1.442695, %v2216_v25  ;;  %v2224_v19 = vsub.f32 %v6472_v3, %v2148_v6 }
 0x47a   : > { %v2328_v27 = vmul.f32 1.442695, %v2226_v61  ;;  %v2330_v5 = vmul.f32 1.442695, %v2227_v58  ;;  %v6674_v29 = vpop.eup %5333  ;;  %2426 = vadd.xlane.f32.xlu1 %v2425_v53  ;;  %v2318_v60 = vmul.f32 1.442695, %v2221_v49  ;;  %v2225_v25 = vsub.f32 %v6474_v8, %v2148_v6 }
 0x47b   : > { %v6679_v32 = vpop.eup %5335  ;;  %v2398_v15 = vadd.f32 %v6674_v29, %v6672_v26  ;;  %v2324_v53 = vmul.f32 1.442695, %v2224_v19 }
 0x47c   : > { %5349 = vpow2.f32 %v2328_v27  ;;  %v2326_v27 = vmul.f32 1.442695, %v2225_v25 }
 0x47d   : > { %5351 = vpow2.f32 %v2330_v5  ;;  %2393 = vadd.xlane.f32.xlu0 %v2392_v10  ;;  %v2154_v57 = vpop.xlane.xlu0 %2153 }
 0x47e   : > { %v6681_v43 = vpop.eup %5337  ;;  %5353 = vpow2.f32 %v2302_v38  ;;  %v2228_v38 = vsub.f32 %v6484_v33, %v2154_v57  ;;  %v2229_v5 = vsub.f32 %v6486_v30, %v2154_v57 }
 0x47f   : > { %v6684_v0 = vpop.eup %5339  ;;  %v2157_v23 = vpop.xlane.xlu1 %2156  ;;  %5355 = vpow2.f32 %v2308_v24 }
 0x480   : > { %v6688_v56 = vpop.eup %5341  ;;  %v2230_v11 = vsub.f32 %v6488_v39, %v2157_v23  ;;  %v2231_v50 = vsub.f32 %v6492_v59, %v2157_v23  ;;  %5357 = vpow2.f32 %v2310_v20  ;;  %v2431_v45 = vadd.f32 %v6684_v0, %v6681_v43 }
 0x481   : > { %2399 = vadd.xlane.f32.xlu0 %v2398_v15  ;;  %v6696_v36 = vpop.eup %5343  ;;  %5359 = vpow2.f32 %v2316_v41  ;;  %v2404_v39 = vadd.f32 %v6688_v56, %v6679_v32  ;;  %v2332_v49 = vmul.f32 1.442695, %v2228_v38  ;;  %v2334_v30 = vmul.f32 1.442695, %v2229_v5 }
 0x482   : > { %v2336_v61 = vmul.f32 1.442695, %v2230_v11  ;;  %v2338_v58 = vmul.f32 1.442695, %v2231_v50  ;;  %2432 = vadd.xlane.f32.xlu1 %v2431_v45  ;;  %v6700_v59 = vpop.eup %5345 }
 0x483   : > { %v6702_v3 = vpop.eup %5347  ;;  %v2410_v24 = vadd.f32 %v6700_v59, %v6696_v36 }
 0x484   : > { %5361 = vpow2.f32 %v2336_v61 }
 0x485   : > { %5363 = vpow2.f32 %v2338_v58  ;;  %2405 = vadd.xlane.f32.xlu0 %v2404_v39  ;;  %v2160_v31 = vpop.xlane.xlu0 %2159 }
 0x486   : > { %v6705_v8 = vpop.eup %5349  ;;  %5365 = vpow2.f32 %v2318_v60  ;;  %v2232_v33 = vsub.f32 %v6496_v22, %v2160_v31  ;;  %v2233_v23 = vsub.f32 %v6498_v18, %v2160_v31 }
 0x487   : > { %9433 = vst [vmem:[#allocation32_spill] sm:$0xff] %v6705_v8  ;;  %v6708_v10 = vpop.eup %5351  ;;  %5367 = vpow2.f32 %v2324_v53 }
 0x488   : > { %v6712_v20 = vpop.eup %5353  ;;  %v2437_v6 = vadd.f32 %v6708_v10, %v6705_v8  ;;  %5369 = vpow2.f32 %v2326_v27  ;;  %v2340_v22 = vmul.f32 1.442695, %v2232_v33  ;;  %v2342_v60 = vmul.f32 1.442695, %v2233_v23  ;;  %v9452_v8 = vld [vmem:[#allocation30_spill] sm:$0xff] }
 0x489   : > { %2411 = vadd.xlane.f32.xlu0 %v2410_v24  ;;  %v6717_v41 = vpop.eup %5355  ;;  %v2416_v11 = vadd.f32 %v6712_v20, %v6702_v3  ;;  %5371 = vpow2.f32 %v2332_v49 }
 0x48a   : > { %v6720_v15 = vpop.eup %5357  ;;  %2438 = vadd.xlane.f32.xlu1 %v2437_v6  ;;  %5373 = vpow2.f32 %v2334_v30 }
 0x48b   : > { %v6724_v50 = vpop.eup %5359  ;;  %v2422_v61 = vadd.f32 %v6720_v15, %v6717_v41  ;;  %5375 = vpow2.f32 %v2340_v22  ;;  %v671_v22 = vld [vmem:[%s9123_s6 + $0x10] sm:$0xff] }
 0x48c   : > { %5377 = vpow2.f32 %v2342_v60  ;;  %v2163_v60 = vpop.xlane.xlu1 %2162 }
 0x48d   : > { %2417 = vadd.xlane.f32.xlu0 %v2416_v11  ;;  %v2166_v19 = vpop.xlane.xlu0 %2165 }
 0x48e   : > { %v6726_v45 = vpop.eup %5361  ;;  %v2236_v25 = vsub.f32 %v6508_v52, %v2166_v19  ;;  %v2237_v18 = vsub.f32 %v6510_v1, %v2166_v19 }
 0x48f   : > { %9434 = vst [vmem:[#allocation33_spill] sm:$0xff] %v6726_v45  ;;  %v6730_v57 = vpop.eup %5363 }
 0x490   : > { %9435 = vst [vmem:[#allocation34_spill] sm:$0xff] %v6730_v57  ;;  %v6734_v58 = vpop.eup %5365  ;;  %v2348_v39 = vmul.f32 1.442695, %v2236_v25  ;;  %v2443_v53 = vadd.f32 %v6730_v57, %v6726_v45  ;;  %v2350_v38 = vmul.f32 1.442695, %v2237_v18  ;;  %v2234_v25 = vsub.f32 %v6500_v28, %v2163_v60 }
 0x491   : > { %2423 = vadd.xlane.f32.xlu0 %v2422_v61  ;;  %v6738_v27 = vpop.eup %5367  ;;  %v2428_v1 = vadd.f32 %v6734_v58, %v6724_v50  ;;  %v2235_v18 = vsub.f32 %v6504_v16, %v2163_v60  ;;  %v2169_v61 = vpop.xlane.xlu1 %2168 }
 0x492   : > { %2444 = vadd.xlane.f32.xlu1 %v2443_v53  ;;  %v6742_v52 = vpop.eup %5369  ;;  %5379 = vpow2.f32 %v2348_v39  ;;  %v2344_v39 = vmul.f32 1.442695, %v2234_v25  ;;  %v2238_v53 = vsub.f32 %v6512_v46, %v2169_v61 }
 0x493   : > { %5381 = vpow2.f32 %v2350_v38  ;;  %v6744_v5 = vpop.eup %5371  ;;  %v2434_v31 = vadd.f32 %v6742_v52, %v6738_v27  ;;  %v2346_v38 = vmul.f32 1.442695, %v2235_v18  ;;  %v9444_v18 = vld [vmem:[#allocation22_spill] sm:$0xff] }
 0x494   : > { %9436 = vst [vmem:[#allocation35_spill] sm:$0xff] %v6744_v5  ;;  %v6748_v24 = vpop.eup %5373  ;;  %5383 = vpow2.f32 %v2344_v39 }
 0x495   : > { %2429 = vadd.xlane.f32.xlu0 %v2428_v1  ;;  %v6750_v49 = vpop.eup %5375  ;;  %v2440_v33 = vadd.f32 %v6748_v24, %v6744_v5  ;;  %v9441_v1 = vld [vmem:[#allocation19_spill] sm:$0xff]  ;;  %5385 = vpow2.f32 %v2346_v38 }
 0x496   : > { %9437 = vst [vmem:[#allocation36_spill] sm:$0xff] %v6750_v49  ;;  %v6754_v6 = vpop.eup %5377 }
 0x497   : > { %9438 = vst [vmem:[#allocation37_spill] sm:$0xff] %v6754_v6  ;;  %v2446_v23 = vadd.f32 %v6754_v6, %v6750_v49  ;;  %v9442_v49 = vld [vmem:[#allocation20_spill] sm:$0xff]  ;;  %v2175_v60 = vpop.xlane.xlu1 %2174 }
 0x499   : > { %2435 = vadd.xlane.f32.xlu0 %v2434_v31  ;;  %v2239_v31 = vsub.f32 %v9441_v1, %v2169_v61  ;;  %v2242_v61 = vsub.f32 %v9444_v18, %v2175_v60  ;;  %v9450_v18 = vld [vmem:[#allocation26_spill] sm:$0xff] }
 0x49b   : > { %v2354_v28 = vmul.f32 1.442695, %v2239_v31 }
 0x49c   : > { %v6756_v30 = vpop.eup %5379 }
 0x49d   : > { %2441 = vadd.xlane.f32.xlu0 %v2440_v33  ;;  %9439 = vst [vmem:[#allocation38_spill] sm:$0xff] %v6756_v30  ;;  %v6760_v11 = vpop.eup %5381  ;;  %v2172_v33 = vpop.xlane.xlu0 %2171 }
 0x49e   : > { %9440 = vst [vmem:[#allocation39_spill] sm:$0xff] %v6760_v11  ;;  %v2452_v19 = vadd.f32 %v6760_v11, %v6756_v30  ;;  %v2240_v6 = vsub.f32 %v9442_v49, %v2172_v33  ;;  %v2360_v30 = vmul.f32 1.442695, %v2242_v61  ;;  %v9446_v11 = vld [vmem:[#allocation24_spill] sm:$0xff]  ;;  %v6780_v5 = vpop.eup %5383 }
 0x49f   : > { %v2181_v38 = vpop.xlane.xlu1 %2180 }
 0x4a0   : > { %v2356_v46 = vmul.f32 1.442695, %v2240_v6 }
 0x4a1   : > { %2447 = vadd.xlane.f32.xlu0 %v2446_v23  ;;  %v2352_v23 = vmul.f32 1.442695, %v2238_v53  ;;  %v2178_v25 = vpop.xlane.xlu0 %2177  ;;  %v9445_v53 = vld [vmem:[#allocation23_spill] sm:$0xff] }
 0x4a2   : > { %v2243_v1 = vsub.f32 %v9445_v53, %v2175_v60  ;;  %v2244_v45 = vsub.f32 %v9446_v11, %v2178_v25  ;;  %v9451_v53 = vld [vmem:[#allocation27_spill] sm:$0xff] }
 0x4a3   : > { %685 = vperm.xlu1 %5272, %v671_v22   ;;  %v767_v22 = vld [vmem:[%s9124_s7] sm:$0xff]  ;;  %5387 = vpow2.f32 %v2352_v23  ;;  %v9448_v23 = vld [vmem:[#allocation28_spill] sm:$0xff] }
 0x4a4   : > { %5389 = vpow2.f32 %v2354_v28  ;;  %v2362_v31 = vmul.f32 1.442695, %v2243_v1  ;;  %v9449_v28 = vld [vmem:[#allocation29_spill] sm:$0xff]  ;;  %v2364_v60 = vmul.f32 1.442695, %v2244_v45 }
 0x4a5   : > { %2453 = vadd.xlane.f32.xlu0 %v2452_v19  ;;  %v9443_v19 = vld [vmem:[#allocation21_spill] sm:$0xff]  ;;  %v2184_v49 = vpop.xlane.xlu0 %2183  ;;  %5391 = vpow2.f32 %v2356_v46  ;;  %v2246_v46 = vsub.f32 %v9450_v18, %v2181_v38 }
 0x4a6   : > { %v2241_v16 = vsub.f32 %v9443_v19, %v2172_v33  ;;  %v9447_v33 = vld [vmem:[#allocation25_spill] sm:$0xff]  ;;  %v2248_v6 = vsub.f32 %v9448_v23, %v2184_v49 }
 0x4a7   : > { %v2245_v19 = vsub.f32 %v9447_v33, %v2178_v25  ;;  %v2187_v61 = vpop.xlane.xlu1 %2186  ;;  %v2368_v45 = vmul.f32 1.442695, %v2246_v46 }
 0x4a8   : > { %v2358_v39 = vmul.f32 1.442695, %v2241_v16  ;;  %v2249_v16 = vsub.f32 %v9449_v28, %v2184_v49  ;;  %v2372_v25 = vmul.f32 1.442695, %v2248_v6  ;;  %v2250_v49 = vsub.f32 %v9452_v8, %v2187_v61 }
 0x4a9   : > { %v2366_v11 = vmul.f32 1.442695, %v2245_v19 }
 0x4aa   : > { %5393 = vpow2.f32 %v2358_v39  ;;  %v2247_v39 = vsub.f32 %v9451_v53, %v2181_v38  ;;  %v2374_v57 = vmul.f32 1.442695, %v2249_v16  ;;  %v2376_v18 = vmul.f32 1.442695, %v2250_v49 }
 0x4ab   : > { %5395 = vpow2.f32 %v2360_v30 }
 0x4ac   : > { %5397 = vpow2.f32 %v2362_v31  ;;  %v2370_v30 = vmul.f32 1.442695, %v2247_v39  ;;  %v9453_v31 = vld [vmem:[#allocation31_spill] sm:$0xff] }
 0x4ad   : > { %5399 = vpow2.f32 %v2364_v60  ;;  %v2251_v19 = vsub.f32 %v9453_v31, %v2187_v61 }
 0x4ae   : > { %5401 = vpow2.f32 %v2366_v11 }
 0x4af   : > { %5403 = vpow2.f32 %v2372_v25  ;;  %v2378_v8 = vmul.f32 1.442695, %v2251_v19 }
 0x4b0   : > { %5405 = vpow2.f32 %v2374_v57 }
 0x4b1   : > { %5407 = vpow2.f32 %v2368_v45 }
 0x4b2   : > { %5409 = vpow2.f32 %v2370_v30 }
 0x4bb   : > { %773 = vperm.xlu0 %5271, %v767_v22   ;;  %v6783_v22 = vpop.eup %5385 }
 0x4bc   : > { %v6788_v1 = vpop.eup %5387  ;;  %v2449_v33 = vadd.f32 %v6783_v22, %v6780_v5 }
 0x4bd   : > { %v6792_v23 = vpop.eup %5389 }
 0x4be   : > { %v6796_v28 = vpop.eup %5391  ;;  %v2455_v38 = vadd.f32 %v6792_v23, %v6788_v1 }
 0x4bf   : > { %v6800_v6 = vpop.eup %5393 }
 0x4c0   : > { %v6802_v60 = vpop.eup %5395  ;;  %v2458_v46 = vadd.f32 %v6800_v6, %v6796_v28 }
 0x4c1   : > { %v6806_v61 = vpop.eup %5397 }
 0x4c2   : > { %v6808_v57 = vpop.eup %5399  ;;  %v2461_v53 = vadd.f32 %v6806_v61, %v6802_v60 }
 0x4c3   : > { %9454 = vst [vmem:[#allocation19_spill] sm:$0xff] %v6808_v57  ;;  %v6812_v39 = vpop.eup %5401 }
 0x4c4   : > { %v6814_v25 = vpop.eup %5403  ;;  %v2464_v30 = vadd.f32 %v6812_v39, %v6808_v57 }
 0x4c5   : > { %9455 = vst [vmem:[#allocation20_spill] sm:$0xff] %v6814_v25 }
 0x4c7   : > { %2450 = vadd.xlane.f32.xlu1 %v2449_v33  ;;  %v6816_v33 = vpop.eup %5405 }
 0x4c8   : > { %9456 = vst [vmem:[#allocation21_spill] sm:$0xff] %v6816_v33  ;;  %v6818_v45 = vpop.eup %5407 }
 0x4c9   : > { %9457 = vst [vmem:[#allocation22_spill] sm:$0xff] %v6818_v45  ;;  %v6822_v31 = vpop.eup %5409 }
 0x4ca   : > { %9458 = vst [vmem:[#allocation23_spill] sm:$0xff] %v6822_v31 }
 0x4cb   : > { %2456 = vadd.xlane.f32.xlu1 %v2455_v38  ;;  %v2470_v38 = vadd.f32 %v6816_v33, %v6814_v25 }
 0x4cd   : > { %v2382_v16 = vpop.xlane.xlu0 %2381 }
 0x4ce   : > { %5411 = vrcp.f32 %v2382_v16 }
 0x4cf   : > { %5413 = vpow2.f32 %v2376_v18  ;;  %v2385_v11 = vpop.xlane.xlu1 %2384  ;;  %2459 = vadd.xlane.f32.xlu1 %v2458_v46  ;;  %v2467_v46 = vadd.f32 %v6822_v31, %v6818_v45 }
 0x4d0   : > { %5415 = vrcp.f32 %v2385_v11 }
 0x4d1   : > { %5417 = vpow2.f32 %v2378_v8 }
 0x4d3   : > { %2462 = vadd.xlane.f32.xlu1 %v2461_v53 }
 0x4d5   : > { %v2388_v49 = vpop.xlane.xlu0 %2387 }
 0x4d6   : > { %5419 = vrcp.f32 %v2388_v49 }
 0x4d7   : > { %2465 = vadd.xlane.f32.xlu1 %v2464_v30 }
 0x4d8   : > { %v5412_v19 = vpop.eup %5411 }
 0x4d9   : > { %v6826_v18 = vpop.eup %5413  ;;  %v2391_v8 = vpop.xlane.xlu1 %2390  ;;  %v2509_v53 = vmul.f32 %v5412_v19, %v6571_v14  ;;  %v2508_v49 = vmul.f32 %v5412_v19, %v6569_v40 }
 0x4da   : > { %v5416_v16 = vpop.eup %5415  ;;  %5421 = vrcp.f32 %v2391_v8  ;;  %2471 = vadd.xlane.f32.xlu0 %v2470_v38 }
 0x4db   : > { %v6830_v11 = vpop.eup %5417  ;;  %v2511_v57 = vmul.f32 %v5416_v16, %v6579_v13  ;;  %v2510_v30 = vmul.f32 %v5416_v16, %v6575_v42  ;;  %2468 = vadd.xlane.f32.xlu1 %v2467_v46 }
 0x4dc   : > { %v2473_v8 = vadd.f32 %v6830_v11, %v6826_v18 }
 0x4dd   : > { %v2573_v25 = vpack.c.bf16 %v2511_v57, %v2509_v53  ;;  %v2572_v33 = vpack.c.bf16 %v2510_v30, %v2508_v49  ;;  %v769_v57 = vld [vmem:[%s9124_s7 + $0x10] sm:$0xff] }
 0x4df   : > { %2604 = vmatprep.subr.bf16.mxu0 %v2573_v25  ;;  %2474 = vadd.xlane.f32.xlu1 %v2473_v8  ;;  %v865_v25 = vld [vmem:[%s9125_s8 + $0x8] sm:$0xff] }
 0x4e0   : > { %2605 = vmatpush1.bf16.xpose.msra.mxu0 %v2572_v33  ;;  %v5420_v38 = vpop.eup %5419 }
 0x4e1   : > { %v2513_v31 = vmul.f32 %v5420_v38, %v6587_v51  ;;  %v2512_v13 = vmul.f32 %v5420_v38, %v6585_v62  ;;  %v2397_v62 = vpop.xlane.xlu1 %2396 }
 0x4e2   : > { %5423 = vrcp.f32 %v2397_v62 }
 0x4e4   : > { %v5422_v45 = vpop.eup %5421 }
 0x4e5   : > { %v2515_v14 = vmul.f32 %v5422_v45, %v6595_v63  ;;  %v2514_v40 = vmul.f32 %v5422_v45, %v6593_v37  ;;  %v676_v37 = vpop.permute.xlu0 %675  ;;  %v9459_v63 = vld [vmem:[#allocation3_spill] sm:$0xff] }
 0x4e6   : > { %v6848_v33 = vpop.f32.mrb[0].mxu1  ;;  %v745_v45 = vadd.f32 %v9459_v63, %v676_v37 }
 0x4e7   : > { %v2575_v42 = vpack.c.bf16 %v2515_v14, %v2513_v31  ;;  %v2574_v19 = vpack.c.bf16 %v2514_v40, %v2512_v13  ;;  %v6850_v51 = vpop.f32.mrb[1].mxu1 }
 0x4e8   : > { %v961_v16 = vmul.f32 0.35355338, %v745_v45 }
 0x4e9   : > { %2606 = vmatprep.subr.bf16.mxu0 %v2575_v42  ;;  %v2403_v31 = vpop.xlane.xlu1 %2402 }
 0x4ea   : > { %2607 = vmatpush1.bf16.xpose.msra.mxu0 %v2574_v19  ;;  %v963_v49 = vpack.c.bf16 %v961_v16, %v961_v16 }
 0x4ec   : > { %v5424_v13 = vpop.eup %5423 }
 0x4ed   : > { %v2518_v63 = vmul.f32 %v5424_v13, %v6601_v47 }
 0x4ef   : > { %v2409_v46 = vpop.xlane.xlu1 %2408 }
 0x4f0   : > { %783 = vperm.xlu0 %5271, %v769_v57   ;;  %875 = vperm.xlu1 %5272, %v865_v25   ;;  %v2519_v25 = vmul.f32 %v5424_v13, %v6605_v17 }
 0x4f7   : > { %v2415_v30 = vpop.xlane.xlu1 %2414 }
 0x4ff   : > { %v2421_v38 = vpop.xlane.xlu1 %2420 }
 0x507   : > { %v2427_v40 = vpop.xlane.xlu1 %2426 }
 0x50a   : > { %v2394_v53 = vpop.xlane.xlu0 %2393 }
 0x50b   : > { %5425 = vrcp.f32 %v2394_v53 }
 0x50c   : > { %5427 = vrcp.f32 %v2403_v31 }
 0x50e   : > { %969 = vxpose.xlu0.c.b16.start.end [1/1] (short) %v963_v49, 128  ;;  %v2400_v8 = vpop.xlane.xlu0 %2399 }
 0x50f   : > { %5429 = vrcp.f32 %v2400_v8  ;;  %v2433_v31 = vpop.xlane.xlu1 %2432 }
 0x510   : > { %5431 = vrcp.f32 %v2409_v46 }
 0x512   : > { %v2406_v14 = vpop.xlane.xlu0 %2405 }
 0x513   : > { %5433 = vrcp.f32 %v2406_v14 }
 0x515   : > { %v5426_v42 = vpop.eup %5425 }
 0x516   : > { %v2412_v19 = vpop.xlane.xlu0 %2411  ;;  %v2517_v57 = vmul.f32 %v5426_v42, %v6664_v2  ;;  %v2516_v62 = vmul.f32 %v5426_v42, %v6657_v48  ;;  %v5428_v45 = vpop.eup %5427 }
 0x517   : > { %5435 = vrcp.f32 %v2412_v19  ;;  %v2523_v14 = vmul.f32 %v5428_v45, %v6613_v7  ;;  %v6859_v17 = vpop.xlane.xlu1 %2438  ;;  %v2522_v19 = vmul.f32 %v5428_v45, %v6609_v54  ;;  %v9460_v7 = vld [vmem:[#allocation4_spill] sm:$0xff] }
 0x518   : > { %v2577_v16 = vpack.c.bf16 %v2519_v25, %v2517_v57  ;;  %v2576_v53 = vpack.c.bf16 %v2518_v63, %v2516_v62  ;;  %5437 = vrcp.f32 %v2415_v30  ;;  %v747_v62 = vadd.f32 %v9460_v7, %v676_v37 }
 0x519   : > { %v5430_v49 = vpop.eup %5429 }
 0x51a   : > { %v2418_v46 = vpop.xlane.xlu0 %2417  ;;  %2608 = vmatprep.subr.bf16.mxu0 %v2577_v16  ;;  %v2521_v8 = vmul.f32 %v5430_v49, %v6674_v29  ;;  %v5432_v2 = vpop.eup %5431  ;;  %v2520_v47 = vmul.f32 %v5430_v49, %v6672_v26  ;;  %v962_v49 = vmul.f32 0.35355338, %v747_v62 }
 0x51b   : > { %2609 = vmatpush1.bf16.xpose.msra.mxu0 %v2576_v53  ;;  %v2527_v29 = vmul.f32 %v5432_v2, %v6622_v21  ;;  %5439 = vrcp.f32 %v2418_v46  ;;  %v2526_v37 = vmul.f32 %v5432_v2, %v6620_v44 }
 0x51c   : > { %v2579_v48 = vpack.c.bf16 %v2523_v14, %v2521_v8  ;;  %v2578_v63 = vpack.c.bf16 %v2522_v19, %v2520_v47  ;;  %5441 = vrcp.f32 %v2421_v38  ;;  %v9461_v8 = vld [vmem:[#allocation5_spill] sm:$0xff]  ;;  %v964_v46 = vpack.c.bf16 %v962_v49, %v962_v49 }
 0x51d   : > { %v5434_v42 = vpop.eup %5433 }
 0x51e   : > { %v2424_v13 = vpop.xlane.xlu0 %2423  ;;  %2610 = vmatprep.subr.bf16.mxu0 %v2579_v48  ;;  %v2525_v57 = vmul.f32 %v5434_v42, %v6688_v56  ;;  %v2524_v45 = vmul.f32 %v5434_v42, %v6679_v32 }
 0x51f   : > { %v6864_v25 = vpop.xlane.xlu1 %2444  ;;  %5443 = vrcp.f32 %v2424_v13 }
 0x520   : > { %v2581_v16 = vpack.c.bf16 %v2527_v29, %v2525_v57  ;;  %v2580_v19 = vpack.c.bf16 %v2526_v37, %v2524_v45  ;;  %5445 = vrcp.f32 %v2427_v40 }
 0x521   : > { %v5436_v53 = vpop.eup %5435 }
 0x522   : > { %v2430_v30 = vpop.xlane.xlu0 %2429  ;;  %v5438_v14 = vpop.eup %5437  ;;  %v2529_v21 = vmul.f32 %v5436_v53, %v6700_v59  ;;  %v2528_v42 = vmul.f32 %v5436_v53, %v6696_v36 }
 0x523   : > { %2611 = vmatpush1.bf16.xpose.msra.mxu0 %v2578_v63  ;;  %v686_v26 = vpop.permute.xlu1 %685  ;;  %v2531_v57 = vmul.f32 %v5438_v14, %v6634_v9  ;;  %v2530_v2 = vmul.f32 %v5438_v14, %v6630_v55  ;;  %5447 = vrcp.f32 %v2430_v30  ;;  %v9462_v30 = vld [vmem:[#allocation9_spill] sm:$0xff] }
 0x524   : > { %2612 = vmatprep.subr.bf16.mxu0 %v2581_v16  ;;  %v755_v56 = vadd.f32 %v9461_v8, %v686_v26  ;;  %5449 = vrcp.f32 %v2433_v31 }
 0x525   : > { %v2583_v29 = vpack.c.bf16 %v2531_v57, %v2529_v21  ;;  %v5440_v7 = vpop.eup %5439  ;;  %v2582_v13 = vpack.c.bf16 %v2530_v2, %v2528_v42  ;;  %v9464_v21 = vld [vmem:[#allocation6_spill] sm:$0xff] }
 0x526   : > { %v2436_v54 = vpop.xlane.xlu0 %2435  ;;  %v2791_v48 = vmul.f32 0.35355338, %v755_v56  ;;  %v5442_v32 = vpop.eup %5441  ;;  %v2533_v59 = vmul.f32 %v5440_v7, %v6712_v20  ;;  %v2532_v49 = vmul.f32 %v5440_v7, %v6702_v3  ;;  %v9463_v56 = vld [vmem:[#allocation10_spill] sm:$0xff] }
 0x527   : > { %v2535_v9 = vmul.f32 %v5442_v32, %v6648_v35  ;;  %v2534_v20 = vmul.f32 %v5442_v32, %v6645_v34  ;;  %5451 = vrcp.f32 %v2436_v54  ;;  %v757_v34 = vadd.f32 %v9464_v21, %v686_v26 }
 0x528   : > { %v2793_v47 = vpack.c.bf16 %v2791_v48, %v2791_v48  ;;  %5453 = vrcp.f32 %v6859_v17 }
 0x529   : > { %v2585_v62 = vpack.c.bf16 %v2535_v9, %v2533_v59  ;;  %v5444_v63 = vpop.eup %5443  ;;  %v2584_v35 = vpack.c.bf16 %v2534_v20, %v2532_v49  ;;  %v6898_v59 = vpop.f32.mrb[2].mxu1  ;;  %v9469_v49 = vld [vmem:[#allocation35_spill] sm:$0xff] }
 0x52a   : > { %v2442_v38 = vpop.xlane.xlu0 %2441  ;;  %2799 = vxpose.xlu1.c.b16.start.end [1/1] (short) %v2793_v47, 128  ;;  %v5446_v40 = vpop.eup %5445  ;;  %v2537_v36 = vmul.f32 %v5444_v63, %v6720_v15  ;;  %v2792_v47 = vmul.f32 0.35355338, %v757_v34  ;;  %9465 = vst [vmem:[#allocation24_spill] sm:$0xff] %v6898_v59 }
 0x52b   : > { %985 = vxpose.xlu0.c.b16.start.end [1/1] (short) %v964_v46, 128  ;;  %2613 = vmatpush1.bf16.xpose.msra.mxu0 %v2580_v19  ;;  %v2539_v53 = vmul.f32 %v5446_v40, %v6662_v12  ;;  %v2536_v12 = vmul.f32 %v5444_v63, %v6717_v41  ;;  %v2538_v46 = vmul.f32 %v5446_v40, %v6659_v4  ;;  %5455 = vrcp.f32 %v2442_v38  ;;  %v6901_v9 = vpop.f32.mrb[3].mxu1 }
 0x52c   : > { %2614 = vmatprep.subr.bf16.mxu0 %v2583_v29  ;;  %5457 = vrcp.f32 %v6864_v25  ;;  %v2794_v26 = vpack.c.bf16 %v2792_v47, %v2792_v47  ;;  %9466 = vst [vmem:[#allocation25_spill] sm:$0xff] %v6901_v9 }
 0x52d   : > { %v2587_v31 = vpack.c.bf16 %v2539_v53, %v2537_v36  ;;  %v5448_v45 = vpop.eup %5447  ;;  %v2586_v57 = vpack.c.bf16 %v2538_v46, %v2536_v12  ;;  %v9473_v12 = vld [vmem:[#allocation39_spill] sm:$0xff] }
 0x52e   : > { %v6875_v44 = vpop.xlane.xlu0 %2447  ;;  %v5450_v15 = vpop.eup %5449  ;;  %v2541_v37 = vmul.f32 %v5448_v45, %v6734_v58  ;;  %v2540_v7 = vmul.f32 %v5448_v45, %v6724_v50 }
 0x52f   : > { %v2543_v17 = vmul.f32 %v5450_v15, %v6684_v0  ;;  %v2542_v4 = vmul.f32 %v5450_v15, %v6681_v43  ;;  %5459 = vrcp.f32 %v6875_v44 }
 0x531   : > { %v2589_v19 = vpack.c.bf16 %v2543_v17, %v2541_v37  ;;  %v5452_v29 = vpop.eup %5451  ;;  %v2588_v32 = vpack.c.bf16 %v2542_v4, %v2540_v7 }
 0x532   : > { %v2454_v16 = vpop.xlane.xlu0 %2453  ;;  %v5454_v41 = vpop.eup %5453  ;;  %v2545_v58 = vmul.f32 %v5452_v29, %v6742_v52  ;;  %v2544_v2 = vmul.f32 %v5452_v29, %v6738_v27  ;;  %v9467_v52 = vld [vmem:[#allocation32_spill] sm:$0xff]  ;;  %v9470_v27 = vld [vmem:[#allocation33_spill] sm:$0xff] }
 0x533   : > { %2615 = vmatpush1.bf16.xpose.msra.mxu0 %v2582_v13  ;;  %v2547_v0 = vmul.f32 %v5454_v41, %v6708_v10  ;;  %v2546_v13 = vmul.f32 %v5454_v41, %v9467_v52 }
 0x534   : > { %2616 = vmatprep.subr.bf16.mxu0 %v2585_v62  ;;  %v9468_v62 = vld [vmem:[#allocation34_spill] sm:$0xff] }
 0x535   : > { %v2591_v38 = vpack.c.bf16 %v2547_v0, %v2545_v58  ;;  %v5456_v42 = vpop.eup %5455  ;;  %v2590_v63 = vpack.c.bf16 %v2546_v13, %v2544_v2 }
 0x536   : > { %v5458_v25 = vpop.eup %5457  ;;  %v2549_v50 = vmul.f32 %v5456_v42, %v6748_v24  ;;  %v2548_v36 = vmul.f32 %v5456_v42, %v9469_v49 }
 0x537   : > { %v2551_v43 = vmul.f32 %v5458_v25, %v9468_v62  ;;  %v2550_v20 = vmul.f32 %v5458_v25, %v9470_v27  ;;  %v9479_v27 = vld [vmem:[#allocation19_spill] sm:$0xff] }
 0x539   : > { %v2593_v10 = vpack.c.bf16 %v2551_v43, %v2549_v50  ;;  %v2592_v24 = vpack.c.bf16 %v2550_v20, %v2548_v36 }
 0x53a   : > { %v774_v55 = vpop.permute.xlu0 %773 }
 0x53b   : > { %v842_v8 = vadd.f32 %v9462_v30, %v774_v55  ;;  %v844_v14 = vadd.f32 %v9463_v56, %v774_v55  ;;  %2617 = vmatpush1.bf16.xpose.msra.mxu0 %v2584_v35  ;;  %v5460_v35 = vpop.eup %5459  ;;  %v9471_v56 = vld [vmem:[#allocation37_spill] sm:$0xff] }
 0x53c   : > { %2618 = vmatprep.subr.bf16.mxu0 %v2587_v31  ;;  %v2553_v44 = vmul.f32 %v5460_v35, %v9471_v56  ;;  %v9472_v31 = vld [vmem:[#allocation36_spill] sm:$0xff] }
 0x53d   : > { %v965_v48 = vpack.c.bf16 %v842_v8, %v842_v8  ;;  %v966_v3 = vpack.c.bf16 %v844_v14, %v844_v14  ;;  %v2552_v45 = vmul.f32 %v5460_v35, %v9472_v31  ;;  %v9481_v56 = vld [vmem:[#allocation20_spill] sm:$0xff] }
 0x53f   : > { %5137 = vmatprep.subr.msk.bf16.mxu1 %vm1050_vm1, %v966_v3  ;;  %v1052_v54 = vsel %vm1050_vm1, %v965_v48, 0 }
 0x540   : > { %1058 = vmatpush1.bf16.msra.mxu1 %v1052_v54 }
 0x543   : > { %2619 = vmatpush1.bf16.xpose.msra.mxu0 %v2586_v57  ;;  %v9474_v57 = vld [vmem:[#allocation38_spill] sm:$0xff] }
 0x544   : > { %2620 = vmatprep.subr.bf16.mxu0 %v2589_v19 }
 0x547   : > { %2815 = vxpose.xlu1.c.b16.start.end [1/1] (short) %v2794_v26, 128 }
 0x54b   : > { %2621 = vmatpush1.bf16.xpose.msra.mxu0 %v2588_v32 }
 0x54c   : > { %2622 = vmatprep.subr.bf16.mxu0 %v2591_v38  ;;  %v9475_v38 = vld [vmem:[#allocation14_spill] sm:$0xff] }
 0x553   : > { %2623 = vmatpush1.bf16.xpose.msra.mxu0 %v2590_v63  ;;  %v9477_v63 = vmov 0  }
 0x554   : > { %2624 = vmatprep.subr.bf16.mxu0 %v2593_v10  ;;  %v2451_v40 = vpop.xlane.xlu1 %2450 }
 0x555   : > { %5461 = vrcp.f32 %v2451_v40  ;;  %v9478_v40 = vld [vmem:[#allocation22_spill] sm:$0xff] }
 0x556   : > { %5463 = vrcp.f32 %v2454_v16 }
 0x558   : > { %v2457_v53 = vpop.xlane.xlu1 %2456 }
 0x559   : > { %5465 = vrcp.f32 %v2457_v53  ;;  %v9480_v53 = vld [vmem:[#allocation21_spill] sm:$0xff] }
 0x55b   : > { %2625 = vmatpush1.bf16.xpose.msra.mxu0 %v2592_v24 }
 0x55c   : > { %v2460_v55 = vpop.xlane.xlu1 %2459 }
 0x55d   : > { %5467 = vrcp.f32 %v2460_v55 }
 0x55f   : > { %v5462_v30 = vpop.eup %5461 }
 0x560   : > { %v2463_v8 = vpop.xlane.xlu1 %2462  ;;  %v2555_v14 = vmul.f32 %v5462_v30, %v6783_v22  ;;  %v2554_v48 = vmul.f32 %v5462_v30, %v6780_v5  ;;  %v5464_v16 = vpop.eup %5463 }
 0x561   : > { %5469 = vrcp.f32 %v2463_v8  ;;  %v2557_v54 = vmul.f32 %v5464_v16, %v9473_v12  ;;  %v2556_v19 = vmul.f32 %v5464_v16, %v9474_v57 }
 0x562   : > { %v2595_v3 = vpack.c.bf16 %v2555_v14, %v2553_v44  ;;  %v2594_v15 = vpack.c.bf16 %v2554_v48, %v2552_v45  ;;  %v9482_v45 = vld [vmem:[#allocation13_spill] sm:$0xff] }
 0x563   : > { %v5466_v21 = vpop.eup %5465 }
 0x564   : > { %2626 = vmatprep.subr.bf16.mxu0 %v2595_v3  ;;  %v2466_v34 = vpop.xlane.xlu1 %2465  ;;  %v2559_v37 = vmul.f32 %v5466_v21, %v6792_v23  ;;  %v2558_v22 = vmul.f32 %v5466_v21, %v6788_v1 }
 0x565   : > { %2627 = vmatpush1.bf16.xpose.msra.mxu0 %v2594_v15  ;;  %5471 = vrcp.f32 %v2466_v34 }
 0x566   : > { %v2597_v46 = vpack.c.bf16 %v2559_v37, %v2557_v54  ;;  %v2596_v41 = vpack.c.bf16 %v2558_v22, %v2556_v19 }
 0x567   : > { %v5468_v47 = vpop.eup %5467  ;;  %v2472_v5 = vpop.xlane.xlu0 %2471 }
 0x568   : > { %2628 = vmatprep.subr.bf16.mxu0 %v2597_v46  ;;  %v2469_v17 = vpop.xlane.xlu1 %2468  ;;  %v2561_v7 = vmul.f32 %v5468_v47, %v6800_v6  ;;  %v2560_v25 = vmul.f32 %v5468_v47, %v6796_v28 }
 0x569   : > { %5473 = vrcp.f32 %v2469_v17 }
 0x56a   : > { %5475 = vrcp.f32 %v2472_v5 }
 0x56b   : > { %v5470_v29 = vpop.eup %5469 }
 0x56c   : > { %v2475_v26 = vpop.xlane.xlu1 %2474  ;;  %v2563_v23 = vmul.f32 %v5470_v29, %v6806_v61  ;;  %v2562_v1 = vmul.f32 %v5470_v29, %v6802_v60  ;;  %v9476_v61 = vld [vmem:[#allocation23_spill] sm:$0xff] }
 0x56d   : > { %5477 = vrcp.f32 %v2475_v26  ;;  %2629 = vmatpush1.bf16.xpose.msra.mxu0 %v2596_v41 }
 0x56e   : > { %v2599_v4 = vpack.c.bf16 %v2563_v23, %v2561_v7  ;;  %v2598_v52 = vpack.c.bf16 %v2562_v1, %v2560_v25 }
 0x56f   : > { %v784_v58 = vpop.permute.xlu0 %783  ;;  %v5472_v32 = vpop.eup %5471 }
 0x570   : > { %2630 = vmatprep.subr.bf16.mxu0 %v2599_v4  ;;  %v876_v0 = vpop.permute.xlu1 %875  ;;  %v2565_v6 = vmul.f32 %v5472_v32, %v6812_v39  ;;  %v2564_v20 = vmul.f32 %v5472_v32, %v9479_v27  ;;  %v854_v30 = vadd.f32 %v6850_v51, %v784_v58  ;;  %v852_v14 = vadd.f32 %v6848_v33, %v784_v58 }
 0x571   : > { %v945_v42 = vadd.f32 %v9475_v38, %v876_v0  ;;  %v943_v48 = vadd.f32 %v9482_v45, %v876_v0 }
 0x572   : > { %v2796_v31 = vpack.c.bf16 %v854_v30, %v854_v30  ;;  %v2795_v16 = vpack.c.bf16 %v852_v14, %v852_v14 }
 0x573   : > { %v5474_v2 = vpop.eup %5473  ;;  %v1812_v13 = vpack.c.bf16 %v945_v42, %v945_v42  ;;  %v1811_v3 = vpack.c.bf16 %v943_v48, %v943_v48 }
 0x574   : > { %v977_v50 = vpop.trf.xlu0  ;;  %v2567_v62 = vmul.f32 %v5474_v2, %v9476_v61  ;;  %v5476_v60 = vpop.eup %5475  ;;  %v2566_v49 = vmul.f32 %v5474_v2, %v9478_v40  ;;  %v2880_v51 = vsel %vm1050_vm1, %v2795_v16, 0 }
 0x575   : > { %5138 = vmatmul.mubr.msk.bf16.vlgmr.msra.gmra.mrb[4].mxu1 %vm1001_vm2, %v977_v50  ;;  %2631 = vmatpush1.bf16.xpose.msra.mxu0 %v2598_v52  ;;  %v2569_v24 = vmul.f32 %v5476_v60, %v9480_v53 }
 0x576   : > { %2636 = vmatprep.mubr.bf16.mxu0 %v1812_v13  ;;  %v2601_v43 = vpack.c.bf16 %v2567_v62, %v2565_v6  ;;  %1099 = vmatprep.mubr.bf16.mxu1 %v9477_v63  ;;  %v2600_v39 = vpack.c.bf16 %v2566_v49, %v2564_v20 }
 0x577   : > { %v5478_v10 = vpop.eup %5477 }
 0x578   : > { %2632 = vmatprep.subr.bf16.mxu0 %v2601_v43  ;;  %v2571_v28 = vmul.f32 %v5478_v10, %v6830_v11  ;;  %v978_v36 = vpop.trf.xlu0  ;;  %v2570_v35 = vmul.f32 %v5478_v10, %v6826_v18  ;;  %v2568_v11 = vmul.f32 %v5476_v60, %v9481_v56 }
 0x57a   : > { %v2603_v55 = vpack.c.bf16 %v2571_v28, %v2569_v24  ;;  %v2602_v44 = vpack.c.bf16 %v2570_v35, %v2568_v11 }
 0x57c   : > { %v979_v8 = vpop.trf.xlu0 }
 0x57d   : > { %5139 = vmatmul.mubr.msk.bf16.gmra.mrb[8].mxu1 %vm1001_vm2, %v978_v36  ;;  %2633 = vmatpush1.bf16.xpose.msra.mxu0 %v2600_v39 }
 0x57e   : > { %1109 = vmatprep.mubr.bf16.mxu1 %v9477_v63  ;;  %2634 = vmatprep.subr.bf16.mxu0 %v2603_v55 }
 0x580   : > { %v980_v18 = vpop.trf.xlu0 }
 0x584   : > { %v981_v33 = vpop.trf.xlu0 }
 0x585   : > { %5140 = vmatmul.mubr.msk.bf16.gmra.mrb[12].mxu1 %vm1001_vm2, %v979_v8  ;;  %2635 = vmatpush1.bf16.xpose.msra.mxu0 %v2602_v44 }
 0x586   : > { %1119 = vmatprep.mubr.bf16.mxu1 %v9477_v63  ;;  %5179 = vmatprep.subr.msk.bf16.mxu0 %vm1050_vm1, %v2796_v31 }
 0x588   : > { %v982_v21 = vpop.trf.xlu0 }
 0x58c   : > { %2637 = vmatmul.mubr.bf16.vlgmr.msra.gmra.mrb[84].mxu0 %v1811_v3  ;;  %v983_v12 = vpop.trf.xlu0 }
 0x58d   : > { %5141 = vmatmul.mubr.msk.bf16.gmra.mrb[16].mxu1 %vm1001_vm2, %v980_v18  ;;  %2886 = vmatpush1.bf16.msra.mxu0 %v2880_v51 }
 0x58e   : > { %1129 = vmatprep.mubr.bf16.mxu1 %v9477_v63  ;;  %2917 = vmatprep.mubr.bf16.mxu0 %v9477_v63 }
 0x590   : > { %v2807_v15 = vpop.trf.xlu1  ;;  %v984_v37 = vpop.trf.xlu0 }
 0x594   : > { %5180 = vmatmul.mubr.msk.bf16.vlgmr.msra.gmra.mrb[88].mxu0 %vm1001_vm2, %v2807_v15  ;;  %v2808_v34 = vpop.trf.xlu1  ;;  %v993_v22 = vpop.trf.xlu0 }
 0x595   : > { %5142 = vmatmul.mubr.msk.bf16.gmra.mrb[20].mxu1 %vm1001_vm2, %v981_v33  ;;  %2927 = vmatprep.mubr.bf16.mxu0 %v9477_v63 }
 0x596   : > { %1139 = vmatprep.mubr.bf16.mxu1 %v9477_v63 }
 0x598   : > { %v2809_v54 = vpop.trf.xlu1  ;;  %v994_v47 = vpop.trf.xlu0 }
 0x59c   : > { %5181 = vmatmul.mubr.msk.bf16.gmra.mrb[92].mxu0 %vm1001_vm2, %v2808_v34  ;;  %v2810_v46 = vpop.trf.xlu1  ;;  %v995_v57 = vpop.trf.xlu0 }
 0x59d   : > { %5143 = vmatmul.mubr.msk.bf16.gmra.mrb[24].mxu1 %vm1001_vm2, %v982_v21  ;;  %2937 = vmatprep.mubr.bf16.mxu0 %v9477_v63 }
 0x59e   : > { %1149 = vmatprep.mubr.bf16.mxu1 %v9477_v63 }
 0x5a0   : > { %v2811_v17 = vpop.trf.xlu1  ;;  %v996_v29 = vpop.trf.xlu0 }
 0x5a4   : > { %5182 = vmatmul.mubr.msk.bf16.gmra.mrb[96].mxu0 %vm1001_vm2, %v2809_v54  ;;  %v2812_v5 = vpop.trf.xlu1  ;;  %v997_v26 = vpop.trf.xlu0 }
 0x5a5   : > { %5144 = vmatmul.mubr.msk.bf16.gmra.mrb[28].mxu1 %vm1001_vm2, %v983_v12  ;;  %2947 = vmatprep.mubr.bf16.mxu0 %v9477_v63 }
 0x5a6   : > { %1159 = vmatprep.mubr.bf16.mxu1 %v9477_v63 }
 0x5a8   : > { %v2813_v19 = vpop.trf.xlu1  ;;  %v998_v23 = vpop.trf.xlu0 }
 0x5ac   : > { %5183 = vmatmul.mubr.msk.bf16.gmra.mrb[100].mxu0 %vm1001_vm2, %v2810_v46  ;;  %v2814_v41 = vpop.trf.xlu1  ;;  %v999_v4 = vpop.trf.xlu0 }
 0x5ad   : > { %5145 = vmatmul.mubr.msk.bf16.gmra.mrb[32].mxu1 %vm1001_vm2, %v984_v37  ;;  %2957 = vmatprep.mubr.bf16.mxu0 %v9477_v63 }
 0x5ae   : > { %1169 = vmatprep.mubr.bf16.mxu1 %v9477_v63 }
 0x5b0   : > { %v2823_v7 = vpop.trf.xlu1  ;;  %v1000_v0 = vpop.trf.xlu0 }
 0x5b4   : > { %5184 = vmatmul.mubr.msk.bf16.gmra.mrb[104].mxu0 %vm1001_vm2, %v2811_v17  ;;  %v2824_v58 = vpop.trf.xlu1 }
 0x5b5   : > { %5146 = vmatmul.mubr.msk.bf16.gmra.mrb[36].mxu1 %vm1001_vm2, %v993_v22  ;;  %2967 = vmatprep.mubr.bf16.mxu0 %v9477_v63 }
 0x5b6   : > { %1179 = vmatprep.mubr.bf16.mxu1 %v9477_v63 }
 0x5b8   : > { %v2825_v1 = vpop.trf.xlu1 }
 0x5bc   : > { %5185 = vmatmul.mubr.msk.bf16.gmra.mrb[108].mxu0 %vm1001_vm2, %v2812_v5  ;;  %v2826_v32 = vpop.trf.xlu1 }
 0x5bd   : > { %5147 = vmatmul.mubr.msk.bf16.gmra.mrb[40].mxu1 %vm1001_vm2, %v994_v47  ;;  %2977 = vmatprep.mubr.bf16.mxu0 %v9477_v63 }
 0x5be   : > { %1189 = vmatprep.mubr.bf16.mxu1 %v9477_v63 }
 0x5c0   : > { %v2827_v38 = vpop.trf.xlu1 }
 0x5c4   : > { %5186 = vmatmul.mubr.msk.bf16.gmra.mrb[112].mxu0 %vm1001_vm2, %v2813_v19  ;;  %v2828_v42 = vpop.trf.xlu1 }
 0x5c5   : > { %5148 = vmatmul.mubr.msk.bf16.gmra.mrb[44].mxu1 %vm1001_vm2, %v995_v57  ;;  %2987 = vmatprep.mubr.bf16.mxu0 %v9477_v63 }
 0x5c6   : > { %1199 = vmatprep.mubr.bf16.mxu1 %v9477_v63 }
 0x5c8   : > { %v2829_v25 = vpop.trf.xlu1 }
 0x5cc   : > { %5187 = vmatmul.mubr.msk.bf16.gmra.mrb[116].mxu0 %vm1001_vm2, %v2814_v41  ;;  %v2830_v2 = vpop.trf.xlu1 }
 0x5cd   : > { %5149 = vmatmul.mubr.msk.bf16.gmra.mrb[48].mxu1 %vm1001_vm2, %v996_v29  ;;  %2997 = vmatprep.mubr.bf16.mxu0 %v9477_v63 }
 0x5ce   : > { %1209 = vmatprep.mubr.bf16.mxu1 %v9477_v63 }
 0x5d4   : > { %5188 = vmatmul.mubr.msk.bf16.gmra.mrb[120].mxu0 %vm1001_vm2, %v2823_v7 }
 0x5d5   : > { %5150 = vmatmul.mubr.msk.bf16.gmra.mrb[52].mxu1 %vm1001_vm2, %v997_v26  ;;  %3007 = vmatprep.mubr.bf16.mxu0 %v9477_v63 }
 0x5d6   : > { %1219 = vmatprep.mubr.bf16.mxu1 %v9477_v63 }
 0x5dc   : > { %5189 = vmatmul.mubr.msk.bf16.gmra.mrb[124].mxu0 %vm1001_vm2, %v2824_v58 }
 0x5dd   : > { %5151 = vmatmul.mubr.msk.bf16.gmra.mrb[56].mxu1 %vm1001_vm2, %v998_v23  ;;  %3017 = vmatprep.mubr.bf16.mxu0 %v9477_v63 }
 0x5de   : > { %1229 = vmatprep.mubr.bf16.mxu1 %v9477_v63 }
 0x5e4   : > { %5190 = vmatmul.mubr.msk.bf16.gmra.mrb[128].mxu0 %vm1001_vm2, %v2825_v1 }
 0x5e5   : > { %5152 = vmatmul.mubr.msk.bf16.gmra.mrb[60].mxu1 %vm1001_vm2, %v999_v4  ;;  %3027 = vmatprep.mubr.bf16.mxu0 %v9477_v63 }
 0x5e6   : > { %1239 = vmatprep.mubr.bf16.mxu1 %v9477_v63 }
 0x5ec   : > { %5191 = vmatmul.mubr.msk.bf16.gmra.mrb[132].mxu0 %vm1001_vm2, %v2826_v32 }
 0x5ed   : > { %5153 = vmatmul.mubr.msk.bf16.gmra.mrb[64].mxu1 %vm1001_vm2, %v1000_v0  ;;  %3037 = vmatprep.mubr.bf16.mxu0 %v9477_v63 }
 0x5f4   : > { %5192 = vmatmul.mubr.msk.bf16.gmra.mrb[136].mxu0 %vm1001_vm2, %v2827_v38 }
 0x5f5   : > { %3047 = vmatprep.mubr.bf16.mxu0 %v9477_v63 }
 0x5fc   : > { %5193 = vmatmul.mubr.msk.bf16.gmra.mrb[140].mxu0 %vm1001_vm2, %v2828_v42 }
 0x5fd   : > { %3057 = vmatprep.mubr.bf16.mxu0 %v9477_v63 }
 0x604   : > { %5194 = vmatmul.mubr.msk.bf16.gmra.mrb[144].mxu0 %vm1001_vm2, %v2829_v25 }
 0x605   : > { %3067 = vmatprep.mubr.bf16.mxu0 %v9477_v63 }
 0x60c   : > { %5195 = vmatmul.mubr.msk.bf16.gmra.mrb[148].mxu0 %vm1001_vm2, %v2830_v2 }
 0x648   : > { %v6998_v50 = vpop.f32.mrb[4].mxu1 }
 0x649   : > { %v7000_v52 = vpop.f32.mrb[5].mxu1 }
 0x64a   : > { %v1250_v13 = vmax.f32 %v6998_v50, %v7000_v52  ;;  %v7004_v6 = vpop.f32.mrb[6].mxu1 }
 0x64b   : > { %v7006_v61 = vpop.f32.mrb[7].mxu1 }
 0x64c   : > { %v1253_v62 = vmax.f32 %v7004_v6, %v7006_v61  ;;  %1251 = vmax.xlane.f32.xlu0 %v1250_v13 }
 0x64e   : > { %1254 = vmax.xlane.f32.xlu1 %v1253_v62 }
 0x650   : > { %v7010_v60 = vpop.f32.mrb[8].mxu1 }
 0x651   : > { %v7012_v43 = vpop.f32.mrb[9].mxu1 }
 0x652   : > { %v1256_v10 = vmax.f32 %v7010_v60, %v7012_v43  ;;  %v7016_v40 = vpop.f32.mrb[10].mxu1 }
 0x653   : > { %v7018_v49 = vpop.f32.mrb[11].mxu1 }
 0x654   : > { %1257 = vmax.xlane.f32.xlu0 %v1256_v10  ;;  %v1259_v28 = vmax.f32 %v7016_v40, %v7018_v49 }
 0x658   : > { %1260 = vmax.xlane.f32.xlu0 %v1259_v28  ;;  %v7022_v36 = vpop.f32.mrb[12].mxu1 }
 0x659   : > { %v7024_v27 = vpop.f32.mrb[13].mxu1 }
 0x65a   : > { %v1262_v20 = vmax.f32 %v7022_v36, %v7024_v27  ;;  %v7028_v53 = vpop.f32.mrb[14].mxu1 }
 0x65b   : > { %v7030_v24 = vpop.f32.mrb[15].mxu1 }
 0x65c   : > { %1263 = vmax.xlane.f32.xlu0 %v1262_v20  ;;  %v1265_v39 = vmax.f32 %v7028_v53, %v7030_v24 }
 0x65f   : > { %v7034_v55 = vpop.f32.mrb[84].mxu0 }
 0x660   : > { %9483 = vst [vmem:[#allocation28_spill] sm:$0xff] %v7034_v55  ;;  %1266 = vmax.xlane.f32.xlu0 %v1265_v39  ;;  %v7036_v35 = vpop.f32.mrb[16].mxu1  ;;  %v7038_v30 = vpop.f32.mrb[85].mxu0 }
 0x661   : > { %9484 = vst [vmem:[#allocation29_spill] sm:$0xff] %v7038_v30  ;;  %v7040_v8 = vpop.f32.mrb[17].mxu1  ;;  %v2642_v11 = vpop.f32.mrb[86].mxu0 }
 0x662   : > { %v1268_v56 = vmax.f32 %v7036_v35, %v7040_v8  ;;  %v7044_v44 = vpop.f32.mrb[18].mxu1  ;;  %v2643_v14 = vpop.f32.mrb[87].mxu0 }
 0x663   : > { %v7046_v31 = vpop.f32.mrb[19].mxu1 }
 0x664   : > { %v1271_v45 = vmax.f32 %v7044_v44, %v7046_v31  ;;  %1269 = vmax.xlane.f32.xlu1 %v1268_v56 }
 0x666   : > { %1272 = vmax.xlane.f32.xlu0 %v1271_v45 }
 0x667   : > { %v7052_v16 = vpop.f32.mrb[88].mxu0 }
 0x668   : > { %v7050_v48 = vpop.f32.mrb[20].mxu1  ;;  %v7056_v3 = vpop.f32.mrb[89].mxu0 }
 0x669   : > { %v7054_v18 = vpop.f32.mrb[21].mxu1  ;;  %v7064_v21 = vpop.f32.mrb[90].mxu0 }
 0x66a   : > { %v1274_v51 = vmax.f32 %v7050_v48, %v7054_v18  ;;  %v7060_v33 = vpop.f32.mrb[22].mxu1  ;;  %9485 = vst [vmem:[#allocation26_spill] sm:$0xff] %v7064_v21  ;;  %v7068_v12 = vpop.f32.mrb[91].mxu0 }
 0x66b   : > { %v7066_v34 = vpop.f32.mrb[23].mxu1  ;;  %9487 = vst [vmem:[#allocation30_spill] sm:$0xff] %v7068_v12 }
 0x66c   : > { %9486 = vst [vmem:[#allocation27_spill] sm:$0xff] %v7066_v34  ;;  %v1277_v54 = vmax.f32 %v7060_v33, %v7066_v34  ;;  %1275 = vmax.xlane.f32.xlu1 %v1274_v51 }
 0x66e   : > { %1278 = vmax.xlane.f32.xlu0 %v1277_v54 }
 0x66f   : > { %v7076_v22 = vpop.f32.mrb[92].mxu0 }
 0x670   : > { %v7074_v46 = vpop.f32.mrb[24].mxu1  ;;  %v7080_v47 = vpop.f32.mrb[93].mxu0 }
 0x671   : > { %9488 = vst [vmem:[#allocation31_spill] sm:$0xff] %v7074_v46  ;;  %v7078_v17 = vpop.f32.mrb[25].mxu1  ;;  %v7088_v29 = vpop.f32.mrb[94].mxu0 }
 0x672   : > { %9489 = vst [vmem:[#allocation3_spill] sm:$0xff] %v7078_v17  ;;  %v1280_v5 = vmax.f32 %v7074_v46, %v7078_v17  ;;  %v7084_v57 = vpop.f32.mrb[26].mxu1  ;;  %v7092_v26 = vpop.f32.mrb[95].mxu0 }
 0x673   : > { %9490 = vst [vmem:[#allocation4_spill] sm:$0xff] %v7084_v57  ;;  %v7090_v41 = vpop.f32.mrb[27].mxu1 }
 0x674   : > { %9491 = vst [vmem:[#allocation5_spill] sm:$0xff] %v7090_v41  ;;  %v1283_v7 = vmax.f32 %v7084_v57, %v7090_v41  ;;  %1281 = vmax.xlane.f32.xlu1 %v1280_v5  ;;  %v9530_v57 = vmax.f32 %v7064_v21, %v7068_v12 }
 0x676   : > { %1284 = vmax.xlane.f32.xlu0 %v1283_v7 }
 0x677   : > { %v7100_v4 = vpop.f32.mrb[96].mxu0 }
 0x678   : > { %v7098_v58 = vpop.f32.mrb[28].mxu1  ;;  %v7104_v0 = vpop.f32.mrb[97].mxu0 }
 0x679   : > { %9492 = vst [vmem:[#allocation9_spill] sm:$0xff] %v7098_v58  ;;  %v7102_v1 = vpop.f32.mrb[29].mxu1  ;;  %v7112_v25 = vpop.f32.mrb[98].mxu0 }
 0x67a   : > { %9493 = vst [vmem:[#allocation10_spill] sm:$0xff] %v7102_v1  ;;  %v1286_v32 = vmax.f32 %v7098_v58, %v7102_v1  ;;  %v7108_v38 = vpop.f32.mrb[30].mxu1  ;;  %v7116_v13 = vpop.f32.mrb[99].mxu0 }
 0x67b   : > { %9494 = vst [vmem:[#allocation6_spill] sm:$0xff] %v7108_v38  ;;  %v7114_v2 = vpop.f32.mrb[31].mxu1 }
 0x67c   : > { %9495 = vst [vmem:[#allocation32_spill] sm:$0xff] %v7114_v2  ;;  %v1289_v62 = vmax.f32 %v7108_v38, %v7114_v2  ;;  %1287 = vmax.xlane.f32.xlu1 %v1286_v32 }
 0x67e   : > { %1290 = vmax.xlane.f32.xlu0 %v1289_v62 }
 0x67f   : > { %v7124_v20 = vpop.f32.mrb[100].mxu0 }
 0x680   : > { %v7122_v28 = vpop.f32.mrb[32].mxu1  ;;  %v7128_v56 = vpop.f32.mrb[101].mxu0 }
 0x681   : > { %9496 = vst [vmem:[#allocation34_spill] sm:$0xff] %v7122_v28  ;;  %v7126_v39 = vpop.f32.mrb[33].mxu1  ;;  %v7136_v51 = vpop.f32.mrb[102].mxu0 }
 0x682   : > { %9497 = vst [vmem:[#allocation35_spill] sm:$0xff] %v7126_v39  ;;  %v1292_v11 = vmax.f32 %v7122_v28, %v7126_v39  ;;  %v7132_v14 = vpop.f32.mrb[34].mxu1  ;;  %v7140_v5 = vpop.f32.mrb[103].mxu0 }
 0x683   : > { %9498 = vst [vmem:[#allocation33_spill] sm:$0xff] %v7132_v14  ;;  %v7138_v54 = vpop.f32.mrb[35].mxu1 }
 0x684   : > { %9499 = vst [vmem:[#allocation37_spill] sm:$0xff] %v7138_v54  ;;  %v1295_v7 = vmax.f32 %v7132_v14, %v7138_v54  ;;  %1293 = vmax.xlane.f32.xlu1 %v1292_v11 }
 0x686   : > { %1296 = vmax.xlane.f32.xlu0 %v1295_v7 }
 0x687   : > { %v7148_v42 = vpop.f32.mrb[104].mxu0 }
 0x688   : > { %v7146_v62 = vpop.f32.mrb[36].mxu1  ;;  %v7152_v45 = vpop.f32.mrb[105].mxu0 }
 0x689   : > { %9500 = vst [vmem:[#allocation36_spill] sm:$0xff] %v7146_v62  ;;  %v7150_v10 = vpop.f32.mrb[37].mxu1  ;;  %v7160_v15 = vpop.f32.mrb[106].mxu0 }
 0x68a   : > { %9501 = vst [vmem:[#allocation39_spill] sm:$0xff] %v7150_v10  ;;  %v1298_v19 = vmax.f32 %v7146_v62, %v7150_v10  ;;  %v7156_v23 = vpop.f32.mrb[38].mxu1  ;;  %v7164_v7 = vpop.f32.mrb[107].mxu0 }
 0x68b   : > { %9502 = vst [vmem:[#allocation38_spill] sm:$0xff] %v7156_v23  ;;  %v7162_v32 = vpop.f32.mrb[39].mxu1 }
 0x68c   : > { %9503 = vst [vmem:[#allocation14_spill] sm:$0xff] %v7162_v32  ;;  %v1301_v37 = vmax.f32 %v7156_v23, %v7162_v32  ;;  %1299 = vmax.xlane.f32.xlu1 %v1298_v19 }
 0x68e   : > { %1302 = vmax.xlane.f32.xlu0 %v1301_v37 }
 0x68f   : > { %v7172_v63 = vpop.f32.mrb[108].mxu0 }
 0x690   : > { %v7170_v59 = vpop.f32.mrb[40].mxu1  ;;  %9505 = vst [vmem:[#allocation22_spill] sm:$0xff] %v7172_v63  ;;  %v7176_v11 = vpop.f32.mrb[109].mxu0 }
 0x691   : > { %9504 = vst [vmem:[#allocation23_spill] sm:$0xff] %v7170_v59  ;;  %v7174_v55 = vpop.f32.mrb[41].mxu1  ;;  %9507 = vst [vmem:[#allocation21_spill] sm:$0xff] %v7176_v11  ;;  %v7184_v32 = vpop.f32.mrb[110].mxu0 }
 0x692   : > { %9506 = vst [vmem:[#allocation19_spill] sm:$0xff] %v7174_v55  ;;  %v1304_v30 = vmax.f32 %v7170_v59, %v7174_v55  ;;  %v7180_v10 = vpop.f32.mrb[42].mxu1  ;;  %v7188_v37 = vpop.f32.mrb[111].mxu0 }
 0x693   : > { %9508 = vst [vmem:[#allocation20_spill] sm:$0xff] %v7180_v10  ;;  %v7186_v9 = vpop.f32.mrb[43].mxu1 }
 0x694   : > { %9509 = vst [vmem:[#allocation13_spill] sm:$0xff] %v7186_v9  ;;  %v1307_v23 = vmax.f32 %v7180_v10, %v7186_v9  ;;  %1305 = vmax.xlane.f32.xlu1 %v1304_v30 }
 0x696   : > { %1308 = vmax.xlane.f32.xlu0 %v1307_v23 }
 0x697   : > { %v7196_v59 = vpop.f32.mrb[112].mxu0 }
 0x698   : > { %v7194_v55 = vpop.f32.mrb[44].mxu1  ;;  %9511 = vst [vmem:[#allocation41_spill] sm:$0xff] %v7196_v59  ;;  %v7200_v19 = vpop.f32.mrb[113].mxu0 }
 0x699   : > { %9510 = vst [vmem:[#allocation40_spill] sm:$0xff] %v7194_v55  ;;  %v7198_v54 = vpop.f32.mrb[45].mxu1  ;;  %9513 = vst [vmem:[#allocation43_spill] sm:$0xff] %v7200_v19  ;;  %v7208_v9 = vpop.f32.mrb[114].mxu0 }
 0x69a   : > { %9512 = vst [vmem:[#allocation42_spill] sm:$0xff] %v7198_v54  ;;  %v1310_v14 = vmax.f32 %v7194_v55, %v7198_v54  ;;  %v7204_v39 = vpop.f32.mrb[46].mxu1  ;;  %9515 = vst [vmem:[#allocation45_spill] sm:$0xff] %v7208_v9  ;;  %v7212_v23 = vpop.f32.mrb[115].mxu0 }
 0x69b   : > { %9514 = vst [vmem:[#allocation44_spill] sm:$0xff] %v7204_v39  ;;  %v7210_v62 = vpop.f32.mrb[47].mxu1  ;;  %9517 = vst [vmem:[#allocation47_spill] sm:$0xff] %v7212_v23 }
 0x69c   : > { %9516 = vst [vmem:[#allocation46_spill] sm:$0xff] %v7210_v62  ;;  %v1313_v10 = vmax.f32 %v7204_v39, %v7210_v62  ;;  %1311 = vmax.xlane.f32.xlu1 %v1310_v14 }
 0x69e   : > { %1314 = vmax.xlane.f32.xlu0 %v1313_v10 }
 0x69f   : > { %v7220_v55 = vpop.f32.mrb[116].mxu0 }
 0x6a0   : > { %v7218_v54 = vpop.f32.mrb[48].mxu1  ;;  %9519 = vst [vmem:[#allocation49_spill] sm:$0xff] %v7220_v55  ;;  %v7224_v30 = vpop.f32.mrb[117].mxu0 }
 0x6a1   : > { %9518 = vst [vmem:[#allocation48_spill] sm:$0xff] %v7218_v54  ;;  %v7222_v2 = vpop.f32.mrb[49].mxu1  ;;  %9521 = vst [vmem:[#allocation51_spill] sm:$0xff] %v7224_v30  ;;  %v7232_v62 = vpop.f32.mrb[118].mxu0 }
 0x6a2   : > { %9520 = vst [vmem:[#allocation50_spill] sm:$0xff] %v7222_v2  ;;  %v1316_v38 = vmax.f32 %v7218_v54, %v7222_v2  ;;  %v7228_v1 = vpop.f32.mrb[50].mxu1  ;;  %9523 = vst [vmem:[#allocation53_spill] sm:$0xff] %v7232_v62  ;;  %v7236_v10 = vpop.f32.mrb[119].mxu0 }
 0x6a3   : > { %9522 = vst [vmem:[#allocation52_spill] sm:$0xff] %v7228_v1  ;;  %v7234_v28 = vpop.f32.mrb[51].mxu1  ;;  %9525 = vst [vmem:[#allocation55_spill] sm:$0xff] %v7236_v10 }
 0x6a4   : > { %9524 = vst [vmem:[#allocation54_spill] sm:$0xff] %v7234_v28  ;;  %v1319_v39 = vmax.f32 %v7228_v1, %v7234_v28  ;;  %1317 = vmax.xlane.f32.xlu1 %v1316_v38 }
 0x6a6   : > { %1320 = vmax.xlane.f32.xlu0 %v1319_v39 }
 0x6a7   : > { %v7244_v54 = vpop.f32.mrb[120].mxu0 }
 0x6a8   : > { %v7242_v2 = vpop.f32.mrb[52].mxu1  ;;  %9527 = vst [vmem:[#allocation57_spill] sm:$0xff] %v7244_v54  ;;  %v7248_v14 = vpop.f32.mrb[121].mxu0 }
 0x6a9   : > { %9526 = vst [vmem:[#allocation56_spill] sm:$0xff] %v7242_v2  ;;  %v7246_v41 = vpop.f32.mrb[53].mxu1  ;;  %9529 = vst [vmem:[#allocation59_spill] sm:$0xff] %v7248_v14  ;;  %v7259_v58 = vpop.f32.mrb[122].mxu0 }
 0x6aa   : > { %9528 = vst [vmem:[#allocation58_spill] sm:$0xff] %v7246_v41  ;;  %3082 = vmax.xlane.f32.xlu0 %v9530_v57  ;;  %v7255_v38 = vpop.f32.mrb[54].mxu1  ;;  %9532 = vst [vmem:[#allocation61_spill] sm:$0xff] %v7259_v58  ;;  %v7263_v17 = vpop.f32.mrb[123].mxu0 }
 0x6ab   : > { %9531 = vst [vmem:[#allocation60_spill] sm:$0xff] %v7255_v38  ;;  %v7261_v1 = vpop.f32.mrb[55].mxu1  ;;  %9534 = vst [vmem:[#allocation63_spill] sm:$0xff] %v7263_v17 }
 0x6ac   : > { %9533 = vst [vmem:[#allocation62_spill] sm:$0xff] %v7261_v1 }
 0x6af   : > { %v7271_v28 = vpop.f32.mrb[124].mxu0 }
 0x6b0   : > { %v7269_v12 = vpop.f32.mrb[56].mxu1  ;;  %9536 = vst [vmem:[#allocation65_spill] sm:$0xff] %v7271_v28  ;;  %v7275_v30 = vpop.f32.mrb[125].mxu0 }
 0x6b1   : > { %9535 = vst [vmem:[#allocation64_spill] sm:$0xff] %v7269_v12  ;;  %v7273_v21 = vpop.f32.mrb[57].mxu1  ;;  %9538 = vst [vmem:[#allocation67_spill] sm:$0xff] %v7275_v30  ;;  %v7283_v46 = vpop.f32.mrb[126].mxu0 }
 0x6b2   : > { %9537 = vst [vmem:[#allocation66_spill] sm:$0xff] %v7273_v21  ;;  %v7279_v14 = vpop.f32.mrb[58].mxu1  ;;  %9540 = vst [vmem:[#allocation69_spill] sm:$0xff] %v7283_v46  ;;  %v7287_v57 = vpop.f32.mrb[127].mxu0 }
 0x6b3   : > { %9539 = vst [vmem:[#allocation68_spill] sm:$0xff] %v7279_v14  ;;  %v7285_v55 = vpop.f32.mrb[59].mxu1  ;;  %9542 = vst [vmem:[#allocation71_spill] sm:$0xff] %v7287_v57 }
 0x6b4   : > { %9541 = vst [vmem:[#allocation70_spill] sm:$0xff] %v7285_v55 }
 0x6b7   : > { %v7295_v39 = vpop.f32.mrb[128].mxu0 }
 0x6b8   : > { %v7293_v10 = vpop.f32.mrb[60].mxu1  ;;  %9544 = vst [vmem:[#allocation73_spill] sm:$0xff] %v7295_v39  ;;  %v7299_v19 = vpop.f32.mrb[129].mxu0 }
 0x6b9   : > { %9543 = vst [vmem:[#allocation72_spill] sm:$0xff] %v7293_v10  ;;  %v7297_v62 = vpop.f32.mrb[61].mxu1  ;;  %9546 = vst [vmem:[#allocation75_spill] sm:$0xff] %v7299_v19  ;;  %v7307_v17 = vpop.f32.mrb[130].mxu0 }
 0x6ba   : > { %9545 = vst [vmem:[#allocation74_spill] sm:$0xff] %v7297_v62  ;;  %v7303_v30 = vpop.f32.mrb[62].mxu1  ;;  %9548 = vst [vmem:[#allocation77_spill] sm:$0xff] %v7307_v17  ;;  %v7311_v58 = vpop.f32.mrb[131].mxu0 }
 0x6bb   : > { %9547 = vst [vmem:[#allocation76_spill] sm:$0xff] %v7303_v30  ;;  %v7309_v59 = vpop.f32.mrb[63].mxu1  ;;  %9550 = vst [vmem:[#allocation79_spill] sm:$0xff] %v7311_v58 }
 0x6bc   : > { %9549 = vst [vmem:[#allocation78_spill] sm:$0xff] %v7309_v59 }
 0x6bf   : > { %v7319_v54 = vpop.f32.mrb[132].mxu0 }
 0x6c0   : > { %v7317_v23 = vpop.f32.mrb[64].mxu1  ;;  %9552 = vst [vmem:[#allocation81_spill] sm:$0xff] %v7319_v54  ;;  %v7323_v11 = vpop.f32.mrb[133].mxu0 }
 0x6c1   : > { %9551 = vst [vmem:[#allocation80_spill] sm:$0xff] %v7317_v23  ;;  %v7321_v9 = vpop.f32.mrb[65].mxu1  ;;  %9554 = vst [vmem:[#allocation83_spill] sm:$0xff] %v7323_v11  ;;  %v7331_v57 = vpop.f32.mrb[134].mxu0 }
 0x6c2   : > { %9553 = vst [vmem:[#allocation82_spill] sm:$0xff] %v7321_v9  ;;  %v7327_v19 = vpop.f32.mrb[66].mxu1  ;;  %9556 = vst [vmem:[#allocation85_spill] sm:$0xff] %v7331_v57  ;;  %v7335_v46 = vpop.f32.mrb[135].mxu0 }
 0x6c3   : > { %9555 = vst [vmem:[#allocation84_spill] sm:$0xff] %v7327_v19  ;;  %v7333_v63 = vpop.f32.mrb[67].mxu1  ;;  %9558 = vst [vmem:[#allocation87_spill] sm:$0xff] %v7335_v46 }
 0x6c4   : > { %9557 = vst [vmem:[#allocation86_spill] sm:$0xff] %v7333_v63 }
 0x6c7   : > { %v7341_v34 = vpop.f32.mrb[136].mxu0 }
 0x6c8   : > { %9559 = vst [vmem:[#allocation88_spill] sm:$0xff] %v7341_v34  ;;  %v7343_v28 = vpop.f32.mrb[137].mxu0 }
 0x6c9   : > { %9560 = vst [vmem:[#allocation89_spill] sm:$0xff] %v7343_v28  ;;  %v7347_v39 = vpop.f32.mrb[138].mxu0 }
 0x6ca   : > { %9561 = vst [vmem:[#allocation90_spill] sm:$0xff] %v7347_v39  ;;  %v7349_v11 = vpop.f32.mrb[139].mxu0 }
 0x6cb   : > { %9562 = vst [vmem:[#allocation91_spill] sm:$0xff] %v7349_v11 }
 0x6cf   : > { %v7353_v23 = vpop.f32.mrb[140].mxu0 }
 0x6d0   : > { %9563 = vst [vmem:[#allocation92_spill] sm:$0xff] %v7353_v23  ;;  %v7355_v58 = vpop.f32.mrb[141].mxu0 }
 0x6d1   : > { %9564 = vst [vmem:[#allocation93_spill] sm:$0xff] %v7355_v58  ;;  %v7359_v46 = vpop.f32.mrb[142].mxu0 }
 0x6d2   : > { %9565 = vst [vmem:[#allocation94_spill] sm:$0xff] %v7359_v46  ;;  %v7361_v57 = vpop.f32.mrb[143].mxu0 }
 0x6d3   : > { %9566 = vst [vmem:[#allocation95_spill] sm:$0xff] %v7361_v57 }
 0x6d7   : > { %v7365_v28 = vpop.f32.mrb[144].mxu0 }
 0x6d8   : > { %9567 = vst [vmem:[#allocation96_spill] sm:$0xff] %v7365_v28  ;;  %v7367_v63 = vpop.f32.mrb[145].mxu0 }
 0x6d9   : > { %v1252_v34 = vpop.xlane.xlu0 %1251  ;;  %9568 = vst [vmem:[#allocation97_spill] sm:$0xff] %v7367_v63  ;;  %v7373_v17 = vpop.f32.mrb[146].mxu0 }
 0x6da   : > { %v1346_v54 = vsub.f32 %v6998_v50, %v1252_v34  ;;  %v1347_v11 = vsub.f32 %v7000_v52, %v1252_v34  ;;  %9569 = vst [vmem:[#allocation98_spill] sm:$0xff] %v7373_v17  ;;  %v7375_v23 = vpop.f32.mrb[147].mxu0 }
 0x6db   : > { %v1255_v58 = vpop.xlane.xlu1 %1254  ;;  %9570 = vst [vmem:[#allocation99_spill] sm:$0xff] %v7375_v23 }
 0x6dc   : > { %v1410_v19 = vmul.f32 1.442695, %v1346_v54  ;;  %v1412_v59 = vmul.f32 1.442695, %v1347_v11  ;;  %v1348_v9 = vsub.f32 %v7004_v6, %v1255_v58  ;;  %v1349_v57 = vsub.f32 %v7006_v61, %v1255_v58 }
 0x6de   : > { %5479 = vpow2.f32 %v1410_v19  ;;  %v1414_v50 = vmul.f32 1.442695, %v1348_v9  ;;  %v1416_v52 = vmul.f32 1.442695, %v1349_v57 }
 0x6df   : > { %5481 = vpow2.f32 %v1412_v59 }
 0x6e0   : > { %5483 = vpow2.f32 %v1414_v50 }
 0x6e1   : > { %5485 = vpow2.f32 %v1416_v52  ;;  %v1258_v34 = vpop.xlane.xlu0 %1257 }
 0x6e2   : > { %v1350_v39 = vsub.f32 %v7010_v60, %v1258_v34  ;;  %v1351_v63 = vsub.f32 %v7012_v43, %v1258_v34  ;;  %v9573_v34 = vmax.f32 %v7242_v2, %v7246_v41  ;;  %v9628_v2 = vld [vmem:[#allocation69_spill] sm:$0xff] }
 0x6e4   : > { %v1418_v58 = vmul.f32 1.442695, %v1350_v39  ;;  %v1420_v9 = vmul.f32 1.442695, %v1351_v63  ;;  %v9571_v63 = vmax.f32 %v7052_v16, %v7056_v3  ;;  %v9572_v39 = vmax.f32 %v7088_v29, %v7092_v26 }
 0x6e5   : > { %v1261_v54 = vpop.xlane.xlu0 %1260 }
 0x6e6   : > { %v1352_v11 = vsub.f32 %v7016_v40, %v1261_v54  ;;  %v1353_v6 = vsub.f32 %v7018_v49, %v1261_v54  ;;  %5487 = vpow2.f32 %v1418_v58  ;;  %v9574_v58 = vmax.f32 %v7255_v38, %v7261_v1  ;;  %v9607_v1 = vld [vmem:[#allocation55_spill] sm:$0xff]  ;;  %v9618_v38 = vld [vmem:[#allocation49_spill] sm:$0xff] }
 0x6e7   : > { %5489 = vpow2.f32 %v1420_v9 }
 0x6e8   : > { %v7385_v61 = vpop.eup %5479  ;;  %v1422_v59 = vmul.f32 1.442695, %v1352_v11  ;;  %v1424_v43 = vmul.f32 1.442695, %v1353_v6 }
 0x6e9   : > { %v7387_v46 = vpop.eup %5481  ;;  %v1264_v49 = vpop.xlane.xlu0 %1263 }
 0x6ea   : > { %v7389_v19 = vpop.eup %5483  ;;  %v1538_v57 = vadd.f32 %v7387_v46, %v7385_v61  ;;  %5491 = vpow2.f32 %v1422_v59  ;;  %v1354_v52 = vsub.f32 %v7022_v36, %v1264_v49  ;;  %v1355_v54 = vsub.f32 %v7024_v27, %v1264_v49 }
 0x6eb   : > { %v7393_v60 = vpop.eup %5485  ;;  %5493 = vpow2.f32 %v1424_v43  ;;  %v9575_v43 = vmax.f32 %v7076_v22, %v7080_v47 }
 0x6ec   : > { %1539 = vadd.xlane.f32.xlu1 %v1538_v57  ;;  %v1541_v40 = vadd.f32 %v7393_v60, %v7389_v19  ;;  %v1426_v36 = vmul.f32 1.442695, %v1354_v52 }
 0x6ed   : > { %v1267_v50 = vpop.xlane.xlu0 %1266 }
 0x6ee   : > { %1542 = vadd.xlane.f32.xlu0 %v1541_v40  ;;  %v1356_v6 = vsub.f32 %v7028_v53, %v1267_v50  ;;  %v1357_v59 = vsub.f32 %v7030_v24, %v1267_v50  ;;  %v1428_v40 = vmul.f32 1.442695, %v1355_v54  ;;  %v9576_v53 = vmax.f32 %v7112_v25, %v7116_v13 }
 0x6ef   : > { %5495 = vpow2.f32 %v1426_v36  ;;  %v9577_v50 = vmax.f32 %v7100_v4, %v7104_v0 }
 0x6f0   : > { %3079 = vmax.xlane.f32.xlu1 %v9571_v63  ;;  %v7408_v11 = vpop.eup %5487  ;;  %v1430_v49 = vmul.f32 1.442695, %v1356_v6  ;;  %5497 = vpow2.f32 %v1428_v40  ;;  %v9581_v40 = vmax.f32 %v7279_v14, %v7285_v55 }
 0x6f1   : > { %v7414_v9 = vpop.eup %5489  ;;  %v1270_v52 = vpop.xlane.xlu1 %1269 }
 0x6f2   : > { %3088 = vmax.xlane.f32.xlu0 %v9572_v39  ;;  %v1544_v63 = vadd.f32 %v7414_v9, %v7408_v11  ;;  %v1432_v39 = vmul.f32 1.442695, %v1357_v59  ;;  %5499 = vpow2.f32 %v1430_v49  ;;  %v1358_v6 = vsub.f32 %v7036_v35, %v1270_v52 }
 0x6f3   : > { %v1273_v54 = vpop.xlane.xlu0 %1272  ;;  %v1359_v59 = vsub.f32 %v7040_v8, %v1270_v52 }
 0x6f4   : > { %1323 = vmax.xlane.f32.xlu1 %v9573_v34  ;;  %v7417_v57 = vpop.eup %5491  ;;  %5501 = vpow2.f32 %v1432_v39  ;;  %v9578_v34 = vmax.f32 %v7136_v51, %v7140_v5  ;;  %v1434_v35 = vmul.f32 1.442695, %v1358_v6  ;;  %v9584_v39 = vmax.f32 %v7124_v20, %v7128_v56 }
 0x6f5   : > { %v7422_v27 = vpop.eup %5493 }
 0x6f6   : > { %1326 = vmax.xlane.f32.xlu0 %v9574_v58  ;;  %v1547_v24 = vadd.f32 %v7422_v27, %v7417_v57  ;;  %v9579_v58 = vmax.f32 %v7269_v12, %v7273_v21  ;;  %5503 = vpow2.f32 %v1434_v35  ;;  %v9606_v12 = vld [vmem:[#allocation53_spill] sm:$0xff] }
 0x6f8   : > { %3085 = vmax.xlane.f32.xlu1 %v9575_v43  ;;  %v1360_v43 = vsub.f32 %v7044_v44, %v1273_v54  ;;  %v9586_v44 = vmax.f32 %v7160_v15, %v7164_v7 }
 0x6f9   : > { %v7442_v36 = vpop.eup %5495  ;;  %v1276_v6 = vpop.xlane.xlu1 %1275 }
 0x6fa   : > { %3094 = vmax.xlane.f32.xlu0 %v9576_v53  ;;  %9580 = vst [vmem:[#allocation100_spill] sm:$0xff] %v7442_v36  ;;  %v7448_v49 = vpop.eup %5497  ;;  %v1361_v53 = vsub.f32 %v7046_v31, %v1273_v54  ;;  %v9587_v54 = vmax.f32 %v7148_v42, %v7152_v45 }
 0x6fb   : > { %9582 = vst [vmem:[#allocation101_spill] sm:$0xff] %v7448_v49  ;;  %v1550_v52 = vadd.f32 %v7448_v49, %v7442_v36  ;;  %v9639_v36 = vld [vmem:[#allocation30_spill] sm:$0xff] }
 0x6fc   : > { %1545 = vadd.xlane.f32.xlu1 %v1544_v63  ;;  %v7451_v63 = vpop.eup %5499 }
 0x6fd   : > { %9583 = vst [vmem:[#allocation102_spill] sm:$0xff] %v7451_v63 }
 0x6fe   : > { %1548 = vadd.xlane.f32.xlu0 %v1547_v24  ;;  %v7456_v8 = vpop.eup %5501  ;;  %v1436_v24 = vmul.f32 1.442695, %v1359_v59  ;;  %v1279_v59 = vpop.xlane.xlu0 %1278 }
 0x6ff   : > { %9585 = vst [vmem:[#allocation103_spill] sm:$0xff] %v7456_v8  ;;  %v1553_v31 = vadd.f32 %v7456_v8, %v7451_v63 }
 0x700   : > { %3091 = vmax.xlane.f32.xlu1 %v9577_v50  ;;  %v1438_v50 = vmul.f32 1.442695, %v1360_v43  ;;  %5505 = vpow2.f32 %v1436_v24  ;;  %v1362_v43 = vsub.f32 %v7050_v48, %v1276_v6  ;;  %v7476_v35 = vpop.eup %5503  ;;  %v9591_v24 = vld [vmem:[#allocation78_spill] sm:$0xff] }
 0x701   : > { %9590 = vst [vmem:[#allocation104_spill] sm:$0xff] %v7476_v35 }
 0x702   : > { %3100 = vmax.xlane.f32.xlu0 %v9578_v34  ;;  %v1440_v34 = vmul.f32 1.442695, %v1361_v53  ;;  %5507 = vpow2.f32 %v1438_v50  ;;  %v1363_v53 = vsub.f32 %v7054_v18, %v1276_v6  ;;  %v9592_v50 = vmax.f32 %v7303_v30, %v9591_v24  ;;  %v7490_v18 = vpop.f32.mrb[148].mxu0  ;;  %v9601_v30 = vld [vmem:[#allocation47_spill] sm:$0xff] }
 0x703   : > { %v1442_v48 = vmul.f32 1.442695, %v1362_v43  ;;  %v7505_v55 = vpop.xlane.xlu0 %1284  ;;  %v9603_v43 = vld [vmem:[#allocation41_spill] sm:$0xff] }
 0x704   : > { %1329 = vmax.xlane.f32.xlu1 %v9579_v58  ;;  %5509 = vpow2.f32 %v1440_v34  ;;  %v9588_v58 = vmax.f32 %v7184_v32, %v7188_v37 }
 0x705   : > { %5511 = vpow2.f32 %v1442_v48  ;;  %v9608_v48 = vmax.f32 %v9606_v12, %v9607_v1 }
 0x706   : > { %1332 = vmax.xlane.f32.xlu0 %v9581_v40  ;;  %v9589_v40 = vmax.f32 %v7293_v10, %v7297_v62  ;;  %v7494_v62 = vpop.f32.mrb[149].mxu0 }
 0x708   : > { %3097 = vmax.xlane.f32.xlu1 %v9584_v39  ;;  %v1364_v39 = vsub.f32 %v7060_v33, %v1279_v59  ;;  %v1444_v33 = vmul.f32 1.442695, %v1363_v53 }
 0x70a   : > { %3106 = vmax.xlane.f32.xlu0 %v9586_v44  ;;  %v7482_v44 = vpop.eup %5505  ;;  %v1446_v24 = vmul.f32 1.442695, %v1364_v39  ;;  %5513 = vpow2.f32 %v1444_v33  ;;  %v9610_v33 = vld [vmem:[#allocation82_spill] sm:$0xff] }
 0x70b   : > { %9593 = vst [vmem:[#allocation105_spill] sm:$0xff] %v7482_v44  ;;  %v7513_v39 = vpop.xlane.xlu0 %1290 }
 0x70c   : > { %1551 = vadd.xlane.f32.xlu1 %v1550_v52  ;;  %v9594_v52 = vld [vmem:[#allocation27_spill] sm:$0xff]  ;;  %5515 = vpow2.f32 %v1446_v24  ;;  %v9613_v24 = vld [vmem:[#allocation84_spill] sm:$0xff] }
 0x70d   : > { %v1365_v34 = vsub.f32 %v9594_v52, %v1279_v59  ;;  %v1556_v59 = vadd.f32 %v7482_v44, %v7476_v35  ;;  %v7503_v52 = vpop.f32.mrb[150].mxu0 }
 0x70e   : > { %1554 = vadd.xlane.f32.xlu0 %v1553_v31  ;;  %v7485_v31 = vpop.eup %5507  ;;  %v7507_v14 = vpop.f32.mrb[151].mxu0 }
 0x70f   : > { %9595 = vst [vmem:[#allocation27_spill] sm:$0xff] %v7485_v31  ;;  %v7492_v6 = vpop.eup %5509 }
 0x710   : > { %3103 = vmax.xlane.f32.xlu1 %v9587_v54  ;;  %v9596_v54 = vld [vmem:[#allocation22_spill] sm:$0xff]  ;;  %v1559_v53 = vadd.f32 %v7492_v6, %v7485_v31  ;;  %v9609_v31 = vld [vmem:[#allocation80_spill] sm:$0xff] }
 0x711   : > { %9599 = vst [vmem:[#allocation22_spill] sm:$0xff] %v7492_v6  ;;  %v9611_v35 = vmax.f32 %v9609_v31, %v9610_v33  ;;  %v9622_v33 = vld [vmem:[#allocation61_spill] sm:$0xff] }
 0x712   : > { %3112 = vmax.xlane.f32.xlu0 %v9588_v58  ;;  %v9597_v58 = vld [vmem:[#allocation21_spill] sm:$0xff] }
 0x714   : > { %1335 = vmax.xlane.f32.xlu1 %v9589_v40  ;;  %v9598_v40 = vmax.f32 %v9596_v54, %v9597_v58 }
 0x716   : > { %1338 = vmax.xlane.f32.xlu0 %v9592_v50  ;;  %v9600_v50 = vld [vmem:[#allocation45_spill] sm:$0xff] }
 0x717   : > { %v9602_v10 = vmax.f32 %v9600_v50, %v9601_v30  ;;  %v9674_v30 = vld [vmem:[#allocation34_spill] sm:$0xff] }
 0x718   : > { %3109 = vmax.xlane.f32.xlu1 %v9598_v40  ;;  %v1448_v40 = vmul.f32 1.442695, %v1365_v34  ;;  %v9604_v34 = vld [vmem:[#allocation43_spill] sm:$0xff] }
 0x719   : > { %v9605_v21 = vmax.f32 %v9603_v43, %v9604_v34  ;;  %v9629_v34 = vld [vmem:[#allocation71_spill] sm:$0xff] }
 0x71a   : > { %3118 = vmax.xlane.f32.xlu0 %v9602_v10  ;;  %5517 = vpow2.f32 %v1448_v40  ;;  %v7526_v10 = vpop.eup %5511  ;;  %v9614_v40 = vld [vmem:[#allocation86_spill] sm:$0xff]  ;;  %v9636_v43 = vld [vmem:[#allocation79_spill] sm:$0xff] }
 0x71b   : > { %9612 = vst [vmem:[#allocation21_spill] sm:$0xff] %v7526_v10  ;;  %v7531_v6 = vpop.eup %5513 }
 0x71c   : > { %1557 = vadd.xlane.f32.xlu1 %v1556_v59  ;;  %v7521_v59 = vpop.xlane.xlu0 %1296  ;;  %9616 = vst [vmem:[#allocation45_spill] sm:$0xff] %v7531_v6 }
 0x71e   : > { %1560 = vadd.xlane.f32.xlu0 %v1559_v53  ;;  %v9615_v53 = vmax.f32 %v9613_v24, %v9614_v40  ;;  %v1562_v40 = vadd.f32 %v7531_v6, %v7526_v10  ;;  %v9632_v10 = vld [vmem:[#allocation65_spill] sm:$0xff]  ;;  %v9633_v6 = vld [vmem:[#allocation67_spill] sm:$0xff] }
 0x720   : > { %3115 = vmax.xlane.f32.xlu1 %v9605_v21  ;;  %v7533_v44 = vpop.xlane.xlu0 %1302  ;;  %v7535_v21 = vpop.eup %5515 }
 0x721   : > { %9617 = vst [vmem:[#allocation106_spill] sm:$0xff] %v7535_v21 }
 0x722   : > { %3124 = vmax.xlane.f32.xlu0 %v9608_v48  ;;  %v9619_v48 = vld [vmem:[#allocation51_spill] sm:$0xff] }
 0x723   : > { %v9620_v41 = vmax.f32 %v9618_v38, %v9619_v48  ;;  %v9625_v48 = vld [vmem:[#allocation57_spill] sm:$0xff] }
 0x724   : > { %1341 = vmax.xlane.f32.xlu1 %v9611_v35  ;;  %v7540_v1 = vpop.eup %5517  ;;  %v9623_v35 = vld [vmem:[#allocation63_spill] sm:$0xff] }
 0x725   : > { %9621 = vst [vmem:[#allocation107_spill] sm:$0xff] %v7540_v1  ;;  %v9624_v31 = vmax.f32 %v9622_v33, %v9623_v35  ;;  %v1565_v24 = vadd.f32 %v7540_v1, %v7535_v21  ;;  %v9630_v35 = vmax.f32 %v9628_v2, %v9629_v34  ;;  %v9634_v33 = vmax.f32 %v9632_v10, %v9633_v6  ;;  %v9638_v1 = vld [vmem:[#allocation26_spill] sm:$0xff]  ;;  %v9643_v2 = vld [vmem:[#allocation85_spill] sm:$0xff]  ;;  %v9647_v6 = vld [vmem:[#allocation83_spill] sm:$0xff] }
 0x726   : > { %1344 = vmax.xlane.f32.xlu0 %v9615_v53  ;;  %v7547_v53 = vpop.xlane.xlu0 %1308 }
 0x728   : > { %3121 = vmax.xlane.f32.xlu1 %v9620_v41  ;;  %v9626_v41 = vld [vmem:[#allocation59_spill] sm:$0xff] }
 0x729   : > { %v9627_v38 = vmax.f32 %v9625_v48, %v9626_v41  ;;  %v9641_v48 = vld [vmem:[#allocation75_spill] sm:$0xff] }
 0x72a   : > { %3130 = vmax.xlane.f32.xlu0 %v9624_v31 }
 0x72b   : > { %v7551_v12 = vpop.xlane.xlu0 %1314 }
 0x72c   : > { %1563 = vadd.xlane.f32.xlu1 %v1562_v40  ;;  %v9635_v40 = vld [vmem:[#allocation77_spill] sm:$0xff] }
 0x72d   : > { %v9637_v21 = vmax.f32 %v9635_v40, %v9636_v43 }
 0x72e   : > { %1566 = vadd.xlane.f32.xlu0 %v1565_v24 }
 0x730   : > { %3127 = vmax.xlane.f32.xlu1 %v9627_v38  ;;  %v9640_v38 = vld [vmem:[#allocation73_spill] sm:$0xff] }
 0x731   : > { %v9642_v8 = vmax.f32 %v9640_v38, %v9641_v48 }
 0x732   : > { %3136 = vmax.xlane.f32.xlu0 %v9630_v35 }
 0x733   : > { %v7559_v31 = vpop.xlane.xlu0 %1320 }
 0x734   : > { %9631 = vst [vmem:[#allocation108_spill] sm:$0xff] %v7559_v31  ;;  %3133 = vmax.xlane.f32.xlu1 %v9634_v33  ;;  %v9644_v31 = vld [vmem:[#allocation87_spill] sm:$0xff]  ;;  %v9646_v33 = vld [vmem:[#allocation81_spill] sm:$0xff] }
 0x735   : > { %v9645_v49 = vmax.f32 %v9643_v2, %v9644_v31  ;;  %v9648_v43 = vmax.f32 %v9646_v33, %v9647_v6  ;;  %v9658_v31 = vld [vmem:[#allocation92_spill] sm:$0xff] }
 0x736   : > { %3142 = vmax.xlane.f32.xlu0 %v9637_v21  ;;  %v9649_v21 = vld [vmem:[#allocation90_spill] sm:$0xff] }
 0x737   : > { %v3083_v24 = vpop.xlane.xlu0 %3082 }
 0x738   : > { %v3176_v63 = vsub.f32 %v9638_v1, %v3083_v24  ;;  %v3177_v41 = vsub.f32 %v9639_v36, %v3083_v24  ;;  %3139 = vmax.xlane.f32.xlu1 %v9642_v8  ;;  %v9650_v1 = vld [vmem:[#allocation91_spill] sm:$0xff]  ;;  %v9652_v36 = vld [vmem:[#allocation88_spill] sm:$0xff]  ;;  %v9653_v24 = vld [vmem:[#allocation89_spill] sm:$0xff] }
 0x739   : > { %v9651_v40 = vmax.f32 %v9649_v21, %v9650_v1  ;;  %v9654_v48 = vmax.f32 %v9652_v36, %v9653_v24  ;;  %v9656_v8 = vld [vmem:[#allocation95_spill] sm:$0xff]  ;;  %v9668_v21 = vld [vmem:[#allocation4_spill] sm:$0xff] }
 0x73a   : > { %v3242_v35 = vmul.f32 1.442695, %v3176_v63  ;;  %v3244_v34 = vmul.f32 1.442695, %v3177_v41  ;;  %3148 = vmax.xlane.f32.xlu0 %v9645_v49  ;;  %v9655_v63 = vld [vmem:[#allocation94_spill] sm:$0xff]  ;;  %v9659_v49 = vld [vmem:[#allocation93_spill] sm:$0xff] }
 0x73b   : > { %v9657_v41 = vmax.f32 %v9655_v63, %v9656_v8  ;;  %v9667_v63 = vld [vmem:[#allocation3_spill] sm:$0xff] }
 0x73c   : > { %5519 = vpow2.f32 %v3242_v35  ;;  %3145 = vmax.xlane.f32.xlu1 %v9648_v43  ;;  %v9660_v35 = vmax.f32 %v9658_v31, %v9659_v49 }
 0x73d   : > { %5521 = vpow2.f32 %v3244_v34  ;;  %v9663_v34 = vld [vmem:[#allocation97_spill] sm:$0xff] }
 0x73e   : > { %3154 = vmax.xlane.f32.xlu0 %v9651_v40  ;;  %v9664_v1 = vmax.f32 %v7365_v28, %v9663_v34  ;;  %v1368_v34 = vsub.f32 %v9668_v21, %v7505_v55 }
 0x740   : > { %3151 = vmax.xlane.f32.xlu1 %v9654_v48  ;;  %v9665_v48 = vmax.f32 %v7373_v17, %v7375_v23  ;;  %v9671_v23 = vld [vmem:[#allocation10_spill] sm:$0xff]  ;;  %v1454_v33 = vmul.f32 1.442695, %v1368_v34  ;;  %v9676_v34 = vld [vmem:[#allocation33_spill] sm:$0xff] }
 0x742   : > { %3160 = vmax.xlane.f32.xlu0 %v9657_v41  ;;  %v1282_v41 = vpop.xlane.xlu1 %1281 }
 0x743   : > { %v1367_v24 = vsub.f32 %v9667_v63, %v1282_v41 }
 0x744   : > { %3157 = vmax.xlane.f32.xlu1 %v9660_v35  ;;  %v9666_v35 = vld [vmem:[#allocation31_spill] sm:$0xff] }
 0x745   : > { %v1366_v31 = vsub.f32 %v9666_v35, %v1282_v41  ;;  %v1452_v6 = vmul.f32 1.442695, %v1367_v24  ;;  %v9672_v35 = vld [vmem:[#allocation6_spill] sm:$0xff]  ;;  %v9673_v41 = vld [vmem:[#allocation32_spill] sm:$0xff] }
 0x746   : > { %v7590_v2 = vpop.eup %5519  ;;  %v1288_v8 = vpop.xlane.xlu1 %1287  ;;  %v1372_v38 = vsub.f32 %v9672_v35, %v7513_v39  ;;  %v1373_v10 = vsub.f32 %v9673_v41, %v7513_v39  ;;  %v9677_v39 = vld [vmem:[#allocation37_spill] sm:$0xff] }
 0x747   : > { %9661 = vst [vmem:[#allocation26_spill] sm:$0xff] %v7590_v2  ;;  %v7592_v43 = vpop.eup %5521 }
 0x748   : > { %9662 = vst [vmem:[#allocation30_spill] sm:$0xff] %v7592_v43  ;;  %3163 = vmax.xlane.f32.xlu1 %v9664_v1  ;;  %v3369_v40 = vadd.f32 %v7592_v43, %v7590_v2  ;;  %v9669_v1 = vld [vmem:[#allocation5_spill] sm:$0xff]  ;;  %v1450_v2 = vmul.f32 1.442695, %v1366_v31 }
 0x749   : > { %v1369_v28 = vsub.f32 %v9669_v1, %v7505_v55  ;;  %v9675_v1 = vld [vmem:[#allocation35_spill] sm:$0xff] }
 0x74a   : > { %3370 = vadd.xlane.f32.xlu0 %v3369_v40  ;;  %v1294_v49 = vpop.xlane.xlu1 %1293  ;;  %v9670_v40 = vld [vmem:[#allocation9_spill] sm:$0xff]  ;;  %5523 = vpow2.f32 %v1450_v2 }
 0x74b   : > { %v1370_v43 = vsub.f32 %v9670_v40, %v1288_v8  ;;  %v1456_v63 = vmul.f32 1.442695, %v1369_v28  ;;  %v1374_v55 = vsub.f32 %v9674_v30, %v1294_v49  ;;  %5525 = vpow2.f32 %v1452_v6 }
 0x74c   : > { %v1375_v24 = vsub.f32 %v9675_v1, %v1294_v49  ;;  %5527 = vpow2.f32 %v1454_v33  ;;  %v1376_v28 = vsub.f32 %v9676_v34, %v7521_v59  ;;  %v1377_v30 = vsub.f32 %v9677_v39, %v7521_v59  ;;  %v9678_v49 = vld [vmem:[#allocation36_spill] sm:$0xff] }
 0x74d   : > { %v1458_v21 = vmul.f32 1.442695, %v1370_v43  ;;  %5529 = vpow2.f32 %v1456_v63  ;;  %v1466_v35 = vmul.f32 1.442695, %v1374_v55  ;;  %v9680_v63 = vld [vmem:[#allocation38_spill] sm:$0xff] }
 0x74e   : > { %3166 = vmax.xlane.f32.xlu0 %v9665_v48  ;;  %v1300_v36 = vpop.xlane.xlu1 %1299  ;;  %v1371_v48 = vsub.f32 %v9671_v23, %v1288_v8  ;;  %v1462_v23 = vmul.f32 1.442695, %v1372_v38  ;;  %v1464_v8 = vmul.f32 1.442695, %v1373_v10  ;;  %v1468_v2 = vmul.f32 1.442695, %v1375_v24 }
 0x74f   : > { %5531 = vpow2.f32 %v1458_v21  ;;  %v1378_v43 = vsub.f32 %v9678_v49, %v1300_v36  ;;  %v1470_v33 = vmul.f32 1.442695, %v1376_v28  ;;  %v9679_v38 = vld [vmem:[#allocation39_spill] sm:$0xff]  ;;  %v1472_v10 = vmul.f32 1.442695, %v1377_v30 }
 0x750   : > { %v1460_v31 = vmul.f32 1.442695, %v1371_v48  ;;  %v1379_v48 = vsub.f32 %v9679_v38, %v1300_v36  ;;  %v1380_v41 = vsub.f32 %v9680_v63, %v7533_v44 }
 0x752   : > { %v7610_v17 = vpop.xlane.xlu1 %1305  ;;  %5533 = vpow2.f32 %v1460_v31  ;;  %v1474_v31 = vmul.f32 1.442695, %v1378_v43  ;;  %v1476_v1 = vmul.f32 1.442695, %v1379_v48 }
 0x753   : > { %5535 = vpow2.f32 %v1462_v23 }
 0x754   : > { %5537 = vpow2.f32 %v1464_v8  ;;  %v7630_v55 = vpop.eup %5523  ;;  %v1478_v8 = vmul.f32 1.442695, %v1380_v41 }
 0x755   : > { %5539 = vpow2.f32 %v1466_v35  ;;  %v7632_v59 = vpop.eup %5525  ;;  %v9681_v35 = vld [vmem:[#allocation14_spill] sm:$0xff] }
 0x756   : > { %v7618_v40 = vpop.xlane.xlu1 %1311  ;;  %5541 = vpow2.f32 %v1468_v2  ;;  %v7634_v23 = vpop.eup %5527  ;;  %v1381_v2 = vsub.f32 %v9681_v35, %v7533_v44  ;;  %v9682_v44 = vld [vmem:[#allocation23_spill] sm:$0xff] }
 0x757   : > { %v7636_v36 = vpop.eup %5529 }
 0x759   : > { %v7638_v28 = vpop.eup %5531 }
 0x75a   : > { %v7624_v6 = vpop.xlane.xlu1 %1317 }
 0x75c   : > { %v7644_v49 = vpop.eup %5533 }
 0x779   : > { %v1540_v21 = vpop.xlane.xlu1 %1539 }
 0x77a   : > { %5543 = vrcp.f32 %v1540_v21 }
 0x77b   : > { %5545 = vpow2.f32 %v1470_v33  ;;  %v1543_v24 = vpop.xlane.xlu0 %1542  ;;  %v7646_v33 = vpop.eup %5535 }
 0x77c   : > { %5547 = vrcp.f32 %v1543_v24  ;;  %v7650_v41 = vpop.eup %5537 }
 0x77d   : > { %5549 = vpow2.f32 %v1472_v10  ;;  %v3080_v34 = vpop.xlane.xlu1 %3079 }
 0x77e   : > { %5551 = vpow2.f32 %v1474_v31  ;;  %v3174_v39 = vsub.f32 %v7052_v16, %v3080_v34  ;;  %v3175_v30 = vsub.f32 %v7056_v3, %v3080_v34  ;;  %v1382_v16 = vsub.f32 %v9682_v44, %v7610_v17  ;;  %v7656_v3 = vpop.eup %5539 }
 0x77f   : > { %5553 = vpow2.f32 %v1476_v1  ;;  %v3089_v43 = vpop.xlane.xlu0 %3088  ;;  %9684 = vst [vmem:[#allocation3_spill] sm:$0xff] %v7656_v3  ;;  %v1480_v31 = vmul.f32 1.442695, %v1381_v2  ;;  %v7658_v34 = vpop.eup %5541 }
 0x780   : > { %v3238_v38 = vmul.f32 1.442695, %v3174_v39  ;;  %v3240_v48 = vmul.f32 1.442695, %v3175_v30  ;;  %v3180_v10 = vsub.f32 %v7088_v29, %v3089_v43  ;;  %v3181_v63 = vsub.f32 %v7092_v26, %v3089_v43 }
 0x781   : > { %5555 = vpow2.f32 %v1478_v8  ;;  %v7654_v21 = vpop.xlane.xlu1 %1323  ;;  %v1482_v8 = vmul.f32 1.442695, %v1382_v16 }
 0x782   : > { %9683 = vst [vmem:[#allocation31_spill] sm:$0xff] %v7654_v21  ;;  %5557 = vpow2.f32 %v3238_v38  ;;  %v3250_v1 = vmul.f32 1.442695, %v3180_v10  ;;  %v3252_v24 = vmul.f32 1.442695, %v3181_v63 }
 0x783   : > { %5559 = vpow2.f32 %v3240_v48  ;;  %v7660_v29 = vpop.xlane.xlu0 %1326 }
 0x784   : > { %9685 = vst [vmem:[#allocation4_spill] sm:$0xff] %v7660_v29  ;;  %v5544_v26 = vpop.eup %5543  ;;  %5561 = vpow2.f32 %v3250_v1 }
 0x785   : > { %v7662_v35 = vpop.eup %5545  ;;  %5563 = vpow2.f32 %v3252_v24  ;;  %v3086_v39 = vpop.xlane.xlu1 %3085  ;;  %v1667_v2 = vmul.f32 %v5544_v26, %v7387_v46  ;;  %v1666_v44 = vmul.f32 %v5544_v26, %v7385_v61  ;;  %v9689_v24 = vld [vmem:[#allocation19_spill] sm:$0xff] }
 0x786   : > { %9686 = vst [vmem:[#allocation5_spill] sm:$0xff] %v7662_v35  ;;  %v5548_v30 = vpop.eup %5547  ;;  %5565 = vpow2.f32 %v1480_v31  ;;  %v3178_v43 = vsub.f32 %v7076_v22, %v3086_v39  ;;  %v3179_v10 = vsub.f32 %v7080_v47, %v3086_v39  ;;  %v1383_v31 = vsub.f32 %v9689_v24, %v7610_v17 }
 0x787   : > { %v7666_v38 = vpop.eup %5549  ;;  %v3095_v48 = vpop.xlane.xlu0 %3094  ;;  %v1669_v63 = vmul.f32 %v5548_v30, %v7393_v60  ;;  %v1668_v1 = vmul.f32 %v5548_v30, %v7389_v19  ;;  %5567 = vpow2.f32 %v1482_v8  ;;  %v9692_v8 = vld [vmem:[#allocation20_spill] sm:$0xff] }
 0x788   : > { %9687 = vst [vmem:[#allocation9_spill] sm:$0xff] %v7666_v38  ;;  %v7672_v16 = vpop.eup %5551  ;;  %v3246_v29 = vmul.f32 1.442695, %v3178_v43  ;;  %v3184_v22 = vsub.f32 %v7112_v25, %v3095_v48  ;;  %v3185_v46 = vsub.f32 %v7116_v13, %v3095_v48  ;;  %v3248_v47 = vmul.f32 1.442695, %v3179_v10 }
 0x789   : > { %9688 = vst [vmem:[#allocation10_spill] sm:$0xff] %v7672_v16  ;;  %v7678_v21 = vpop.eup %5553  ;;  %v1546_v39 = vpop.xlane.xlu1 %1545  ;;  %v1731_v60 = vpack.c.bf16 %v1669_v63, %v1667_v2  ;;  %v1730_v38 = vpack.c.bf16 %v1668_v1, %v1666_v44  ;;  %v1484_v13 = vmul.f32 1.442695, %v1383_v31  ;;  %v1384_v43 = vsub.f32 %v9692_v8, %v7547_v53 }
 0x78a   : > { %9690 = vst [vmem:[#allocation6_spill] sm:$0xff] %v7678_v21  ;;  %5569 = vpow2.f32 %v3246_v29  ;;  %v3258_v61 = vmul.f32 1.442695, %v3184_v22  ;;  %v3260_v19 = vmul.f32 1.442695, %v3185_v46 }
 0x78b   : > { %v7680_v26 = vpop.eup %5555  ;;  %5571 = vpow2.f32 %v3248_v47  ;;  %v1549_v30 = vpop.xlane.xlu0 %1548  ;;  %1762 = vmatprep.subr.bf16.mxu1 %v1731_v60 }
 0x78c   : > { %9691 = vst [vmem:[#allocation32_spill] sm:$0xff] %v7680_v26  ;;  %v7682_v17 = vpop.eup %5557  ;;  %5573 = vpow2.f32 %v3258_v61  ;;  %1763 = vmatpush1.bf16.xpose.msra.mxu1 %v1730_v38  ;;  %v9693_v38 = vld [vmem:[#allocation13_spill] sm:$0xff] }
 0x78d   : > { %v7684_v25 = vpop.eup %5559  ;;  %5575 = vpow2.f32 %v3260_v19  ;;  %v3092_v2 = vpop.xlane.xlu1 %3091  ;;  %v1385_v1 = vsub.f32 %v9693_v38, %v7547_v53  ;;  %v1568_v53 = vadd.f32 %v7632_v59, %v7630_v55  ;;  %v1486_v19 = vmul.f32 1.442695, %v1384_v43 }
 0x78e   : > { %v7688_v29 = vpop.eup %5561  ;;  %5577 = vrcp.f32 %v1546_v39  ;;  %v3182_v10 = vsub.f32 %v7100_v4, %v3092_v2  ;;  %v3183_v48 = vsub.f32 %v7104_v0, %v3092_v2  ;;  %v3366_v63 = vadd.f32 %v7684_v25, %v7682_v17  ;;  %v9695_v0 = vld [vmem:[#allocation40_spill] sm:$0xff] }
 0x78f   : > { %v7694_v44 = vpop.eup %5563  ;;  %5579 = vrcp.f32 %v1549_v30  ;;  %v3101_v24 = vpop.xlane.xlu0 %3100  ;;  %v1386_v39 = vsub.f32 %v9695_v0, %v7618_v40  ;;  %v1571_v43 = vadd.f32 %v7636_v36, %v7634_v23  ;;  %v9696_v0 = vld [vmem:[#allocation42_spill] sm:$0xff] }
 0x790   : > { %v7698_v31 = vpop.eup %5565  ;;  %v3254_v22 = vmul.f32 1.442695, %v3182_v10  ;;  %v3256_v46 = vmul.f32 1.442695, %v3183_v48  ;;  %v3188_v47 = vsub.f32 %v7136_v51, %v3101_v24  ;;  %v3189_v4 = vsub.f32 %v7140_v5, %v3101_v24  ;;  %3367 = vadd.xlane.f32.xlu1 %v3366_v63 }
 0x791   : > { %9694 = vst [vmem:[#allocation34_spill] sm:$0xff] %v7698_v31  ;;  %5581 = vpow2.f32 %v1484_v13  ;;  %v3375_v60 = vadd.f32 %v7694_v44, %v7688_v29  ;;  %v7706_v61 = vpop.xlane.xlu1 %1329  ;;  %v7710_v51 = vpop.eup %5567  ;;  %v1488_v5 = vmul.f32 1.442695, %v1385_v1  ;;  %v1490_v48 = vmul.f32 1.442695, %v1386_v39 }
 0x792   : > { %5583 = vpow2.f32 %v3254_v22  ;;  %v3266_v30 = vmul.f32 1.442695, %v3188_v47  ;;  %v3268_v8 = vmul.f32 1.442695, %v3189_v4  ;;  %v1387_v39 = vsub.f32 %v9696_v0, %v7618_v40  ;;  %v9697_v0 = vld [vmem:[#allocation44_spill] sm:$0xff] }
 0x793   : > { %5585 = vpow2.f32 %v3256_v46  ;;  %3376 = vadd.xlane.f32.xlu0 %v3375_v60  ;;  %v7712_v13 = vpop.xlane.xlu0 %1332 }
 0x794   : > { %v7714_v2 = vpop.eup %5569  ;;  %5587 = vpow2.f32 %v3266_v30  ;;  %1569 = vadd.xlane.f32.xlu1 %v1568_v53 }
 0x795   : > { %v7716_v10 = vpop.eup %5571  ;;  %5589 = vpow2.f32 %v3268_v8  ;;  %v3098_v63 = vpop.xlane.xlu1 %3097 }
 0x796   : > { %v7720_v38 = vpop.eup %5573  ;;  %5591 = vpow2.f32 %v1486_v19  ;;  %v3186_v1 = vsub.f32 %v7124_v20, %v3098_v63  ;;  %v3187_v22 = vsub.f32 %v7128_v56, %v3098_v63  ;;  %v3372_v47 = vadd.f32 %v7716_v10, %v7714_v2 }
 0x797   : > { %v7723_v24 = vpop.eup %5575  ;;  %5593 = vpow2.f32 %v1488_v5  ;;  %1572 = vadd.xlane.f32.xlu0 %v1571_v43  ;;  %v3107_v46 = vpop.xlane.xlu0 %3106 }
 0x798   : > { %v5578_v4 = vpop.eup %5577  ;;  %v3262_v60 = vmul.f32 1.442695, %v3186_v1  ;;  %v3192_v53 = vsub.f32 %v7160_v15, %v3107_v46  ;;  %v3193_v19 = vsub.f32 %v7164_v7, %v3107_v46  ;;  %5595 = vpow2.f32 %v1490_v48  ;;  %3373 = vadd.xlane.f32.xlu1 %v3372_v47 }
 0x799   : > { %v5580_v20 = vpop.eup %5579  ;;  %v3264_v30 = vmul.f32 1.442695, %v3187_v22  ;;  %v3381_v56 = vadd.f32 %v7723_v24, %v7720_v38  ;;  %v1552_v8 = vpop.xlane.xlu1 %1551  ;;  %v1671_v5 = vmul.f32 %v5578_v4, %v7414_v9  ;;  %v1670_v7 = vmul.f32 %v5578_v4, %v7408_v11 }
 0x79a   : > { %5597 = vpow2.f32 %v3262_v60  ;;  %v3274_v43 = vmul.f32 1.442695, %v3192_v53  ;;  %v3276_v63 = vmul.f32 1.442695, %v3193_v19  ;;  %v1673_v40 = vmul.f32 %v5580_v20, %v7422_v27 }
 0x79b   : > { %v7736_v1 = vpop.eup %5581  ;;  %5599 = vpow2.f32 %v3264_v30  ;;  %3382 = vadd.xlane.f32.xlu0 %v3381_v56  ;;  %v1555_v15 = vpop.xlane.xlu0 %1554  ;;  %v1672_v48 = vmul.f32 %v5580_v20, %v7417_v57  ;;  %v1492_v9 = vmul.f32 1.442695, %v1387_v39  ;;  %v1388_v60 = vsub.f32 %v9697_v0, %v7551_v12  ;;  %v9701_v30 = vld [vmem:[#allocation46_spill] sm:$0xff] }
 0x79c   : > { %v7740_v22 = vpop.eup %5583  ;;  %5601 = vpow2.f32 %v3274_v43  ;;  %v1733_v46 = vpack.c.bf16 %v1673_v40, %v1671_v5  ;;  %v9698_v27 = vmax.f32 %v7490_v18, %v7494_v62  ;;  %v1389_v56 = vsub.f32 %v9701_v30, %v7551_v12  ;;  %v9704_v12 = vld [vmem:[#allocation48_spill] sm:$0xff] }
 0x79d   : > { %v7742_v47 = vpop.eup %5585  ;;  %5603 = vpow2.f32 %v3276_v63  ;;  %v1732_v53 = vpack.c.bf16 %v1672_v48, %v1670_v7  ;;  %v3104_v19 = vpop.xlane.xlu1 %3103  ;;  %v9702_v5 = vmax.f32 %v7503_v52, %v7507_v14  ;;  %v1494_v0 = vmul.f32 1.442695, %v1388_v60 }
 0x79e   : > { %3169 = vmax.xlane.f32.xlu1 %v9698_v27  ;;  %v7749_v11 = vpop.eup %5587  ;;  %5605 = vrcp.f32 %v1552_v8  ;;  %1764 = vmatprep.subr.bf16.mxu1 %v1733_v46  ;;  %v3190_v57 = vsub.f32 %v7148_v42, %v3104_v19  ;;  %v3191_v4 = vsub.f32 %v7152_v45, %v3104_v19  ;;  %v3378_v39 = vadd.f32 %v7742_v47, %v7740_v22 }
 0x79f   : > { %9699 = vst [vmem:[#allocation35_spill] sm:$0xff] %v7749_v11  ;;  %v7755_v20 = vpop.eup %5589  ;;  %5607 = vrcp.f32 %v1555_v15  ;;  %1765 = vmatpush1.bf16.xpose.msra.mxu1 %v1732_v53  ;;  %3172 = vmax.xlane.f32.xlu0 %v9702_v5  ;;  %v3113_v8 = vpop.xlane.xlu0 %3112  ;;  %v1390_v15 = vsub.f32 %v9704_v12, %v7624_v6  ;;  %v1577_v60 = vadd.f32 %v7650_v41, %v7646_v33  ;;  %v9709_v12 = vld [vmem:[#allocation50_spill] sm:$0xff] }
 0x7a0   : > { %9700 = vst [vmem:[#allocation33_spill] sm:$0xff] %v7755_v20  ;;  %v7762_v43 = vpop.eup %5591  ;;  %v3270_v42 = vmul.f32 1.442695, %v3190_v57  ;;  %v3272_v63 = vmul.f32 1.442695, %v3191_v4  ;;  %v3196_v45 = vsub.f32 %v7184_v32, %v3113_v8  ;;  %v3197_v40 = vsub.f32 %v7188_v37, %v3113_v8 }
 0x7a1   : > { %9703 = vst [vmem:[#allocation37_spill] sm:$0xff] %v7762_v43  ;;  %v7766_v7 = vpop.eup %5593  ;;  %5609 = vpow2.f32 %v1492_v9  ;;  %v3387_v48 = vadd.f32 %v7755_v20, %v7749_v11  ;;  %v7772_v46 = vpop.xlane.xlu1 %1335  ;;  %v1496_v32 = vmul.f32 1.442695, %v1389_v56  ;;  %v1574_v9 = vadd.f32 %v7644_v49, %v7638_v28  ;;  %v9712_v20 = vld [vmem:[#allocation103_spill] sm:$0xff] }
 0x7a2   : > { %3379 = vadd.xlane.f32.xlu1 %v3378_v39  ;;  %5611 = vpow2.f32 %v3270_v42  ;;  %v3282_v27 = vmul.f32 1.442695, %v3196_v45  ;;  %v3284_v53 = vmul.f32 1.442695, %v3197_v40  ;;  %v7774_v19 = vpop.eup %5595  ;;  %v1498_v39 = vmul.f32 1.442695, %v1390_v15 }
 0x7a3   : > { %9705 = vst [vmem:[#allocation36_spill] sm:$0xff] %v7774_v19  ;;  %5613 = vpow2.f32 %v3272_v63  ;;  %3388 = vadd.xlane.f32.xlu0 %v3387_v48  ;;  %v7776_v37 = vpop.xlane.xlu0 %1338  ;;  %v1391_v15 = vsub.f32 %v9709_v12, %v7624_v6 }
 0x7a4   : > { %v7780_v57 = vpop.eup %5597  ;;  %5615 = vpow2.f32 %v3282_v27 }
 0x7a5   : > { %9706 = vst [vmem:[#allocation39_spill] sm:$0xff] %v7780_v57  ;;  %v7782_v4 = vpop.eup %5599  ;;  %5617 = vpow2.f32 %v3284_v53  ;;  %v3110_v30 = vpop.xlane.xlu1 %3109 }
 0x7a6   : > { %1575 = vadd.xlane.f32.xlu1 %v1574_v9  ;;  %v7786_v56 = vpop.eup %5601  ;;  %5619 = vpow2.f32 %v1494_v0  ;;  %v3194_v5 = vsub.f32 %v9596_v54, %v3110_v30  ;;  %v3195_v42 = vsub.f32 %v9597_v58, %v3110_v30  ;;  %v3384_v45 = vadd.f32 %v7782_v4, %v7780_v57  ;;  %v9710_v0 = vld [vmem:[#allocation47_spill] sm:$0xff] }
 0x7a7   : > { %9707 = vst [vmem:[#allocation38_spill] sm:$0xff] %v7786_v56  ;;  %v7789_v8 = vpop.eup %5603  ;;  %5621 = vpow2.f32 %v1496_v32  ;;  %1578 = vadd.xlane.f32.xlu0 %v1577_v60  ;;  %v3119_v63 = vpop.xlane.xlu0 %3118  ;;  %v9711_v60 = vld [vmem:[#allocation101_spill] sm:$0xff] }
 0x7a8   : > { %9708 = vst [vmem:[#allocation14_spill] sm:$0xff] %v7789_v8  ;;  %v5606_v40 = vpop.eup %5605  ;;  %v3278_v48 = vmul.f32 1.442695, %v3194_v5  ;;  %v3200_v27 = vsub.f32 %v9600_v50, %v3119_v63  ;;  %v3201_v53 = vsub.f32 %v9710_v0, %v3119_v63  ;;  %5623 = vpow2.f32 %v1498_v39 }
 0x7a9   : > { %v5608_v54 = vpop.eup %5607  ;;  %v3280_v9 = vmul.f32 1.442695, %v3195_v42  ;;  %v3393_v58 = vadd.f32 %v7789_v8, %v7786_v56  ;;  %v1558_v32 = vpop.xlane.xlu1 %1557  ;;  %v1675_v30 = vmul.f32 %v5606_v40, %v9711_v60  ;;  %v1580_v39 = vadd.f32 %v7658_v34, %v7656_v3  ;;  %v9714_v42 = vld [vmem:[#allocation100_spill] sm:$0xff] }
 0x7aa   : > { %3385 = vadd.xlane.f32.xlu1 %v3384_v45  ;;  %5625 = vpow2.f32 %v3278_v48  ;;  %v3290_v11 = vmul.f32 1.442695, %v3200_v27  ;;  %v3292_v57 = vmul.f32 1.442695, %v3201_v53  ;;  %v1677_v6 = vmul.f32 %v5608_v54, %v9712_v20  ;;  %v9715_v45 = vld [vmem:[#allocation102_spill] sm:$0xff]  ;;  %v9717_v27 = vld [vmem:[#allocation9_spill] sm:$0xff] }
 0x7ab   : > { %v7802_v5 = vpop.eup %5609  ;;  %5627 = vpow2.f32 %v3280_v9  ;;  %3394 = vadd.xlane.f32.xlu0 %v3393_v58  ;;  %v1561_v50 = vpop.xlane.xlu0 %1560  ;;  %v1674_v63 = vmul.f32 %v5606_v40, %v9714_v42  ;;  %v1676_v12 = vmul.f32 %v5608_v54, %v9715_v45  ;;  %v1583_v53 = vadd.f32 %v9717_v27, %v7662_v35  ;;  %v9719_v9 = vld [vmem:[#allocation108_spill] sm:$0xff]  ;;  %v9722_v54 = vld [vmem:[#allocation41_spill] sm:$0xff]  ;;  %v9730_v35 = vld [vmem:[#allocation55_spill] sm:$0xff] }
 0x7ac   : > { %9713 = vst [vmem:[#allocation23_spill] sm:$0xff] %v7802_v5  ;;  %v7808_v0 = vpop.eup %5611  ;;  %5629 = vpow2.f32 %v3290_v11  ;;  %v1735_v48 = vpack.c.bf16 %v1677_v6, %v1675_v30  ;;  %v1500_v60 = vmul.f32 1.442695, %v1391_v15  ;;  %v9720_v58 = vld [vmem:[#allocation52_spill] sm:$0xff]  ;;  %v9723_v30 = vld [vmem:[#allocation43_spill] sm:$0xff]  ;;  %v9725_v15 = vld [vmem:[#allocation54_spill] sm:$0xff] }
 0x7ad   : > { %9716 = vst [vmem:[#allocation19_spill] sm:$0xff] %v7808_v0  ;;  %v7812_v20 = vpop.eup %5613  ;;  %v1392_v56 = vsub.f32 %v9720_v58, %v9719_v9  ;;  %5631 = vpow2.f32 %v3292_v57  ;;  %v1734_v8 = vpack.c.bf16 %v1676_v12, %v1674_v63  ;;  %v3116_v3 = vpop.xlane.xlu1 %3115  ;;  %v1393_v58 = vsub.f32 %v9725_v15, %v9719_v9  ;;  %v9726_v57 = vld [vmem:[#allocation31_spill] sm:$0xff]  ;;  %v9732_v9 = vld [vmem:[#allocation58_spill] sm:$0xff] }
 0x7ae   : > { %9718 = vst [vmem:[#allocation20_spill] sm:$0xff] %v7812_v20  ;;  %1581 = vadd.xlane.f32.xlu1 %v1580_v39  ;;  %v7816_v40 = vpop.eup %5615  ;;  %5633 = vrcp.f32 %v1558_v32  ;;  %1766 = vmatprep.subr.bf16.mxu1 %v1735_v48  ;;  %v3198_v11 = vsub.f32 %v9722_v54, %v3116_v3  ;;  %v3199_v6 = vsub.f32 %v9723_v30, %v3116_v3  ;;  %v9727_v39 = vld [vmem:[#allocation56_spill] sm:$0xff]  ;;  %v9729_v3 = vld [vmem:[#allocation53_spill] sm:$0xff] }
 0x7af   : > { %9721 = vst [vmem:[#allocation13_spill] sm:$0xff] %v7816_v40  ;;  %v3390_v42 = vadd.f32 %v7812_v20, %v7808_v0  ;;  %v7822_v45 = vpop.eup %5617  ;;  %v1394_v63 = vsub.f32 %v9727_v39, %v9726_v57  ;;  %5635 = vrcp.f32 %v1561_v50  ;;  %1767 = vmatpush1.bf16.xpose.msra.mxu1 %v1734_v8  ;;  %1584 = vadd.xlane.f32.xlu0 %v1583_v53  ;;  %v3125_v32 = vpop.xlane.xlu0 %3124  ;;  %v1502_v53 = vmul.f32 1.442695, %v1392_v56 }
 0x7b0   : > { %9724 = vst [vmem:[#allocation40_spill] sm:$0xff] %v7822_v45  ;;  %v7828_v12 = vpop.eup %5619  ;;  %v3286_v48 = vmul.f32 1.442695, %v3198_v11  ;;  %v3288_v54 = vmul.f32 1.442695, %v3199_v6  ;;  %v3204_v30 = vsub.f32 %v9729_v3, %v3125_v32  ;;  %v3205_v0 = vsub.f32 %v9730_v35, %v3125_v32 }
 0x7b1   : > { %9728 = vst [vmem:[#allocation42_spill] sm:$0xff] %v7828_v12  ;;  %v7832_v20 = vpop.eup %5621  ;;  %5637 = vpow2.f32 %v1500_v60  ;;  %v1395_v15 = vsub.f32 %v9732_v9, %v9726_v57  ;;  %v3399_v8 = vadd.f32 %v7822_v45, %v7816_v40  ;;  %v7838_v50 = vpop.xlane.xlu1 %1341  ;;  %v1504_v3 = vmul.f32 1.442695, %v1393_v58  ;;  %v9741_v40 = vld [vmem:[#allocation51_spill] sm:$0xff] }
 0x7b2   : > { %9731 = vst [vmem:[#allocation44_spill] sm:$0xff] %v7832_v20  ;;  %3391 = vadd.xlane.f32.xlu1 %v3390_v42  ;;  %5639 = vpow2.f32 %v3286_v48  ;;  %v3298_v11 = vmul.f32 1.442695, %v3204_v30  ;;  %v3300_v6 = vmul.f32 1.442695, %v3205_v0  ;;  %v7840_v39 = vpop.eup %5623  ;;  %v1586_v60 = vadd.f32 %v7678_v21, %v7672_v16  ;;  %v9742_v16 = vld [vmem:[#allocation61_spill] sm:$0xff] }
 0x7b3   : > { %9733 = vst [vmem:[#allocation46_spill] sm:$0xff] %v7840_v39  ;;  %5641 = vpow2.f32 %v3288_v54  ;;  %3400 = vadd.xlane.f32.xlu0 %v3399_v8  ;;  %v7842_v35 = vpop.xlane.xlu0 %1344  ;;  %v1506_v57 = vmul.f32 1.442695, %v1394_v63  ;;  %v1508_v56 = vmul.f32 1.442695, %v1395_v15  ;;  %v1589_v0 = vadd.f32 %v7698_v31, %v7680_v26  ;;  %v9737_v54 = vld [vmem:[#allocation49_spill] sm:$0xff] }
 0x7b4   : > { %v7846_v42 = vpop.eup %5625  ;;  %5643 = vpow2.f32 %v3298_v11  ;;  %v9739_v8 = vld [vmem:[#allocation4_spill] sm:$0xff]  ;;  %v9743_v31 = vld [vmem:[#allocation63_spill] sm:$0xff] }
 0x7b5   : > { %9734 = vst [vmem:[#allocation48_spill] sm:$0xff] %v7846_v42  ;;  %v7848_v32 = vpop.eup %5627  ;;  %5645 = vpow2.f32 %v3300_v6  ;;  %v3122_v58 = vpop.xlane.xlu1 %3121  ;;  %v9740_v63 = vld [vmem:[#allocation60_spill] sm:$0xff] }
 0x7b6   : > { %9735 = vst [vmem:[#allocation50_spill] sm:$0xff] %v7848_v32  ;;  %1587 = vadd.xlane.f32.xlu1 %v1586_v60  ;;  %v7852_v48 = vpop.eup %5629  ;;  %5647 = vpow2.f32 %v1502_v53  ;;  %v3202_v30 = vsub.f32 %v9737_v54, %v3122_v58  ;;  %v1396_v11 = vsub.f32 %v9740_v63, %v9739_v8  ;;  %v3203_v15 = vsub.f32 %v9741_v40, %v3122_v58  ;;  %v9744_v40 = vld [vmem:[#allocation105_spill] sm:$0xff] }
 0x7b7   : > { %9736 = vst [vmem:[#allocation47_spill] sm:$0xff] %v7852_v48  ;;  %v7855_v9 = vpop.eup %5631  ;;  %5649 = vpow2.f32 %v1504_v3  ;;  %1590 = vadd.xlane.f32.xlu0 %v1589_v0  ;;  %v3131_v6 = vpop.xlane.xlu0 %3130  ;;  %v3396_v60 = vadd.f32 %v7848_v32, %v7846_v42  ;;  %v9745_v32 = vld [vmem:[#allocation22_spill] sm:$0xff] }
 0x7b8   : > { %9738 = vst [vmem:[#allocation101_spill] sm:$0xff] %v7855_v9  ;;  %v5634_v45 = vpop.eup %5633  ;;  %5651 = vpow2.f32 %v1506_v57  ;;  %v3294_v26 = vmul.f32 1.442695, %v3202_v30  ;;  %v3208_v53 = vsub.f32 %v9742_v16, %v3131_v6  ;;  %v3209_v54 = vsub.f32 %v9743_v31, %v3131_v6  ;;  %v9748_v6 = vld [vmem:[#allocation27_spill] sm:$0xff] }
 0x7b9   : > { %v5636_v21 = vpop.eup %5635  ;;  %5653 = vpow2.f32 %v1508_v56  ;;  %v3296_v3 = vmul.f32 1.442695, %v3203_v15  ;;  %v3405_v0 = vadd.f32 %v7855_v9, %v7852_v48  ;;  %v1564_v63 = vpop.xlane.xlu1 %1563  ;;  %v1679_v58 = vmul.f32 %v5634_v45, %v9744_v40  ;;  %v9747_v56 = vld [vmem:[#allocation104_spill] sm:$0xff] }
 0x7ba   : > { %3397 = vadd.xlane.f32.xlu1 %v3396_v60  ;;  %5655 = vpow2.f32 %v3294_v26  ;;  %v3306_v27 = vmul.f32 1.442695, %v3208_v53  ;;  %v3308_v42 = vmul.f32 1.442695, %v3209_v54  ;;  %v1681_v57 = vmul.f32 %v5636_v21, %v9745_v32  ;;  %v9751_v54 = vld [vmem:[#allocation62_spill] sm:$0xff] }
 0x7bb   : > { %v7868_v30 = vpop.eup %5637  ;;  %5657 = vpow2.f32 %v3296_v3  ;;  %3406 = vadd.xlane.f32.xlu0 %v3405_v0  ;;  %v1567_v16 = vpop.xlane.xlu0 %1566  ;;  %v1592_v31 = vadd.f32 %v7736_v1, %v7710_v51  ;;  %v1678_v15 = vmul.f32 %v5634_v45, %v9747_v56  ;;  %v1680_v60 = vmul.f32 %v5636_v21, %v9748_v6  ;;  %v9753_v21 = vld [vmem:[#allocation57_spill] sm:$0xff] }
 0x7bc   : > { %9746 = vst [vmem:[#allocation103_spill] sm:$0xff] %v7868_v30  ;;  %v7874_v48 = vpop.eup %5639  ;;  %5659 = vpow2.f32 %v3306_v27  ;;  %v1737_v26 = vpack.c.bf16 %v1681_v57, %v1679_v58  ;;  %v1595_v53 = vadd.f32 %v7766_v7, %v7762_v43  ;;  %v1397_v3 = vsub.f32 %v9751_v54, %v9739_v8  ;;  %v9754_v58 = vld [vmem:[#allocation59_spill] sm:$0xff]  ;;  %v9756_v8 = vld [vmem:[#allocation64_spill] sm:$0xff] }
 0x7bd   : > { %9749 = vst [vmem:[#allocation100_spill] sm:$0xff] %v7874_v48  ;;  %v7878_v32 = vpop.eup %5641  ;;  %v1510_v0 = vmul.f32 1.442695, %v1396_v11  ;;  %5661 = vpow2.f32 %v3308_v42  ;;  %v1736_v40 = vpack.c.bf16 %v1680_v60, %v1678_v15  ;;  %v3128_v9 = vpop.xlane.xlu1 %3127  ;;  %v1398_v11 = vsub.f32 %v9756_v8, %v7706_v61  ;;  %v9757_v42 = vld [vmem:[#allocation66_spill] sm:$0xff] }
 0x7be   : > { %9750 = vst [vmem:[#allocation102_spill] sm:$0xff] %v7878_v32  ;;  %1593 = vadd.xlane.f32.xlu1 %v1592_v31  ;;  %v7882_v45 = vpop.eup %5643  ;;  %5663 = vrcp.f32 %v1564_v63  ;;  %1768 = vmatprep.subr.bf16.mxu1 %v1737_v26  ;;  %v3206_v27 = vsub.f32 %v9753_v21, %v3128_v9  ;;  %v3207_v57 = vsub.f32 %v9754_v58, %v3128_v9  ;;  %v9759_v9 = vld [vmem:[#allocation69_spill] sm:$0xff]  ;;  %v9760_v21 = vld [vmem:[#allocation71_spill] sm:$0xff] }
 0x7bf   : > { %9752 = vst [vmem:[#allocation108_spill] sm:$0xff] %v7882_v45  ;;  %v3402_v56 = vadd.f32 %v7878_v32, %v7874_v48  ;;  %v7888_v6 = vpop.eup %5645  ;;  %v1399_v31 = vsub.f32 %v9757_v42, %v7706_v61  ;;  %5665 = vrcp.f32 %v1567_v16  ;;  %1769 = vmatpush1.bf16.xpose.msra.mxu1 %v1736_v40  ;;  %1596 = vadd.xlane.f32.xlu0 %v1595_v53  ;;  %v3137_v63 = vpop.xlane.xlu0 %3136  ;;  %v1512_v32 = vmul.f32 1.442695, %v1397_v3 }
 0x7c0   : > { %9755 = vst [vmem:[#allocation52_spill] sm:$0xff] %v7888_v6  ;;  %v7894_v15 = vpop.eup %5647  ;;  %v3302_v60 = vmul.f32 1.442695, %v3206_v27  ;;  %v3304_v26 = vmul.f32 1.442695, %v3207_v57  ;;  %v3212_v54 = vsub.f32 %v9759_v9, %v3137_v63  ;;  %v3213_v58 = vsub.f32 %v9760_v21, %v3137_v63  ;;  %v9762_v27 = vld [vmem:[#allocation65_spill] sm:$0xff] }
 0x7c1   : > { %9758 = vst [vmem:[#allocation41_spill] sm:$0xff] %v7894_v15  ;;  %v7898_v48 = vpop.eup %5649  ;;  %5667 = vpow2.f32 %v1510_v0  ;;  %v3411_v61 = vadd.f32 %v7888_v6, %v7882_v45  ;;  %v3134_v16 = vpop.xlane.xlu1 %3133  ;;  %v1514_v9 = vmul.f32 1.442695, %v1398_v11  ;;  %v9763_v63 = vld [vmem:[#allocation67_spill] sm:$0xff]  ;;  %v1516_v45 = vmul.f32 1.442695, %v1399_v31 }
 0x7c2   : > { %9761 = vst [vmem:[#allocation43_spill] sm:$0xff] %v7898_v48  ;;  %3403 = vadd.xlane.f32.xlu1 %v3402_v56  ;;  %v7902_v40 = vpop.eup %5651  ;;  %5669 = vpow2.f32 %v3302_v60  ;;  %v3314_v53 = vmul.f32 1.442695, %v3212_v54  ;;  %v3316_v8 = vmul.f32 1.442695, %v3213_v58  ;;  %v3210_v57 = vsub.f32 %v9762_v27, %v3134_v16  ;;  %v9765_v60 = vld [vmem:[#allocation77_spill] sm:$0xff] }
 0x7c3   : > { %v7905_v42 = vpop.eup %5653  ;;  %5671 = vpow2.f32 %v3304_v26  ;;  %3412 = vadd.xlane.f32.xlu0 %v3411_v61  ;;  %v3211_v0 = vsub.f32 %v9763_v63, %v3134_v16  ;;  %v3143_v3 = vpop.xlane.xlu0 %3142  ;;  %v1598_v56 = vadd.f32 %v7802_v5, %v7774_v19  ;;  %v9766_v58 = vld [vmem:[#allocation79_spill] sm:$0xff]  ;;  %v1601_v26 = vadd.f32 %v7832_v20, %v7828_v12  ;;  %v9769_v16 = vld [vmem:[#allocation68_spill] sm:$0xff]  ;;  %v9780_v20 = vld [vmem:[#allocation106_spill] sm:$0xff] }
 0x7c4   : > { %v7910_v21 = vpop.eup %5655  ;;  %5673 = vpow2.f32 %v3314_v53  ;;  %v3216_v54 = vsub.f32 %v9765_v60, %v3143_v3  ;;  %v3217_v6 = vsub.f32 %v9766_v58, %v3143_v3  ;;  %v3310_v11 = vmul.f32 1.442695, %v3210_v57 }
 0x7c5   : > { %9764 = vst [vmem:[#allocation54_spill] sm:$0xff] %v7910_v21  ;;  %v7914_v27 = vpop.eup %5657  ;;  %5675 = vpow2.f32 %v3316_v8  ;;  %v1400_v63 = vsub.f32 %v9769_v16, %v7712_v13  ;;  %v3312_v31 = vmul.f32 1.442695, %v3211_v0  ;;  %v3140_v53 = vpop.xlane.xlu1 %3139  ;;  %v9772_v16 = vld [vmem:[#allocation73_spill] sm:$0xff] }
 0x7c6   : > { %9767 = vst [vmem:[#allocation31_spill] sm:$0xff] %v7914_v27  ;;  %1599 = vadd.xlane.f32.xlu1 %v1598_v56  ;;  %v7918_v61 = vpop.eup %5659  ;;  %5677 = vpow2.f32 %v1512_v32  ;;  %v3322_v3 = vmul.f32 1.442695, %v3216_v54  ;;  %v3408_v8 = vadd.f32 %v7914_v27, %v7910_v21  ;;  %v9771_v56 = vld [vmem:[#allocation70_spill] sm:$0xff]  ;;  %v3324_v32 = vmul.f32 1.442695, %v3217_v6 }
 0x7c7   : > { %9768 = vst [vmem:[#allocation56_spill] sm:$0xff] %v7918_v61  ;;  %v7922_v19 = vpop.eup %5661  ;;  %5679 = vpow2.f32 %v1514_v9  ;;  %1602 = vadd.xlane.f32.xlu0 %v1601_v26  ;;  %v3149_v60 = vpop.xlane.xlu0 %3148  ;;  %v1401_v58 = vsub.f32 %v9771_v56, %v7712_v13  ;;  %v3214_v0 = vsub.f32 %v9772_v16, %v3140_v53  ;;  %v1604_v54 = vadd.f32 %v7868_v30, %v7840_v39  ;;  %v9773_v21 = vld [vmem:[#allocation75_spill] sm:$0xff]  ;;  %v9774_v6 = vld [vmem:[#allocation85_spill] sm:$0xff] }
 0x7c8   : > { %9770 = vst [vmem:[#allocation53_spill] sm:$0xff] %v7922_v19  ;;  %v5664_v57 = vpop.eup %5663  ;;  %5681 = vpow2.f32 %v1516_v45  ;;  %v3417_v9 = vadd.f32 %v7922_v19, %v7918_v61  ;;  %v1518_v26 = vmul.f32 1.442695, %v1400_v63  ;;  %v3215_v27 = vsub.f32 %v9773_v21, %v3140_v53  ;;  %v9776_v16 = vld [vmem:[#allocation107_spill] sm:$0xff]  ;;  %v9777_v63 = vld [vmem:[#allocation72_spill] sm:$0xff] }
 0x7c9   : > { %v5666_v12 = vpop.eup %5665  ;;  %5683 = vpow2.f32 %v3310_v11  ;;  %v1607_v45 = vadd.f32 %v7898_v48, %v7894_v15  ;;  %v3220_v11 = vsub.f32 %v9774_v6, %v3149_v60  ;;  %v1520_v39 = vmul.f32 1.442695, %v1401_v58  ;;  %v9778_v21 = vld [vmem:[#allocation87_spill] sm:$0xff]  ;;  %v3146_v15 = vpop.xlane.xlu1 %3145  ;;  %v9779_v6 = vld [vmem:[#allocation21_spill] sm:$0xff]  ;;  %v9782_v58 = vld [vmem:[#allocation74_spill] sm:$0xff] }
 0x7ca   : > { %3409 = vadd.xlane.f32.xlu1 %v3408_v8  ;;  %5685 = vpow2.f32 %v3312_v31  ;;  %v9775_v8 = vld [vmem:[#allocation45_spill] sm:$0xff]  ;;  %v1685_v61 = vmul.f32 %v5666_v12, %v9776_v16  ;;  %v1402_v31 = vsub.f32 %v9777_v63, %v7772_v46  ;;  %v3221_v53 = vsub.f32 %v9778_v21, %v3149_v60  ;;  %v9784_v60 = vld [vmem:[#allocation76_spill] sm:$0xff] }
 0x7cb   : > { %v7936_v13 = vpop.eup %5667  ;;  %5687 = vpow2.f32 %v3322_v3  ;;  %3418 = vadd.xlane.f32.xlu0 %v3417_v9  ;;  %v1683_v56 = vmul.f32 %v5664_v57, %v9775_v8  ;;  %v3318_v3 = vmul.f32 1.442695, %v3214_v0  ;;  %v3155_v30 = vpop.xlane.xlu0 %3154  ;;  %v1682_v8 = vmul.f32 %v5664_v57, %v9779_v6 }
 0x7cc   : > { %v7941_v19 = vpop.eup %5669  ;;  %5689 = vpow2.f32 %v3324_v32  ;;  %v1684_v16 = vmul.f32 %v5666_v12, %v9780_v20  ;;  %v1403_v63 = vsub.f32 %v9782_v58, %v7772_v46  ;;  %v3320_v32 = vmul.f32 1.442695, %v3215_v27  ;;  %v9785_v12 = vld [vmem:[#allocation78_spill] sm:$0xff] }
 0x7cd   : > { %v7946_v48 = vpop.eup %5671  ;;  %v1739_v9 = vpack.c.bf16 %v1685_v61, %v1683_v56  ;;  %5691 = vpow2.f32 %v1518_v26  ;;  %v1404_v21 = vsub.f32 %v9784_v60, %v7776_v37  ;;  %v3330_v0 = vmul.f32 1.442695, %v3220_v11  ;;  %v9787_v56 = vld [vmem:[#allocation81_spill] sm:$0xff] }
 0x7ce   : > { %1605 = vadd.xlane.f32.xlu1 %v1604_v54  ;;  %v7950_v5 = vpop.eup %5673  ;;  %v1738_v54 = vpack.c.bf16 %v1684_v16, %v1682_v8  ;;  %v3414_v61 = vadd.f32 %v7946_v48, %v7941_v19  ;;  %5693 = vpow2.f32 %v1520_v39  ;;  %v1405_v57 = vsub.f32 %v9785_v12, %v7776_v37  ;;  %v9788_v39 = vld [vmem:[#allocation83_spill] sm:$0xff]  ;;  %v3152_v16 = vpop.xlane.xlu1 %3151 }
 0x7cf   : > { %9781 = vst [vmem:[#allocation55_spill] sm:$0xff] %v7950_v5  ;;  %v7954_v43 = vpop.eup %5675  ;;  %1770 = vmatprep.subr.bf16.mxu1 %v1739_v9  ;;  %1608 = vadd.xlane.f32.xlu0 %v1607_v45  ;;  %v3332_v46 = vmul.f32 1.442695, %v3221_v53  ;;  %v1522_v26 = vmul.f32 1.442695, %v1402_v31  ;;  %5695 = vpow2.f32 %v3318_v3  ;;  %v3218_v6 = vsub.f32 %v9787_v56, %v3146_v15  ;;  %v9790_v31 = vld [vmem:[#allocation90_spill] sm:$0xff]  ;;  %v7975_v58 = vpop.xlane.xlu0 %3160 }
 0x7d0   : > { %9783 = vst [vmem:[#allocation58_spill] sm:$0xff] %v7954_v43  ;;  %v7960_v20 = vpop.eup %5677  ;;  %1771 = vmatpush1.bf16.xpose.msra.mxu1 %v1738_v54  ;;  %v3423_v45 = vadd.f32 %v7954_v43, %v7950_v5  ;;  %v1524_v9 = vmul.f32 1.442695, %v1403_v63  ;;  %5697 = vpow2.f32 %v3320_v32  ;;  %v3219_v8 = vsub.f32 %v9788_v39, %v3146_v15  ;;  %v9792_v63 = vld [vmem:[#allocation91_spill] sm:$0xff]  ;;  %v9796_v39 = vld [vmem:[#allocation82_spill] sm:$0xff] }
 0x7d1   : > { %v7964_v27 = vpop.eup %5679  ;;  %v1526_v53 = vmul.f32 1.442695, %v1404_v21  ;;  %5699 = vpow2.f32 %v3330_v0  ;;  %v3224_v3 = vsub.f32 %v9790_v31, %v3155_v30  ;;  %v1610_v60 = vadd.f32 %v7905_v42, %v7902_v40  ;;  %v9794_v21 = vld [vmem:[#allocation80_spill] sm:$0xff] }
 0x7d2   : > { %9786 = vst [vmem:[#allocation49_spill] sm:$0xff] %v7964_v27  ;;  %3415 = vadd.xlane.f32.xlu1 %v3414_v61  ;;  %v7969_v11 = vpop.eup %5681  ;;  %v1528_v61 = vmul.f32 1.442695, %v1405_v57  ;;  %5701 = vpow2.f32 %v3332_v46  ;;  %v3225_v32 = vsub.f32 %v9792_v63, %v3155_v30  ;;  %v1406_v0 = vsub.f32 %v9794_v21, %v7838_v50  ;;  %v9797_v30 = vld [vmem:[#allocation84_spill] sm:$0xff] }
 0x7d3   : > { %v7972_v37 = vpop.eup %5683  ;;  %3424 = vadd.xlane.f32.xlu0 %v3423_v45  ;;  %5703 = vpow2.f32 %v1522_v26  ;;  %v3326_v12 = vmul.f32 1.442695, %v3218_v6  ;;  %v1613_v56 = vadd.f32 %v7960_v20, %v7936_v13  ;;  %v1407_v57 = vsub.f32 %v9796_v39, %v7838_v50  ;;  %v3158_v50 = vpop.xlane.xlu1 %3157 }
 0x7d4   : > { %9789 = vst [vmem:[#allocation4_spill] sm:$0xff] %v7972_v37  ;;  %v7979_v54 = vpop.eup %5685  ;;  %5705 = vpow2.f32 %v1524_v9  ;;  %v3328_v46 = vmul.f32 1.442695, %v3219_v8  ;;  %v1408_v31 = vsub.f32 %v9797_v30, %v7842_v35  ;;  %v3338_v26 = vmul.f32 1.442695, %v3224_v3  ;;  %v9799_v9 = vld [vmem:[#allocation86_spill] sm:$0xff] }
 0x7d5   : > { %9791 = vst [vmem:[#allocation60_spill] sm:$0xff] %v7979_v54  ;;  %v7982_v15 = vpop.eup %5687  ;;  %5707 = vpow2.f32 %v1526_v53  ;;  %v3420_v6 = vadd.f32 %v7979_v54, %v7972_v37  ;;  %v1409_v21 = vsub.f32 %v9799_v9, %v7842_v35  ;;  %v3340_v5 = vmul.f32 1.442695, %v3225_v32  ;;  %v9800_v53 = vld [vmem:[#allocation88_spill] sm:$0xff]  ;;  %v9801_v37 = vld [vmem:[#allocation89_spill] sm:$0xff]  ;;  %v9803_v35 = vld [vmem:[#allocation94_spill] sm:$0xff] }
 0x7d6   : > { %9793 = vst [vmem:[#allocation51_spill] sm:$0xff] %v7982_v15  ;;  %1611 = vadd.xlane.f32.xlu1 %v1610_v60  ;;  %v7988_v45 = vpop.eup %5689  ;;  %5709 = vpow2.f32 %v1528_v61  ;;  %v1530_v8 = vmul.f32 1.442695, %v1406_v0  ;;  %v3222_v39 = vsub.f32 %v9800_v53, %v3152_v16  ;;  %v1532_v30 = vmul.f32 1.442695, %v1407_v57  ;;  %v9804_v57 = vld [vmem:[#allocation95_spill] sm:$0xff] }
 0x7d7   : > { %9795 = vst [vmem:[#allocation61_spill] sm:$0xff] %v7988_v45  ;;  %1614 = vadd.xlane.f32.xlu0 %v1613_v56  ;;  %v7994_v63 = vpop.xlane.xlu0 %3370  ;;  %v7998_v60 = vpop.eup %5691  ;;  %5711 = vpow2.f32 %v3326_v12  ;;  %v3429_v3 = vadd.f32 %v7988_v45, %v7982_v15  ;;  %v3223_v43 = vsub.f32 %v9801_v37, %v3152_v16  ;;  %v1534_v54 = vmul.f32 1.442695, %v1408_v31  ;;  %v9805_v31 = vld [vmem:[#allocation92_spill] sm:$0xff] }
 0x7d8   : > { %9798 = vst [vmem:[#allocation63_spill] sm:$0xff] %v7998_v60  ;;  %v8005_v56 = vpop.eup %5693  ;;  %5713 = vpow2.f32 %v3328_v46  ;;  %v3228_v32 = vsub.f32 %v9803_v35, %v7975_v58  ;;  %v1616_v0 = vadd.f32 %v7969_v11, %v7964_v27  ;;  %v3229_v46 = vsub.f32 %v9804_v57, %v7975_v58  ;;  %v3164_v15 = vpop.xlane.xlu1 %3163  ;;  %v9807_v57 = vld [vmem:[#allocation98_spill] sm:$0xff] }
 0x7d9   : > { %v8008_v61 = vpop.eup %5695  ;;  %5715 = vpow2.f32 %v3338_v26  ;;  %v3334_v37 = vmul.f32 1.442695, %v3222_v39  ;;  %v3226_v26 = vsub.f32 %v9805_v31, %v3158_v50  ;;  %v1619_v53 = vadd.f32 %v8005_v56, %v7998_v60  ;;  %v9808_v60 = vld [vmem:[#allocation99_spill] sm:$0xff] }
 0x7da   : > { %3421 = vadd.xlane.f32.xlu1 %v3420_v6  ;;  %9802 = vst [vmem:[#allocation105_spill] sm:$0xff] %v8008_v61  ;;  %v8014_v12 = vpop.eup %5697  ;;  %v1536_v6 = vmul.f32 1.442695, %v1409_v21  ;;  %5717 = vpow2.f32 %v3340_v5  ;;  %v3336_v35 = vmul.f32 1.442695, %v3223_v43  ;;  %v9806_v21 = vld [vmem:[#allocation93_spill] sm:$0xff] }
 0x7db   : > { %3430 = vadd.xlane.f32.xlu0 %v3429_v3  ;;  %v3167_v9 = vpop.xlane.xlu0 %3166  ;;  %v8018_v16 = vpop.eup %5699  ;;  %5719 = vpow2.f32 %v1530_v8  ;;  %v3227_v5 = vsub.f32 %v9806_v21, %v3158_v50  ;;  %v3346_v58 = vmul.f32 1.442695, %v3228_v32  ;;  %v3426_v39 = vadd.f32 %v8014_v12, %v8008_v61  ;;  %v9809_v21 = vld [vmem:[#allocation96_spill] sm:$0xff] }
 0x7dc   : > { %v8023_v3 = vpop.eup %5701  ;;  %5721 = vpow2.f32 %v1532_v30  ;;  %v3232_v8 = vsub.f32 %v9807_v57, %v3167_v9  ;;  %v3348_v31 = vmul.f32 1.442695, %v3229_v46  ;;  %v3233_v30 = vsub.f32 %v9808_v60, %v3167_v9  ;;  %v9810_v57 = vld [vmem:[#allocation97_spill] sm:$0xff] }
 0x7dd   : > { %v8026_v45 = vpop.eup %5703  ;;  %5723 = vpow2.f32 %v1534_v54  ;;  %v3342_v50 = vmul.f32 1.442695, %v3226_v26  ;;  %v3230_v27 = vsub.f32 %v9809_v21, %v3164_v15  ;;  %v3435_v54 = vadd.f32 %v8023_v3, %v8018_v16 }
 0x7de   : > { %1617 = vadd.xlane.f32.xlu1 %v1616_v0  ;;  %v8031_v0 = vpop.eup %5705  ;;  %5725 = vpow2.f32 %v1536_v6  ;;  %v3231_v61 = vsub.f32 %v9810_v57, %v3164_v15  ;;  %v3354_v60 = vmul.f32 1.442695, %v3232_v8 }
 0x7df   : > { %1620 = vadd.xlane.f32.xlu0 %v1619_v53  ;;  %v8034_v43 = vpop.eup %5707  ;;  %5727 = vpow2.f32 %v3334_v37  ;;  %v3344_v53 = vmul.f32 1.442695, %v3227_v5  ;;  %v1622_v46 = vadd.f32 %v8031_v0, %v8026_v45  ;;  %v3356_v37 = vmul.f32 1.442695, %v3233_v30 }
 0x7e0   : > { %v8039_v32 = vpop.eup %5709  ;;  %5729 = vpow2.f32 %v3336_v35  ;;  %v3352_v5 = vmul.f32 1.442695, %v3231_v61 }
 0x7e1   : > { %v8042_v6 = vpop.eup %5711  ;;  %5731 = vpow2.f32 %v3346_v58  ;;  %v1625_v15 = vadd.f32 %v8039_v32, %v8034_v43 }
 0x7e2   : > { %3427 = vadd.xlane.f32.xlu1 %v3426_v39  ;;  %v8046_v9 = vpop.eup %5713  ;;  %5733 = vpow2.f32 %v3348_v31  ;;  %v3350_v39 = vmul.f32 1.442695, %v3230_v27 }
 0x7e3   : > { %3436 = vadd.xlane.f32.xlu0 %v3435_v54  ;;  %v8048_v26 = vpop.eup %5715  ;;  %5735 = vpow2.f32 %v3342_v50  ;;  %v3432_v8 = vadd.f32 %v8046_v9, %v8042_v6 }
 0x7e4   : > { %9811 = vst [vmem:[#allocation22_spill] sm:$0xff] %v8048_v26  ;;  %v8052_v35 = vpop.eup %5717  ;;  %5737 = vpow2.f32 %v3344_v53 }
 0x7e5   : > { %9812 = vst [vmem:[#allocation104_spill] sm:$0xff] %v8052_v35  ;;  %v8054_v58 = vpop.eup %5719  ;;  %5739 = vpow2.f32 %v3354_v60  ;;  %v3441_v27 = vadd.f32 %v8052_v35, %v8048_v26 }
 0x7e6   : > { %1623 = vadd.xlane.f32.xlu1 %v1622_v46  ;;  %9813 = vst [vmem:[#allocation27_spill] sm:$0xff] %v8054_v58  ;;  %v8058_v31 = vpop.eup %5721  ;;  %5741 = vpow2.f32 %v3356_v37 }
 0x7e7   : > { %1626 = vadd.xlane.f32.xlu0 %v1625_v15  ;;  %v8060_v30 = vpop.eup %5723  ;;  %5743 = vpow2.f32 %v3350_v39  ;;  %v1628_v21 = vadd.f32 %v8058_v31, %v8054_v58 }
 0x7e8   : > { %9814 = vst [vmem:[#allocation62_spill] sm:$0xff] %v8060_v30  ;;  %v8064_v50 = vpop.eup %5725  ;;  %5745 = vpow2.f32 %v3352_v5 }
 0x7e9   : > { %9815 = vst [vmem:[#allocation57_spill] sm:$0xff] %v8064_v50  ;;  %v8066_v61 = vpop.eup %5727  ;;  %v1631_v57 = vadd.f32 %v8064_v50, %v8060_v30  ;;  %5747 = vrcp.f32 %v7994_v63  ;;  %v9827_v63 = vld [vmem:[#allocation26_spill] sm:$0xff] }
 0x7ea   : > { %3433 = vadd.xlane.f32.xlu1 %v3432_v8  ;;  %9816 = vst [vmem:[#allocation59_spill] sm:$0xff] %v8066_v61  ;;  %v8070_v54 = vpop.eup %5729 }
 0x7eb   : > { %3442 = vadd.xlane.f32.xlu0 %v3441_v27  ;;  %9817 = vst [vmem:[#allocation64_spill] sm:$0xff] %v8070_v54  ;;  %v8072_v53 = vpop.eup %5731  ;;  %v3438_v37 = vadd.f32 %v8070_v54, %v8066_v61 }
 0x7ec   : > { %9818 = vst [vmem:[#allocation66_spill] sm:$0xff] %v8072_v53  ;;  %v8076_v60 = vpop.eup %5733 }
 0x7ed   : > { %9819 = vst [vmem:[#allocation69_spill] sm:$0xff] %v8076_v60  ;;  %v8078_v46 = vpop.eup %5735  ;;  %v3447_v5 = vadd.f32 %v8076_v60, %v8072_v53 }
 0x7ee   : > { %1629 = vadd.xlane.f32.xlu1 %v1628_v21  ;;  %9820 = vst [vmem:[#allocation71_spill] sm:$0xff] %v8078_v46  ;;  %v8082_v39 = vpop.eup %5737 }
 0x7ef   : > { %1632 = vadd.xlane.f32.xlu0 %v1631_v57  ;;  %9821 = vst [vmem:[#allocation65_spill] sm:$0xff] %v8082_v39  ;;  %v8084_v15 = vpop.eup %5739  ;;  %v3444_v21 = vadd.f32 %v8082_v39, %v8078_v46 }
 0x7f0   : > { %9822 = vst [vmem:[#allocation67_spill] sm:$0xff] %v8084_v15  ;;  %v8088_v8 = vpop.eup %5741 }
 0x7f1   : > { %9823 = vst [vmem:[#allocation77_spill] sm:$0xff] %v8088_v8  ;;  %v8090_v27 = vpop.eup %5743  ;;  %v3453_v26 = vadd.f32 %v8088_v8, %v8084_v15  ;;  %v9826_v8 = vld [vmem:[#allocation30_spill] sm:$0xff] }
 0x7f2   : > { %3439 = vadd.xlane.f32.xlu1 %v3438_v37  ;;  %9824 = vst [vmem:[#allocation79_spill] sm:$0xff] %v8090_v27  ;;  %v8094_v57 = vpop.eup %5745 }
 0x7f3   : > { %3448 = vadd.xlane.f32.xlu0 %v3447_v5  ;;  %9825 = vst [vmem:[#allocation68_spill] sm:$0xff] %v8094_v57  ;;  %v3450_v37 = vadd.f32 %v8094_v57, %v8090_v27  ;;  %v5748_v39 = vpop.eup %5747 }
 0x7f4   : > { %v3497_v27 = vmul.f32 %v5748_v39, %v9826_v8  ;;  %v3496_v57 = vmul.f32 %v5748_v39, %v9827_v63 }
 0x7f6   : > { %3445 = vadd.xlane.f32.xlu1 %v3444_v21 }
 0x7f7   : > { %3454 = vadd.xlane.f32.xlu0 %v3453_v26 }
 0x7fa   : > { %3451 = vadd.xlane.f32.xlu1 %v3450_v37 }
 0x81d   : > { %v3368_v53 = vpop.xlane.xlu1 %3367 }
 0x81e   : > { %5749 = vrcp.f32 %v3368_v53 }
 0x820   : > { %v3377_v60 = vpop.xlane.xlu0 %3376 }
 0x821   : > { %v1570_v5 = vpop.xlane.xlu1 %1569 }
 0x822   : > { %5751 = vrcp.f32 %v1570_v5 }
 0x823   : > { %5753 = vrcp.f32 %v3377_v60 }
 0x824   : > { %v1573_v46 = vpop.xlane.xlu0 %1572 }
 0x825   : > { %5755 = vrcp.f32 %v1573_v46  ;;  %v3374_v21 = vpop.xlane.xlu1 %3373 }
 0x826   : > { %5757 = vrcp.f32 %v3374_v21 }
 0x828   : > { %v5750_v61 = vpop.eup %5749  ;;  %v3383_v15 = vpop.xlane.xlu0 %3382 }
 0x829   : > { %v3495_v26 = vmul.f32 %v5750_v61, %v7684_v25  ;;  %v3494_v37 = vmul.f32 %v5750_v61, %v7682_v17  ;;  %5759 = vrcp.f32 %v3383_v15 }
 0x82b   : > { %v3170_v53 = vpop.xlane.xlu1 %3169  ;;  %v3559_v5 = vpack.c.bf16 %v3497_v27, %v3495_v26  ;;  %v3558_v46 = vpack.c.bf16 %v3496_v57, %v3494_v37 }
 0x82c   : > { %v3234_v35 = vsub.f32 %v7490_v18, %v3170_v53  ;;  %v3235_v60 = vsub.f32 %v7494_v62, %v3170_v53  ;;  %v5752_v54 = vpop.eup %5751  ;;  %v3173_v30 = vpop.xlane.xlu0 %3172 }
 0x82d   : > { %v3236_v50 = vsub.f32 %v7503_v52, %v3173_v30  ;;  %v3237_v25 = vsub.f32 %v7507_v14, %v3173_v30  ;;  %3590 = vmatprep.subr.bf16.mxu0 %v3559_v5  ;;  %v5754_v8 = vpop.eup %5753  ;;  %v1687_v62 = vmul.f32 %v5752_v54, %v7632_v59  ;;  %v1686_v57 = vmul.f32 %v5752_v54, %v7630_v55 }
 0x82e   : > { %v3358_v21 = vmul.f32 1.442695, %v3234_v35  ;;  %v3360_v58 = vmul.f32 1.442695, %v3235_v60  ;;  %3591 = vmatpush1.bf16.xpose.msra.mxu0 %v3558_v46  ;;  %v3501_v30 = vmul.f32 %v5754_v8, %v7694_v44 }
 0x82f   : > { %v3380_v17 = vpop.xlane.xlu1 %3379  ;;  %v5756_v61 = vpop.eup %5755  ;;  %v3362_v18 = vmul.f32 1.442695, %v3236_v50  ;;  %v3364_v39 = vmul.f32 1.442695, %v3237_v25 }
 0x830   : > { %5761 = vpow2.f32 %v3358_v21  ;;  %v3389_v27 = vpop.xlane.xlu0 %3388  ;;  %v1689_v35 = vmul.f32 %v5756_v61, %v7636_v36  ;;  %v1688_v52 = vmul.f32 %v5756_v61, %v7634_v23  ;;  %v5758_v14 = vpop.eup %5757 }
 0x831   : > { %5763 = vpow2.f32 %v3360_v58  ;;  %v3499_v50 = vmul.f32 %v5758_v14, %v7716_v10  ;;  %v3498_v59 = vmul.f32 %v5758_v14, %v7714_v2  ;;  %v3500_v58 = vmul.f32 %v5754_v8, %v7688_v29 }
 0x832   : > { %5765 = vpow2.f32 %v3362_v18  ;;  %v1741_v26 = vpack.c.bf16 %v1689_v35, %v1687_v62  ;;  %v1740_v37 = vpack.c.bf16 %v1688_v52, %v1686_v57 }
 0x833   : > { %5767 = vpow2.f32 %v3364_v39  ;;  %v1576_v15 = vpop.xlane.xlu1 %1575  ;;  %v3561_v55 = vpack.c.bf16 %v3501_v30, %v3499_v50  ;;  %v3560_v23 = vpack.c.bf16 %v3500_v58, %v3498_v59  ;;  %v5760_v54 = vpop.eup %5759 }
 0x834   : > { %5769 = vrcp.f32 %v3380_v17  ;;  %v1579_v36 = vpop.xlane.xlu0 %1578  ;;  %1772 = vmatprep.subr.bf16.mxu1 %v1741_v26  ;;  %v3505_v61 = vmul.f32 %v5760_v54, %v7723_v24  ;;  %v3504_v62 = vmul.f32 %v5760_v54, %v7720_v38 }
 0x835   : > { %5771 = vrcp.f32 %v3389_v27  ;;  %1773 = vmatpush1.bf16.xpose.msra.mxu1 %v1740_v37  ;;  %3592 = vmatprep.subr.bf16.mxu0 %v3561_v55  ;;  %v9828_v37 = vld [vmem:[#allocation33_spill] sm:$0xff] }
 0x836   : > { %5773 = vrcp.f32 %v1576_v15  ;;  %3593 = vmatpush1.bf16.xpose.msra.mxu0 %v3560_v23 }
 0x837   : > { %5775 = vrcp.f32 %v1579_v36  ;;  %v3386_v44 = vpop.xlane.xlu1 %3385  ;;  %v9829_v36 = vld [vmem:[#allocation39_spill] sm:$0xff] }
 0x838   : > { %5777 = vrcp.f32 %v3386_v44  ;;  %v3395_v63 = vpop.xlane.xlu0 %3394 }
 0x83a   : > { %v8117_v10 = vpop.eup %5761 }
 0x83b   : > { %v8119_v53 = vpop.eup %5763  ;;  %v1582_v2 = vpop.xlane.xlu1 %1581 }
 0x83c   : > { %v8121_v29 = vpop.eup %5765  ;;  %5779 = vrcp.f32 %v1582_v2  ;;  %v3456_v60 = vadd.f32 %v8119_v53, %v8117_v10  ;;  %v1585_v46 = vpop.xlane.xlu0 %1584 }
 0x83d   : > { %v8125_v5 = vpop.eup %5767  ;;  %5781 = vrcp.f32 %v3395_v63 }
 0x83e   : > { %v5770_v21 = vpop.eup %5769  ;;  %5783 = vrcp.f32 %v1585_v46  ;;  %3457 = vadd.xlane.f32.xlu1 %v3456_v60  ;;  %v3459_v25 = vadd.f32 %v8125_v5, %v8121_v29  ;;  %v9831_v46 = vld [vmem:[#allocation9_spill] sm:$0xff] }
 0x83f   : > { %v5772_v8 = vpop.eup %5771  ;;  %v3503_v17 = vmul.f32 %v5770_v21, %v7742_v47  ;;  %v3392_v18 = vpop.xlane.xlu1 %3391  ;;  %v3502_v39 = vmul.f32 %v5770_v21, %v7740_v22 }
 0x840   : > { %v5774_v27 = vpop.eup %5773  ;;  %3460 = vadd.xlane.f32.xlu0 %v3459_v25  ;;  %5785 = vrcp.f32 %v3392_v18  ;;  %v3401_v14 = vpop.xlane.xlu0 %3400  ;;  %v3509_v50 = vmul.f32 %v5772_v8, %v9828_v37  ;;  %v9832_v25 = vld [vmem:[#allocation3_spill] sm:$0xff] }
 0x841   : > { %v5776_v35 = vpop.eup %5775  ;;  %v3563_v57 = vpack.c.bf16 %v3505_v61, %v3503_v17  ;;  %v3562_v52 = vpack.c.bf16 %v3504_v62, %v3502_v39  ;;  %v1691_v15 = vmul.f32 %v5774_v27, %v7644_v49  ;;  %v1690_v47 = vmul.f32 %v5774_v27, %v7638_v28  ;;  %v9830_v28 = vld [vmem:[#allocation35_spill] sm:$0xff]  ;;  %v9833_v61 = vld [vmem:[#allocation5_spill] sm:$0xff] }
 0x842   : > { %v5778_v30 = vpop.eup %5777  ;;  %v1693_v26 = vmul.f32 %v5776_v35, %v7650_v41  ;;  %v1692_v24 = vmul.f32 %v5776_v35, %v7646_v33  ;;  %v3508_v33 = vmul.f32 %v5772_v8, %v9830_v28  ;;  %v9834_v35 = vld [vmem:[#allocation20_spill] sm:$0xff] }
 0x843   : > { %3594 = vmatprep.subr.bf16.mxu0 %v3563_v57  ;;  %v1588_v22 = vpop.xlane.xlu1 %1587  ;;  %v3507_v38 = vmul.f32 %v5778_v30, %v7782_v4  ;;  %v3506_v55 = vmul.f32 %v5778_v30, %v9829_v36  ;;  %v9836_v30 = vld [vmem:[#allocation19_spill] sm:$0xff]  ;;  %v672_v36 = vld [vmem:[%s9123_s6 + $0x18] sm:$0xff] }
 0x844   : > { %3595 = vmatpush1.bf16.xpose.msra.mxu0 %v3562_v52  ;;  %5787 = vrcp.f32 %v1588_v22  ;;  %v1743_v59 = vpack.c.bf16 %v1693_v26, %v1691_v15  ;;  %v1742_v58 = vpack.c.bf16 %v1692_v24, %v1690_v47  ;;  %v1591_v49 = vpop.xlane.xlu0 %1590  ;;  %v9835_v52 = vld [vmem:[#allocation14_spill] sm:$0xff] }
 0x845   : > { %5789 = vrcp.f32 %v3401_v14  ;;  %v3565_v23 = vpack.c.bf16 %v3509_v50, %v3507_v38  ;;  %v3564_v63 = vpack.c.bf16 %v3508_v33, %v3506_v55  ;;  %v9837_v22 = vld [vmem:[#allocation38_spill] sm:$0xff] }
 0x846   : > { %v5780_v41 = vpop.eup %5779  ;;  %5791 = vrcp.f32 %v1591_v49  ;;  %1774 = vmatprep.subr.bf16.mxu1 %v1743_v59  ;;  %v9838_v49 = vld [vmem:[#allocation6_spill] sm:$0xff] }
 0x847   : > { %v5782_v44 = vpop.eup %5781  ;;  %1775 = vmatpush1.bf16.xpose.msra.mxu1 %v1742_v58  ;;  %3596 = vmatprep.subr.bf16.mxu0 %v3565_v23  ;;  %v3398_v4 = vpop.xlane.xlu1 %3397  ;;  %v1695_v60 = vmul.f32 %v5780_v41, %v7658_v34  ;;  %v1694_v17 = vmul.f32 %v5780_v41, %v9832_v25  ;;  %v864_v34 = vld [vmem:[%s9125_s8] sm:$0xff]  ;;  %v9839_v41 = vld [vmem:[#allocation34_spill] sm:$0xff] }
 0x848   : > { %v5784_v54 = vpop.eup %5783  ;;  %5793 = vrcp.f32 %v3398_v4  ;;  %v3407_v2 = vpop.xlane.xlu0 %3406  ;;  %v3513_v14 = vmul.f32 %v5782_v44, %v9835_v52  ;;  %v3512_v38 = vmul.f32 %v5782_v44, %v9837_v22  ;;  %v9840_v33 = vld [vmem:[#allocation10_spill] sm:$0xff]  ;;  %v9841_v44 = vld [vmem:[#allocation32_spill] sm:$0xff]  ;;  %v9845_v52 = vld [vmem:[#allocation13_spill] sm:$0xff] }
 0x849   : > { %v1697_v21 = vmul.f32 %v5784_v54, %v9831_v46  ;;  %v1696_v18 = vmul.f32 %v5784_v54, %v9833_v61  ;;  %v9842_v25 = vld [vmem:[#allocation50_spill] sm:$0xff]  ;;  %v9843_v61 = vld [vmem:[#allocation40_spill] sm:$0xff] }
 0x84a   : > { %v5786_v39 = vpop.eup %5785 }
 0x84b   : > { %v1594_v62 = vpop.xlane.xlu1 %1593  ;;  %v1745_v27 = vpack.c.bf16 %v1697_v21, %v1695_v60  ;;  %v1744_v8 = vpack.c.bf16 %v1696_v18, %v1694_v17  ;;  %v3511_v57 = vmul.f32 %v5786_v39, %v9834_v35  ;;  %v3510_v15 = vmul.f32 %v5786_v39, %v9836_v30  ;;  %v866_v60 = vld [vmem:[%s9125_s8 + $0x10] sm:$0xff]  ;;  %v9844_v39 = vld [vmem:[#allocation48_spill] sm:$0xff] }
 0x84c   : > { %3597 = vmatpush1.bf16.xpose.msra.mxu0 %v3564_v63  ;;  %5795 = vrcp.f32 %v1594_v62  ;;  %v1597_v26 = vpop.xlane.xlu0 %1596 }
 0x84d   : > { %5797 = vrcp.f32 %v3407_v2  ;;  %1776 = vmatprep.subr.bf16.mxu1 %v1745_v27  ;;  %v3567_v47 = vpack.c.bf16 %v3513_v14, %v3511_v57  ;;  %v3566_v58 = vpack.c.bf16 %v3512_v38, %v3510_v15  ;;  %v8168_v27 = vld [vmem:[%s9126_s9] sm:$0xff]  }
 0x84e   : > { %v5788_v24 = vpop.eup %5787  ;;  %5799 = vrcp.f32 %v1597_v26 }
 0x84f   : > { %v5790_v37 = vpop.eup %5789  ;;  %870 = vperm.xlu1 %5272, %v864_v34   ;;  %1777 = vmatpush1.bf16.xpose.msra.mxu1 %v1744_v8  ;;  %v3404_v50 = vpop.xlane.xlu1 %3403  ;;  %v1699_v23 = vmul.f32 %v5788_v24, %v9838_v49  ;;  %v1698_v4 = vmul.f32 %v5788_v24, %v9840_v33  ;;  %v8174_v34 = vld [vmem:[%s9126_s9 + $0x8] sm:$0xff]   ;;  %v9848_v33 = vld [vmem:[#allocation101_spill] sm:$0xff] }
 0x850   : > { %v5792_v59 = vpop.eup %5791  ;;  %3598 = vmatprep.subr.bf16.mxu0 %v3567_v47  ;;  %5801 = vrcp.f32 %v3404_v50  ;;  %v3413_v55 = vpop.xlane.xlu0 %3412  ;;  %v3517_v18 = vmul.f32 %v5790_v37, %v9843_v61  ;;  %v3516_v14 = vmul.f32 %v5790_v37, %v9845_v52  ;;  %v9846_v50 = vld [vmem:[#allocation37_spill] sm:$0xff]  ;;  %v9851_v61 = vld [vmem:[#allocation23_spill] sm:$0xff] }
 0x851   : > { %v1701_v28 = vmul.f32 %v5792_v59, %v9839_v41  ;;  %v1700_v54 = vmul.f32 %v5792_v59, %v9841_v44  ;;  %v9847_v41 = vld [vmem:[#allocation102_spill] sm:$0xff] }
 0x852   : > { %v5794_v63 = vpop.eup %5793 }
 0x853   : > { %690 = vperm.xlu1 %5272, %v672_v36   ;;  %v1600_v2 = vpop.xlane.xlu1 %1599  ;;  %v1747_v46 = vpack.c.bf16 %v1701_v28, %v1699_v23  ;;  %v1746_v21 = vpack.c.bf16 %v1700_v54, %v1698_v4  ;;  %v3515_v17 = vmul.f32 %v5794_v63, %v9842_v25  ;;  %v3514_v62 = vmul.f32 %v5794_v63, %v9844_v39  ;;  %v9850_v63 = vld [vmem:[#allocation47_spill] sm:$0xff]  ;;  %v9852_v39 = vld [vmem:[#allocation44_spill] sm:$0xff] }
 0x854   : > { %3599 = vmatpush1.bf16.xpose.msra.mxu0 %v3566_v58  ;;  %5803 = vrcp.f32 %v1600_v2  ;;  %v1603_v8 = vpop.xlane.xlu0 %1602 }
 0x855   : > { %5805 = vrcp.f32 %v3413_v55  ;;  %1778 = vmatprep.subr.bf16.mxu1 %v1747_v46  ;;  %v3569_v35 = vpack.c.bf16 %v3517_v18, %v3515_v17  ;;  %v3568_v47 = vpack.c.bf16 %v3516_v14, %v3514_v62  ;;  %v770_v55 = vld [vmem:[%s9124_s7 + $0x18] sm:$0xff] }
 0x856   : > { %v5796_v57 = vpop.eup %5795  ;;  %880 = vperm.xlu0 %5271, %v866_v60   ;;  %5807 = vrcp.f32 %v1603_v8  ;;  %v9853_v8 = vld [vmem:[#allocation36_spill] sm:$0xff] }
 0x857   : > { %v5798_v30 = vpop.eup %5797  ;;  %1779 = vmatpush1.bf16.xpose.msra.mxu1 %v1746_v21  ;;  %3600 = vmatprep.subr.bf16.mxu0 %v3569_v35  ;;  %v3410_v15 = vpop.xlane.xlu1 %3409  ;;  %v1703_v22 = vmul.f32 %v5796_v57, %v7736_v1  ;;  %v1702_v37 = vmul.f32 %v5796_v57, %v7710_v51  ;;  %v9854_v57 = vld [vmem:[#allocation42_spill] sm:$0xff] }
 0x858   : > { %v5800_v26 = vpop.eup %5799  ;;  %5809 = vrcp.f32 %v3410_v15  ;;  %2657 = vrot.lane.b32.xlu1 %v8168_v27, %s6092_s24  ;;  %v3419_v24 = vpop.xlane.xlu0 %3418  ;;  %v3521_v1 = vmul.f32 %v5798_v30, %v9848_v33  ;;  %v3520_v2 = vmul.f32 %v5798_v30, %v9850_v63 }
 0x859   : > { %v1705_v38 = vmul.f32 %v5800_v26, %v7766_v7  ;;  %v1704_v59 = vmul.f32 %v5800_v26, %v9846_v50  ;;  %v9849_v7 = vld [vmem:[#allocation100_spill] sm:$0xff] }
 0x85a   : > { %v5802_v58 = vpop.eup %5801  ;;  %2659 = vrot.lane.b32.xlu0 %v8174_v34, %s6092_s24 }
 0x85b   : > { %v1606_v36 = vpop.xlane.xlu1 %1605  ;;  %v1749_v49 = vpack.c.bf16 %v1705_v38, %v1703_v22  ;;  %v1748_v23 = vpack.c.bf16 %v1704_v59, %v1702_v37  ;;  %v3519_v28 = vmul.f32 %v5802_v58, %v9847_v41  ;;  %v3518_v51 = vmul.f32 %v5802_v58, %v9849_v7  ;;  %v9856_v22 = vld [vmem:[#allocation52_spill] sm:$0xff]  ;;  %v9857_v37 = vld [vmem:[#allocation54_spill] sm:$0xff]  ;;  %v9859_v7 = vld [vmem:[#allocation103_spill] sm:$0xff] }
 0x85c   : > { %3601 = vmatpush1.bf16.xpose.msra.mxu0 %v3568_v47  ;;  %5811 = vrcp.f32 %v1606_v36  ;;  %3633 = vrot.lane.b32.xlu1 %v8168_v27, %s6093_s18  ;;  %v1609_v4 = vpop.xlane.xlu0 %1608  ;;  %v9855_v47 = vld [vmem:[#allocation31_spill] sm:$0xff] }
 0x85d   : > { %5813 = vrcp.f32 %v3419_v24  ;;  %1780 = vmatprep.subr.bf16.mxu1 %v1749_v49  ;;  %v3571_v44 = vpack.c.bf16 %v3521_v1, %v3519_v28  ;;  %v3570_v25 = vpack.c.bf16 %v3520_v2, %v3518_v51  ;;  %v9862_v2 = vld [vmem:[#allocation41_spill] sm:$0xff] }
 0x85e   : > { %v5804_v54 = vpop.eup %5803  ;;  %788 = vperm.xlu0 %5271, %v770_v55   ;;  %5815 = vrcp.f32 %v1609_v4  ;;  %v9858_v55 = vld [vmem:[#allocation108_spill] sm:$0xff]  ;;  %v9860_v4 = vld [vmem:[#allocation43_spill] sm:$0xff] }
 0x85f   : > { %v5806_v60 = vpop.eup %5805  ;;  %1781 = vmatpush1.bf16.xpose.msra.mxu1 %v1748_v23  ;;  %3602 = vmatprep.subr.bf16.mxu0 %v3571_v44  ;;  %v3416_v46 = vpop.xlane.xlu1 %3415  ;;  %v1707_v18 = vmul.f32 %v5804_v54, %v9851_v61  ;;  %v1706_v35 = vmul.f32 %v5804_v54, %v9853_v8  ;;  %v9861_v54 = vld [vmem:[#allocation46_spill] sm:$0xff] }
 0x860   : > { %v5808_v21 = vpop.eup %5807  ;;  %5817 = vrcp.f32 %v3416_v46  ;;  %3635 = vrot.lane.b32.xlu1 %v8174_v34, %s6093_s18  ;;  %v3425_v17 = vpop.xlane.xlu0 %3424  ;;  %v3525_v38 = vmul.f32 %v5806_v60, %v9856_v22  ;;  %v3524_v49 = vmul.f32 %v5806_v60, %v9858_v55 }
 0x861   : > { %v1709_v62 = vmul.f32 %v5808_v21, %v9852_v39  ;;  %v1708_v52 = vmul.f32 %v5808_v21, %v9854_v57 }
 0x862   : > { %v5810_v14 = vpop.eup %5809 }
 0x863   : > { %v1612_v30 = vpop.xlane.xlu1 %1611  ;;  %v1751_v15 = vpack.c.bf16 %v1709_v62, %v1707_v18  ;;  %v1750_v26 = vpack.c.bf16 %v1708_v52, %v1706_v35  ;;  %v3523_v24 = vmul.f32 %v5810_v14, %v9855_v47  ;;  %v3522_v50 = vmul.f32 %v5810_v14, %v9857_v37  ;;  %v9863_v18 = vld [vmem:[#allocation53_spill] sm:$0xff]  ;;  %v9864_v52 = vld [vmem:[#allocation56_spill] sm:$0xff] }
 0x864   : > { %3603 = vmatpush1.bf16.xpose.msra.mxu0 %v3570_v25  ;;  %5819 = vrcp.f32 %v1612_v30  ;;  %v1615_v59 = vpop.xlane.xlu0 %1614 }
 0x865   : > { %5821 = vrcp.f32 %v3425_v17  ;;  %1782 = vmatprep.subr.bf16.mxu1 %v1751_v15  ;;  %v3573_v58 = vpack.c.bf16 %v3525_v38, %v3523_v24  ;;  %v3572_v33 = vpack.c.bf16 %v3524_v49, %v3522_v50  ;;  %v9866_v49 = vld [vmem:[#allocation58_spill] sm:$0xff] }
 0x866   : > { %v5812_v36 = vpop.eup %5811  ;;  %5823 = vrcp.f32 %v1615_v59 }
 0x867   : > { %v5814_v23 = vpop.eup %5813  ;;  %1783 = vmatpush1.bf16.xpose.msra.mxu1 %v1750_v26  ;;  %3604 = vmatprep.subr.bf16.mxu0 %v3573_v58  ;;  %v3422_v41 = vpop.xlane.xlu1 %3421  ;;  %v1711_v51 = vmul.f32 %v5812_v36, %v9859_v7  ;;  %v1710_v63 = vmul.f32 %v5812_v36, %v9861_v54  ;;  %v9865_v36 = vld [vmem:[#allocation60_spill] sm:$0xff] }
 0x868   : > { %v5816_v28 = vpop.eup %5815  ;;  %5825 = vrcp.f32 %v3422_v41  ;;  %v3431_v1 = vpop.xlane.xlu0 %3430  ;;  %v3529_v39 = vmul.f32 %v5814_v23, %v9863_v18  ;;  %v3528_v14 = vmul.f32 %v5814_v23, %v9864_v52  ;;  %v9867_v41 = vld [vmem:[#allocation4_spill] sm:$0xff] }
 0x869   : > { %v1713_v44 = vmul.f32 %v5816_v28, %v9860_v4  ;;  %v1712_v46 = vmul.f32 %v5816_v28, %v9862_v2  ;;  %v9869_v2 = vld [vmem:[#allocation49_spill] sm:$0xff] }
 0x86a   : > { %v5818_v21 = vpop.eup %5817 }
 0x86b   : > { %v1618_v25 = vpop.xlane.xlu1 %1617  ;;  %v1753_v17 = vpack.c.bf16 %v1713_v44, %v1711_v51  ;;  %v1752_v60 = vpack.c.bf16 %v1712_v46, %v1710_v63  ;;  %v3527_v61 = vmul.f32 %v5818_v21, %v7946_v48  ;;  %v3526_v62 = vmul.f32 %v5818_v21, %v7941_v19  ;;  %v9870_v21 = vld [vmem:[#allocation63_spill] sm:$0xff] }
 0x86c   : > { %3605 = vmatpush1.bf16.xpose.msra.mxu0 %v3572_v33  ;;  %5827 = vrcp.f32 %v1618_v25  ;;  %v1621_v8 = vpop.xlane.xlu0 %1620 }
 0x86d   : > { %5829 = vrcp.f32 %v3431_v1  ;;  %1784 = vmatprep.subr.bf16.mxu1 %v1753_v17  ;;  %v3575_v35 = vpack.c.bf16 %v3529_v39, %v3527_v61  ;;  %v3574_v48 = vpack.c.bf16 %v3528_v14, %v3526_v62  ;;  %v9871_v62 = vld [vmem:[#allocation61_spill] sm:$0xff]  ;;  %v9873_v14 = vld [vmem:[#allocation51_spill] sm:$0xff] }
 0x86e   : > { %v5820_v57 = vpop.eup %5819  ;;  %5831 = vrcp.f32 %v1621_v8 }
 0x86f   : > { %v5822_v30 = vpop.eup %5821  ;;  %1785 = vmatpush1.bf16.xpose.msra.mxu1 %v1752_v60  ;;  %3606 = vmatprep.subr.bf16.mxu0 %v3575_v35  ;;  %v3428_v15 = vpop.xlane.xlu1 %3427  ;;  %v1715_v24 = vmul.f32 %v5820_v57, %v7905_v42  ;;  %v1714_v22 = vmul.f32 %v5820_v57, %v7902_v40  ;;  %v9868_v40 = vld [vmem:[#allocation55_spill] sm:$0xff]  ;;  %v9872_v35 = vld [vmem:[#allocation105_spill] sm:$0xff] }
 0x870   : > { %v5824_v26 = vpop.eup %5823  ;;  %5833 = vrcp.f32 %v3428_v15  ;;  %v3437_v47 = vpop.xlane.xlu0 %3436  ;;  %v3533_v23 = vmul.f32 %v5822_v30, %v9866_v49 }
 0x871   : > { %v1717_v19 = vmul.f32 %v5824_v26, %v7960_v20  ;;  %v1716_v38 = vmul.f32 %v5824_v26, %v7936_v13  ;;  %v3532_v13 = vmul.f32 %v5822_v30, %v9868_v40 }
 0x872   : > { %v5826_v37 = vpop.eup %5825 }
 0x873   : > { %v1624_v50 = vpop.xlane.xlu1 %1623  ;;  %v1755_v59 = vpack.c.bf16 %v1717_v19, %v1715_v24  ;;  %v1754_v58 = vpack.c.bf16 %v1716_v38, %v1714_v22  ;;  %v3531_v55 = vmul.f32 %v5826_v37, %v9865_v36  ;;  %v3530_v28 = vmul.f32 %v5826_v37, %v9867_v41 }
 0x874   : > { %3607 = vmatpush1.bf16.xpose.msra.mxu0 %v3574_v48  ;;  %5835 = vrcp.f32 %v1624_v50  ;;  %v1627_v42 = vpop.xlane.xlu0 %1626 }
 0x875   : > { %5837 = vrcp.f32 %v3437_v47  ;;  %1786 = vmatprep.subr.bf16.mxu1 %v1755_v59  ;;  %v3577_v20 = vpack.c.bf16 %v3533_v23, %v3531_v55  ;;  %v3576_v4 = vpack.c.bf16 %v3532_v13, %v3530_v28  ;;  %v9876_v13 = vld [vmem:[#allocation62_spill] sm:$0xff] }
 0x876   : > { %v5828_v33 = vpop.eup %5827  ;;  %5839 = vrcp.f32 %v1627_v42 }
 0x877   : > { %v5830_v1 = vpop.eup %5829  ;;  %1787 = vmatpush1.bf16.xpose.msra.mxu1 %v1754_v58  ;;  %3608 = vmatprep.subr.bf16.mxu0 %v3577_v20  ;;  %v3434_v7 = vpop.xlane.xlu1 %3433  ;;  %v1719_v54 = vmul.f32 %v5828_v33, %v7969_v11  ;;  %v1718_v46 = vmul.f32 %v5828_v33, %v9869_v2  ;;  %v9874_v20 = vld [vmem:[#allocation57_spill] sm:$0xff]  ;;  %v9875_v33 = vld [vmem:[#allocation27_spill] sm:$0xff] }
 0x878   : > { %v5832_v51 = vpop.eup %5831  ;;  %5841 = vrcp.f32 %v3434_v7  ;;  %v3443_v44 = vpop.xlane.xlu0 %3442  ;;  %v3537_v8 = vmul.f32 %v5830_v1, %v9871_v62  ;;  %v3536_v30 = vmul.f32 %v5830_v1, %v9873_v14  ;;  %v9879_v2 = vld [vmem:[#allocation59_spill] sm:$0xff]  ;;  %v9883_v62 = vld [vmem:[#allocation69_spill] sm:$0xff] }
 0x879   : > { %v1721_v63 = vmul.f32 %v5832_v51, %v8005_v56  ;;  %v1720_v25 = vmul.f32 %v5832_v51, %v9870_v21 }
 0x87a   : > { %v5834_v17 = vpop.eup %5833 }
 0x87b   : > { %v1630_v60 = vpop.xlane.xlu1 %1629  ;;  %v1757_v61 = vpack.c.bf16 %v1721_v63, %v1719_v54  ;;  %v1756_v18 = vpack.c.bf16 %v1720_v25, %v1718_v46  ;;  %v3535_v39 = vmul.f32 %v5834_v17, %v8014_v12  ;;  %v3534_v57 = vmul.f32 %v5834_v17, %v9872_v35  ;;  %v9880_v25 = vld [vmem:[#allocation29_spill] sm:$0xff] }
 0x87c   : > { %3609 = vmatpush1.bf16.xpose.msra.mxu0 %v3576_v4  ;;  %5843 = vrcp.f32 %v1630_v60  ;;  %v1633_v11 = vpop.xlane.xlu0 %1632  ;;  %v2646_v17 = vpack.c.bf16 %v9880_v25, %v9880_v25  ;;  %v9881_v60 = vld [vmem:[#allocation22_spill] sm:$0xff] }
 0x87d   : > { %5845 = vrcp.f32 %v3443_v44  ;;  %1788 = vmatprep.subr.bf16.mxu1 %v1757_v61  ;;  %v3579_v56 = vpack.c.bf16 %v3537_v8, %v3535_v39  ;;  %v3578_v12 = vpack.c.bf16 %v3536_v30, %v3534_v57  ;;  %v9878_v44 = vld [vmem:[#allocation104_spill] sm:$0xff] }
 0x87e   : > { %v5836_v52 = vpop.eup %5835  ;;  %5847 = vrcp.f32 %v1633_v11  ;;  %v9885_v30 = vld [vmem:[#allocation68_spill] sm:$0xff] }
 0x87f   : > { %v5838_v15 = vpop.eup %5837  ;;  %1789 = vmatpush1.bf16.xpose.msra.mxu1 %v1756_v18  ;;  %3610 = vmatprep.subr.bf16.mxu0 %v3579_v56  ;;  %v3440_v26 = vpop.xlane.xlu1 %3439  ;;  %v1723_v24 = vmul.f32 %v5836_v52, %v8031_v0  ;;  %v1722_v22 = vmul.f32 %v5836_v52, %v8026_v45  ;;  %v9882_v18 = vld [vmem:[#allocation65_spill] sm:$0xff]  ;;  %v9884_v52 = vld [vmem:[#allocation71_spill] sm:$0xff] }
 0x880   : > { %v5840_v48 = vpop.eup %5839  ;;  %5849 = vrcp.f32 %v3440_v26  ;;  %v3449_v47 = vpop.xlane.xlu0 %3448  ;;  %v3541_v55 = vmul.f32 %v5838_v15, %v8023_v3  ;;  %v3540_v45 = vmul.f32 %v5838_v15, %v8018_v16  ;;  %v9877_v16 = vld [vmem:[#allocation64_spill] sm:$0xff]  ;;  %v9886_v26 = vld [vmem:[#allocation66_spill] sm:$0xff] }
 0x881   : > { %v1725_v19 = vmul.f32 %v5840_v48, %v8039_v32  ;;  %v1724_v38 = vmul.f32 %v5840_v48, %v8034_v43  ;;  %5851 = vrcp.f32 %v3449_v47 }
 0x882   : > { %v5842_v37 = vpop.eup %5841 }
 0x883   : > { %v3446_v50 = vpop.xlane.xlu1 %3445  ;;  %v1759_v59 = vpack.c.bf16 %v1725_v19, %v1723_v24  ;;  %v1758_v58 = vpack.c.bf16 %v1724_v38, %v1722_v22  ;;  %v3539_v36 = vmul.f32 %v5842_v37, %v8046_v9  ;;  %v3538_v49 = vmul.f32 %v5842_v37, %v8042_v6  ;;  %v9888_v22 = vld [vmem:[#allocation79_spill] sm:$0xff] }
 0x884   : > { %3611 = vmatpush1.bf16.xpose.msra.mxu0 %v3578_v12  ;;  %5853 = vrcp.f32 %v3446_v50  ;;  %v3455_v42 = vpop.xlane.xlu0 %3454  ;;  %v9887_v12 = vld [vmem:[#allocation77_spill] sm:$0xff]  ;;  %v9889_v37 = vld [vmem:[#allocation67_spill] sm:$0xff] }
 0x885   : > { %1790 = vmatprep.subr.bf16.mxu1 %v1759_v59  ;;  %v3581_v0 = vpack.c.bf16 %v3541_v55, %v3539_v36  ;;  %v3580_v28 = vpack.c.bf16 %v3540_v45, %v3538_v49  ;;  %v9890_v49 = vld [vmem:[#allocation11_spill] sm:$0xff] }
 0x886   : > { %v5844_v32 = vpop.eup %5843 }
 0x887   : > { %v5846_v23 = vpop.eup %5845  ;;  %1791 = vmatpush1.bf16.xpose.msra.mxu1 %v1758_v58  ;;  %3612 = vmatprep.subr.bf16.mxu0 %v3581_v0  ;;  %v3452_v43 = vpop.xlane.xlu1 %3451  ;;  %v1727_v9 = vmul.f32 %v5844_v32, %v8058_v31  ;;  %v1726_v40 = vmul.f32 %v5844_v32, %v9875_v33  ;;  %v9891_v32 = vld [vmem:[#allocation12_spill] sm:$0xff] }
 0x888   : > { %v5848_v41 = vpop.eup %5847  ;;  %5855 = vrcp.f32 %v3452_v43  ;;  %v3545_v54 = vmul.f32 %v5846_v23, %v9878_v44  ;;  %v3544_v61 = vmul.f32 %v5846_v23, %v9881_v60  ;;  %v9892_v23 = vld [vmem:[#allocation28_spill] sm:$0xff] }
 0x889   : > { %v1729_v3 = vmul.f32 %v5848_v41, %v9874_v20  ;;  %v1728_v6 = vmul.f32 %v5848_v41, %v9876_v13  ;;  %5857 = vrcp.f32 %v3455_v42  ;;  %v2645_v43 = vpack.c.bf16 %v9892_v23, %v9892_v23 }
 0x88a   : > { %v5850_v1 = vpop.eup %5849 }
 0x88b   : > { %v1761_v7 = vpack.c.bf16 %v1729_v3, %v1727_v9  ;;  %v1760_v51 = vpack.c.bf16 %v1728_v6, %v1726_v40  ;;  %v3543_v4 = vmul.f32 %v5850_v1, %v9877_v16  ;;  %v5852_v63 = vpop.eup %5851  ;;  %v3542_v46 = vmul.f32 %v5850_v1, %v9879_v2  ;;  %v9893_v9 = vld [vmem:[#allocation7_spill] sm:$0xff]  ;;  %v9894_v3 = vld [vmem:[#allocation8_spill] sm:$0xff] }
 0x88c   : > { %3613 = vmatpush1.bf16.xpose.msra.mxu0 %v3580_v28  ;;  %v3549_v8 = vmul.f32 %v5852_v63, %v9883_v62  ;;  %v3548_v48 = vmul.f32 %v5852_v63, %v9886_v26  ;;  %v2668_v40 = vsel %vm1050_vm1, %v2645_v43, 0 }
 0x88d   : > { %1792 = vmatprep.subr.bf16.mxu1 %v1761_v7  ;;  %v3583_v31 = vpack.c.bf16 %v3545_v54, %v3543_v4  ;;  %v3582_v35 = vpack.c.bf16 %v3544_v61, %v3542_v46  ;;  %v9896_v4 = vmov 0  }
 0x88e   : > { %v5854_v21 = vpop.eup %5853 }
 0x88f   : > { %1793 = vmatpush1.bf16.xpose.msra.mxu1 %v1760_v51  ;;  %3614 = vmatprep.subr.bf16.mxu0 %v3583_v31  ;;  %v3547_v39 = vmul.f32 %v5854_v21, %v9882_v18  ;;  %v3546_v14 = vmul.f32 %v5854_v21, %v9884_v52  ;;  %v9895_v51 = vld [vmem:[#allocation16_spill] sm:$0xff]  ;;  %v9897_v18 = vld [vmem:[#allocation15_spill] sm:$0xff] }
 0x890   : > { %5173 = vmatprep.subr.msk.bf16.mxu1 %vm1050_vm1, %v2646_v17  ;;  %v9898_v52 = vld [vmem:[#allocation24_spill] sm:$0xff] }
 0x891   : > { %v3585_v57 = vpack.c.bf16 %v3549_v8, %v3547_v39  ;;  %v3584_v24 = vpack.c.bf16 %v3548_v48, %v3546_v14 }
 0x892   : > { %v5856_v11 = vpop.eup %5855 }
 0x893   : > { %v5858_v56 = vpop.eup %5857  ;;  %v3551_v15 = vmul.f32 %v5856_v11, %v9885_v30  ;;  %v3550_v38 = vmul.f32 %v5856_v11, %v9888_v22  ;;  %v9899_v30 = vld [vmem:[#allocation25_spill] sm:$0xff] }
 0x894   : > { %3615 = vmatpush1.bf16.xpose.msra.mxu0 %v3582_v35  ;;  %v3553_v47 = vmul.f32 %v5858_v56, %v9887_v12  ;;  %v3552_v50 = vmul.f32 %v5858_v56, %v9889_v37 }
 0x895   : > { %3616 = vmatprep.subr.bf16.mxu0 %v3585_v57 }
 0x896   : > { %v3587_v19 = vpack.c.bf16 %v3553_v47, %v3551_v15  ;;  %v3586_v59 = vpack.c.bf16 %v3552_v50, %v3550_v38 }
 0x89c   : > { %3617 = vmatpush1.bf16.xpose.msra.mxu0 %v3584_v24 }
 0x89d   : > { %3618 = vmatprep.subr.bf16.mxu0 %v3587_v19 }
 0x8a4   : > { %3619 = vmatpush1.bf16.xpose.msra.mxu0 %v3586_v59 }
 0x8cb   : > { %v3458_v58 = vpop.xlane.xlu1 %3457 }
 0x8cc   : > { %5859 = vrcp.f32 %v3458_v58 }
 0x8cd   : > { %v3461_v36 = vpop.xlane.xlu0 %3460 }
 0x8ce   : > { %5861 = vrcp.f32 %v3461_v36 }
 0x8cf   : > { %v871_v55 = vpop.permute.xlu1 %870 }
 0x8d0   : > { %v939_v0 = vadd.f32 %v9890_v49, %v871_v55  ;;  %v941_v45 = vadd.f32 %v9891_v32, %v871_v55 }
 0x8d2   : > { %v967_v41 = vpack.c.bf16 %v939_v0, %v939_v0  ;;  %v968_v28 = vpack.c.bf16 %v941_v45, %v941_v45 }
 0x8d3   : > { %v691_v42 = vpop.permute.xlu1 %690 }
 0x8d4   : > { %v759_v20 = vadd.f32 %v9893_v9, %v691_v42  ;;  %v761_v33 = vadd.f32 %v9894_v3, %v691_v42  ;;  %1794 = vmatprep.mubr.bf16.mxu1 %v968_v28 }
 0x8d5   : > { %v881_v13 = vpop.permute.xlu0 %880  ;;  %1795 = vmatmul.mubr.bf16.vlgmr.msra.gmra.mrb[68].mxu1 %v967_v41 }
 0x8d6   : > { %v5860_v6 = vpop.eup %5859  ;;  %v3710_v1 = vmul.f32 0.35355338, %v759_v20  ;;  %v3711_v7 = vmul.f32 0.35355338, %v761_v33  ;;  %v951_v16 = vadd.f32 %v9895_v51, %v881_v13  ;;  %2674 = vmatpush1.bf16.msra.mxu1 %v2668_v40  ;;  %2705 = vmatprep.mubr.bf16.mxu1 %v9896_v4 }
 0x8d7   : > { %v3555_v46 = vmul.f32 %v5860_v6, %v8119_v53  ;;  %v3554_v21 = vmul.f32 %v5860_v6, %v8117_v10  ;;  %v2658_v17 = vpop.permute.xlu1 %2657  ;;  %v949_v53 = vadd.f32 %v9897_v18, %v881_v13 }
 0x8d8   : > { %v5862_v44 = vpop.eup %5861  ;;  %v3712_v54 = vpack.c.bf16 %v3710_v1, %v3710_v1  ;;  %v3713_v63 = vpack.c.bf16 %v3711_v7, %v3711_v7  ;;  %v2798_v2 = vpack.c.bf16 %v951_v16, %v951_v16 }
 0x8d9   : > { %v3557_v31 = vmul.f32 %v5862_v44, %v8125_v5  ;;  %v3556_v25 = vmul.f32 %v5862_v44, %v8121_v29  ;;  %v2797_v39 = vpack.c.bf16 %v949_v53, %v949_v53  ;;  %v2660_v5 = vpop.permute.xlu0 %2659 }
 0x8da   : > { %3622 = vmatprep.mubr.bf16.mxu0 %v2798_v2  ;;  %3734 = vxpose.xlu1.c.b16.start.end [1/1] (short) %v3713_v63, 128 }
 0x8db   : > { %3718 = vxpose.xlu0.c.b16.start.end [1/1] (short) %v3712_v54, 128  ;;  %v3589_v60 = vpack.c.bf16 %v3557_v31, %v3555_v46  ;;  %v3588_v61 = vpack.c.bf16 %v3556_v25, %v3554_v21  ;;  %v3634_v37 = vpop.permute.xlu1 %3633 }
 0x8dd   : > { %3620 = vmatprep.subr.bf16.mxu0 %v3589_v60  ;;  %5174 = vmatmul.mubr.msk.bf16.vlgmr.msra.gmra.mrb[72].mxu1 %vm1001_vm2, %v2658_v17  ;;  %v789_v56 = vpop.permute.xlu0 %788 }
 0x8de   : > { %3621 = vmatpush1.bf16.xpose.msra.mxu0 %v3588_v61  ;;  %2715 = vmatprep.mubr.bf16.mxu1 %v9896_v4  ;;  %v856_v14 = vadd.f32 %v9898_v52, %v789_v56  ;;  %v858_v15 = vadd.f32 %v9899_v30, %v789_v56 }
 0x8df   : > { %v3636_v50 = vpop.permute.xlu1 %3635 }
 0x8e0   : > { %v3714_v22 = vpack.c.bf16 %v856_v14, %v856_v14  ;;  %v3715_v38 = vpack.c.bf16 %v858_v15, %v858_v15 }
 0x8e5   : > { %3623 = vmatmul.mubr.bf16.vlgmr.msra.gmra.mrb[152].mxu0 %v2797_v39  ;;  %5175 = vmatmul.mubr.msk.bf16.gmra.mrb[76].mxu1 %vm1001_vm2, %v2660_v5 }
 0x8e6   : > { %2770 = vmatprep.mubr.bf16.mxu1 %v9896_v4  ;;  %4851 = vmatprep.mubr.bf16.mxu0 %v9896_v4 }
 0x940   : > { %v3742_v23 = vpop.trf.xlu1 }
 0x941   : > { %v3726_v59 = vpop.trf.xlu0 }
 0x944   : > { %v3743_v43 = vpop.trf.xlu1 }
 0x945   : > { %v3727_v58 = vpop.trf.xlu0 }
 0x948   : > { %v3744_v41 = vpop.trf.xlu1 }
 0x949   : > { %v3728_v36 = vpop.trf.xlu0 }
 0x94c   : > { %v3745_v28 = vpop.trf.xlu1 }
 0x94d   : > { %v3729_v55 = vpop.trf.xlu0 }
 0x950   : > { %v3746_v42 = vpop.trf.xlu1 }
 0x951   : > { %v3730_v49 = vpop.trf.xlu0 }
 0x954   : > { %v3747_v9 = vpop.trf.xlu1 }
 0x955   : > { %v3731_v0 = vpop.trf.xlu0 }
 0x958   : > { %v3748_v20 = vpop.trf.xlu1 }
 0x959   : > { %v3732_v32 = vpop.trf.xlu0 }
 0x95c   : > { %v3749_v3 = vpop.trf.xlu1 }
 0x95d   : > { %v3733_v45 = vpop.trf.xlu0 }
 0x9a8   : > { %v1796_v10 = vpop.f32.mrb[68].mxu1 }
 0x9a9   : > { %v1803_v29 = vpack.c.bf16 %v1796_v10, %v1796_v10  ;;  %v1798_v62 = vpop.f32.mrb[69].mxu1 }
 0x9aa   : > { %v1804_v8 = vpack.c.bf16 %v1798_v62, %v1798_v62  ;;  %v1800_v35 = vpop.f32.mrb[70].mxu1 }
 0x9ab   : > { %v2733_v57 = vsel %vm1050_vm1, %v1803_v29, 0  ;;  %v1801_v11 = vpop.f32.mrb[71].mxu1 }
 0x9ac   : > { %5176 = vmatprep.subr.msk.bf16.mxu1 %vm1050_vm1, %v1804_v8 }
 0x9ad   : > { %2739 = vmatpush1.bf16.msra.mxu1 %v2733_v57 }
 0x9b0   : > { %5177 = vmatmul.mubr.msk.bf16.vlgmr.msra.gmra.mrb[72].mxu1 %vm1001_vm2, %v8168_v27 }
 0x9b1   : > { %2780 = vmatprep.mubr.bf16.mxu1 %v9896_v4 }
 0x9b8   : > { %5178 = vmatmul.mubr.msk.bf16.gmra.mrb[76].mxu1 %vm1001_vm2, %v8174_v34  ;;  %v3624_v26 = vpop.f32.mrb[152].mxu0  ;;  %v3799_v34 = vsel %vm1050_vm1, %v3714_v22, 0 }
 0x9b9   : > { %v3631_v48 = vpack.c.bf16 %v3624_v26, %v3624_v26  ;;  %v3626_v12 = vpop.f32.mrb[153].mxu0  ;;  %3681 = vmatprep.mubr.bf16.mxu1 %v9896_v4 }
 0x9ba   : > { %v3632_v47 = vpack.c.bf16 %v3626_v12, %v3626_v12  ;;  %v3628_v24 = vpop.f32.mrb[154].mxu0 }
 0x9bb   : > { %v3644_v19 = vsel %vm1050_vm1, %v3631_v48, 0  ;;  %v3629_v27 = vpop.f32.mrb[155].mxu0 }
 0x9bc   : > { %5196 = vmatprep.subr.msk.bf16.mxu1 %vm1050_vm1, %v3632_v47 }
 0x9bd   : > { %3650 = vmatpush1.bf16.msra.mxu1 %v3644_v19 }
 0x9be   : > { %5199 = vmatprep.subr.msk.bf16.mxu1 %vm1050_vm1, %v3715_v38 }
 0x9c0   : > { %5197 = vmatmul.mubr.msk.bf16.vlgmr.msra.gmra.mrb[72].mxu1 %vm1001_vm2, %v3634_v37 }
 0x9c1   : > { %3805 = vmatpush1.bf16.msra.mxu1 %v3799_v34  ;;  %3691 = vmatprep.mubr.bf16.mxu1 %v9896_v4 }
 0x9c8   : > { %5198 = vmatmul.mubr.msk.bf16.gmra.mrb[76].mxu1 %vm1001_vm2, %v3636_v50 }
 0x9c9   : > { %3836 = vmatprep.mubr.bf16.mxu1 %v9896_v4 }
 0x9d0   : > { %5200 = vmatmul.mubr.msk.bf16.vlgmr.msra.gmra.mrb[80].mxu1 %vm1001_vm2, %v3726_v59 }
 0x9d1   : > { %3846 = vmatprep.mubr.bf16.mxu1 %v9896_v4 }
 0x9d8   : > { %5201 = vmatmul.mubr.msk.bf16.gmra.mrb[84].mxu1 %vm1001_vm2, %v3727_v58 }
 0x9d9   : > { %3856 = vmatprep.mubr.bf16.mxu1 %v9896_v4 }
 0x9e0   : > { %5202 = vmatmul.mubr.msk.bf16.gmra.mrb[88].mxu1 %vm1001_vm2, %v3728_v36 }
 0x9e1   : > { %3866 = vmatprep.mubr.bf16.mxu1 %v9896_v4 }
 0x9e8   : > { %5203 = vmatmul.mubr.msk.bf16.gmra.mrb[92].mxu1 %vm1001_vm2, %v3729_v55 }
 0x9e9   : > { %3876 = vmatprep.mubr.bf16.mxu1 %v9896_v4 }
 0x9f0   : > { %5204 = vmatmul.mubr.msk.bf16.gmra.mrb[96].mxu1 %vm1001_vm2, %v3730_v49 }
 0x9f1   : > { %3886 = vmatprep.mubr.bf16.mxu1 %v9896_v4 }
 0x9f8   : > { %5205 = vmatmul.mubr.msk.bf16.gmra.mrb[100].mxu1 %vm1001_vm2, %v3731_v0 }
 0x9f9   : > { %3896 = vmatprep.mubr.bf16.mxu1 %v9896_v4 }
 0xa00   : > { %5206 = vmatmul.mubr.msk.bf16.gmra.mrb[104].mxu1 %vm1001_vm2, %v3732_v32 }
 0xa01   : > { %3906 = vmatprep.mubr.bf16.mxu1 %v9896_v4 }
 0xa08   : > { %5207 = vmatmul.mubr.msk.bf16.gmra.mrb[108].mxu1 %vm1001_vm2, %v3733_v45 }
 0xa09   : > { %3916 = vmatprep.mubr.bf16.mxu1 %v9896_v4 }
 0xa10   : > { %5208 = vmatmul.mubr.msk.bf16.gmra.mrb[112].mxu1 %vm1001_vm2, %v3742_v23 }
 0xa11   : > { %3926 = vmatprep.mubr.bf16.mxu1 %v9896_v4 }
 0xa18   : > { %5209 = vmatmul.mubr.msk.bf16.gmra.mrb[116].mxu1 %vm1001_vm2, %v3743_v43 }
 0xa19   : > { %3936 = vmatprep.mubr.bf16.mxu1 %v9896_v4 }
 0xa20   : > { %5210 = vmatmul.mubr.msk.bf16.gmra.mrb[120].mxu1 %vm1001_vm2, %v3744_v41 }
 0xa21   : > { %3946 = vmatprep.mubr.bf16.mxu1 %v9896_v4 }
 0xa28   : > { %5211 = vmatmul.mubr.msk.bf16.gmra.mrb[124].mxu1 %vm1001_vm2, %v3745_v28 }
 0xa29   : > { %3956 = vmatprep.mubr.bf16.mxu1 %v9896_v4 }
 0xa30   : > { %5212 = vmatmul.mubr.msk.bf16.gmra.mrb[128].mxu1 %vm1001_vm2, %v3746_v42 }
 0xa31   : > { %3966 = vmatprep.mubr.bf16.mxu1 %v9896_v4 }
 0xa38   : > { %5213 = vmatmul.mubr.msk.bf16.gmra.mrb[132].mxu1 %vm1001_vm2, %v3747_v9 }
 0xa39   : > { %3976 = vmatprep.mubr.bf16.mxu1 %v9896_v4 }
 0xa40   : > { %5214 = vmatmul.mubr.msk.bf16.gmra.mrb[136].mxu1 %vm1001_vm2, %v3748_v20 }
 0xa41   : > { %3986 = vmatprep.mubr.bf16.mxu1 %v9896_v4 }
 0xa48   : > { %5215 = vmatmul.mubr.msk.bf16.gmra.mrb[140].mxu1 %vm1001_vm2, %v3749_v3 }
 0xaa3   : > { %v8318_v33 = vpop.f32.mrb[80].mxu1 }
 0xaa4   : > { %v8320_v40 = vpop.f32.mrb[81].mxu1 }
 0xaa5   : > { %v3997_v13 = vmax.f32 %v8318_v33, %v8320_v40  ;;  %v8324_v6 = vpop.f32.mrb[82].mxu1 }
 0xaa6   : > { %v8326_v1 = vpop.f32.mrb[83].mxu1 }
 0xaa7   : > { %v4000_v7 = vmax.f32 %v8324_v6, %v8326_v1  ;;  %3998 = vmax.xlane.f32.xlu0 %v3997_v13 }
 0xaa9   : > { %4001 = vmax.xlane.f32.xlu1 %v4000_v7 }
 0xaab   : > { %v8330_v51 = vpop.f32.mrb[84].mxu1 }
 0xaac   : > { %v8332_v16 = vpop.f32.mrb[85].mxu1 }
 0xaad   : > { %v4003_v44 = vmax.f32 %v8330_v51, %v8332_v16  ;;  %v8336_v54 = vpop.f32.mrb[86].mxu1 }
 0xaae   : > { %v8338_v63 = vpop.f32.mrb[87].mxu1 }
 0xaaf   : > { %4004 = vmax.xlane.f32.xlu0 %v4003_v44  ;;  %v4006_v2 = vmax.f32 %v8336_v54, %v8338_v63 }
 0xab3   : > { %4007 = vmax.xlane.f32.xlu0 %v4006_v2  ;;  %v8342_v46 = vpop.f32.mrb[88].mxu1 }
 0xab4   : > { %v8344_v31 = vpop.f32.mrb[89].mxu1 }
 0xab5   : > { %v4009_v21 = vmax.f32 %v8342_v46, %v8344_v31  ;;  %v8348_v25 = vpop.f32.mrb[90].mxu1 }
 0xab6   : > { %v8350_v17 = vpop.f32.mrb[91].mxu1 }
 0xab7   : > { %v4012_v60 = vmax.f32 %v8348_v25, %v8350_v17  ;;  %4010 = vmax.xlane.f32.xlu1 %v4009_v21 }
 0xab9   : > { %4013 = vmax.xlane.f32.xlu0 %v4012_v60 }
 0xabb   : > { %v8354_v61 = vpop.f32.mrb[92].mxu1 }
 0xabc   : > { %v8356_v18 = vpop.f32.mrb[93].mxu1 }
 0xabd   : > { %v4015_v53 = vmax.f32 %v8354_v61, %v8356_v18  ;;  %v8360_v39 = vpop.f32.mrb[94].mxu1 }
 0xabe   : > { %v8362_v5 = vpop.f32.mrb[95].mxu1 }
 0xabf   : > { %v4018_v10 = vmax.f32 %v8360_v39, %v8362_v5  ;;  %4016 = vmax.xlane.f32.xlu1 %v4015_v53 }
 0xac1   : > { %4019 = vmax.xlane.f32.xlu0 %v4018_v10 }
 0xac3   : > { %v8366_v29 = vpop.f32.mrb[96].mxu1 }
 0xac4   : > { %v8368_v62 = vpop.f32.mrb[97].mxu1 }
 0xac5   : > { %v4021_v8 = vmax.f32 %v8366_v29, %v8368_v62  ;;  %v8372_v35 = vpop.f32.mrb[98].mxu1 }
 0xac6   : > { %v8374_v57 = vpop.f32.mrb[99].mxu1 }
 0xac7   : > { %v4024_v11 = vmax.f32 %v8372_v35, %v8374_v57  ;;  %4022 = vmax.xlane.f32.xlu1 %v4021_v8 }
 0xac9   : > { %4025 = vmax.xlane.f32.xlu0 %v4024_v11 }
 0xacb   : > { %v8378_v56 = vpop.f32.mrb[100].mxu1 }
 0xacc   : > { %v8380_v52 = vpop.f32.mrb[101].mxu1 }
 0xacd   : > { %v4027_v14 = vmax.f32 %v8378_v56, %v8380_v52  ;;  %v8384_v30 = vpop.f32.mrb[102].mxu1 }
 0xace   : > { %v8386_v15 = vpop.f32.mrb[103].mxu1 }
 0xacf   : > { %v4030_v26 = vmax.f32 %v8384_v30, %v8386_v15  ;;  %4028 = vmax.xlane.f32.xlu1 %v4027_v14 }
 0xad1   : > { %4031 = vmax.xlane.f32.xlu0 %v4030_v26 }
 0xad3   : > { %v8390_v48 = vpop.f32.mrb[104].mxu1 }
 0xad4   : > { %v8392_v12 = vpop.f32.mrb[105].mxu1 }
 0xad5   : > { %v4033_v47 = vmax.f32 %v8390_v48, %v8392_v12  ;;  %v8396_v24 = vpop.f32.mrb[106].mxu1 }
 0xad6   : > { %v8398_v19 = vpop.f32.mrb[107].mxu1 }
 0xad7   : > { %v4036_v27 = vmax.f32 %v8396_v24, %v8398_v19  ;;  %4034 = vmax.xlane.f32.xlu1 %v4033_v47 }
 0xad9   : > { %4037 = vmax.xlane.f32.xlu0 %v4036_v27 }
 0xadb   : > { %v8402_v22 = vpop.f32.mrb[108].mxu1 }
 0xadc   : > { %v8404_v38 = vpop.f32.mrb[109].mxu1 }
 0xadd   : > { %v4039_v37 = vmax.f32 %v8402_v22, %v8404_v38  ;;  %v8408_v34 = vpop.f32.mrb[110].mxu1 }
 0xade   : > { %v8410_v50 = vpop.f32.mrb[111].mxu1 }
 0xadf   : > { %v4042_v59 = vmax.f32 %v8408_v34, %v8410_v50  ;;  %4040 = vmax.xlane.f32.xlu1 %v4039_v37 }
 0xae1   : > { %4043 = vmax.xlane.f32.xlu0 %v4042_v59 }
 0xae3   : > { %v8414_v58 = vpop.f32.mrb[112].mxu1 }
 0xae4   : > { %v8416_v36 = vpop.f32.mrb[113].mxu1 }
 0xae5   : > { %v4045_v55 = vmax.f32 %v8414_v58, %v8416_v36  ;;  %v8420_v49 = vpop.f32.mrb[114].mxu1 }
 0xae6   : > { %v8422_v0 = vpop.f32.mrb[115].mxu1 }
 0xae7   : > { %9900 = vst [vmem:[#allocation70_spill] sm:$0xff] %v8422_v0  ;;  %v4048_v32 = vmax.f32 %v8420_v49, %v8422_v0  ;;  %4046 = vmax.xlane.f32.xlu1 %v4045_v55 }
 0xae9   : > { %4049 = vmax.xlane.f32.xlu0 %v4048_v32 }
 0xaeb   : > { %v8426_v45 = vpop.f32.mrb[116].mxu1 }
 0xaec   : > { %9901 = vst [vmem:[#allocation73_spill] sm:$0xff] %v8426_v45  ;;  %v8428_v23 = vpop.f32.mrb[117].mxu1 }
 0xaed   : > { %9902 = vst [vmem:[#allocation75_spill] sm:$0xff] %v8428_v23  ;;  %v4051_v43 = vmax.f32 %v8426_v45, %v8428_v23  ;;  %v8432_v41 = vpop.f32.mrb[118].mxu1 }
 0xaee   : > { %9903 = vst [vmem:[#allocation85_spill] sm:$0xff] %v8432_v41  ;;  %v8434_v28 = vpop.f32.mrb[119].mxu1 }
 0xaef   : > { %9904 = vst [vmem:[#allocation45_spill] sm:$0xff] %v8434_v28  ;;  %v4054_v42 = vmax.f32 %v8432_v41, %v8434_v28  ;;  %4052 = vmax.xlane.f32.xlu1 %v4051_v43 }
 0xaf1   : > { %4055 = vmax.xlane.f32.xlu0 %v4054_v42 }
 0xaf3   : > { %v8438_v9 = vpop.f32.mrb[120].mxu1 }
 0xaf4   : > { %9905 = vst [vmem:[#allocation107_spill] sm:$0xff] %v8438_v9  ;;  %v8440_v20 = vpop.f32.mrb[121].mxu1 }
 0xaf5   : > { %9906 = vst [vmem:[#allocation72_spill] sm:$0xff] %v8440_v20  ;;  %v4057_v3 = vmax.f32 %v8438_v9, %v8440_v20  ;;  %v8444_v13 = vpop.f32.mrb[122].mxu1 }
 0xaf6   : > { %9907 = vst [vmem:[#allocation87_spill] sm:$0xff] %v8444_v13  ;;  %v8446_v7 = vpop.f32.mrb[123].mxu1 }
 0xaf7   : > { %9908 = vst [vmem:[#allocation21_spill] sm:$0xff] %v8446_v7  ;;  %v4060_v44 = vmax.f32 %v8444_v13, %v8446_v7  ;;  %4058 = vmax.xlane.f32.xlu1 %v4057_v3 }
 0xaf9   : > { %4061 = vmax.xlane.f32.xlu0 %v4060_v44 }
 0xafb   : > { %v8450_v2 = vpop.f32.mrb[124].mxu1 }
 0xafc   : > { %9909 = vst [vmem:[#allocation106_spill] sm:$0xff] %v8450_v2  ;;  %v8452_v21 = vpop.f32.mrb[125].mxu1 }
 0xafd   : > { %9910 = vst [vmem:[#allocation74_spill] sm:$0xff] %v8452_v21  ;;  %v4063_v60 = vmax.f32 %v8450_v2, %v8452_v21  ;;  %v8456_v53 = vpop.f32.mrb[126].mxu1 }
 0xafe   : > { %9911 = vst [vmem:[#allocation76_spill] sm:$0xff] %v8456_v53  ;;  %v8458_v10 = vpop.f32.mrb[127].mxu1 }
 0xaff   : > { %9912 = vst [vmem:[#allocation78_spill] sm:$0xff] %v8458_v10  ;;  %v4066_v8 = vmax.f32 %v8456_v53, %v8458_v10  ;;  %4064 = vmax.xlane.f32.xlu1 %v4063_v60 }
 0xb01   : > { %4067 = vmax.xlane.f32.xlu0 %v4066_v8 }
 0xb03   : > { %v8462_v11 = vpop.f32.mrb[128].mxu1 }
 0xb04   : > { %v8464_v14 = vpop.f32.mrb[129].mxu1 }
 0xb05   : > { %v8468_v47 = vpop.f32.mrb[130].mxu1 }
 0xb06   : > { %v8470_v27 = vpop.f32.mrb[131].mxu1 }
 0xb0b   : > { %v8474_v59 = vpop.f32.mrb[132].mxu1 }
 0xb0c   : > { %v8476_v55 = vpop.f32.mrb[133].mxu1 }
 0xb0d   : > { %v8480_v43 = vpop.f32.mrb[134].mxu1 }
 0xb0e   : > { %v8482_v42 = vpop.f32.mrb[135].mxu1 }
 0xb13   : > { %v8486_v44 = vpop.f32.mrb[136].mxu1 }
 0xb14   : > { %v8488_v60 = vpop.f32.mrb[137].mxu1 }
 0xb15   : > { %v8492_v37 = vpop.f32.mrb[138].mxu1 }
 0xb16   : > { %v8494_v26 = vpop.f32.mrb[139].mxu1 }
 0xb1b   : > { %v8498_v4 = vpop.f32.mrb[140].mxu1 }
 0xb1c   : > { %v8500_v10 = vpop.f32.mrb[141].mxu1 }
 0xb1d   : > { %v8504_v53 = vpop.f32.mrb[142].mxu1 }
 0xb1e   : > { %v8506_v21 = vpop.f32.mrb[143].mxu1 }
 0xb34   : > { %v3999_v2 = vpop.xlane.xlu0 %3998 }
 0xb35   : > { %v4093_v7 = vsub.f32 %v8318_v33, %v3999_v2  ;;  %v4094_v13 = vsub.f32 %v8320_v40, %v3999_v2 }
 0xb36   : > { %v4002_v32 = vpop.xlane.xlu1 %4001 }
 0xb37   : > { %v4157_v20 = vmul.f32 1.442695, %v4093_v7  ;;  %v4159_v9 = vmul.f32 1.442695, %v4094_v13  ;;  %v4095_v28 = vsub.f32 %v8324_v6, %v4002_v32  ;;  %v4096_v41 = vsub.f32 %v8326_v1, %v4002_v32 }
 0xb39   : > { %5863 = vpow2.f32 %v4157_v20  ;;  %v4161_v3 = vmul.f32 1.442695, %v4095_v28  ;;  %v4163_v23 = vmul.f32 1.442695, %v4096_v41 }
 0xb3a   : > { %5865 = vpow2.f32 %v4159_v9 }
 0xb3b   : > { %5867 = vpow2.f32 %v4161_v3 }
 0xb3c   : > { %5869 = vpow2.f32 %v4163_v23  ;;  %v4005_v45 = vpop.xlane.xlu0 %4004 }
 0xb3d   : > { %v4097_v8 = vsub.f32 %v8330_v51, %v4005_v45  ;;  %v4098_v33 = vsub.f32 %v8332_v16, %v4005_v45 }
 0xb3f   : > { %v4165_v0 = vmul.f32 1.442695, %v4097_v8  ;;  %v4167_v40 = vmul.f32 1.442695, %v4098_v33 }
 0xb40   : > { %v4008_v2 = vpop.xlane.xlu0 %4007 }
 0xb41   : > { %5871 = vpow2.f32 %v4165_v0  ;;  %v4099_v13 = vsub.f32 %v8336_v54, %v4008_v2  ;;  %v4100_v6 = vsub.f32 %v8338_v63, %v4008_v2 }
 0xb42   : > { %5873 = vpow2.f32 %v4167_v40  ;;  %v9913_v40 = vmax.f32 %v8462_v11, %v8464_v14 }
 0xb43   : > { %v8518_v1 = vpop.eup %5863  ;;  %v4169_v41 = vmul.f32 1.442695, %v4099_v13  ;;  %v4171_v28 = vmul.f32 1.442695, %v4100_v6 }
 0xb44   : > { %v8520_v9 = vpop.eup %5865  ;;  %v4011_v23 = vpop.xlane.xlu1 %4010 }
 0xb45   : > { %v8522_v20 = vpop.eup %5867  ;;  %5875 = vpow2.f32 %v4169_v41  ;;  %v4101_v51 = vsub.f32 %v8342_v46, %v4011_v23  ;;  %v4102_v16 = vsub.f32 %v8344_v31, %v4011_v23  ;;  %v4285_v54 = vadd.f32 %v8520_v9, %v8518_v1 }
 0xb46   : > { %v8528_v0 = vpop.eup %5869  ;;  %5877 = vpow2.f32 %v4171_v28  ;;  %v4014_v63 = vpop.xlane.xlu0 %4013  ;;  %v9914_v41 = vmax.f32 %v8468_v47, %v8470_v27 }
 0xb47   : > { %v4173_v45 = vmul.f32 1.442695, %v4101_v51  ;;  %v4175_v7 = vmul.f32 1.442695, %v4102_v16  ;;  %v4103_v32 = vsub.f32 %v8348_v25, %v4014_v63  ;;  %v4104_v3 = vsub.f32 %v8350_v17, %v4014_v63  ;;  %4286 = vadd.xlane.f32.xlu1 %v4285_v54 }
 0xb48   : > { %v4288_v8 = vadd.f32 %v8528_v0, %v8522_v20 }
 0xb49   : > { %5879 = vpow2.f32 %v4173_v45  ;;  %v4177_v46 = vmul.f32 1.442695, %v4103_v32  ;;  %v4179_v31 = vmul.f32 1.442695, %v4104_v3  ;;  %v9915_v3 = vmax.f32 %v8474_v59, %v8476_v55 }
 0xb4a   : > { %5881 = vpow2.f32 %v4175_v7  ;;  %4289 = vadd.xlane.f32.xlu0 %v4288_v8 }
 0xb4b   : > { %v8534_v33 = vpop.eup %5871  ;;  %5883 = vpow2.f32 %v4177_v46  ;;  %4070 = vmax.xlane.f32.xlu1 %v9913_v40 }
 0xb4c   : > { %v8539_v2 = vpop.eup %5873  ;;  %5885 = vpow2.f32 %v4179_v31  ;;  %v4017_v25 = vpop.xlane.xlu1 %4016 }
 0xb4d   : > { %v4105_v17 = vsub.f32 %v8354_v61, %v4017_v25  ;;  %v4106_v13 = vsub.f32 %v8356_v18, %v4017_v25  ;;  %v4291_v6 = vadd.f32 %v8539_v2, %v8534_v33 }
 0xb4e   : > { %4073 = vmax.xlane.f32.xlu0 %v9914_v41  ;;  %v4020_v28 = vpop.xlane.xlu0 %4019 }
 0xb4f   : > { %v8548_v23 = vpop.eup %5875  ;;  %v4181_v51 = vmul.f32 1.442695, %v4105_v17  ;;  %v4183_v16 = vmul.f32 1.442695, %v4106_v13  ;;  %v4107_v54 = vsub.f32 %v8360_v39, %v4020_v28  ;;  %v4108_v63 = vsub.f32 %v8362_v5, %v4020_v28  ;;  %4292 = vadd.xlane.f32.xlu1 %v4291_v6 }
 0xb50   : > { %v8552_v61 = vpop.eup %5877 }
 0xb51   : > { %5887 = vpow2.f32 %v4181_v51  ;;  %v4185_v18 = vmul.f32 1.442695, %v4107_v54  ;;  %v4187_v45 = vmul.f32 1.442695, %v4108_v63  ;;  %v4294_v7 = vadd.f32 %v8552_v61, %v8548_v23 }
 0xb52   : > { %5889 = vpow2.f32 %v4183_v16  ;;  %v9916_v51 = vmax.f32 %v8480_v43, %v8482_v42 }
 0xb53   : > { %v8556_v32 = vpop.eup %5879  ;;  %5891 = vpow2.f32 %v4185_v18  ;;  %4076 = vmax.xlane.f32.xlu1 %v9915_v3  ;;  %4295 = vadd.xlane.f32.xlu0 %v4294_v7 }
 0xb54   : > { %v8561_v39 = vpop.eup %5881  ;;  %5893 = vpow2.f32 %v4187_v45  ;;  %v4023_v5 = vpop.xlane.xlu1 %4022 }
 0xb55   : > { %v8563_v8 = vpop.eup %5883  ;;  %v4109_v46 = vsub.f32 %v8366_v29, %v4023_v5  ;;  %v4110_v31 = vsub.f32 %v8368_v62, %v4023_v5  ;;  %v4297_v40 = vadd.f32 %v8561_v39, %v8556_v32 }
 0xb56   : > { %v8569_v25 = vpop.eup %5885  ;;  %v4026_v17 = vpop.xlane.xlu0 %4025 }
 0xb57   : > { %v4189_v13 = vmul.f32 1.442695, %v4109_v46  ;;  %v4191_v6 = vmul.f32 1.442695, %v4110_v31  ;;  %v4111_v41 = vsub.f32 %v8372_v35, %v4026_v17  ;;  %v4112_v28 = vsub.f32 %v8374_v57, %v4026_v17  ;;  %4079 = vmax.xlane.f32.xlu0 %v9916_v51  ;;  %4298 = vadd.xlane.f32.xlu1 %v4297_v40 }
 0xb58   : > { %v4300_v16 = vadd.f32 %v8569_v25, %v8563_v8  ;;  %v9917_v35 = vmax.f32 %v8486_v44, %v8488_v60 }
 0xb59   : > { %5895 = vpow2.f32 %v4189_v13  ;;  %v4193_v29 = vmul.f32 1.442695, %v4111_v41  ;;  %v4195_v62 = vmul.f32 1.442695, %v4112_v28 }
 0xb5a   : > { %5897 = vpow2.f32 %v4191_v6  ;;  %v9918_v6 = vmax.f32 %v8492_v37, %v8494_v26 }
 0xb5b   : > { %v8578_v54 = vpop.eup %5887  ;;  %5899 = vpow2.f32 %v4193_v29  ;;  %4301 = vadd.xlane.f32.xlu0 %v4300_v16  ;;  %4082 = vmax.xlane.f32.xlu1 %v9917_v35 }
 0xb5c   : > { %v8583_v57 = vpop.eup %5889  ;;  %5901 = vpow2.f32 %v4195_v62  ;;  %v4029_v63 = vpop.xlane.xlu1 %4028 }
 0xb5d   : > { %v8585_v18 = vpop.eup %5891  ;;  %v4113_v45 = vsub.f32 %v8378_v56, %v4029_v63  ;;  %v4114_v7 = vsub.f32 %v8380_v52, %v4029_v63  ;;  %v4303_v3 = vadd.f32 %v8583_v57, %v8578_v54 }
 0xb5e   : > { %v8591_v5 = vpop.eup %5893  ;;  %v4032_v46 = vpop.xlane.xlu0 %4031 }
 0xb5f   : > { %v4197_v31 = vmul.f32 1.442695, %v4113_v45  ;;  %v4199_v40 = vmul.f32 1.442695, %v4114_v7  ;;  %v4115_v17 = vsub.f32 %v8384_v30, %v4032_v46  ;;  %v4116_v13 = vsub.f32 %v8386_v15, %v4032_v46  ;;  %4085 = vmax.xlane.f32.xlu0 %v9918_v6  ;;  %4304 = vadd.xlane.f32.xlu1 %v4303_v3 }
 0xb60   : > { %v4306_v41 = vadd.f32 %v8591_v5, %v8585_v18  ;;  %v9919_v30 = vmax.f32 %v8498_v4, %v8500_v10 }
 0xb61   : > { %5903 = vpow2.f32 %v4197_v31  ;;  %v4201_v56 = vmul.f32 1.442695, %v4115_v17  ;;  %v4203_v52 = vmul.f32 1.442695, %v4116_v13 }
 0xb62   : > { %5905 = vpow2.f32 %v4199_v40  ;;  %v9920_v40 = vmax.f32 %v8504_v53, %v8506_v21 }
 0xb63   : > { %v8600_v28 = vpop.eup %5895  ;;  %5907 = vpow2.f32 %v4201_v56  ;;  %4307 = vadd.xlane.f32.xlu0 %v4306_v41  ;;  %4088 = vmax.xlane.f32.xlu1 %v9919_v30 }
 0xb64   : > { %v8605_v15 = vpop.eup %5897  ;;  %5909 = vpow2.f32 %v4203_v52  ;;  %v4035_v51 = vpop.xlane.xlu1 %4034 }
 0xb65   : > { %v8607_v29 = vpop.eup %5899  ;;  %v4117_v62 = vsub.f32 %v8390_v48, %v4035_v51  ;;  %v4118_v16 = vsub.f32 %v8392_v12, %v4035_v51  ;;  %v4309_v35 = vadd.f32 %v8605_v15, %v8600_v28 }
 0xb66   : > { %v8613_v63 = vpop.eup %5901  ;;  %v4038_v45 = vpop.xlane.xlu0 %4037 }
 0xb67   : > { %v4205_v7 = vmul.f32 1.442695, %v4117_v62  ;;  %v4207_v3 = vmul.f32 1.442695, %v4118_v16  ;;  %v4119_v46 = vsub.f32 %v8396_v24, %v4038_v45  ;;  %v4120_v31 = vsub.f32 %v8398_v19, %v4038_v45  ;;  %4091 = vmax.xlane.f32.xlu0 %v9920_v40  ;;  %4310 = vadd.xlane.f32.xlu1 %v4309_v35 }
 0xb68   : > { %v4312_v17 = vadd.f32 %v8613_v63, %v8607_v29 }
 0xb69   : > { %5911 = vpow2.f32 %v4205_v7  ;;  %v4209_v48 = vmul.f32 1.442695, %v4119_v46  ;;  %v4211_v12 = vmul.f32 1.442695, %v4120_v31 }
 0xb6a   : > { %5913 = vpow2.f32 %v4207_v3 }
 0xb6b   : > { %v8622_v13 = vpop.eup %5903  ;;  %5915 = vpow2.f32 %v4209_v48  ;;  %4313 = vadd.xlane.f32.xlu0 %v4312_v17 }
 0xb6c   : > { %v8624_v6 = vpop.eup %5905  ;;  %5917 = vpow2.f32 %v4211_v12  ;;  %v4041_v24 = vpop.xlane.xlu1 %4040 }
 0xb6d   : > { %v8626_v19 = vpop.eup %5907  ;;  %v4121_v56 = vsub.f32 %v8402_v22, %v4041_v24  ;;  %v4122_v52 = vsub.f32 %v8404_v38, %v4041_v24  ;;  %v4315_v41 = vadd.f32 %v8624_v6, %v8622_v13 }
 0xb6e   : > { %v8632_v30 = vpop.eup %5909  ;;  %v4044_v51 = vpop.xlane.xlu0 %4043 }
 0xb6f   : > { %v4213_v62 = vmul.f32 1.442695, %v4121_v56  ;;  %v4215_v16 = vmul.f32 1.442695, %v4122_v52  ;;  %v4123_v35 = vsub.f32 %v8408_v34, %v4044_v51  ;;  %v4124_v45 = vsub.f32 %v8410_v50, %v4044_v51  ;;  %4316 = vadd.xlane.f32.xlu1 %v4315_v41  ;;  %v9921_v41 = vld [vmem:[#allocation70_spill] sm:$0xff] }
 0xb70   : > { %v4318_v7 = vadd.f32 %v8632_v30, %v8626_v19 }
 0xb71   : > { %5919 = vpow2.f32 %v4213_v62  ;;  %v4217_v22 = vmul.f32 1.442695, %v4123_v35  ;;  %v4219_v3 = vmul.f32 1.442695, %v4124_v45 }
 0xb72   : > { %5921 = vpow2.f32 %v4215_v16  ;;  %4319 = vadd.xlane.f32.xlu0 %v4318_v7 }
 0xb73   : > { %v8638_v38 = vpop.eup %5911  ;;  %5923 = vpow2.f32 %v4217_v22 }
 0xb74   : > { %v8640_v46 = vpop.eup %5913  ;;  %5925 = vpow2.f32 %v4219_v3  ;;  %v4047_v31 = vpop.xlane.xlu1 %4046  ;;  %v9925_v3 = vld [vmem:[#allocation75_spill] sm:$0xff] }
 0xb75   : > { %v8642_v40 = vpop.eup %5915  ;;  %v4125_v34 = vsub.f32 %v8414_v58, %v4047_v31  ;;  %v4126_v50 = vsub.f32 %v8416_v36, %v4047_v31  ;;  %v4321_v48 = vadd.f32 %v8640_v46, %v8638_v38 }
 0xb76   : > { %v8648_v12 = vpop.eup %5917  ;;  %v4050_v17 = vpop.xlane.xlu0 %4049 }
 0xb77   : > { %v4221_v24 = vmul.f32 1.442695, %v4125_v34  ;;  %v4223_v56 = vmul.f32 1.442695, %v4126_v50  ;;  %v4127_v52 = vsub.f32 %v8420_v49, %v4050_v17  ;;  %v4128_v51 = vsub.f32 %v9921_v41, %v4050_v17  ;;  %4322 = vadd.xlane.f32.xlu1 %v4321_v48  ;;  %v9924_v49 = vld [vmem:[#allocation73_spill] sm:$0xff] }
 0xb78   : > { %v4324_v62 = vadd.f32 %v8648_v12, %v8642_v40  ;;  %v9928_v41 = vld [vmem:[#allocation45_spill] sm:$0xff] }
 0xb79   : > { %5927 = vpow2.f32 %v4221_v24  ;;  %v4225_v58 = vmul.f32 1.442695, %v4127_v52  ;;  %v4227_v16 = vmul.f32 1.442695, %v4128_v51 }
 0xb7a   : > { %5929 = vpow2.f32 %v4223_v56  ;;  %4325 = vadd.xlane.f32.xlu0 %v4324_v62  ;;  %v9927_v56 = vld [vmem:[#allocation85_spill] sm:$0xff] }
 0xb7b   : > { %v8654_v36 = vpop.eup %5919  ;;  %5931 = vpow2.f32 %v4225_v58 }
 0xb7c   : > { %9922 = vst [vmem:[#allocation81_spill] sm:$0xff] %v8654_v36  ;;  %v8656_v35 = vpop.eup %5921  ;;  %5933 = vpow2.f32 %v4227_v16  ;;  %v4053_v45 = vpop.xlane.xlu1 %4052 }
 0xb7d   : > { %v8658_v7 = vpop.eup %5923  ;;  %v4129_v22 = vsub.f32 %v9924_v49, %v4053_v45  ;;  %v4130_v31 = vsub.f32 %v9925_v3, %v4053_v45  ;;  %v4327_v34 = vadd.f32 %v8656_v35, %v8654_v36  ;;  %v9936_v36 = vld [vmem:[#allocation21_spill] sm:$0xff] }
 0xb7e   : > { %9923 = vst [vmem:[#allocation83_spill] sm:$0xff] %v8658_v7  ;;  %v8664_v50 = vpop.eup %5925  ;;  %v4056_v48 = vpop.xlane.xlu0 %4055 }
 0xb7f   : > { %9926 = vst [vmem:[#allocation90_spill] sm:$0xff] %v8664_v50  ;;  %v4229_v17 = vmul.f32 1.442695, %v4129_v22  ;;  %v4231_v24 = vmul.f32 1.442695, %v4130_v31  ;;  %v4131_v52 = vsub.f32 %v9927_v56, %v4056_v48  ;;  %v4132_v51 = vsub.f32 %v9928_v41, %v4056_v48  ;;  %4328 = vadd.xlane.f32.xlu1 %v4327_v34  ;;  %v9932_v31 = vld [vmem:[#allocation107_spill] sm:$0xff] }
 0xb80   : > { %v4330_v62 = vadd.f32 %v8664_v50, %v8658_v7  ;;  %v9933_v34 = vld [vmem:[#allocation72_spill] sm:$0xff] }
 0xb81   : > { %5935 = vpow2.f32 %v4229_v17  ;;  %v4233_v58 = vmul.f32 1.442695, %v4131_v52  ;;  %v4235_v16 = vmul.f32 1.442695, %v4132_v51 }
 0xb82   : > { %5937 = vpow2.f32 %v4231_v24  ;;  %4331 = vadd.xlane.f32.xlu0 %v4330_v62  ;;  %v9935_v62 = vld [vmem:[#allocation87_spill] sm:$0xff] }
 0xb83   : > { %v8670_v45 = vpop.eup %5927  ;;  %5939 = vpow2.f32 %v4233_v58 }
 0xb84   : > { %9929 = vst [vmem:[#allocation91_spill] sm:$0xff] %v8670_v45  ;;  %v8672_v49 = vpop.eup %5929  ;;  %5941 = vpow2.f32 %v4235_v16  ;;  %v4059_v22 = vpop.xlane.xlu1 %4058 }
 0xb85   : > { %9930 = vst [vmem:[#allocation80_spill] sm:$0xff] %v8672_v49  ;;  %v8674_v3 = vpop.eup %5931  ;;  %v4133_v48 = vsub.f32 %v9932_v31, %v4059_v22  ;;  %v4134_v56 = vsub.f32 %v9933_v34, %v4059_v22  ;;  %v4333_v17 = vadd.f32 %v8672_v49, %v8670_v45  ;;  %v9939_v45 = vld [vmem:[#allocation76_spill] sm:$0xff] }
 0xb86   : > { %9931 = vst [vmem:[#allocation82_spill] sm:$0xff] %v8674_v3  ;;  %v8680_v52 = vpop.eup %5933  ;;  %v4062_v24 = vpop.xlane.xlu0 %4061 }
 0xb87   : > { %9934 = vst [vmem:[#allocation84_spill] sm:$0xff] %v8680_v52  ;;  %v4237_v41 = vmul.f32 1.442695, %v4133_v48  ;;  %v4239_v51 = vmul.f32 1.442695, %v4134_v56  ;;  %v4135_v58 = vsub.f32 %v9935_v62, %v4062_v24  ;;  %v4136_v7 = vsub.f32 %v9936_v36, %v4062_v24  ;;  %4334 = vadd.xlane.f32.xlu1 %v4333_v17  ;;  %v9937_v62 = vld [vmem:[#allocation106_spill] sm:$0xff] }
 0xb88   : > { %v4336_v16 = vadd.f32 %v8680_v52, %v8674_v3  ;;  %v9938_v17 = vld [vmem:[#allocation74_spill] sm:$0xff] }
 0xb89   : > { %5943 = vpow2.f32 %v4237_v41  ;;  %v4241_v31 = vmul.f32 1.442695, %v4135_v58  ;;  %v4243_v50 = vmul.f32 1.442695, %v4136_v7  ;;  %v9940_v3 = vld [vmem:[#allocation78_spill] sm:$0xff] }
 0xb8a   : > { %5945 = vpow2.f32 %v4239_v51  ;;  %4337 = vadd.xlane.f32.xlu0 %v4336_v16 }
 0xb8b   : > { %v8686_v22 = vpop.eup %5935  ;;  %5947 = vpow2.f32 %v4241_v31 }
 0xb8c   : > { %v8688_v34 = vpop.eup %5937  ;;  %5949 = vpow2.f32 %v4243_v50  ;;  %v4065_v48 = vpop.xlane.xlu1 %4064 }
 0xb8d   : > { %v8690_v56 = vpop.eup %5939  ;;  %v4137_v36 = vsub.f32 %v9937_v62, %v4065_v48  ;;  %v4138_v24 = vsub.f32 %v9938_v17, %v4065_v48  ;;  %v4339_v41 = vadd.f32 %v8688_v34, %v8686_v22 }
 0xb8e   : > { %v8696_v58 = vpop.eup %5941  ;;  %v4068_v7 = vpop.xlane.xlu0 %4067 }
 0xb8f   : > { %v4245_v51 = vmul.f32 1.442695, %v4137_v36  ;;  %v4247_v16 = vmul.f32 1.442695, %v4138_v24  ;;  %v4139_v31 = vsub.f32 %v9939_v45, %v4068_v7  ;;  %v4140_v52 = vsub.f32 %v9940_v3, %v4068_v7  ;;  %4340 = vadd.xlane.f32.xlu1 %v4339_v41 }
 0xb90   : > { %v4342_v50 = vadd.f32 %v8696_v58, %v8690_v56 }
 0xb91   : > { %5951 = vpow2.f32 %v4245_v51  ;;  %v4249_v62 = vmul.f32 1.442695, %v4139_v31  ;;  %v4251_v49 = vmul.f32 1.442695, %v4140_v52 }
 0xb92   : > { %5953 = vpow2.f32 %v4247_v16  ;;  %4343 = vadd.xlane.f32.xlu0 %v4342_v50 }
 0xb93   : > { %v8702_v48 = vpop.eup %5943  ;;  %5955 = vpow2.f32 %v4249_v62 }
 0xb94   : > { %9941 = vst [vmem:[#allocation86_spill] sm:$0xff] %v8702_v48  ;;  %v8704_v17 = vpop.eup %5945  ;;  %5957 = vpow2.f32 %v4251_v49 }
 0xb95   : > { %v8706_v36 = vpop.eup %5947  ;;  %v4345_v45 = vadd.f32 %v8704_v17, %v8702_v48 }
 0xb96   : > { %9942 = vst [vmem:[#allocation88_spill] sm:$0xff] %v8706_v36  ;;  %v8710_v3 = vpop.eup %5949 }
 0xb97   : > { %9943 = vst [vmem:[#allocation89_spill] sm:$0xff] %v8710_v3  ;;  %4346 = vadd.xlane.f32.xlu1 %v4345_v45  ;;  %v4348_v24 = vadd.f32 %v8710_v3, %v8706_v36 }
 0xb99   : > { %4349 = vadd.xlane.f32.xlu0 %v4348_v24 }
 0xb9b   : > { %v8714_v52 = vpop.eup %5951 }
 0xb9c   : > { %9944 = vst [vmem:[#allocation94_spill] sm:$0xff] %v8714_v52  ;;  %v8716_v41 = vpop.eup %5953 }
 0xb9d   : > { %9945 = vst [vmem:[#allocation95_spill] sm:$0xff] %v8716_v41  ;;  %v8718_v7 = vpop.eup %5955  ;;  %v4351_v49 = vadd.f32 %v8716_v41, %v8714_v52 }
 0xb9e   : > { %9946 = vst [vmem:[#allocation92_spill] sm:$0xff] %v8718_v7  ;;  %v8722_v51 = vpop.eup %5957 }
 0xb9f   : > { %9947 = vst [vmem:[#allocation93_spill] sm:$0xff] %v8722_v51  ;;  %4352 = vadd.xlane.f32.xlu1 %v4351_v49  ;;  %v4354_v16 = vadd.f32 %v8722_v51, %v8718_v7 }
 0xba1   : > { %4355 = vadd.xlane.f32.xlu0 %v4354_v16 }
 0xbd4   : > { %v4287_v31 = vpop.xlane.xlu1 %4286 }
 0xbd5   : > { %5959 = vrcp.f32 %v4287_v31 }
 0xbd7   : > { %v4290_v50 = vpop.xlane.xlu0 %4289 }
 0xbd8   : > { %5961 = vrcp.f32 %v4290_v50  ;;  %v4071_v62 = vpop.xlane.xlu1 %4070 }
 0xbd9   : > { %v4141_v45 = vsub.f32 %v8462_v11, %v4071_v62  ;;  %v4142_v24 = vsub.f32 %v8464_v14, %v4071_v62 }
 0xbdb   : > { %v4253_v48 = vmul.f32 1.442695, %v4141_v45  ;;  %v4255_v36 = vmul.f32 1.442695, %v4142_v24  ;;  %v4074_v3 = vpop.xlane.xlu0 %4073 }
 0xbdc   : > { %v4143_v52 = vsub.f32 %v8468_v47, %v4074_v3  ;;  %v4144_v49 = vsub.f32 %v8470_v27, %v4074_v3  ;;  %v4293_v41 = vpop.xlane.xlu1 %4292 }
 0xbdd   : > { %5963 = vpow2.f32 %v4253_v48 }
 0xbde   : > { %5965 = vpow2.f32 %v4255_v36  ;;  %v4257_v16 = vmul.f32 1.442695, %v4143_v52  ;;  %v4259_v7 = vmul.f32 1.442695, %v4144_v49 }
 0xbdf   : > { %v5960_v31 = vpop.eup %5959  ;;  %5967 = vrcp.f32 %v4293_v41 }
 0xbe0   : > { %5969 = vpow2.f32 %v4257_v16  ;;  %v4296_v50 = vpop.xlane.xlu0 %4295  ;;  %v4077_v51 = vpop.xlane.xlu1 %4076  ;;  %v4414_v47 = vmul.f32 %v5960_v31, %v8520_v9  ;;  %v4413_v45 = vmul.f32 %v5960_v31, %v8518_v1 }
 0xbe1   : > { %5971 = vpow2.f32 %v4259_v7  ;;  %v4145_v11 = vsub.f32 %v8474_v59, %v4077_v51  ;;  %v4146_v14 = vsub.f32 %v8476_v55, %v4077_v51 }
 0xbe2   : > { %v5962_v62 = vpop.eup %5961  ;;  %5973 = vrcp.f32 %v4296_v50 }
 0xbe3   : > { %v4261_v27 = vmul.f32 1.442695, %v4145_v11  ;;  %v4263_v3 = vmul.f32 1.442695, %v4146_v14  ;;  %v4416_v48 = vmul.f32 %v5962_v62, %v8528_v0  ;;  %v4415_v36 = vmul.f32 %v5962_v62, %v8522_v20 }
 0xbe4   : > { %v4080_v52 = vpop.xlane.xlu0 %4079  ;;  %v4299_v41 = vpop.xlane.xlu1 %4298 }
 0xbe5   : > { %5975 = vpow2.f32 %v4261_v27  ;;  %v4147_v7 = vsub.f32 %v8480_v43, %v4080_v52  ;;  %v4148_v59 = vsub.f32 %v8482_v42, %v4080_v52  ;;  %v4478_v55 = vpack.c.bf16 %v4416_v48, %v4414_v47 }
 0xbe6   : > { %5977 = vpow2.f32 %v4263_v3  ;;  %v4477_v51 = vpack.c.bf16 %v4415_v36, %v4413_v45 }
 0xbe7   : > { %v8738_v24 = vpop.eup %5963  ;;  %v4265_v9 = vmul.f32 1.442695, %v4147_v7  ;;  %v4267_v49 = vmul.f32 1.442695, %v4148_v59  ;;  %5979 = vrcp.f32 %v4299_v41  ;;  %4509 = vmatprep.subr.bf16.mxu1 %v4478_v55 }
 0xbe8   : > { %v8740_v0 = vpop.eup %5965  ;;  %4510 = vmatpush1.bf16.xpose.msra.mxu1 %v4477_v51  ;;  %v4302_v20 = vpop.xlane.xlu0 %4301 }
 0xbe9   : > { %v4083_v16 = vpop.xlane.xlu1 %4082  ;;  %v5968_v1 = vpop.eup %5967  ;;  %5981 = vpow2.f32 %v4265_v9  ;;  %v4357_v31 = vadd.f32 %v8740_v0, %v8738_v24 }
 0xbea   : > { %v4149_v43 = vsub.f32 %v8486_v44, %v4083_v16  ;;  %v4150_v42 = vsub.f32 %v8488_v60, %v4083_v16  ;;  %v8746_v50 = vpop.eup %5969  ;;  %5983 = vpow2.f32 %v4267_v49  ;;  %v4418_v60 = vmul.f32 %v5968_v1, %v8539_v2 }
 0xbeb   : > { %v8748_v11 = vpop.eup %5971  ;;  %5985 = vrcp.f32 %v4302_v20  ;;  %4358 = vadd.xlane.f32.xlu1 %v4357_v31  ;;  %v4417_v41 = vmul.f32 %v5968_v1, %v8534_v33 }
 0xbec   : > { %v4269_v14 = vmul.f32 1.442695, %v4149_v43  ;;  %v4271_v62 = vmul.f32 1.442695, %v4150_v42  ;;  %v5974_v47 = vpop.eup %5973  ;;  %v4360_v27 = vadd.f32 %v8748_v11, %v8746_v50  ;;  %v4086_v3 = vpop.xlane.xlu0 %4085 }
 0xbed   : > { %v4305_v44 = vpop.xlane.xlu1 %4304  ;;  %v4151_v48 = vsub.f32 %v8492_v37, %v4086_v3  ;;  %v4152_v36 = vsub.f32 %v8494_v26, %v4086_v3  ;;  %v4420_v52 = vmul.f32 %v5974_v47, %v8552_v61  ;;  %v4419_v45 = vmul.f32 %v5974_v47, %v8548_v23 }
 0xbee   : > { %5987 = vpow2.f32 %v4269_v14  ;;  %4361 = vadd.xlane.f32.xlu0 %v4360_v27 }
 0xbef   : > { %5989 = vpow2.f32 %v4271_v62  ;;  %v8758_v7 = vpop.eup %5975  ;;  %v4273_v59 = vmul.f32 1.442695, %v4151_v48  ;;  %v4275_v55 = vmul.f32 1.442695, %v4152_v36  ;;  %v4480_v51 = vpack.c.bf16 %v4420_v52, %v4418_v60 }
 0xbf0   : > { %v8760_v9 = vpop.eup %5977  ;;  %5991 = vrcp.f32 %v4305_v44  ;;  %v4308_v2 = vpop.xlane.xlu0 %4307  ;;  %v4479_v49 = vpack.c.bf16 %v4419_v45, %v4417_v41 }
 0xbf1   : > { %v4089_v37 = vpop.xlane.xlu1 %4088  ;;  %v5980_v26 = vpop.eup %5979  ;;  %5993 = vpow2.f32 %v4273_v59  ;;  %4511 = vmatprep.subr.bf16.mxu1 %v4480_v51  ;;  %v4363_v23 = vadd.f32 %v8760_v9, %v8758_v7 }
 0xbf2   : > { %v4153_v61 = vsub.f32 %v8498_v4, %v4089_v37  ;;  %v4154_v33 = vsub.f32 %v8500_v10, %v4089_v37  ;;  %5995 = vpow2.f32 %v4275_v55  ;;  %4512 = vmatpush1.bf16.xpose.msra.mxu1 %v4479_v49  ;;  %v4422_v31 = vmul.f32 %v5980_v26, %v8561_v39 }
 0xbf3   : > { %v8766_v20 = vpop.eup %5981  ;;  %5997 = vrcp.f32 %v4308_v2  ;;  %4364 = vadd.xlane.f32.xlu1 %v4363_v23  ;;  %v4421_v3 = vmul.f32 %v5980_v26, %v8556_v32 }
 0xbf4   : > { %v4277_v16 = vmul.f32 1.442695, %v4153_v61  ;;  %v4279_v1 = vmul.f32 1.442695, %v4154_v33  ;;  %v8768_v43 = vpop.eup %5983  ;;  %v4092_v42 = vpop.xlane.xlu0 %4091 }
 0xbf5   : > { %v5986_v14 = vpop.eup %5985  ;;  %v4155_v4 = vsub.f32 %v8504_v53, %v4092_v42  ;;  %v4156_v10 = vsub.f32 %v8506_v21, %v4092_v42  ;;  %v4311_v62 = vpop.xlane.xlu1 %4310  ;;  %v4366_v47 = vadd.f32 %v8768_v43, %v8766_v20 }
 0xbf6   : > { %5999 = vpow2.f32 %v4277_v16  ;;  %v4424_v27 = vmul.f32 %v5986_v14, %v8569_v25  ;;  %v4423_v44 = vmul.f32 %v5986_v14, %v8563_v8 }
 0xbf7   : > { %6001 = vpow2.f32 %v4279_v1  ;;  %v4281_v39 = vmul.f32 1.442695, %v4155_v4  ;;  %v4283_v48 = vmul.f32 1.442695, %v4156_v10  ;;  %4367 = vadd.xlane.f32.xlu0 %v4366_v47 }
 0xbf8   : > { %v8778_v60 = vpop.eup %5987  ;;  %6003 = vrcp.f32 %v4311_v62  ;;  %v4314_v21 = vpop.xlane.xlu0 %4313  ;;  %v4482_v53 = vpack.c.bf16 %v4424_v27, %v4422_v31  ;;  %v4481_v52 = vpack.c.bf16 %v4423_v44, %v4421_v3 }
 0xbf9   : > { %v8780_v36 = vpop.eup %5989  ;;  %6005 = vpow2.f32 %v4281_v39 }
 0xbfa   : > { %v4369_v41 = vadd.f32 %v8780_v36, %v8778_v60  ;;  %v5992_v25 = vpop.eup %5991  ;;  %6007 = vpow2.f32 %v4283_v48  ;;  %4513 = vmatprep.subr.bf16.mxu1 %v4482_v53 }
 0xbfb   : > { %v8784_v32 = vpop.eup %5993  ;;  %6009 = vrcp.f32 %v4314_v21  ;;  %4514 = vmatpush1.bf16.xpose.msra.mxu1 %v4481_v52  ;;  %v4426_v51 = vmul.f32 %v5992_v25, %v8583_v57  ;;  %v4425_v37 = vmul.f32 %v5992_v25, %v8578_v54  ;;  %v867_v25 = vld [vmem:[%s9125_s8 + $0x18] sm:$0xff] }
 0xbfc   : > { %4370 = vadd.xlane.f32.xlu1 %v4369_v41  ;;  %v8786_v8 = vpop.eup %5995  ;;  %v4317_v45 = vpop.xlane.xlu1 %4316 }
 0xbfd   : > { %v5998_v59 = vpop.eup %5997  ;;  %v4372_v55 = vadd.f32 %v8786_v8, %v8784_v32  ;;  %6011 = vrcp.f32 %v4317_v45 }
 0xbfe   : > { %v4428_v2 = vmul.f32 %v5998_v59, %v8591_v5  ;;  %v4427_v49 = vmul.f32 %v5998_v59, %v8585_v18 }
 0xbff   : > { %4373 = vadd.xlane.f32.xlu0 %v4372_v55  ;;  %v4320_v61 = vpop.xlane.xlu0 %4319 }
 0xc00   : > { %v8794_v26 = vpop.eup %5999  ;;  %6013 = vrcp.f32 %v4320_v61  ;;  %v4484_v23 = vpack.c.bf16 %v4428_v2, %v4426_v51  ;;  %v4483_v16 = vpack.c.bf16 %v4427_v49, %v4425_v37  ;;  %v6073_v37 = vld [vmem:[%s9126_s9 + $0x8] sm:$0xff]   ;;  %v9948_v61 = vld [vmem:[#allocation90_spill] sm:$0xff] }
 0xc01   : > { %v8796_v33 = vpop.eup %6001 }
 0xc02   : > { %v4375_v1 = vadd.f32 %v8796_v33, %v8794_v26  ;;  %v6004_v57 = vpop.eup %6003  ;;  %4515 = vmatprep.subr.bf16.mxu1 %v4484_v23 }
 0xc03   : > { %v8800_v42 = vpop.eup %6005  ;;  %4516 = vmatpush1.bf16.xpose.msra.mxu1 %v4483_v16  ;;  %v4430_v14 = vmul.f32 %v6004_v57, %v8605_v15  ;;  %v4429_v10 = vmul.f32 %v6004_v57, %v8600_v28  ;;  %v6074_v16 = vld [vmem:[%s9126_s9] sm:$0xff]   ;;  %v4631_v57 = vld [vmem:[%s9127_s10 + $0x10] sm:$0xff] }
 0xc04   : > { %4376 = vadd.xlane.f32.xlu1 %v4375_v1  ;;  %v8802_v54 = vpop.eup %6007  ;;  %v4323_v18 = vpop.xlane.xlu1 %4322 }
 0xc05   : > { %v6010_v5 = vpop.eup %6009  ;;  %v4378_v31 = vadd.f32 %v8802_v54, %v8800_v42  ;;  %6015 = vrcp.f32 %v4323_v18  ;;  %v9949_v18 = vld [vmem:[#allocation83_spill] sm:$0xff] }
 0xc06   : > { %v4432_v4 = vmul.f32 %v6010_v5, %v8613_v63  ;;  %v4431_v62 = vmul.f32 %v6010_v5, %v8607_v29 }
 0xc07   : > { %4379 = vadd.xlane.f32.xlu0 %v4378_v31  ;;  %v4326_v47 = vpop.xlane.xlu0 %4325  ;;  %v6012_v27 = vpop.eup %6011 }
 0xc08   : > { %6017 = vrcp.f32 %v4326_v47  ;;  %v4486_v3 = vpack.c.bf16 %v4432_v4, %v4430_v14  ;;  %v4485_v44 = vpack.c.bf16 %v4431_v62, %v4429_v10  ;;  %v4434_v48 = vmul.f32 %v6012_v27, %v8624_v6  ;;  %v9950_v14 = vld [vmem:[#allocation81_spill] sm:$0xff] }
 0xc09   : > { %v4433_v29 = vmul.f32 %v6012_v27, %v8622_v13  ;;  %v4632_v27 = vld [vmem:[%s9127_s10 + $0x18] sm:$0xff] }
 0xc0a   : > { %v6014_v39 = vpop.eup %6013  ;;  %4517 = vmatprep.subr.bf16.mxu1 %v4486_v3  ;;  %v9951_v3 = vld [vmem:[#allocation80_spill] sm:$0xff] }
 0xc0b   : > { %4518 = vmatpush1.bf16.xpose.msra.mxu1 %v4485_v44  ;;  %v4436_v15 = vmul.f32 %v6014_v39, %v8632_v30  ;;  %v4435_v63 = vmul.f32 %v6014_v39, %v8626_v19  ;;  %v9952_v39 = vld [vmem:[#allocation84_spill] sm:$0xff] }
 0xc0c   : > { %v4329_v21 = vpop.xlane.xlu1 %4328 }
 0xc0d   : > { %v4488_v53 = vpack.c.bf16 %v4436_v15, %v4434_v48  ;;  %6019 = vrcp.f32 %v4329_v21  ;;  %v4487_v41 = vpack.c.bf16 %v4435_v63, %v4433_v29  ;;  %v9954_v29 = vld [vmem:[#allocation91_spill] sm:$0xff] }
 0xc0f   : > { %v4332_v28 = vpop.xlane.xlu0 %4331  ;;  %4519 = vmatprep.subr.bf16.mxu1 %v4488_v53  ;;  %v6016_v52 = vpop.eup %6015  ;;  %v9953_v53 = vld [vmem:[#allocation82_spill] sm:$0xff] }
 0xc10   : > { %6021 = vrcp.f32 %v4332_v28  ;;  %v4438_v6 = vmul.f32 %v6016_v52, %v8640_v46  ;;  %v4437_v51 = vmul.f32 %v6016_v52, %v8638_v38 }
 0xc12   : > { %v6018_v45 = vpop.eup %6017 }
 0xc13   : > { %4520 = vmatpush1.bf16.xpose.msra.mxu1 %v4487_v41  ;;  %v4440_v30 = vmul.f32 %v6018_v45, %v8648_v12  ;;  %v4439_v55 = vmul.f32 %v6018_v45, %v8642_v40  ;;  %v4629_v12 = vld [vmem:[%s9127_s10] sm:$0xff] }
 0xc14   : > { %v4335_v19 = vpop.xlane.xlu1 %4334 }
 0xc15   : > { %885 = vperm.xlu1 %5272, %v867_v25   ;;  %v4490_v59 = vpack.c.bf16 %v4440_v30, %v4438_v6  ;;  %6023 = vrcp.f32 %v4335_v19  ;;  %v4489_v46 = vpack.c.bf16 %v4439_v55, %v4437_v51 }
 0xc17   : > { %v4338_v13 = vpop.xlane.xlu0 %4337  ;;  %4521 = vmatprep.subr.bf16.mxu1 %v4490_v59  ;;  %v6020_v2 = vpop.eup %6019 }
 0xc18   : > { %6025 = vrcp.f32 %v4338_v13  ;;  %v4442_v40 = vmul.f32 %v6020_v2, %v8656_v35  ;;  %v4630_v35 = vld [vmem:[%s9127_s10 + $0x8] sm:$0xff]  ;;  %v4441_v4 = vmul.f32 %v6020_v2, %v9950_v14  ;;  %v9961_v14 = vld [vmem:[#allocation94_spill] sm:$0xff] }
 0xc19   : > { %4554 = vrot.lane.b32.xlu1 %v6073_v37, %s6094_s21 }
 0xc1a   : > { %v6022_v49 = vpop.eup %6021 }
 0xc1b   : > { %4522 = vmatpush1.bf16.xpose.msra.mxu1 %v4489_v46  ;;  %v4444_v23 = vmul.f32 %v6022_v49, %v9948_v61  ;;  %v4443_v5 = vmul.f32 %v6022_v49, %v9949_v18  ;;  %v9955_v49 = vld [vmem:[#allocation89_spill] sm:$0xff] }
 0xc1c   : > { %v4341_v38 = vpop.xlane.xlu1 %4340 }
 0xc1d   : > { %4635 = vperm.xlu1 %5272, %v4629_v12   ;;  %4552 = vrot.lane.b32.xlu0 %v6074_v16, %s6094_s21  ;;  %v4492_v1 = vpack.c.bf16 %v4444_v23, %v4442_v40  ;;  %6027 = vrcp.f32 %v4341_v38  ;;  %v4491_v62 = vpack.c.bf16 %v4443_v5, %v4441_v4  ;;  %v9957_v38 = vld [vmem:[#allocation86_spill] sm:$0xff]  ;;  %v9959_v5 = vld [vmem:[#allocation93_spill] sm:$0xff] }
 0xc1f   : > { %v4344_v31 = vpop.xlane.xlu0 %4343  ;;  %4523 = vmatprep.subr.bf16.mxu1 %v4492_v1  ;;  %v6024_v10 = vpop.eup %6023 }
 0xc20   : > { %6029 = vrcp.f32 %v4344_v31  ;;  %v4446_v44 = vmul.f32 %v6024_v10, %v9951_v3  ;;  %v4445_v52 = vmul.f32 %v6024_v10, %v9954_v29  ;;  %v9960_v31 = vld [vmem:[#allocation92_spill] sm:$0xff] }
 0xc21   : > { %4645 = vperm.xlu1 %5272, %v4631_v57   ;;  %4640 = vperm.xlu0 %5271, %v4630_v35   ;;  %v9958_v57 = vld [vmem:[#allocation95_spill] sm:$0xff] }
 0xc22   : > { %v6026_v47 = vpop.eup %6025 }
 0xc23   : > { %4524 = vmatpush1.bf16.xpose.msra.mxu1 %v4491_v62  ;;  %v4448_v48 = vmul.f32 %v6026_v47, %v9952_v39  ;;  %v4447_v63 = vmul.f32 %v6026_v47, %v9953_v53 }
 0xc24   : > { %v4347_v15 = vpop.xlane.xlu1 %4346 }
 0xc25   : > { %4650 = vperm.xlu0 %5271, %v4632_v27   ;;  %6031 = vrcp.f32 %v4347_v15  ;;  %v4494_v21 = vpack.c.bf16 %v4448_v48, %v4446_v44  ;;  %v4493_v25 = vpack.c.bf16 %v4447_v63, %v4445_v52 }
 0xc26   : > { %v4350_v28 = vpop.xlane.xlu0 %4349 }
 0xc27   : > { %6033 = vrcp.f32 %v4350_v28  ;;  %4525 = vmatprep.subr.bf16.mxu1 %v4494_v21  ;;  %v6028_v41 = vpop.eup %6027 }
 0xc28   : > { %v4450_v6 = vmul.f32 %v6028_v41, %v8688_v34  ;;  %v4449_v2 = vmul.f32 %v6028_v41, %v8686_v22 }
 0xc2a   : > { %v6030_v45 = vpop.eup %6029 }
 0xc2b   : > { %4526 = vmatpush1.bf16.xpose.msra.mxu1 %v4493_v25  ;;  %v4452_v30 = vmul.f32 %v6030_v45, %v8696_v58  ;;  %v4451_v55 = vmul.f32 %v6030_v45, %v8690_v56  ;;  %v9956_v58 = vld [vmem:[#allocation88_spill] sm:$0xff] }
 0xc2c   : > { %v4353_v19 = vpop.xlane.xlu1 %4352 }
 0xc2d   : > { %6035 = vrcp.f32 %v4353_v19  ;;  %v4496_v59 = vpack.c.bf16 %v4452_v30, %v4450_v6  ;;  %v4495_v46 = vpack.c.bf16 %v4451_v55, %v4449_v2 }
 0xc2e   : > { %v4356_v13 = vpop.xlane.xlu0 %4355 }
 0xc2f   : > { %v6032_v51 = vpop.eup %6031  ;;  %6037 = vrcp.f32 %v4356_v13  ;;  %4527 = vmatprep.subr.bf16.mxu1 %v4496_v59  ;;  %v9962_v13 = vld [vmem:[#allocation18_spill] sm:$0xff] }
 0xc30   : > { %v4454_v12 = vmul.f32 %v6032_v51, %v8704_v17  ;;  %v4453_v56 = vmul.f32 %v6032_v51, %v9957_v38 }
 0xc31   : > { %v6034_v37 = vpop.eup %6033 }
 0xc32   : > { %v4456_v40 = vmul.f32 %v6034_v37, %v9955_v49  ;;  %v4455_v61 = vmul.f32 %v6034_v37, %v9956_v58 }
 0xc33   : > { %4528 = vmatpush1.bf16.xpose.msra.mxu1 %v4495_v46 }
 0xc34   : > { %v4498_v34 = vpack.c.bf16 %v4456_v40, %v4454_v12  ;;  %v4497_v1 = vpack.c.bf16 %v4455_v61, %v4453_v56  ;;  %v9964_v56 = vmov 0  }
 0xc36   : > { %4529 = vmatprep.subr.bf16.mxu1 %v4498_v34 }
 0xc37   : > { %v6036_v23 = vpop.eup %6035 }
 0xc38   : > { %v4458_v18 = vmul.f32 %v6036_v23, %v9958_v57  ;;  %v4457_v4 = vmul.f32 %v6036_v23, %v9961_v14 }
 0xc39   : > { %v6038_v16 = vpop.eup %6037 }
 0xc3a   : > { %v4460_v22 = vmul.f32 %v6038_v16, %v9959_v5  ;;  %v4459_v17 = vmul.f32 %v6038_v16, %v9960_v31 }
 0xc3b   : > { %4530 = vmatpush1.bf16.xpose.msra.mxu1 %v4497_v1 }
 0xc3c   : > { %v4500_v35 = vpack.c.bf16 %v4460_v22, %v4458_v18  ;;  %v4499_v10 = vpack.c.bf16 %v4459_v17, %v4457_v4 }
 0xc3e   : > { %4531 = vmatprep.subr.bf16.mxu1 %v4500_v35 }
 0xc43   : > { %4532 = vmatpush1.bf16.xpose.msra.mxu1 %v4499_v10 }
 0xc78   : > { %v4359_v62 = vpop.xlane.xlu1 %4358 }
 0xc79   : > { %6039 = vrcp.f32 %v4359_v62  ;;  %v6075_v62 = vld [vmem:[%s6201_s0] sm:$0xff] }
 0xc7b   : > { %v4362_v47 = vpop.xlane.xlu0 %4361 }
 0xc7c   : > { %6041 = vrcp.f32 %v4362_v47 }
 0xc80   : > { %v4365_v27 = vpop.xlane.xlu1 %4364 }
 0xc81   : > { %6043 = vrcp.f32 %v4365_v27 }
 0xc83   : > { %v6040_v3 = vpop.eup %6039 }
 0xc84   : > { %v4368_v44 = vpop.xlane.xlu0 %4367  ;;  %v4462_v48 = vmul.f32 %v6040_v3, %v8740_v0  ;;  %v4461_v21 = vmul.f32 %v6040_v3, %v8738_v24 }
 0xc85   : > { %6045 = vrcp.f32 %v4368_v44  ;;  %v6076_v44 = vld [vmem:[%s6201_s0 + $0x8] sm:$0xff] }
 0xc86   : > { %v6042_v39 = vpop.eup %6041 }
 0xc87   : > { %v4464_v15 = vmul.f32 %v6042_v39, %v8748_v11  ;;  %v4463_v53 = vmul.f32 %v6042_v39, %v8746_v50 }
 0xc89   : > { %v4371_v63 = vpop.xlane.xlu1 %4370  ;;  %v4502_v28 = vpack.c.bf16 %v4464_v15, %v4462_v48  ;;  %v4501_v29 = vpack.c.bf16 %v4463_v53, %v4461_v21  ;;  %v6077_v15 = vld [vmem:[%s6201_s0 + $0x10] sm:$0xff]  ;;  %v6078_v53 = vld [vmem:[%s6201_s0 + $0x18] sm:$0xff] }
 0xc8a   : > { %6047 = vrcp.f32 %v4371_v63 }
 0xc8b   : > { %4533 = vmatprep.subr.bf16.mxu1 %v4502_v28  ;;  %v6044_v41 = vpop.eup %6043 }
 0xc8c   : > { %4534 = vmatpush1.bf16.xpose.msra.mxu1 %v4501_v29  ;;  %v4374_v52 = vpop.xlane.xlu0 %4373  ;;  %v4466_v6 = vmul.f32 %v6044_v41, %v8760_v9  ;;  %v4465_v11 = vmul.f32 %v6044_v41, %v8758_v7 }
 0xc8d   : > { %6049 = vrcp.f32 %v4374_v52 }
 0xc8f   : > { %v6046_v25 = vpop.eup %6045 }
 0xc90   : > { %v4468_v0 = vmul.f32 %v6046_v25, %v8768_v43  ;;  %v4467_v24 = vmul.f32 %v6046_v25, %v8766_v20 }
 0xc91   : > { %v4377_v45 = vpop.xlane.xlu1 %4376 }
 0xc92   : > { %v4504_v50 = vpack.c.bf16 %v4468_v0, %v4466_v6  ;;  %v4503_v30 = vpack.c.bf16 %v4467_v24, %v4465_v11  ;;  %6051 = vrcp.f32 %v4377_v45  ;;  %v6079_v24 = vld [vmem:[%s6201_s0 + $0x20] sm:$0xff] }
 0xc94   : > { %v4380_v19 = vpop.xlane.xlu0 %4379  ;;  %4535 = vmatprep.subr.bf16.mxu1 %v4504_v50  ;;  %v6048_v55 = vpop.eup %6047 }
 0xc95   : > { %v886_v59 = vpop.permute.xlu1 %885  ;;  %6053 = vrcp.f32 %v4380_v19  ;;  %4536 = vmatpush1.bf16.xpose.msra.mxu1 %v4503_v30  ;;  %v4470_v9 = vmul.f32 %v6048_v55, %v8780_v36  ;;  %v4469_v7 = vmul.f32 %v6048_v55, %v8778_v60  ;;  %v9963_v60 = vld [vmem:[#allocation17_spill] sm:$0xff] }
 0xc96   : > { %v955_v51 = vadd.f32 %v9962_v13, %v886_v59 }
 0xc97   : > { %v6050_v2 = vpop.eup %6049 }
 0xc98   : > { %v3717_v37 = vpack.c.bf16 %v955_v51, %v955_v51  ;;  %v4472_v43 = vmul.f32 %v6050_v2, %v8786_v8  ;;  %v4471_v20 = vmul.f32 %v6050_v2, %v8784_v32  ;;  %v953_v32 = vadd.f32 %v9963_v60, %v886_v59  ;;  %v6080_v59 = vld [vmem:[%s6201_s0 + $0x28] sm:$0xff]  ;;  %v6081_v51 = vld [vmem:[%s6201_s0 + $0x30] sm:$0xff] }
 0xc99   : > { %v4555_v5 = vpop.permute.xlu1 %4554 }
 0xc9a   : > { %4541 = vmatprep.mubr.bf16.mxu1 %v3717_v37  ;;  %v4506_v46 = vpack.c.bf16 %v4472_v43, %v4470_v9  ;;  %v4505_v12 = vpack.c.bf16 %v4471_v20, %v4469_v7  ;;  %v3716_v38 = vpack.c.bf16 %v953_v32, %v953_v32  ;;  %v6082_v37 = vld [vmem:[%s6201_s0 + $0x38] sm:$0xff] }
 0xc9c   : > { %4537 = vmatprep.subr.bf16.mxu1 %v4506_v46  ;;  %v6052_v49 = vpop.eup %6051 }
 0xc9d   : > { %4538 = vmatpush1.bf16.xpose.msra.mxu1 %v4505_v12  ;;  %v4474_v34 = vmul.f32 %v6052_v49, %v8796_v33  ;;  %v4473_v61 = vmul.f32 %v6052_v49, %v8794_v26  ;;  %v4636_v22 = vpop.permute.xlu1 %4635 }
 0xc9f   : > { %v6054_v40 = vpop.eup %6053 }
 0xca0   : > { %v4476_v58 = vmul.f32 %v6054_v40, %v8802_v54  ;;  %v4475_v36 = vmul.f32 %v6054_v40, %v8800_v42  ;;  %v4553_v42 = vpop.permute.xlu0 %4552 }
 0xca1   : > { %v4646_v29 = vpop.permute.xlu1 %4645 }
 0xca2   : > { %v4508_v8 = vpack.c.bf16 %v4476_v58, %v4474_v34  ;;  %v4507_v23 = vpack.c.bf16 %v4475_v36, %v4473_v61 }
 0xca4   : > { %4539 = vmatprep.subr.bf16.mxu1 %v4508_v8  ;;  %v4641_v14 = vpop.permute.xlu0 %4640 }
 0xca5   : > { %4540 = vmatpush1.bf16.xpose.msra.mxu1 %v4507_v23 }
 0xca8   : > { %v4651_v6 = vpop.permute.xlu0 %4650 }
 0xcac   : > { %4542 = vmatmul.mubr.bf16.vlgmr.msra.gmra.mrb[144].mxu1 %v3716_v38 }
 0xcad   : > { %4600 = vmatprep.mubr.bf16.mxu1 %v9964_v56 }
 0xd7f   : > { %v4543_v16 = vpop.f32.mrb[144].mxu1 }
 0xd80   : > { %v4550_v1 = vpack.c.bf16 %v4543_v16, %v4543_v16  ;;  %v4545_v57 = vpop.f32.mrb[145].mxu1 }
 0xd81   : > { %v4551_v33 = vpack.c.bf16 %v4545_v57, %v4545_v57  ;;  %v4547_v18 = vpop.f32.mrb[146].mxu1 }
 0xd82   : > { %v4563_v54 = vsel %vm1050_vm1, %v4550_v1, 0  ;;  %v4548_v26 = vpop.f32.mrb[147].mxu1 }
 0xd83   : > { %5216 = vmatprep.subr.msk.bf16.mxu1 %vm1050_vm1, %v4551_v33 }
 0xd84   : > { %4569 = vmatpush1.bf16.msra.mxu1 %v4563_v54 }
 0xd87   : > { %5217 = vmatmul.mubr.msk.bf16.vlgmr.msra.gmra.mrb[72].mxu1 %vm1001_vm2, %v4553_v42 }
 0xd88   : > { %4610 = vmatprep.mubr.bf16.mxu1 %v9964_v56 }
 0xd8f   : > { %5218 = vmatmul.mubr.msk.bf16.gmra.mrb[76].mxu1 %vm1001_vm2, %v4555_v5 }
 0xe5a   : > { %v4602_v35 = vpop.f32.mrb[72].mxu1 }
 0xe5b   : > { %v4653_v31 = vadd.f32 %v4636_v22, %v4602_v35  ;;  %v4604_v17 = vpop.f32.mrb[73].mxu1 }
 0xe5c   : > { %v4654_v4 = vadd.f32 %v4636_v22, %v4604_v17  ;;  %v4606_v10 = vpop.f32.mrb[74].mxu1 }
 0xe5d   : > { %v8884_v47 = vadd.f32 %v6075_v62, %v4653_v31  ;;  %v4655_v27 = vadd.f32 %v4641_v14, %v4606_v10  ;;  %v4608_v3 = vpop.f32.mrb[75].mxu1 }
 0xe5e   : > { %v8887_v39 = vadd.f32 %v6076_v44, %v4654_v4  ;;  %v4656_v48 = vadd.f32 %v4641_v14, %v4608_v3 }
 0xe5f   : > { %v8890_v21 = vadd.f32 %v6077_v15, %v4655_v27  ;;  %v4781_v15 = vld [vmem:[%s9131_s14 + $0x10] sm:$0xff] }
 0xe60   : > { %v8893_v63 = vadd.f32 %v6078_v53, %v4656_v48  ;;  %v4685_v28 = vadd.f32 %v8887_v39, %v8884_v47  ;;  %v4780_v48 = vld [vmem:[%s9131_s14 + $0x8] sm:$0xff]  ;;  %v4779_v53 = vld [vmem:[%s9131_s14] sm:$0xff] }
 0xe62   : > { %v4612_v52 = vpop.f32.mrb[76].mxu1  ;;  %4686 = vadd.xlane.f32.xlu1 %v4685_v28  ;;  %v4688_v41 = vadd.f32 %v8893_v63, %v8890_v21  ;;  %v4952_v28 = vld [vmem:[%s9133_s16] sm:$0xff] }
 0xe63   : > { %v4657_v25 = vadd.f32 %v4646_v29, %v4612_v52  ;;  %v4614_v45 = vpop.f32.mrb[77].mxu1  ;;  %v4954_v52 = vld [vmem:[%s9133_s16 + $0x10] sm:$0xff] }
 0xe64   : > { %v4658_v0 = vadd.f32 %v4646_v29, %v4614_v45  ;;  %4689 = vadd.xlane.f32.xlu0 %v4688_v41  ;;  %v4616_v11 = vpop.f32.mrb[78].mxu1  ;;  %v4782_v29 = vld [vmem:[%s9131_s14 + $0x18] sm:$0xff]  ;;  %v4953_v41 = vld [vmem:[%s9133_s16 + $0x8] sm:$0xff] }
 0xe65   : > { %v8900_v50 = vadd.f32 %v6079_v24, %v4657_v25  ;;  %v4659_v30 = vadd.f32 %v4651_v6, %v4616_v11  ;;  %v4618_v19 = vpop.f32.mrb[79].mxu1  ;;  %v4955_v25 = vld [vmem:[%s9133_s16 + $0x18] sm:$0xff] }
 0xe66   : > { %v8903_v55 = vadd.f32 %v6080_v59, %v4658_v0  ;;  %v4660_v13 = vadd.f32 %v4651_v6, %v4618_v19 }
 0xe67   : > { %v8906_v2 = vadd.f32 %v6081_v51, %v4659_v30 }
 0xe68   : > { %v8909_v9 = vadd.f32 %v6082_v37, %v4660_v13  ;;  %v4691_v43 = vadd.f32 %v8903_v55, %v8900_v50 }
 0xe6a   : > { %4692 = vadd.xlane.f32.xlu0 %v4691_v43  ;;  %v4694_v7 = vadd.f32 %v8909_v9, %v8906_v2 }
 0xe6c   : > { %4695 = vadd.xlane.f32.xlu1 %v4694_v7 }
 0xeef   : > { %v4687_v46 = vpop.xlane.xlu1 %4686 }
 0xef1   : > { %v4690_v20 = vpop.xlane.xlu0 %4689 }
 0xef2   : > { %v4697_v12 = vadd.f32 %v4690_v20, %v4687_v46 }
 0xef7   : > { %v4693_v49 = vpop.xlane.xlu0 %4692 }
 0xef8   : > { %v4698_v40 = vadd.f32 %v4697_v12, %v4693_v49  ;;  %v4670_v12 = vld [vmem:[%s9128_s11 + $0x8] sm:$0xff]  ;;  %v4672_v49 = vld [vmem:[%s9128_s11 + $0x18] sm:$0xff] }
 0xef9   : > { %v4696_v34 = vpop.xlane.xlu1 %4695 }
 0xefa   : > { %v4699_v58 = vadd.f32 %v4698_v40, %v4696_v34  ;;  %v4678_v34 = vld [vmem:[%s9129_s12 + $0x8] sm:$0xff] }
 0xefc   : > { %v4700_v61 = vrot.slane %v4699_v58, 4 }
 0xefe   : > { %v4701_v36 = vadd.f32 %v4700_v61, %v4699_v58  ;;  %v4669_v58 = vld [vmem:[%s9128_s11] sm:$0xff]  ;;  %v4671_v61 = vld [vmem:[%s9128_s11 + $0x10] sm:$0xff] }
 0xf00   : > { %v4702_v8 = vrot.slane %v4701_v36, 2 }
 0xf02   : > { %v4703_v23 = vadd.f32 %v4702_v8, %v4701_v36  ;;  %v4674_v36 = vld [vmem:[%s9128_s11 + $0x28] sm:$0xff] }
 0xf04   : > { %v4704_v60 = vrot.slane %v4703_v23, 1 }
 0xf06   : > { %v4705_v32 = vadd.f32 %v4704_v60, %v4703_v23 }
 0xf08   : > { %v4706_v38 = vmul.f32 0.00012207031, %v4705_v32 }
 0xf0a   : > { %v8916_v16 = vsub.f32 %v8890_v21, %v4706_v38  ;;  %v8919_v1 = vsub.f32 %v8893_v63, %v4706_v38  ;;  %v8922_v57 = vsub.f32 %v8884_v47, %v4706_v38  ;;  %v4708_v33 = vsub.f32 %v8887_v39, %v4706_v38 }
 0xf0b   : > { %v8926_v18 = vsub.f32 %v8906_v2, %v4706_v38  ;;  %v8929_v54 = vsub.f32 %v8909_v9, %v4706_v38  ;;  %v8932_v26 = vsub.f32 %v8900_v50, %v4706_v38  ;;  %v8935_v42 = vsub.f32 %v8903_v55, %v4706_v38  ;;  %v4676_v38 = vld [vmem:[%s9128_s11 + $0x38] sm:$0xff] }
 0xf0c   : > { %v4717_v5 = vmul.f32 %v8916_v16, %v8916_v16  ;;  %v4718_v22 = vmul.f32 %v8919_v1, %v8919_v1  ;;  %v4715_v35 = vmul.f32 %v8922_v57, %v8922_v57  ;;  %v4716_v31 = vmul.f32 %v4708_v33, %v4708_v33 }
 0xf0d   : > { %v4721_v17 = vmul.f32 %v8926_v18, %v8926_v18  ;;  %v4722_v14 = vmul.f32 %v8929_v54, %v8929_v54  ;;  %v4719_v62 = vmul.f32 %v8932_v26, %v8932_v26  ;;  %v4720_v27 = vmul.f32 %v8935_v42, %v8935_v42 }
 0xf0e   : > { %v4726_v4 = vadd.f32 %v4718_v22, %v4717_v5  ;;  %v4723_v10 = vadd.f32 %v4716_v31, %v4715_v35  ;;  %v4673_v5 = vld [vmem:[%s9128_s11 + $0x20] sm:$0xff]  ;;  %v4675_v22 = vld [vmem:[%s9128_s11 + $0x30] sm:$0xff] }
 0xf0f   : > { %v4732_v3 = vadd.f32 %v4722_v14, %v4721_v17  ;;  %v4729_v44 = vadd.f32 %v4720_v27, %v4719_v62  ;;  %v4682_v27 = vld [vmem:[%s9129_s12 + $0x28] sm:$0xff] }
 0xf10   : > { %4727 = vadd.xlane.f32.xlu1 %v4726_v4  ;;  %4724 = vadd.xlane.f32.xlu0 %v4723_v10 }
 0xf14   : > { %4733 = vadd.xlane.f32.xlu1 %v4732_v3  ;;  %4730 = vadd.xlane.f32.xlu0 %v4729_v44  ;;  %v4684_v3 = vld [vmem:[%s9129_s12 + $0x38] sm:$0xff] }
 0xf25   : > { %4790 = vperm.xlu1 %5272, %v4780_v48  }
 0xf29   : > { %4795 = vperm.xlu1 %5272, %v4781_v15  }
 0xf2a   : > { %4785 = vperm.xlu0 %5271, %v4779_v53  }
 0xf2d   : > { %4958 = vperm.xlu1 %5272, %v4952_v28   ;;  %v4681_v28 = vld [vmem:[%s9129_s12 + $0x20] sm:$0xff] }
 0xf2e   : > { %4800 = vperm.xlu0 %5271, %v4782_v29   ;;  %v4683_v29 = vld [vmem:[%s9129_s12 + $0x30] sm:$0xff] }
 0xf31   : > { %4968 = vperm.xlu1 %5272, %v4954_v52  }
 0xf32   : > { %4963 = vperm.xlu0 %5271, %v4953_v41  }
 0xf36   : > { %4973 = vperm.xlu0 %5271, %v4955_v25  }
 0xf9d   : > { %v4728_v45 = vpop.xlane.xlu1 %4727  ;;  %v4725_v6 = vpop.xlane.xlu0 %4724 }
 0xf9e   : > { %v4735_v0 = vadd.f32 %v4728_v45, %v4725_v6 }
 0xfa1   : > { %v4731_v11 = vpop.xlane.xlu0 %4730  ;;  %v4734_v30 = vpop.xlane.xlu1 %4733 }
 0xfa2   : > { %v4736_v24 = vadd.f32 %v4735_v0, %v4731_v11 }
 0xfa4   : > { %v4737_v19 = vadd.f32 %v4736_v24, %v4734_v30  ;;  %v5281_v30 = vld [vmem:[%s9130_s13] sm:$0xff]  }
 0xfa6   : > { %v4738_v59 = vrot.slane %v4737_v19, 4 }
 0xfa8   : > { %v4739_v13 = vadd.f32 %v4738_v59, %v4737_v19  ;;  %v5282_v19 = vld [vmem:[%s9130_s13 + $0x8] sm:$0xff]  }
 0xfa9   : > { %v4786_v59 = vpop.permute.xlu0 %4785 }
 0xfaa   : > { %v4740_v51 = vrot.slane %v4739_v13, 2 }
 0xfac   : > { %v4741_v37 = vadd.f32 %v4740_v51, %v4739_v13 }
 0xfae   : > { %v4742_v43 = vrot.slane %v4741_v37, 1 }
 0xfb0   : > { %v4743_v7 = vadd.f32 %v4742_v43, %v4741_v37  ;;  %v4791_v43 = vpop.permute.xlu1 %4790 }
 0xfb2   : > { %v4744_v20 = vmul.f32 0.00012207031, %v4743_v7 }
 0xfb4   : > { %v4745_v46 = vadd.f32 1e-05, %v4744_v20 }
 0xfb6   : > { %6055 = vrsqrt.f32 %v4745_v46 }
 0xfc0   : > { %v6056_v40 = vpop.eup %6055 }
 0xfc1   : > { %v4748_v8 = vmul.f32 %v6056_v40, %v4708_v33  ;;  %v4750_v23 = vmul.f32 %v6056_v40, %v8919_v1  ;;  %v4747_v60 = vmul.f32 %v6056_v40, %v8922_v57  ;;  %v4749_v32 = vmul.f32 %v6056_v40, %v8916_v16  ;;  %v4680_v1 = vld [vmem:[%s9129_s12 + $0x18] sm:$0xff]  ;;  %v4677_v16 = vld [vmem:[%s9129_s12] sm:$0xff]  ;;  %v4679_v57 = vld [vmem:[%s9129_s12 + $0x10] sm:$0xff] }
 0xfc2   : > { %v4752_v33 = vmul.f32 %v6056_v40, %v8935_v42  ;;  %v4754_v35 = vmul.f32 %v6056_v40, %v8929_v54  ;;  %v4751_v31 = vmul.f32 %v6056_v40, %v8932_v26  ;;  %v4753_v17 = vmul.f32 %v6056_v40, %v8926_v18 }
 0xfc3   : > { %v4756_v14 = vmul.f32 %v4748_v8, %v4670_v12  ;;  %v4758_v4 = vmul.f32 %v4750_v23, %v4672_v49  ;;  %v4755_v10 = vmul.f32 %v4747_v60, %v4669_v58  ;;  %v4757_v62 = vmul.f32 %v4749_v32, %v4671_v61  ;;  %v4796_v32 = vpop.permute.xlu1 %4795 }
 0xfc4   : > { %v4760_v44 = vmul.f32 %v4752_v33, %v4674_v36  ;;  %v4762_v42 = vmul.f32 %v4754_v35, %v4676_v38  ;;  %v4759_v48 = vmul.f32 %v4751_v31, %v4673_v5  ;;  %v4761_v54 = vmul.f32 %v4753_v17, %v4675_v22  ;;  %v4801_v35 = vpop.permute.xlu0 %4800 }
 0xfc5   : > { %v4764_v15 = vadd.f32 %v4756_v14, %v4678_v34  ;;  %v4766_v26 = vadd.f32 %v4758_v4, %v4680_v1  ;;  %v4763_v53 = vadd.f32 %v4755_v10, %v4677_v16  ;;  %v4765_v18 = vadd.f32 %v4757_v62, %v4679_v57 }
 0xfc6   : > { %v4768_v52 = vadd.f32 %v4760_v44, %v4682_v27  ;;  %v4770_v41 = vadd.f32 %v4762_v42, %v4684_v3  ;;  %v4767_v6 = vadd.f32 %v4759_v48, %v4681_v28  ;;  %v4769_v0 = vadd.f32 %v4761_v54, %v4683_v29 }
 0xfc7   : > { %v4776_v25 = vpack.c.bf16 %v4766_v26, %v4764_v15  ;;  %v4775_v45 = vpack.c.bf16 %v4765_v18, %v4763_v53 }
 0xfc8   : > { %v4778_v11 = vpack.c.bf16 %v4770_v41, %v4768_v52  ;;  %v4777_v24 = vpack.c.bf16 %v4769_v0, %v4767_v6 }
 0xfc9   : > { %4819 = vmatprep.subr.bf16.mxu0 %v4776_v25 }
 0xfca   : > { %4820 = vmatpush1.bf16.msra.mxu0 %v4775_v45 }
 0xfcb   : > { %4821 = vmatprep.subr.bf16.mxu0 %v4778_v11 }
 0xfce   : > { %4822 = vmatpush1.bf16.msra.mxu0 %v4777_v24 }
 0xfd1   : > { %5221 = vmatmul.mubr.msk.bf16.vlgmr.msra.gmra.mrb[156].mxu0 %vm703_vm0, %v5281_v30 }
 0xfd2   : > { %4861 = vmatprep.mubr.bf16.mxu0 %v9964_v56 }
 0xfd9   : > { %5222 = vmatmul.mubr.msk.bf16.gmra.mrb[160].mxu0 %vm703_vm0, %v5282_v19 }
 0xfda   : > { %5024 = vmatprep.mubr.bf16.mxu0 %v9964_v56 }
0x10a4   : > { %v4853_v13 = vpop.f32.mrb[156].mxu0 }
0x10a5   : > { %v9040_v51 = vadd.f32 %v4853_v13, %v4786_v59  ;;  %v4855_v37 = vpop.f32.mrb[157].mxu0 }
0x10a6   : > { %v9042_v7 = vadd.f32 %v4855_v37, %v4786_v59  ;;  %v4857_v20 = vpop.f32.mrb[158].mxu0 }
0x10a7   : > { %v4880_v46 = vmul.f32 0.044715, %v9040_v51  ;;  %v9045_v12 = vadd.f32 %v4857_v20, %v4791_v43  ;;  %v4859_v49 = vpop.f32.mrb[159].mxu0 }
0x10a8   : > { %v4881_v40 = vmul.f32 0.044715, %v9042_v7  ;;  %v9048_v34 = vadd.f32 %v4859_v49, %v4791_v43 }
0x10a9   : > { %v4888_v58 = vmul.f32 %v4880_v46, %v9040_v51  ;;  %v4882_v61 = vmul.f32 0.044715, %v9045_v12 }
0x10aa   : > { %v4889_v36 = vmul.f32 %v4881_v40, %v9042_v7  ;;  %v4883_v8 = vmul.f32 0.044715, %v9048_v34 }
0x10ab   : > { %v4896_v23 = vmul.f32 %v4888_v58, %v9040_v51  ;;  %v4890_v60 = vmul.f32 %v4882_v61, %v9045_v12 }
0x10ac   : > { %v4897_v38 = vmul.f32 %v4889_v36, %v9042_v7  ;;  %v4891_v5 = vmul.f32 %v4883_v8, %v9048_v34  ;;  %v4863_v22 = vpop.f32.mrb[160].mxu0  ;;  %v4872_v8 = vmul.f32 0.5, %v9040_v51 }
0x10ad   : > { %v4904_v1 = vadd.f32 %v4896_v23, %v9040_v51  ;;  %v4898_v16 = vmul.f32 %v4890_v60, %v9045_v12  ;;  %v9060_v57 = vadd.f32 %v4863_v22, %v4796_v32  ;;  %v4865_v33 = vpop.f32.mrb[161].mxu0  ;;  %v4874_v23 = vmul.f32 0.5, %v9045_v12 }
0x10ae   : > { %v4899_v31 = vmul.f32 %v4891_v5, %v9048_v34  ;;  %v9063_v17 = vadd.f32 %v4865_v33, %v4796_v32  ;;  %v4867_v14 = vpop.f32.mrb[162].mxu0  ;;  %v4905_v4 = vadd.f32 %v4897_v38, %v9042_v7  ;;  %v4873_v32 = vmul.f32 0.5, %v9042_v7 }
0x10af   : > { %v4912_v10 = vmul.f32 0.7978846, %v4904_v1  ;;  %v4906_v62 = vadd.f32 %v4898_v16, %v9045_v12  ;;  %v4884_v27 = vmul.f32 0.044715, %v9060_v57  ;;  %v4868_v3 = vadd.f32 %v4867_v14, %v4801_v35  ;;  %v4869_v44 = vpop.f32.mrb[163].mxu0 }
0x10b0   : > { %v4885_v42 = vmul.f32 0.044715, %v9063_v17  ;;  %v4870_v48 = vadd.f32 %v4869_v44, %v4801_v35  ;;  %v4907_v54 = vadd.f32 %v4899_v31, %v9048_v34  ;;  %v4913_v15 = vmul.f32 0.7978846, %v4905_v4 }
0x10b1   : > { %6057 = vtanh.f32 %v4912_v10  ;;  %v4914_v26 = vmul.f32 0.7978846, %v4906_v62  ;;  %v4892_v53 = vmul.f32 %v4884_v27, %v9060_v57  ;;  %v4886_v18 = vmul.f32 0.044715, %v4868_v3 }
0x10b2   : > { %v4893_v28 = vmul.f32 %v4885_v42, %v9063_v17  ;;  %v4887_v29 = vmul.f32 0.044715, %v4870_v48  ;;  %v4915_v52 = vmul.f32 0.7978846, %v4907_v54  ;;  %6059 = vtanh.f32 %v4913_v15 }
0x10b3   : > { %6061 = vtanh.f32 %v4914_v26  ;;  %v4900_v41 = vmul.f32 %v4892_v53, %v9060_v57  ;;  %v4894_v25 = vmul.f32 %v4886_v18, %v4868_v3  ;;  %v4875_v38 = vmul.f32 0.5, %v9048_v34 }
0x10b4   : > { %v4901_v45 = vmul.f32 %v4893_v28, %v9063_v17  ;;  %v4895_v6 = vmul.f32 %v4887_v29, %v4870_v48  ;;  %6063 = vtanh.f32 %v4915_v52  ;;  %v4876_v12 = vmul.f32 0.5, %v9060_v57  ;;  %v5283_v52 = vld [vmem:[%s9132_s15] sm:$0xff]  }
0x10b5   : > { %v4908_v0 = vadd.f32 %v4900_v41, %v9060_v57  ;;  %v4902_v11 = vmul.f32 %v4894_v25, %v4868_v3  ;;  %v4878_v7 = vmul.f32 0.5, %v4868_v3  ;;  %v4877_v34 = vmul.f32 0.5, %v9063_v17  ;;  %v5284_v57 = vld [vmem:[%s9132_s15 + $0x8] sm:$0xff]  }
0x10b6   : > { %v4903_v24 = vmul.f32 %v4895_v6, %v4870_v48  ;;  %v4909_v30 = vadd.f32 %v4901_v45, %v9063_v17  ;;  %v4879_v42 = vmul.f32 0.5, %v4870_v48  ;;  %v4959_v17 = vpop.permute.xlu1 %4958 }
0x10b7   : > { %v4916_v19 = vmul.f32 0.7978846, %v4908_v0  ;;  %v4910_v59 = vadd.f32 %v4902_v11, %v4868_v3 }
0x10b8   : > { %v4911_v13 = vadd.f32 %v4903_v24, %v4870_v48  ;;  %v4917_v37 = vmul.f32 0.7978846, %v4909_v30 }
0x10b9   : > { %6065 = vtanh.f32 %v4916_v19  ;;  %v4918_v43 = vmul.f32 0.7978846, %v4910_v59 }
0x10ba   : > { %v4919_v20 = vmul.f32 0.7978846, %v4911_v13  ;;  %6067 = vtanh.f32 %v4917_v37  ;;  %v4969_v13 = vpop.permute.xlu1 %4968 }
0x10bb   : > { %v6058_v46 = vpop.eup %6057  ;;  %6069 = vtanh.f32 %v4918_v43 }
0x10bc   : > { %v6060_v49 = vpop.eup %6059  ;;  %v4928_v40 = vadd.f32 1.0, %v6058_v46  ;;  %6071 = vtanh.f32 %v4919_v20 }
0x10bd   : > { %v6062_v58 = vpop.eup %6061  ;;  %v4929_v61 = vadd.f32 1.0, %v6060_v49 }
0x10be   : > { %v6064_v36 = vpop.eup %6063  ;;  %v4930_v60 = vadd.f32 1.0, %v6062_v58  ;;  %v4936_v22 = vmul.f32 %v4928_v40, %v4872_v8 }
0x10bf   : > { %v4931_v5 = vadd.f32 1.0, %v6064_v36  ;;  %v4937_v16 = vmul.f32 %v4929_v61, %v4873_v32 }
0x10c0   : > { %v4938_v1 = vmul.f32 %v4930_v60, %v4874_v23 }
0x10c1   : > { %v4939_v33 = vmul.f32 %v4931_v5, %v4875_v38 }
0x10c2   : > { %v4948_v35 = vpack.c.bf16 %v4938_v1, %v4936_v22 }
0x10c3   : > { %v6066_v31 = vpop.eup %6065  ;;  %v4949_v14 = vpack.c.bf16 %v4939_v33, %v4937_v16 }
0x10c4   : > { %v6068_v4 = vpop.eup %6067  ;;  %v4932_v10 = vadd.f32 1.0, %v6066_v31 }
0x10c5   : > { %v6070_v62 = vpop.eup %6069  ;;  %4992 = vmatprep.subr.bf16.mxu0 %v4949_v14  ;;  %v4933_v51 = vadd.f32 1.0, %v6068_v4 }
0x10c6   : > { %v6072_v27 = vpop.eup %6071  ;;  %4993 = vmatpush1.bf16.msra.mxu0 %v4948_v35  ;;  %v4934_v44 = vadd.f32 1.0, %v6070_v62  ;;  %v4940_v15 = vmul.f32 %v4932_v10, %v4876_v12 }
0x10c7   : > { %v4935_v54 = vadd.f32 1.0, %v6072_v27  ;;  %v4941_v53 = vmul.f32 %v4933_v51, %v4877_v34 }
0x10c8   : > { %v4942_v26 = vmul.f32 %v4934_v44, %v4878_v7 }
0x10c9   : > { %v4943_v18 = vmul.f32 %v4935_v54, %v4879_v42 }
0x10ca   : > { %v4950_v28 = vpack.c.bf16 %v4942_v26, %v4940_v15 }
0x10cb   : > { %v4951_v29 = vpack.c.bf16 %v4943_v18, %v4941_v53 }
0x10cd   : > { %4994 = vmatprep.subr.bf16.mxu0 %v4951_v29 }
0x10ce   : > { %4995 = vmatpush1.bf16.msra.mxu0 %v4950_v28 }
0x10d1   : > { %5225 = vmatmul.mubr.msk.bf16.vlgmr.msra.gmra.mrb[164].mxu0 %vm703_vm0, %v5283_v52 }
0x10d2   : > { %5034 = vmatprep.mubr.bf16.mxu0 %v9964_v56  ;;  %v4964_v56 = vpop.permute.xlu0 %4963 }
0x10d6   : > { %v4974_v20 = vpop.permute.xlu0 %4973 }
0x10d9   : > { %5226 = vmatmul.mubr.msk.bf16.gmra.mrb[168].mxu0 %vm703_vm0, %v5284_v57 }
0x11a4   : > { %v5026_v3 = vpop.f32.mrb[164].mxu0 }
0x11a5   : > { %v5027_v48 = vadd.f32 %v5026_v3, %v4959_v17  ;;  %v5028_v41 = vpop.f32.mrb[165].mxu0 }
0x11a6   : > { %v5029_v25 = vadd.f32 %v5028_v41, %v4959_v17  ;;  %v5030_v45 = vpop.f32.mrb[166].mxu0 }
0x11a7   : > { %v5045_v6 = vadd.f32 %v5027_v48, %v8884_v47  ;;  %v5031_v0 = vadd.f32 %v5030_v45, %v4964_v56  ;;  %v5032_v11 = vpop.f32.mrb[167].mxu0 }
0x11a8   : > { %v5046_v24 = vadd.f32 %v5029_v25, %v8887_v39  ;;  %v5033_v30 = vadd.f32 %v5032_v11, %v4964_v56 }
0x11a9   : > { %5053 = vst [vmem:[%s9096_s29] sm:$0xff] %v5045_v6  ;;  %v5047_v19 = vadd.f32 %v5031_v0, %v8890_v21 }
0x11aa   : > { %5054 = vst [vmem:[%s9096_s29 + $0x8] sm:$0xff] %v5046_v24  ;;  %v5048_v59 = vadd.f32 %v5033_v30, %v8893_v63 }
0x11ab   : > { %5055 = vst [vmem:[%s9096_s29 + $0x10] sm:$0xff] %v5047_v19 }
0x11ac   : > { %5056 = vst [vmem:[%s9096_s29 + $0x18] sm:$0xff] %v5048_v59  ;;  %v5036_v37 = vpop.f32.mrb[168].mxu0 }
0x11ad   : > { %v5037_v47 = vadd.f32 %v5036_v37, %v4969_v13  ;;  %v5038_v43 = vpop.f32.mrb[169].mxu0 }
0x11ae   : > { %v5039_v46 = vadd.f32 %v5038_v43, %v4969_v13  ;;  %v5040_v39 = vpop.f32.mrb[170].mxu0 }
0x11af   : > { %v5049_v49 = vadd.f32 %v5037_v47, %v8900_v50  ;;  %v5041_v40 = vadd.f32 %v5040_v39, %v4974_v20  ;;  %v5042_v21 = vpop.f32.mrb[171].mxu0 }
0x11b0   : > { %v5050_v58 = vadd.f32 %v5039_v46, %v8903_v55  ;;  %v5043_v61 = vadd.f32 %v5042_v21, %v4974_v20 }
0x11b1   : > { %5057 = vst [vmem:[%s9096_s29 + $0x20] sm:$0xff] %v5049_v49  ;;  %v5051_v63 = vadd.f32 %v5041_v40, %v8906_v2 }
0x11b2   : > { %5058 = vst [vmem:[%s9096_s29 + $0x28] sm:$0xff] %v5050_v58  ;;  %v5052_v36 = vadd.f32 %v5043_v61, %v8909_v9 }
0x11b3   : > { %5059 = vst [vmem:[%s9096_s29 + $0x30] sm:$0xff] %v5051_v63 }
0x11b4   : > { %5060 = vst [vmem:[%s9096_s29 + $0x38] sm:$0xff] %v5052_v36 }
0x11b5 PF: > { %s9966_s25 = sld [smem:[#allocation2_spill]] }
0x11bb   : > { %s27_s24 = sadd.s32 1, %s9966_s25  }
0x11bc   : > { %p24_p4 = scmp.ge.s32.totalorder %s27_s24, 4  }
0x11be   :  { %26 = sbr.rel (!%p24_p4) target bundleno = 3 (0x3), region = 118 }

</bundles_post_ra>
